<compile_context>
chip_gen: v7x
topology: tpu7x:2x2x1
jax: 0.10.0
libtpu: 0.0.40
codegen_flags: <defaults>
</compile_context>

<pallas_src>
import functools

import numpy as np
import jax
import jax.numpy as jnp
from jax.experimental import pallas as pl
from jax.experimental.pallas import tpu as pltpu

EPS = 1e-5


# --------------------------------------------------------------------------- #
# Chip-dependent static configuration
# --------------------------------------------------------------------------- #

def _tpu_config():
    """Return (tensorcores_per_chip, vmem_limit_bytes) for the attached TPU."""
    kind = ""
    try:
        kind = jax.devices()[0].device_kind.lower().replace(" ", "")
    except Exception:
        pass
    two_tc = ("v7" in kind) or ("tpu7" in kind)        # v7x: 2 TCs, 64 MiB VMEM
    vmem_limit = (32 if two_tc else 64) * 1024 * 1024  # headroom on v7x
    return (2 if two_tc else 1), vmem_limit


def _fc2_col_tile(feat2, k2, num_tc, vmem_limit):
    """Largest 128-multiple column tile of the fc2 weight that (a) gives at
    least `num_tc` grid steps (keep both v7x TensorCores busy) and (b) keeps
    the double-buffered bf16 weight tile well inside the VMEM budget.  On a
    single-TC chip this collapses to one full-extent step."""
    budget = vmem_limit // 3
    cands = [c for c in range(feat2, 0, -128) if feat2 % c == 0] or [feat2]
    fits = lambda c: 2 * k2 * c * 2 <= budget
    for c in cands:
        if feat2 // c >= num_tc and fits(c):
            return c
    for c in cands:
        if fits(c):
            return c
    return cands[-1]


def _cparams(vmem_limit, semantics=("arbitrary",)):
    return pltpu.CompilerParams(dimension_semantics=semantics,
                                vmem_limit_bytes=vmem_limit)


# --------------------------------------------------------------------------- #
# Kernel 1: fc1 + BN1d + ReLU + fc2 + BN1d + ReLU (single fused pallas_call)
# --------------------------------------------------------------------------- #

def _fc_fused(z, w1, g1, b1, w2, g2, b2, *, col_tile, vmem_limit):
    n, k1 = z.shape
    h1dim = w1.shape[1]
    feat2 = w2.shape[1]
    assert feat2 % col_tile == 0
    # BN1d statistics reduce over the batch: the whole batch must live in one
    # block (every BlockSpec below uses the full n rows).

    def kernel(z_ref, w1_ref, g1_ref, b1_ref, w2_ref, g2_ref, b2_ref, o_ref):
        inv_n = 1.0 / n
        # stage 1 (recomputed per column tile; trivial FLOPs, keeps the grid
        # axis parallel with no cross-step state)
        h1 = jnp.dot(z_ref[...], w1_ref[...], preferred_element_type=jnp.float32)
        m1 = jnp.sum(h1, axis=0, keepdims=True) * inv_n
        c1 = h1 - m1                                   # centered -> stable var
        v1 = jnp.sum(c1 * c1, axis=0, keepdims=True) * inv_n
        a1 = jnp.maximum(
            c1 * (g1_ref[...] * jax.lax.rsqrt(v1 + EPS)) + b1_ref[...], 0.0)
        # stage 2: this grid step's fc2 column tile
        h2 = jnp.dot(a1.astype(jnp.bfloat16), w2_ref[...],
                     preferred_element_type=jnp.float32)
        m2 = jnp.sum(h2, axis=0, keepdims=True) * inv_n
        c2 = h2 - m2
        v2 = jnp.sum(c2 * c2, axis=0, keepdims=True) * inv_n
        o_ref[...] = jnp.maximum(
            c2 * (g2_ref[...] * jax.lax.rsqrt(v2 + EPS)) + b2_ref[...],
            0.0).astype(o_ref.dtype)

    return pl.pallas_call(
        kernel,
        out_shape=jax.ShapeDtypeStruct((n, feat2), jnp.bfloat16),
        grid_spec=pltpu.PrefetchScalarGridSpec(
            num_scalar_prefetch=0,
            grid=(feat2 // col_tile,),
            in_specs=[
                pl.BlockSpec((n, k1), lambda j: (0, 0)),
                pl.BlockSpec((k1, h1dim), lambda j: (0, 0)),
                pl.BlockSpec((1, h1dim), lambda j: (0, 0)),
                pl.BlockSpec((1, h1dim), lambda j: (0, 0)),
                pl.BlockSpec((h1dim, col_tile), lambda j: (0, j)),
                pl.BlockSpec((1, col_tile), lambda j: (0, j)),
                pl.BlockSpec((1, col_tile), lambda j: (0, j)),
            ],
            out_specs=pl.BlockSpec((n, col_tile), lambda j: (0, j)),
        ),
        compiler_params=_cparams(vmem_limit, ("parallel",)),
    )(z, w1, g1, b1, w2, g2, b2)


# --------------------------------------------------------------------------- #
# Kernel 2: ConvTranspose2d(128,64,4,2,1) + BN2d + ReLU, fully fused
#   - 9-tap in-kernel phase-decomposed GEMM (no im2col materialisation)
#   - BN2d stats from the f32 accumulator, phases pooled with a 0/1 matmul
# --------------------------------------------------------------------------- #
# TODO(synk): add a row-tiled two-pass BN fallback if rows*4*co f32 accumulators
# ever exceed the VMEM budget (not reachable at the shipped sizes).

def _deconv1_bn_relu(xp, w, mask, ppool, g_row, b_row, *, s, rows, ci, co,
                     vmem_limit):
    c4 = 4 * co
    pad = s + 1
    rp = xp.shape[0]                      # rows + 2*(s+1) halo rows

    def kernel(xp_ref, w_ref, m_ref, pp_ref, g_ref, b_ref, o_ref):
        acc = None
        for t in range(9):                # in-kernel 3x3 neighbourhood taps
            du, dv = t // 3 - 1, t % 3 - 1
            xs = xp_ref[pl.ds(pad + du * s + dv, rows), :]
            xs = xs * m_ref[:, pl.ds(t, 1)]          # zero cross-image reads
            d = jnp.dot(xs, w_ref[pl.ds(t * ci, ci), :],
                        preferred_element_type=jnp.float32)
            acc = d if acc is None else acc + d
        # BatchNorm2d: per-channel stats pooled over rows and the 4 phases.
        inv_cnt = 1.0 / (4.0 * rows)
        s1 = jnp.sum(acc, axis=0, keepdims=True)                     # (1, 4co)
        mean4 = jnp.dot(s1, pp_ref[...],
                        preferred_element_type=jnp.float32) * inv_cnt
        cen = acc - mean4
        sq = jnp.sum(cen * cen, axis=0, keepdims=True)
        var4 = jnp.dot(sq, pp_ref[...],
                       preferred_element_type=jnp.float32) * inv_cnt
        scale = g_ref[...] * jax.lax.rsqrt(var4 + EPS)
        o_ref[...] = jnp.maximum(cen * scale + b_ref[...], 0.0).astype(o_ref.dtype)

    return pl.pallas_call(
        kernel,
        out_shape=jax.ShapeDtypeStruct((rows, c4), jnp.bfloat16),
        grid_spec=pltpu.PrefetchScalarGridSpec(
            num_scalar_prefetch=0,
            grid=(1,),
            in_specs=[
                pl.BlockSpec((rp, ci), lambda i: (0, 0)),
                pl.BlockSpec((9 * ci, c4), lambda i: (0, 0)),
                pl.BlockSpec((rows, 9), lambda i: (0, 0)),
                pl.BlockSpec((c4, c4), lambda i: (0, 0)),
                pl.BlockSpec((1, c4), lambda i: (0, 0)),
                pl.BlockSpec((1, c4), lambda i: (0, 0)),
            ],
            out_specs=pl.BlockSpec((rows, c4), lambda i: (0, 0)),
        ),
        compiler_params=_cparams(vmem_limit),
    )(xp, w, mask, ppool, g_row, b_row)


# --------------------------------------------------------------------------- #
# Kernel 3: ConvTranspose2d(64, output_dim, 4, 2, 1) + Tanh, transposed so the
# output lane dimension is the (>=128) pixel axis instead of Co (=1).
# --------------------------------------------------------------------------- #

def _deconv2_tanh(xp, w_t, mask, bias_col, *, s2, cols, ci, vmem_limit):
    c4p = w_t.shape[0] // 9
    pad = s2 + 1
    cp = xp.shape[1]                      # cols + 2*(s2+1) halo columns

    def kernel(xp_ref, w_ref, m_ref, b_ref, o_ref):
        acc = None
        for t in range(9):
            du, dv = t // 3 - 1, t % 3 - 1
            xs = xp_ref[:, pl.ds(pad + du * s2 + dv, cols)]
            xs = xs * m_ref[pl.ds(t, 1), :]
            d = jnp.dot(w_ref[pl.ds(t * c4p, c4p), :], xs,
                        preferred_element_type=jnp.float32)
            acc = d if acc is None else acc + d
        o_ref[...] = jnp.tanh(acc + b_ref[...])

    return pl.pallas_call(
        kernel,
        out_shape=jax.ShapeDtypeStruct((c4p, cols), jnp.float32),
        grid_spec=pltpu.PrefetchScalarGridSpec(
            num_scalar_prefetch=0,
            grid=(1,),
            in_specs=[
                pl.BlockSpec((ci, cp), lambda i: (0, 0)),
                pl.BlockSpec((9 * c4p, ci), lambda i: (0, 0)),
                pl.BlockSpec((9, cols), lambda i: (0, 0)),
                pl.BlockSpec((c4p, 1), lambda i: (0, 0)),
            ],
            out_specs=pl.BlockSpec((c4p, cols), lambda i: (0, 0)),
        ),
        compiler_params=_cparams(vmem_limit),
    )(xp, w_t, mask, bias_col)


# --------------------------------------------------------------------------- #
# Phase decomposition of ConvTranspose2d(k=4, s=2, p=1) + neighbour masks
# --------------------------------------------------------------------------- #
# Output oy = 2*j + py reads padded-input rows u = j + du (u = iy + 1) with
# kernel tap ky = py + 3 - 2*du; only these four (phase, offset) pairs are valid.
_PHASE_TAPS = {(0, 0): 3, (0, 1): 1, (1, 1): 2, (1, 2): 0}


def _phase_weight(w_t):
    """torch ConvTranspose2d weight (Ci, Co, 4, 4) -> GEMM matrix (9*Ci, 4*Co).
    Rows are (tap = du*3+dv, ci); columns are (py*2+px, co)."""
    ci, co = w_t.shape[0], w_t.shape[1]
    wg = jnp.zeros((9, ci, 2, 2, co), w_t.dtype)
    for (py, du), ky in _PHASE_TAPS.items():
        for (px, dv), kx in _PHASE_TAPS.items():
            wg = wg.at[du * 3 + dv, :, py, px, :].set(w_t[:, :, ky, kx])
    return wg.reshape(9 * ci, 4 * co)


def _neighbor_mask_rows(n, s):
    """(n*s*s, 9) bf16 tap-validity mask for a row-major (b, y, x) flattening.
    Built with numpy -> folded to a compile-time constant under jit."""
    r = np.arange(n * s * s)
    y, x = (r // s) % s, r % s
    cols = []
    for t in range(9):
        du, dv = t // 3 - 1, t % 3 - 1
        cols.append((y + du >= 0) & (y + du < s) & (x + dv >= 0) & (x + dv < s))
    return jnp.asarray(np.stack(cols, axis=1).astype(np.float32), jnp.bfloat16)


def _neighbor_mask_cols(n, s2):
    """(9, n*s2*s2) bf16 tap-validity mask for a column-major flattening."""
    c = np.arange(n * s2 * s2)
    y, x = (c // s2) % s2, c % s2
    rows = []
    for t in range(9):
        du, dv = t // 3 - 1, t % 3 - 1
        rows.append((y + du >= 0) & (y + du < s2) & (x + dv >= 0) & (x + dv < s2))
    return jnp.asarray(np.stack(rows, axis=0).astype(np.float32), jnp.bfloat16)


# --------------------------------------------------------------------------- #
# Parameters
# --------------------------------------------------------------------------- #

def init_params(key, input_dim, output_dim, input_size):
    """Parameters in the PyTorch module's native layout (initialize_weights:
    Linear/ConvTranspose ~ N(0, 0.02), biases 0, BatchNorm gamma=1 / beta=0)."""
    s = input_size // 4
    feat2 = 128 * s * s
    ks = jax.random.split(key, 4)
    std = 0.02
    return {
        "fc1_w": std * jax.random.normal(ks[0], (1024, input_dim), jnp.float32),
        "fc1_b": jnp.zeros((1024,), jnp.float32),
        "bn1_g": jnp.ones((1024,), jnp.float32),
        "bn1_b": jnp.zeros((1024,), jnp.float32),
        "fc2_w": std * jax.random.normal(ks[1], (feat2, 1024), jnp.float32),
        "fc2_b": jnp.zeros((feat2,), jnp.float32),
        "bn2_g": jnp.ones((feat2,), jnp.float32),
        "bn2_b": jnp.zeros((feat2,), jnp.float32),
        "dc1_w": std * jax.random.normal(ks[2], (128, 64, 4, 4), jnp.float32),
        "dc1_b": jnp.zeros((64,), jnp.float32),
        "bn3_g": jnp.ones((64,), jnp.float32),
        "bn3_b": jnp.zeros((64,), jnp.float32),
        "dc2_w": std * jax.random.normal(ks[3], (64, output_dim, 4, 4), jnp.float32),
        "dc2_b": jnp.zeros((output_dim,), jnp.float32),
    }


def prepare_params(params, *, input_size):
    """One-time weight packing (outside the jitted forward): transpose Linear
    weights, permute fc2 columns to channel-last, build phase-packed deconv
    GEMM matrices + phase-pooling matrix, cast GEMM operands to bf16.
    fc1_b / fc2_b / dc1_b feed straight into training-mode BatchNorm and are
    cancelled by its mean subtraction, so they are dropped."""
    s = input_size // 4
    feat2 = 128 * s * s
    ci1, co1 = 128, 64
    c41 = 4 * co1
    # torch feature index (c, y, x) -> channel-last index (y, x, c)
    perm = jnp.arange(feat2).reshape(128, s, s).transpose(1, 2, 0).reshape(-1)
    row = lambda v: v.reshape(1, -1).astype(jnp.float32)

    # 0/1 phase-pool-broadcast matrix: out[j] = sum_{i: i%co==j%co} in[i]
    ppool = (np.arange(c41)[:, None] % co1 ==
             np.arange(c41)[None, :] % co1).astype(np.float32)

    # final deconv, transposed + tap-major so in-kernel slices stay sublane
    # aligned: rows = tap*c4p + (phase*co + o), cols = ci
    ci2 = co1
    co2 = params["dc2_w"].shape[1]
    c42 = 4 * co2
    c4p = ((c42 + 7) // 8) * 8
    wg2 = _phase_weight(params["dc2_w"])                       # (9*ci2, c42)
    wg2 = wg2.reshape(9, ci2, c42).transpose(0, 2, 1)          # (9, c42, ci2)
    wg2 = jnp.pad(wg2, ((0, 0), (0, c4p - c42), (0, 0)))
    wg2t = wg2.reshape(9 * c4p, ci2)
    b2 = jnp.pad(jnp.tile(params["dc2_b"], 4), (0, c4p - c42)).reshape(c4p, 1)

    return {
        "w1": params["fc1_w"].T.astype(jnp.bfloat16),
        "g1": row(params["bn1_g"]),
        "be1": row(params["bn1_b"]),
        "w2": params["fc2_w"].T[:, perm].astype(jnp.bfloat16),
        "g2": row(params["bn2_g"][perm]),
        "be2": row(params["bn2_b"][perm]),
        "wg1": _phase_weight(params["dc1_w"]).astype(jnp.bfloat16),   # (1152, 256)
        "g3t": row(jnp.tile(params["bn3_g"], 4)),
        "b3t": row(jnp.tile(params["bn3_b"], 4)),
        "ppool": jnp.asarray(ppool),                                  # (256, 256)
        "wg2t": wg2t.astype(jnp.bfloat16),                            # (72, 64)
        "b2col": b2.astype(jnp.float32),
    }


# --------------------------------------------------------------------------- #
# Forward
# --------------------------------------------------------------------------- #

def generator_forward(prep, z, *, input_size, output_dim, fc2_col_tile,
                      vmem_limit):
    n = z.shape[0]
    s = input_size // 4
    s2 = 2 * s
    ci1, co1 = 128, 64

    # ---- fc stack: one fused GEMM+BN1d+ReLU+GEMM+BN1d+ReLU kernel ----
    h2 = _fc_fused(z.astype(jnp.bfloat16), prep["w1"], prep["g1"], prep["be1"],
                   prep["w2"], prep["g2"], prep["be2"],
                   col_tile=fc2_col_tile, vmem_limit=vmem_limit)  # (n, feat2)

    # ---- deconv1: ConvTranspose2d(128, 64, 4, 2, 1) + BN2d + ReLU ----
    rows1 = n * s * s
    x2d = h2.reshape(rows1, ci1)                 # channel-last rows (fc perm)
    xp1 = jnp.pad(x2d, ((s + 1, s + 1), (0, 0)))  # halo for in-kernel taps
    mask1 = _neighbor_mask_rows(n, s)
    a1 = _deconv1_bn_relu(xp1, prep["wg1"], mask1, prep["ppool"],
                          prep["g3t"], prep["b3t"], s=s, rows=rows1,
                          ci=ci1, co=co1, vmem_limit=vmem_limit)  # (rows1, 256)

    # phase interleave -> channel-first (64, n*(2s)*(2s)) for the transposed
    # (lane-dense) final deconv; one transpose of a tiny tensor.
    cols2 = n * s2 * s2
    a1t = (a1.reshape(n, s, s, 2, 2, co1)
             .transpose(5, 0, 1, 3, 2, 4)
             .reshape(co1, cols2))
    xp2 = jnp.pad(a1t, ((0, 0), (s2 + 1, s2 + 1)))
    mask2 = _neighbor_mask_cols(n, s2)

    # ---- deconv2: ConvTranspose2d(64, output_dim, 4, 2, 1) + Tanh ----
    y2t = _deconv2_tanh(xp2, prep["wg2t"], mask2, prep["b2col"],
                        s2=s2, cols=cols2, ci=co1, vmem_limit=vmem_limit)

    # (py, px, co, n, Y, X) -> NCHW (n, co, 2Y+py, 2X+px)
    out = (y2t[:4 * output_dim]
           .reshape(2, 2, output_dim, n, s2, s2)
           .transpose(3, 2, 4, 0, 5, 1)
           .reshape(n, output_dim, 2 * s2, 2 * s2))
    return out


# --------------------------------------------------------------------------- #
# Pure-jnp reference (mirrors the PyTorch module; same bf16 matmul operands as
# the Pallas path so the comparison tolerance can be tight)
# --------------------------------------------------------------------------- #

def _im2col_zero_insert(x_nchw, k, stride, pad):
    n, c, h, w = x_nchw.shape
    up = jnp.zeros((n, c, (h - 1) * stride + 1, (w - 1) * stride + 1), x_nchw.dtype)
    up = up.at[:, :, ::stride, ::stride].set(x_nchw)
    ep = k - 1 - pad
    xp = jnp.pad(up, ((0, 0), (0, 0), (ep, ep), (ep, ep)))
    ho, wo = xp.shape[2] - k + 1, xp.shape[3] - k + 1
    pats = jnp.stack([xp[:, :, i:i + ho, j:j + wo]
                      for i in range(k) for j in range(k)], axis=-1)
    pats = pats.transpose(0, 2, 3, 1, 4).reshape(n, ho, wo, c * k * k)
    return pats.reshape(n * ho * wo, c * k * k), (n, ho, wo)


def _deconv_weight_to_gemm(w_t):
    ci, co, k, _ = w_t.shape
    return jnp.flip(w_t, axis=(2, 3)).transpose(0, 2, 3, 1).reshape(ci * k * k, co)


def _reference_forward(params, z, *, input_size, output_dim):
    f32, bf16 = jnp.float32, jnp.bfloat16
    s = input_size // 4

    def mm(a, b):
        return jnp.dot(a.astype(bf16), b.astype(bf16), preferred_element_type=f32)

    def bn_rows(h, g, b):
        mu = jnp.mean(h, axis=0, keepdims=True)
        var = jnp.mean((h - mu) ** 2, axis=0, keepdims=True)
        return (h - mu) * jax.lax.rsqrt(var + EPS) * g + b

    h = mm(z, params["fc1_w"].T) + params["fc1_b"]
    h = jnp.maximum(bn_rows(h, params["bn1_g"], params["bn1_b"]), 0.0)
    h = mm(h, params["fc2_w"].T) + params["fc2_b"]
    h = jnp.maximum(bn_rows(h, params["bn2_g"], params["bn2_b"]), 0.0)
    x = h.reshape(-1, 128, s, s)                                      # NCHW view

    p, (n, ho, wo) = _im2col_zero_insert(x, 4, 2, 1)
    y = mm(p, _deconv_weight_to_gemm(params["dc1_w"])) + params["dc1_b"]
    y = jnp.maximum(bn_rows(y, params["bn3_g"], params["bn3_b"]), 0.0)
    x = y.reshape(n, ho, wo, 64).transpose(0, 3, 1, 2)

    p, (n, ho, wo) = _im2col_zero_insert(x, 4, 2, 1)
    y = jnp.tanh(mm(p, _deconv_weight_to_gemm(params["dc2_w"])) + params["dc2_b"])
    return y.reshape(n, ho, wo, output_dim).transpose(0, 3, 1, 2)


# --------------------------------------------------------------------------- #

if __name__ == "__main__":
    batch, input_dim, output_dim, input_size = 4, 32, 1, 16

    key = jax.random.PRNGKey(0)
    kz, kp = jax.random.split(key)
    params = init_params(kp, input_dim, output_dim, input_size)
    z = jax.random.normal(kz, (batch, input_dim), jnp.float32)

    prep = prepare_params(params, input_size=input_size)

    num_tc, vmem_limit = _tpu_config()
    feat2 = 128 * (input_size // 4) ** 2
    fc2_tile = _fc2_col_tile(feat2, 1024, num_tc, vmem_limit)

    fwd = jax.jit(functools.partial(generator_forward,
                                    input_size=input_size,
                                    output_dim=output_dim,
                                    fc2_col_tile=fc2_tile,
                                    vmem_limit=vmem_limit))
    out = jax.block_until_ready(fwd(prep, z))

    assert out.shape == (batch, output_dim, input_size, input_size), out.shape
    assert bool(jnp.all(jnp.isfinite(out)))
    assert bool(jnp.all(jnp.abs(out) <= 1.0 + 1e-6))   # tanh range

    ref = jax.block_until_ready(
        jax.jit(functools.partial(_reference_forward,
                                  input_size=input_size, output_dim=output_dim)
                )(params, z))
    err = float(jnp.max(jnp.abs(out - ref)))
    assert err < 2e-2, f"kernel vs reference max abs err = {err}"
    print("KERNEL_OK")
</pallas_src>

<mosaic_0001>
module attributes {stable_mosaic.version = 11 : i64} {
  func.func @kernel(%arg0: i32, %arg1: memref<4x32xbf16, #tpu.memory_space<vmem>>, %arg2: memref<32x1024xbf16, #tpu.memory_space<vmem>>, %arg3: memref<1x1024xf32, #tpu.memory_space<vmem>>, %arg4: memref<1x1024xf32, #tpu.memory_space<vmem>>, %arg5: memref<1024x2048xbf16, #tpu.memory_space<vmem>>, %arg6: memref<1x2048xf32, #tpu.memory_space<vmem>>, %arg7: memref<1x2048xf32, #tpu.memory_space<vmem>>, %arg8: memref<4x2048xbf16, #tpu.memory_space<vmem>>) attributes {dimension_semantics = [#tpu.dimension_semantics<parallel>], iteration_bounds = array<i64: 1>, scalar_prefetch = 0 : i64, scratch_operands = 0 : i64, tpu.core_type = #tpu.core_type<tc>, window_params = [{pipeline_mode = #tpu.pipeline_mode<synchronous>, transform_indices = @transform_0, window_bounds = array<i64: 4, 32>}, {pipeline_mode = #tpu.pipeline_mode<synchronous>, transform_indices = @transform_1, window_bounds = array<i64: 32, 1024>}, {pipeline_mode = #tpu.pipeline_mode<synchronous>, transform_indices = @transform_2, window_bounds = array<i64: 1, 1024>}, {pipeline_mode = #tpu.pipeline_mode<synchronous>, transform_indices = @transform_3, window_bounds = array<i64: 1, 1024>}, {transform_indices = @transform_4, window_bounds = array<i64: 1024, 2048>}, {transform_indices = @transform_5, window_bounds = array<i64: 1, 2048>}, {transform_indices = @transform_6, window_bounds = array<i64: 1, 2048>}, {transform_indices = @transform_7, window_bounds = array<i64: 4, 2048>}]} {
    %c0 = arith.constant 0 : index
    %c0_0 = arith.constant 0 : index
    %0 = vector.load %arg1[%c0, %c0_0] : memref<4x32xbf16, #tpu.memory_space<vmem>>, vector<4x32xbf16>
    %c0_1 = arith.constant 0 : index
    %c0_2 = arith.constant 0 : index
    %1 = vector.load %arg2[%c0_1, %c0_2] : memref<32x1024xbf16, #tpu.memory_space<vmem>>, vector<32x1024xbf16>
    %cst = arith.constant dense<0.000000e+00> : vector<4x1024xf32>
    %2 = tpu.matmul %0, %1, %cst {dimension_numbers = #tpu.dot_dimension_numbers<[1], [0], [0], [1], [0, 0, 1, 1], [], []>} : vector<4x32xbf16>, vector<32x1024xbf16>, vector<4x1024xf32> -> vector<4x1024xf32>
    %cst_3 = arith.constant dense<0.000000e+00> : vector<1024xf32>
    %3 = vector.multi_reduction <add>, %2, %cst_3 [0] : vector<4x1024xf32> to vector<1024xf32>
    %4 = vector.shape_cast %3 : vector<1024xf32> to vector<1x1024xf32>
    %cst_4 = arith.constant 2.500000e-01 : f32
    %5 = vector.broadcast %cst_4 : f32 to vector<1x1024xf32>
    %6 = arith.mulf %4, %5 : vector<1x1024xf32>
    %7 = vector.broadcast %6 : vector<1x1024xf32> to vector<4x1024xf32>
    %8 = arith.subf %2, %7 : vector<4x1024xf32>
    %9 = arith.mulf %8, %8 : vector<4x1024xf32>
    %cst_5 = arith.constant dense<0.000000e+00> : vector<1024xf32>
    %10 = vector.multi_reduction <add>, %9, %cst_5 [0] : vector<4x1024xf32> to vector<1024xf32>
    %11 = vector.shape_cast %10 : vector<1024xf32> to vector<1x1024xf32>
    %cst_6 = arith.constant 2.500000e-01 : f32
    %12 = vector.broadcast %cst_6 : f32 to vector<1x1024xf32>
    %13 = arith.mulf %11, %12 : vector<1x1024xf32>
    %c0_7 = arith.constant 0 : index
    %c0_8 = arith.constant 0 : index
    %14 = vector.load %arg3[%c0_7, %c0_8] : memref<1x1024xf32, #tpu.memory_space<vmem>>, vector<1x1024xf32>
    %cst_9 = arith.constant 9.99999974E-6 : f32
    %15 = vector.broadcast %cst_9 : f32 to vector<1x1024xf32>
    %16 = arith.addf %13, %15 : vector<1x1024xf32>
    %17 = math.rsqrt %16 : vector<1x1024xf32>
    %18 = arith.mulf %14, %17 : vector<1x1024xf32>
    %19 = vector.broadcast %18 : vector<1x1024xf32> to vector<4x1024xf32>
    %20 = arith.mulf %8, %19 : vector<4x1024xf32>
    %c0_10 = arith.constant 0 : index
    %c0_11 = arith.constant 0 : index
    %21 = vector.load %arg4[%c0_10, %c0_11] : memref<1x1024xf32, #tpu.memory_space<vmem>>, vector<1x1024xf32>
    %22 = vector.broadcast %21 : vector<1x1024xf32> to vector<4x1024xf32>
    %23 = arith.addf %20, %22 : vector<4x1024xf32>
    %cst_12 = arith.constant 0.000000e+00 : f32
    %24 = vector.broadcast %cst_12 : f32 to vector<4x1024xf32>
    %25 = arith.maximumf %23, %24 : vector<4x1024xf32>
    %26 = arith.truncf %25 : vector<4x1024xf32> to vector<4x1024xbf16>
    %c0_13 = arith.constant 0 : index
    %c0_14 = arith.constant 0 : index
    %27 = vector.load %arg5[%c0_13, %c0_14] : memref<1024x2048xbf16, #tpu.memory_space<vmem>>, vector<1024x2048xbf16>
    %cst_15 = arith.constant dense<0.000000e+00> : vector<4x2048xf32>
    %28 = tpu.matmul %26, %27, %cst_15 {dimension_numbers = #tpu.dot_dimension_numbers<[1], [0], [0], [1], [0, 0, 1, 1], [], []>} : vector<4x1024xbf16>, vector<1024x2048xbf16>, vector<4x2048xf32> -> vector<4x2048xf32>
    %cst_16 = arith.constant dense<0.000000e+00> : vector<2048xf32>
    %29 = vector.multi_reduction <add>, %28, %cst_16 [0] : vector<4x2048xf32> to vector<2048xf32>
    %30 = vector.shape_cast %29 : vector<2048xf32> to vector<1x2048xf32>
    %cst_17 = arith.constant 2.500000e-01 : f32
    %31 = vector.broadcast %cst_17 : f32 to vector<1x2048xf32>
    %32 = arith.mulf %30, %31 : vector<1x2048xf32>
    %33 = vector.broadcast %32 : vector<1x2048xf32> to vector<4x2048xf32>
    %34 = arith.subf %28, %33 : vector<4x2048xf32>
    %35 = arith.mulf %34, %34 : vector<4x2048xf32>
    %cst_18 = arith.constant dense<0.000000e+00> : vector<2048xf32>
    %36 = vector.multi_reduction <add>, %35, %cst_18 [0] : vector<4x2048xf32> to vector<2048xf32>
    %37 = vector.shape_cast %36 : vector<2048xf32> to vector<1x2048xf32>
    %cst_19 = arith.constant 2.500000e-01 : f32
    %38 = vector.broadcast %cst_19 : f32 to vector<1x2048xf32>
    %39 = arith.mulf %37, %38 : vector<1x2048xf32>
    %c0_20 = arith.constant 0 : index
    %c0_21 = arith.constant 0 : index
    %40 = vector.load %arg6[%c0_20, %c0_21] : memref<1x2048xf32, #tpu.memory_space<vmem>>, vector<1x2048xf32>
    %cst_22 = arith.constant 9.99999974E-6 : f32
    %41 = vector.broadcast %cst_22 : f32 to vector<1x2048xf32>
    %42 = arith.addf %39, %41 : vector<1x2048xf32>
    %43 = math.rsqrt %42 : vector<1x2048xf32>
    %44 = arith.mulf %40, %43 : vector<1x2048xf32>
    %45 = vector.broadcast %44 : vector<1x2048xf32> to vector<4x2048xf32>
    %46 = arith.mulf %34, %45 : vector<4x2048xf32>
    %c0_23 = arith.constant 0 : index
    %c0_24 = arith.constant 0 : index
    %47 = vector.load %arg7[%c0_23, %c0_24] : memref<1x2048xf32, #tpu.memory_space<vmem>>, vector<1x2048xf32>
    %48 = vector.broadcast %47 : vector<1x2048xf32> to vector<4x2048xf32>
    %49 = arith.addf %46, %48 : vector<4x2048xf32>
    %cst_25 = arith.constant 0.000000e+00 : f32
    %50 = vector.broadcast %cst_25 : f32 to vector<4x2048xf32>
    %51 = arith.maximumf %49, %50 : vector<4x2048xf32>
    %52 = arith.truncf %51 : vector<4x2048xf32> to vector<4x2048xbf16>
    %c0_26 = arith.constant 0 : index
    %c0_27 = arith.constant 0 : index
    %53 = vector.load %arg8[%c0_26, %c0_27] : memref<4x2048xbf16, #tpu.memory_space<vmem>>, vector<4x2048xbf16>
    tpu.vector_store %arg8[%c0_26, %c0_27], %52 {strides = array<i32>} : memref<4x2048xbf16, #tpu.memory_space<vmem>>, vector<4x2048xbf16>,
    return
  }
  func.func @transform_0(%arg0: i32) -> (i32, i32) {
    %c0_i32 = arith.constant 0 : i32
    %c0_i32_0 = arith.constant 0 : i32
    %c0_i32_1 = arith.constant 0 : i32
    return %c0_i32, %c0_i32_0 : i32, i32
  }
  func.func @transform_1(%arg0: i32) -> (i32, i32) {
    %c0_i32 = arith.constant 0 : i32
    %c0_i32_0 = arith.constant 0 : i32
    %c0_i32_1 = arith.constant 0 : i32
    return %c0_i32, %c0_i32_0 : i32, i32
  }
  func.func @transform_2(%arg0: i32) -> (i32, i32) {
    %c0_i32 = arith.constant 0 : i32
    %c0_i32_0 = arith.constant 0 : i32
    %c0_i32_1 = arith.constant 0 : i32
    return %c0_i32, %c0_i32_0 : i32, i32
  }
  func.func @transform_3(%arg0: i32) -> (i32, i32) {
    %c0_i32 = arith.constant 0 : i32
    %c0_i32_0 = arith.constant 0 : i32
    %c0_i32_1 = arith.constant 0 : i32
    return %c0_i32, %c0_i32_0 : i32, i32
  }
  func.func @transform_4(%arg0: i32) -> (i32, i32) {
    %c0_i32 = arith.constant 0 : i32
    %c0_i32_0 = arith.constant 0 : i32
    return %c0_i32, %arg0 : i32, i32
  }
  func.func @transform_5(%arg0: i32) -> (i32, i32) {
    %c0_i32 = arith.constant 0 : i32
    %c0_i32_0 = arith.constant 0 : i32
    return %c0_i32, %arg0 : i32, i32
  }
  func.func @transform_6(%arg0: i32) -> (i32, i32) {
    %c0_i32 = arith.constant 0 : i32
    %c0_i32_0 = arith.constant 0 : i32
    return %c0_i32, %arg0 : i32, i32
  }
  func.func @transform_7(%arg0: i32) -> (i32, i32) {
    %c0_i32 = arith.constant 0 : i32
    %c0_i32_0 = arith.constant 0 : i32
    return %c0_i32, %arg0 : i32, i32
  }
}

module attributes {stable_mosaic.version = 11 : i64} {
  func.func @kernel(%arg0: i32, %arg1: memref<74x128xbf16, #tpu.memory_space<vmem>>, %arg2: memref<1152x256xbf16, #tpu.memory_space<vmem>>, %arg3: memref<64x9xbf16, #tpu.memory_space<vmem>>, %arg4: memref<256x256xf32, #tpu.memory_space<vmem>>, %arg5: memref<1x256xf32, #tpu.memory_space<vmem>>, %arg6: memref<1x256xf32, #tpu.memory_space<vmem>>, %arg7: memref<64x256xbf16, #tpu.memory_space<vmem>>) attributes {dimension_semantics = [#tpu.dimension_semantics<arbitrary>], iteration_bounds = array<i64: 1>, scalar_prefetch = 0 : i64, scratch_operands = 0 : i64, tpu.core_type = #tpu.core_type<tc>, window_params = [{pipeline_mode = #tpu.pipeline_mode<synchronous>, transform_indices = @transform_0, window_bounds = array<i64: 74, 128>}, {pipeline_mode = #tpu.pipeline_mode<synchronous>, transform_indices = @transform_1, window_bounds = array<i64: 1152, 256>}, {pipeline_mode = #tpu.pipeline_mode<synchronous>, transform_indices = @transform_2, window_bounds = array<i64: 64, 9>}, {pipeline_mode = #tpu.pipeline_mode<synchronous>, transform_indices = @transform_3, window_bounds = array<i64: 256, 256>}, {pipeline_mode = #tpu.pipeline_mode<synchronous>, transform_indices = @transform_4, window_bounds = array<i64: 1, 256>}, {pipeline_mode = #tpu.pipeline_mode<synchronous>, transform_indices = @transform_5, window_bounds = array<i64: 1, 256>}, {pipeline_mode = #tpu.pipeline_mode<synchronous>, transform_indices = @transform_6, window_bounds = array<i64: 64, 256>}]} {
    %c0 = arith.constant 0 : index
    %c0_0 = arith.constant 0 : index
    %0 = vector.load %arg1[%c0, %c0_0] : memref<74x128xbf16, #tpu.memory_space<vmem>>, vector<64x128xbf16>
    %c0_1 = arith.constant 0 : index
    %c0_2 = arith.constant 0 : index
    %1 = vector.load %arg3[%c0_1, %c0_2] : memref<64x9xbf16, #tpu.memory_space<vmem>>, vector<64x1xbf16>
    %2 = vector.broadcast %1 : vector<64x1xbf16> to vector<64x128xbf16>
    %3 = arith.mulf %0, %2 : vector<64x128xbf16>
    %c0_3 = arith.constant 0 : index
    %c0_4 = arith.constant 0 : index
    %4 = vector.load %arg2[%c0_3, %c0_4] : memref<1152x256xbf16, #tpu.memory_space<vmem>>, vector<128x256xbf16>
    %cst = arith.constant dense<0.000000e+00> : vector<64x256xf32>
    %5 = tpu.matmul %3, %4, %cst {dimension_numbers = #tpu.dot_dimension_numbers<[1], [0], [0], [1], [0, 0, 1, 1], [], []>} : vector<64x128xbf16>, vector<128x256xbf16>, vector<64x256xf32> -> vector<64x256xf32>
    %c1 = arith.constant 1 : index
    %c0_5 = arith.constant 0 : index
    %6 = vector.load %arg1[%c1, %c0_5] : memref<74x128xbf16, #tpu.memory_space<vmem>>, vector<64x128xbf16>
    %c0_6 = arith.constant 0 : index
    %c1_7 = arith.constant 1 : index
    %7 = vector.load %arg3[%c0_6, %c1_7] : memref<64x9xbf16, #tpu.memory_space<vmem>>, vector<64x1xbf16>
    %8 = vector.broadcast %7 : vector<64x1xbf16> to vector<64x128xbf16>
    %9 = arith.mulf %6, %8 : vector<64x128xbf16>
    %c128 = arith.constant 128 : index
    %c0_8 = arith.constant 0 : index
    %10 = vector.load %arg2[%c128, %c0_8] : memref<1152x256xbf16, #tpu.memory_space<vmem>>, vector<128x256xbf16>
    %cst_9 = arith.constant dense<0.000000e+00> : vector<64x256xf32>
    %11 = tpu.matmul %9, %10, %cst_9 {dimension_numbers = #tpu.dot_dimension_numbers<[1], [0], [0], [1], [0, 0, 1, 1], [], []>} : vector<64x128xbf16>, vector<128x256xbf16>, vector<64x256xf32> -> vector<64x256xf32>
    %12 = arith.addf %5, %11 : vector<64x256xf32>
    %c2 = arith.constant 2 : index
    %c0_10 = arith.constant 0 : index
    %13 = vector.load %arg1[%c2, %c0_10] : memref<74x128xbf16, #tpu.memory_space<vmem>>, vector<64x128xbf16>
    %c0_11 = arith.constant 0 : index
    %c2_12 = arith.constant 2 : index
    %14 = vector.load %arg3[%c0_11, %c2_12] : memref<64x9xbf16, #tpu.memory_space<vmem>>, vector<64x1xbf16>
    %15 = vector.broadcast %14 : vector<64x1xbf16> to vector<64x128xbf16>
    %16 = arith.mulf %13, %15 : vector<64x128xbf16>
    %c256 = arith.constant 256 : index
    %c0_13 = arith.constant 0 : index
    %17 = vector.load %arg2[%c256, %c0_13] : memref<1152x256xbf16, #tpu.memory_space<vmem>>, vector<128x256xbf16>
    %cst_14 = arith.constant dense<0.000000e+00> : vector<64x256xf32>
    %18 = tpu.matmul %16, %17, %cst_14 {dimension_numbers = #tpu.dot_dimension_numbers<[1], [0], [0], [1], [0, 0, 1, 1], [], []>} : vector<64x128xbf16>, vector<128x256xbf16>, vector<64x256xf32> -> vector<64x256xf32>
    %19 = arith.addf %12, %18 : vector<64x256xf32>
    %c4 = arith.constant 4 : index
    %c0_15 = arith.constant 0 : index
    %20 = vector.load %arg1[%c4, %c0_15] : memref<74x128xbf16, #tpu.memory_space<vmem>>, vector<64x128xbf16>
    %c0_16 = arith.constant 0 : index
    %c3 = arith.constant 3 : index
    %21 = vector.load %arg3[%c0_16, %c3] : memref<64x9xbf16, #tpu.memory_space<vmem>>, vector<64x1xbf16>
    %22 = vector.broadcast %21 : vector<64x1xbf16> to vector<64x128xbf16>
    %23 = arith.mulf %20, %22 : vector<64x128xbf16>
    %c384 = arith.constant 384 : index
    %c0_17 = arith.constant 0 : index
    %24 = vector.load %arg2[%c384, %c0_17] : memref<1152x256xbf16, #tpu.memory_space<vmem>>, vector<128x256xbf16>
    %cst_18 = arith.constant dense<0.000000e+00> : vector<64x256xf32>
    %25 = tpu.matmul %23, %24, %cst_18 {dimension_numbers = #tpu.dot_dimension_numbers<[1], [0], [0], [1], [0, 0, 1, 1], [], []>} : vector<64x128xbf16>, vector<128x256xbf16>, vector<64x256xf32> -> vector<64x256xf32>
    %26 = arith.addf %19, %25 : vector<64x256xf32>
    %c5 = arith.constant 5 : index
    %c0_19 = arith.constant 0 : index
    %27 = vector.load %arg1[%c5, %c0_19] : memref<74x128xbf16, #tpu.memory_space<vmem>>, vector<64x128xbf16>
    %c0_20 = arith.constant 0 : index
    %c4_21 = arith.constant 4 : index
    %28 = vector.load %arg3[%c0_20, %c4_21] : memref<64x9xbf16, #tpu.memory_space<vmem>>, vector<64x1xbf16>
    %29 = vector.broadcast %28 : vector<64x1xbf16> to vector<64x128xbf16>
    %30 = arith.mulf %27, %29 : vector<64x128xbf16>
    %c512 = arith.constant 512 : index
    %c0_22 = arith.constant 0 : index
    %31 = vector.load %arg2[%c512, %c0_22] : memref<1152x256xbf16, #tpu.memory_space<vmem>>, vector<128x256xbf16>
    %cst_23 = arith.constant dense<0.000000e+00> : vector<64x256xf32>
    %32 = tpu.matmul %30, %31, %cst_23 {dimension_numbers = #tpu.dot_dimension_numbers<[1], [0], [0], [1], [0, 0, 1, 1], [], []>} : vector<64x128xbf16>, vector<128x256xbf16>, vector<64x256xf32> -> vector<64x256xf32>
    %33 = arith.addf %26, %32 : vector<64x256xf32>
    %c6 = arith.constant 6 : index
    %c0_24 = arith.constant 0 : index
    %34 = vector.load %arg1[%c6, %c0_24] : memref<74x128xbf16, #tpu.memory_space<vmem>>, vector<64x128xbf16>
    %c0_25 = arith.constant 0 : index
    %c5_26 = arith.constant 5 : index
    %35 = vector.load %arg3[%c0_25, %c5_26] : memref<64x9xbf16, #tpu.memory_space<vmem>>, vector<64x1xbf16>
    %36 = vector.broadcast %35 : vector<64x1xbf16> to vector<64x128xbf16>
    %37 = arith.mulf %34, %36 : vector<64x128xbf16>
    %c640 = arith.constant 640 : index
    %c0_27 = arith.constant 0 : index
    %38 = vector.load %arg2[%c640, %c0_27] : memref<1152x256xbf16, #tpu.memory_space<vmem>>, vector<128x256xbf16>
    %cst_28 = arith.constant dense<0.000000e+00> : vector<64x256xf32>
    %39 = tpu.matmul %37, %38, %cst_28 {dimension_numbers = #tpu.dot_dimension_numbers<[1], [0], [0], [1], [0, 0, 1, 1], [], []>} : vector<64x128xbf16>, vector<128x256xbf16>, vector<64x256xf32> -> vector<64x256xf32>
    %40 = arith.addf %33, %39 : vector<64x256xf32>
    %c8 = arith.constant 8 : index
    %c0_29 = arith.constant 0 : index
    %41 = vector.load %arg1[%c8, %c0_29] : memref<74x128xbf16, #tpu.memory_space<vmem>>, vector<64x128xbf16>
    %c0_30 = arith.constant 0 : index
    %c6_31 = arith.constant 6 : index
    %42 = vector.load %arg3[%c0_30, %c6_31] : memref<64x9xbf16, #tpu.memory_space<vmem>>, vector<64x1xbf16>
    %43 = vector.broadcast %42 : vector<64x1xbf16> to vector<64x128xbf16>
    %44 = arith.mulf %41, %43 : vector<64x128xbf16>
    %c768 = arith.constant 768 : index
    %c0_32 = arith.constant 0 : index
    %45 = vector.load %arg2[%c768, %c0_32] : memref<1152x256xbf16, #tpu.memory_space<vmem>>, vector<128x256xbf16>
    %cst_33 = arith.constant dense<0.000000e+00> : vector<64x256xf32>
    %46 = tpu.matmul %44, %45, %cst_33 {dimension_numbers = #tpu.dot_dimension_numbers<[1], [0], [0], [1], [0, 0, 1, 1], [], []>} : vector<64x128xbf16>, vector<128x256xbf16>, vector<64x256xf32> -> vector<64x256xf32>
    %47 = arith.addf %40, %46 : vector<64x256xf32>
    %c9 = arith.constant 9 : index
    %c0_34 = arith.constant 0 : index
    %48 = vector.load %arg1[%c9, %c0_34] : memref<74x128xbf16, #tpu.memory_space<vmem>>, vector<64x128xbf16>
    %c0_35 = arith.constant 0 : index
    %c7 = arith.constant 7 : index
    %49 = vector.load %arg3[%c0_35, %c7] : memref<64x9xbf16, #tpu.memory_space<vmem>>, vector<64x1xbf16>
    %50 = vector.broadcast %49 : vector<64x1xbf16> to vector<64x128xbf16>
    %51 = arith.mulf %48, %50 : vector<64x128xbf16>
    %c896 = arith.constant 896 : index
    %c0_36 = arith.constant 0 : index
    %52 = vector.load %arg2[%c896, %c0_36] : memref<1152x256xbf16, #tpu.memory_space<vmem>>, vector<128x256xbf16>
    %cst_37 = arith.constant dense<0.000000e+00> : vector<64x256xf32>
    %53 = tpu.matmul %51, %52, %cst_37 {dimension_numbers = #tpu.dot_dimension_numbers<[1], [0], [0], [1], [0, 0, 1, 1], [], []>} : vector<64x128xbf16>, vector<128x256xbf16>, vector<64x256xf32> -> vector<64x256xf32>
    %54 = arith.addf %47, %53 : vector<64x256xf32>
    %c10 = arith.constant 10 : index
    %c0_38 = arith.constant 0 : index
    %55 = vector.load %arg1[%c10, %c0_38] : memref<74x128xbf16, #tpu.memory_space<vmem>>, vector<64x128xbf16>
    %c0_39 = arith.constant 0 : index
    %c8_40 = arith.constant 8 : index
    %56 = vector.load %arg3[%c0_39, %c8_40] : memref<64x9xbf16, #tpu.memory_space<vmem>>, vector<64x1xbf16>
    %57 = vector.broadcast %56 : vector<64x1xbf16> to vector<64x128xbf16>
    %58 = arith.mulf %55, %57 : vector<64x128xbf16>
    %c1024 = arith.constant 1024 : index
    %c0_41 = arith.constant 0 : index
    %59 = vector.load %arg2[%c1024, %c0_41] : memref<1152x256xbf16, #tpu.memory_space<vmem>>, vector<128x256xbf16>
    %cst_42 = arith.constant dense<0.000000e+00> : vector<64x256xf32>
    %60 = tpu.matmul %58, %59, %cst_42 {dimension_numbers = #tpu.dot_dimension_numbers<[1], [0], [0], [1], [0, 0, 1, 1], [], []>} : vector<64x128xbf16>, vector<128x256xbf16>, vector<64x256xf32> -> vector<64x256xf32>
    %61 = arith.addf %54, %60 : vector<64x256xf32>
    %cst_43 = arith.constant dense<0.000000e+00> : vector<256xf32>
    %62 = vector.multi_reduction <add>, %61, %cst_43 [0] : vector<64x256xf32> to vector<256xf32>
    %63 = vector.shape_cast %62 : vector<256xf32> to vector<1x256xf32>
    %c0_44 = arith.constant 0 : index
    %c0_45 = arith.constant 0 : index
    %64 = vector.load %arg4[%c0_44, %c0_45] : memref<256x256xf32, #tpu.memory_space<vmem>>, vector<256x256xf32>
    %cst_46 = arith.constant dense<0.000000e+00> : vector<1x256xf32>
    %65 = tpu.matmul %63, %64, %cst_46 {dimension_numbers = #tpu.dot_dimension_numbers<[1], [0], [0], [1], [0, 0, 1, 1], [], []>} : vector<1x256xf32>, vector<256x256xf32>, vector<1x256xf32> -> vector<1x256xf32>
    %cst_47 = arith.constant 3.906250e-03 : f32
    %66 = vector.broadcast %cst_47 : f32 to vector<1x256xf32>
    %67 = arith.mulf %65, %66 : vector<1x256xf32>
    %68 = vector.broadcast %67 : vector<1x256xf32> to vector<64x256xf32>
    %69 = arith.subf %61, %68 : vector<64x256xf32>
    %70 = arith.mulf %69, %69 : vector<64x256xf32>
    %cst_48 = arith.constant dense<0.000000e+00> : vector<256xf32>
    %71 = vector.multi_reduction <add>, %70, %cst_48 [0] : vector<64x256xf32> to vector<256xf32>
    %72 = vector.shape_cast %71 : vector<256xf32> to vector<1x256xf32>
    %c0_49 = arith.constant 0 : index
    %c0_50 = arith.constant 0 : index
    %73 = vector.load %arg4[%c0_49, %c0_50] : memref<256x256xf32, #tpu.memory_space<vmem>>, vector<256x256xf32>
    %cst_51 = arith.constant dense<0.000000e+00> : vector<1x256xf32>
    %74 = tpu.matmul %72, %73, %cst_51 {dimension_numbers = #tpu.dot_dimension_numbers<[1], [0], [0], [1], [0, 0, 1, 1], [], []>} : vector<1x256xf32>, vector<256x256xf32>, vector<1x256xf32> -> vector<1x256xf32>
    %cst_52 = arith.constant 3.906250e-03 : f32
    %75 = vector.broadcast %cst_52 : f32 to vector<1x256xf32>
    %76 = arith.mulf %74, %75 : vector<1x256xf32>
    %c0_53 = arith.constant 0 : index
    %c0_54 = arith.constant 0 : index
    %77 = vector.load %arg5[%c0_53, %c0_54] : memref<1x256xf32, #tpu.memory_space<vmem>>, vector<1x256xf32>
    %cst_55 = arith.constant 9.99999974E-6 : f32
    %78 = vector.broadcast %cst_55 : f32 to vector<1x256xf32>
    %79 = arith.addf %76, %78 : vector<1x256xf32>
    %80 = math.rsqrt %79 : vector<1x256xf32>
    %81 = arith.mulf %77, %80 : vector<1x256xf32>
    %82 = vector.broadcast %81 : vector<1x256xf32> to vector<64x256xf32>
    %83 = arith.mulf %69, %82 : vector<64x256xf32>
    %c0_56 = arith.constant 0 : index
    %c0_57 = arith.constant 0 : index
    %84 = vector.load %arg6[%c0_56, %c0_57] : memref<1x256xf32, #tpu.memory_space<vmem>>, vector<1x256xf32>
    %85 = vector.broadcast %84 : vector<1x256xf32> to vector<64x256xf32>
    %86 = arith.addf %83, %85 : vector<64x256xf32>
    %cst_58 = arith.constant 0.000000e+00 : f32
    %87 = vector.broadcast %cst_58 : f32 to vector<64x256xf32>
    %88 = arith.maximumf %86, %87 : vector<64x256xf32>
    %89 = arith.truncf %88 : vector<64x256xf32> to vector<64x256xbf16>
    %c0_59 = arith.constant 0 : index
    %c0_60 = arith.constant 0 : index
    %90 = vector.load %arg7[%c0_59, %c0_60] : memref<64x256xbf16, #tpu.memory_space<vmem>>, vector<64x256xbf16>
    tpu.vector_store %arg7[%c0_59, %c0_60], %89 {strides = array<i32>} : memref<64x256xbf16, #tpu.memory_space<vmem>>, vector<64x256xbf16>,
    return
  }
  func.func @transform_0(%arg0: i32) -> (i32, i32) {
    %c0_i32 = arith.constant 0 : i32
    %c0_i32_0 = arith.constant 0 : i32
    %c0_i32_1 = arith.constant 0 : i32
    return %c0_i32, %c0_i32_0 : i32, i32
  }
  func.func @transform_1(%arg0: i32) -> (i32, i32) {
    %c0_i32 = arith.constant 0 : i32
    %c0_i32_0 = arith.constant 0 : i32
    %c0_i32_1 = arith.constant 0 : i32
    return %c0_i32, %c0_i32_0 : i32, i32
  }
  func.func @transform_2(%arg0: i32) -> (i32, i32) {
    %c0_i32 = arith.constant 0 : i32
    %c0_i32_0 = arith.constant 0 : i32
    %c0_i32_1 = arith.constant 0 : i32
    return %c0_i32, %c0_i32_0 : i32, i32
  }
  func.func @transform_3(%arg0: i32) -> (i32, i32) {
    %c0_i32 = arith.constant 0 : i32
    %c0_i32_0 = arith.constant 0 : i32
    %c0_i32_1 = arith.constant 0 : i32
    return %c0_i32, %c0_i32_0 : i32, i32
  }
  func.func @transform_4(%arg0: i32) -> (i32, i32) {
    %c0_i32 = arith.constant 0 : i32
    %c0_i32_0 = arith.constant 0 : i32
    %c0_i32_1 = arith.constant 0 : i32
    return %c0_i32, %c0_i32_0 : i32, i32
  }
  func.func @transform_5(%arg0: i32) -> (i32, i32) {
    %c0_i32 = arith.constant 0 : i32
    %c0_i32_0 = arith.constant 0 : i32
    %c0_i32_1 = arith.constant 0 : i32
    return %c0_i32, %c0_i32_0 : i32, i32
  }
  func.func @transform_6(%arg0: i32) -> (i32, i32) {
    %c0_i32 = arith.constant 0 : i32
    %c0_i32_0 = arith.constant 0 : i32
    %c0_i32_1 = arith.constant 0 : i32
    return %c0_i32, %c0_i32_0 : i32, i32
  }
}

module attributes {stable_mosaic.version = 11 : i64} {
  func.func @kernel(%arg0: i32, %arg1: memref<64x274xbf16, #tpu.memory_space<vmem>>, %arg2: memref<72x64xbf16, #tpu.memory_space<vmem>>, %arg3: memref<9x256xbf16, #tpu.memory_space<vmem>>, %arg4: memref<8x1xf32, #tpu.memory_space<vmem>>, %arg5: memref<8x256xf32, #tpu.memory_space<vmem>>) attributes {dimension_semantics = [#tpu.dimension_semantics<arbitrary>], iteration_bounds = array<i64: 1>, scalar_prefetch = 0 : i64, scratch_operands = 0 : i64, tpu.core_type = #tpu.core_type<tc>, window_params = [{pipeline_mode = #tpu.pipeline_mode<synchronous>, transform_indices = @transform_0, window_bounds = array<i64: 64, 274>}, {pipeline_mode = #tpu.pipeline_mode<synchronous>, transform_indices = @transform_1, window_bounds = array<i64: 72, 64>}, {pipeline_mode = #tpu.pipeline_mode<synchronous>, transform_indices = @transform_2, window_bounds = array<i64: 9, 256>}, {pipeline_mode = #tpu.pipeline_mode<synchronous>, transform_indices = @transform_3, window_bounds = array<i64: 8, 1>}, {pipeline_mode = #tpu.pipeline_mode<synchronous>, transform_indices = @transform_4, window_bounds = array<i64: 8, 256>}]} {
    %c0 = arith.constant 0 : index
    %c0_0 = arith.constant 0 : index
    %0 = vector.load %arg1[%c0, %c0_0] : memref<64x274xbf16, #tpu.memory_space<vmem>>, vector<64x256xbf16>
    %c0_1 = arith.constant 0 : index
    %c0_2 = arith.constant 0 : index
    %1 = vector.load %arg3[%c0_1, %c0_2] : memref<9x256xbf16, #tpu.memory_space<vmem>>, vector<1x256xbf16>
    %2 = vector.broadcast %1 : vector<1x256xbf16> to vector<64x256xbf16>
    %3 = arith.mulf %0, %2 : vector<64x256xbf16>
    %c0_3 = arith.constant 0 : index
    %c0_4 = arith.constant 0 : index
    %4 = vector.load %arg2[%c0_3, %c0_4] : memref<72x64xbf16, #tpu.memory_space<vmem>>, vector<8x64xbf16>
    %cst = arith.constant dense<0.000000e+00> : vector<8x256xf32>
    %5 = tpu.matmul %4, %3, %cst {dimension_numbers = #tpu.dot_dimension_numbers<[1], [0], [0], [1], [0, 0, 1, 1], [], []>} : vector<8x64xbf16>, vector<64x256xbf16>, vector<8x256xf32> -> vector<8x256xf32>
    %c0_5 = arith.constant 0 : index
    %c1 = arith.constant 1 : index
    %6 = vector.load %arg1[%c0_5, %c1] : memref<64x274xbf16, #tpu.memory_space<vmem>>, vector<64x256xbf16>
    %c1_6 = arith.constant 1 : index
    %c0_7 = arith.constant 0 : index
    %7 = vector.load %arg3[%c1_6, %c0_7] : memref<9x256xbf16, #tpu.memory_space<vmem>>, vector<1x256xbf16>
    %8 = vector.broadcast %7 : vector<1x256xbf16> to vector<64x256xbf16>
    %9 = arith.mulf %6, %8 : vector<64x256xbf16>
    %c8 = arith.constant 8 : index
    %c0_8 = arith.constant 0 : index
    %10 = vector.load %arg2[%c8, %c0_8] : memref<72x64xbf16, #tpu.memory_space<vmem>>, vector<8x64xbf16>
    %cst_9 = arith.constant dense<0.000000e+00> : vector<8x256xf32>
    %11 = tpu.matmul %10, %9, %cst_9 {dimension_numbers = #tpu.dot_dimension_numbers<[1], [0], [0], [1], [0, 0, 1, 1], [], []>} : vector<8x64xbf16>, vector<64x256xbf16>, vector<8x256xf32> -> vector<8x256xf32>
    %12 = arith.addf %5, %11 : vector<8x256xf32>
    %c0_10 = arith.constant 0 : index
    %c2 = arith.constant 2 : index
    %13 = vector.load %arg1[%c0_10, %c2] : memref<64x274xbf16, #tpu.memory_space<vmem>>, vector<64x256xbf16>
    %c2_11 = arith.constant 2 : index
    %c0_12 = arith.constant 0 : index
    %14 = vector.load %arg3[%c2_11, %c0_12] : memref<9x256xbf16, #tpu.memory_space<vmem>>, vector<1x256xbf16>
    %15 = vector.broadcast %14 : vector<1x256xbf16> to vector<64x256xbf16>
    %16 = arith.mulf %13, %15 : vector<64x256xbf16>
    %c16 = arith.constant 16 : index
    %c0_13 = arith.constant 0 : index
    %17 = vector.load %arg2[%c16, %c0_13] : memref<72x64xbf16, #tpu.memory_space<vmem>>, vector<8x64xbf16>
    %cst_14 = arith.constant dense<0.000000e+00> : vector<8x256xf32>
    %18 = tpu.matmul %17, %16, %cst_14 {dimension_numbers = #tpu.dot_dimension_numbers<[1], [0], [0], [1], [0, 0, 1, 1], [], []>} : vector<8x64xbf16>, vector<64x256xbf16>, vector<8x256xf32> -> vector<8x256xf32>
    %19 = arith.addf %12, %18 : vector<8x256xf32>
    %c0_15 = arith.constant 0 : index
    %c8_16 = arith.constant 8 : index
    %20 = vector.load %arg1[%c0_15, %c8_16] : memref<64x274xbf16, #tpu.memory_space<vmem>>, vector<64x256xbf16>
    %c3 = arith.constant 3 : index
    %c0_17 = arith.constant 0 : index
    %21 = vector.load %arg3[%c3, %c0_17] : memref<9x256xbf16, #tpu.memory_space<vmem>>, vector<1x256xbf16>
    %22 = vector.broadcast %21 : vector<1x256xbf16> to vector<64x256xbf16>
    %23 = arith.mulf %20, %22 : vector<64x256xbf16>
    %c24 = arith.constant 24 : index
    %c0_18 = arith.constant 0 : index
    %24 = vector.load %arg2[%c24, %c0_18] : memref<72x64xbf16, #tpu.memory_space<vmem>>, vector<8x64xbf16>
    %cst_19 = arith.constant dense<0.000000e+00> : vector<8x256xf32>
    %25 = tpu.matmul %24, %23, %cst_19 {dimension_numbers = #tpu.dot_dimension_numbers<[1], [0], [0], [1], [0, 0, 1, 1], [], []>} : vector<8x64xbf16>, vector<64x256xbf16>, vector<8x256xf32> -> vector<8x256xf32>
    %26 = arith.addf %19, %25 : vector<8x256xf32>
    %c0_20 = arith.constant 0 : index
    %c9 = arith.constant 9 : index
    %27 = vector.load %arg1[%c0_20, %c9] : memref<64x274xbf16, #tpu.memory_space<vmem>>, vector<64x256xbf16>
    %c4 = arith.constant 4 : index
    %c0_21 = arith.constant 0 : index
    %28 = vector.load %arg3[%c4, %c0_21] : memref<9x256xbf16, #tpu.memory_space<vmem>>, vector<1x256xbf16>
    %29 = vector.broadcast %28 : vector<1x256xbf16> to vector<64x256xbf16>
    %30 = arith.mulf %27, %29 : vector<64x256xbf16>
    %c32 = arith.constant 32 : index
    %c0_22 = arith.constant 0 : index
    %31 = vector.load %arg2[%c32, %c0_22] : memref<72x64xbf16, #tpu.memory_space<vmem>>, vector<8x64xbf16>
    %cst_23 = arith.constant dense<0.000000e+00> : vector<8x256xf32>
    %32 = tpu.matmul %31, %30, %cst_23 {dimension_numbers = #tpu.dot_dimension_numbers<[1], [0], [0], [1], [0, 0, 1, 1], [], []>} : vector<8x64xbf16>, vector<64x256xbf16>, vector<8x256xf32> -> vector<8x256xf32>
    %33 = arith.addf %26, %32 : vector<8x256xf32>
    %c0_24 = arith.constant 0 : index
    %c10 = arith.constant 10 : index
    %34 = vector.load %arg1[%c0_24, %c10] : memref<64x274xbf16, #tpu.memory_space<vmem>>, vector<64x256xbf16>
    %c5 = arith.constant 5 : index
    %c0_25 = arith.constant 0 : index
    %35 = vector.load %arg3[%c5, %c0_25] : memref<9x256xbf16, #tpu.memory_space<vmem>>, vector<1x256xbf16>
    %36 = vector.broadcast %35 : vector<1x256xbf16> to vector<64x256xbf16>
    %37 = arith.mulf %34, %36 : vector<64x256xbf16>
    %c40 = arith.constant 40 : index
    %c0_26 = arith.constant 0 : index
    %38 = vector.load %arg2[%c40, %c0_26] : memref<72x64xbf16, #tpu.memory_space<vmem>>, vector<8x64xbf16>
    %cst_27 = arith.constant dense<0.000000e+00> : vector<8x256xf32>
    %39 = tpu.matmul %38, %37, %cst_27 {dimension_numbers = #tpu.dot_dimension_numbers<[1], [0], [0], [1], [0, 0, 1, 1], [], []>} : vector<8x64xbf16>, vector<64x256xbf16>, vector<8x256xf32> -> vector<8x256xf32>
    %40 = arith.addf %33, %39 : vector<8x256xf32>
    %c0_28 = arith.constant 0 : index
    %c16_29 = arith.constant 16 : index
    %41 = vector.load %arg1[%c0_28, %c16_29] : memref<64x274xbf16, #tpu.memory_space<vmem>>, vector<64x256xbf16>
    %c6 = arith.constant 6 : index
    %c0_30 = arith.constant 0 : index
    %42 = vector.load %arg3[%c6, %c0_30] : memref<9x256xbf16, #tpu.memory_space<vmem>>, vector<1x256xbf16>
    %43 = vector.broadcast %42 : vector<1x256xbf16> to vector<64x256xbf16>
    %44 = arith.mulf %41, %43 : vector<64x256xbf16>
    %c48 = arith.constant 48 : index
    %c0_31 = arith.constant 0 : index
    %45 = vector.load %arg2[%c48, %c0_31] : memref<72x64xbf16, #tpu.memory_space<vmem>>, vector<8x64xbf16>
    %cst_32 = arith.constant dense<0.000000e+00> : vector<8x256xf32>
    %46 = tpu.matmul %45, %44, %cst_32 {dimension_numbers = #tpu.dot_dimension_numbers<[1], [0], [0], [1], [0, 0, 1, 1], [], []>} : vector<8x64xbf16>, vector<64x256xbf16>, vector<8x256xf32> -> vector<8x256xf32>
    %47 = arith.addf %40, %46 : vector<8x256xf32>
    %c0_33 = arith.constant 0 : index
    %c17 = arith.constant 17 : index
    %48 = vector.load %arg1[%c0_33, %c17] : memref<64x274xbf16, #tpu.memory_space<vmem>>, vector<64x256xbf16>
    %c7 = arith.constant 7 : index
    %c0_34 = arith.constant 0 : index
    %49 = vector.load %arg3[%c7, %c0_34] : memref<9x256xbf16, #tpu.memory_space<vmem>>, vector<1x256xbf16>
    %50 = vector.broadcast %49 : vector<1x256xbf16> to vector<64x256xbf16>
    %51 = arith.mulf %48, %50 : vector<64x256xbf16>
    %c56 = arith.constant 56 : index
    %c0_35 = arith.constant 0 : index
    %52 = vector.load %arg2[%c56, %c0_35] : memref<72x64xbf16, #tpu.memory_space<vmem>>, vector<8x64xbf16>
    %cst_36 = arith.constant dense<0.000000e+00> : vector<8x256xf32>
    %53 = tpu.matmul %52, %51, %cst_36 {dimension_numbers = #tpu.dot_dimension_numbers<[1], [0], [0], [1], [0, 0, 1, 1], [], []>} : vector<8x64xbf16>, vector<64x256xbf16>, vector<8x256xf32> -> vector<8x256xf32>
    %54 = arith.addf %47, %53 : vector<8x256xf32>
    %c0_37 = arith.constant 0 : index
    %c18 = arith.constant 18 : index
    %55 = vector.load %arg1[%c0_37, %c18] : memref<64x274xbf16, #tpu.memory_space<vmem>>, vector<64x256xbf16>
    %c8_38 = arith.constant 8 : index
    %c0_39 = arith.constant 0 : index
    %56 = vector.load %arg3[%c8_38, %c0_39] : memref<9x256xbf16, #tpu.memory_space<vmem>>, vector<1x256xbf16>
    %57 = vector.broadcast %56 : vector<1x256xbf16> to vector<64x256xbf16>
    %58 = arith.mulf %55, %57 : vector<64x256xbf16>
    %c64 = arith.constant 64 : index
    %c0_40 = arith.constant 0 : index
    %59 = vector.load %arg2[%c64, %c0_40] : memref<72x64xbf16, #tpu.memory_space<vmem>>, vector<8x64xbf16>
    %cst_41 = arith.constant dense<0.000000e+00> : vector<8x256xf32>
    %60 = tpu.matmul %59, %58, %cst_41 {dimension_numbers = #tpu.dot_dimension_numbers<[1], [0], [0], [1], [0, 0, 1, 1], [], []>} : vector<8x64xbf16>, vector<64x256xbf16>, vector<8x256xf32> -> vector<8x256xf32>
    %61 = arith.addf %54, %60 : vector<8x256xf32>
    %c0_42 = arith.constant 0 : index
    %c0_43 = arith.constant 0 : index
    %62 = vector.load %arg4[%c0_42, %c0_43] : memref<8x1xf32, #tpu.memory_space<vmem>>, vector<8x1xf32>
    %63 = vector.broadcast %62 : vector<8x1xf32> to vector<8x256xf32>
    %64 = arith.addf %61, %63 : vector<8x256xf32>
    %65 = math.tanh %64 : vector<8x256xf32>
    %c0_44 = arith.constant 0 : index
    %c0_45 = arith.constant 0 : index
    %66 = vector.load %arg5[%c0_44, %c0_45] : memref<8x256xf32, #tpu.memory_space<vmem>>, vector<8x256xf32>
    tpu.vector_store %arg5[%c0_44, %c0_45], %65 {strides = array<i32>} : memref<8x256xf32, #tpu.memory_space<vmem>>, vector<8x256xf32>,
    return
  }
  func.func @transform_0(%arg0: i32) -> (i32, i32) {
    %c0_i32 = arith.constant 0 : i32
    %c0_i32_0 = arith.constant 0 : i32
    %c0_i32_1 = arith.constant 0 : i32
    return %c0_i32, %c0_i32_0 : i32, i32
  }
  func.func @transform_1(%arg0: i32) -> (i32, i32) {
    %c0_i32 = arith.constant 0 : i32
    %c0_i32_0 = arith.constant 0 : i32
    %c0_i32_1 = arith.constant 0 : i32
    return %c0_i32, %c0_i32_0 : i32, i32
  }
  func.func @transform_2(%arg0: i32) -> (i32, i32) {
    %c0_i32 = arith.constant 0 : i32
    %c0_i32_0 = arith.constant 0 : i32
    %c0_i32_1 = arith.constant 0 : i32
    return %c0_i32, %c0_i32_0 : i32, i32
  }
  func.func @transform_3(%arg0: i32) -> (i32, i32) {
    %c0_i32 = arith.constant 0 : i32
    %c0_i32_0 = arith.constant 0 : i32
    %c0_i32_1 = arith.constant 0 : i32
    return %c0_i32, %c0_i32_0 : i32, i32
  }
  func.func @transform_4(%arg0: i32) -> (i32, i32) {
    %c0_i32 = arith.constant 0 : i32
    %c0_i32_0 = arith.constant 0 : i32
    %c0_i32_1 = arith.constant 0 : i32
    return %c0_i32, %c0_i32_0 : i32, i32
  }
}

</mosaic_0001>

<bundles_post_ra>
// kernel: generator_forward.5
= control target key start
LH: loop header
LB: loop body
LE: loop exit
PB: predicated region body
PF: predicated region fallthrough
CT: control target
= control target key end

     0   :  { %9 = vsyncpa [#allocation3], 0  ;;  %s3078_s0 = inlined_call_operand.hbm [shape: bf16[64,274], index: 0, kind: input, shape index: {}]   ;;  %s3079_s1 = inlined_call_operand.hbm [shape: bf16[72,64], index: 1, kind: input, shape index: {}]   ;;  %s3080_s2 = inlined_call_operand.hbm [shape: bf16[9,256], index: 2, kind: input, shape index: {}]   ;;  %s3081_s3 = inlined_call_operand.hbm [shape: f32[8,1], index: 3, kind: input, shape index: {}]   ;;  %s3082_s4 = inlined_call_operand.hbm [shape: f32[8,256], index: 4, kind: output, shape index: {}]  }
   0x1   :  { %10 = vsyncpa [#allocation6], 0 }
   0x2   :  { %11 = vsyncpa [#allocation9], 0 }
   0x3   :  { %12 = vsyncpa [#allocation4], 0  ;;  %s2007_s15 = smov [#allocation5]   ;;  %s1889_s19 = scalar_lea.hbm %s3079_s1, 576 }
   0x4   :  { %s30_s16 = sshll.u32 %s2007_s15, 4  ;;  %p1890_p0 = scmp.ne.s32.totalorder %s3079_s1, %s1889_s19  ;;  %s31_s16 = int_to_ptr.vmem [resolvable:$true] %s30_s16 }
   0x5   :  { %p1893_p1 = scmp.lt.u32.totalorder %s1889_s19, %s3079_s1 }
   0x7   :  { %p1895_p2 = pnand %p1893_p1, %p1890_p0 }
   0x9   :  { %1898 = shalt.err (!%p1895_p2)
}
   0xa   :  { %s1899_s24 = scalar_lea.vmem %s31_s16, 576  ;;  %p1904_p4 = scmp.lt.s32.totalorder %s31_s16, %s31_s16 }
   0xb   :  { %p1900_p3 = scmp.ne.s32.totalorder %s31_s16, %s1899_s24  ;;  %p1905_p5 = scmp.lt.s32.totalorder %s1899_s24, %s1899_s24 }
   0xd   :  { %p1906_p6 = por %p1905_p5, %p1904_p4 }
   0xf   :  { %p1907_p7 = pnand %p1906_p6, %p1900_p3 }
  0x11   :  { %1910 = shalt.err (!%p1907_p7)
}
  0x12   :  { %s2008_s25 = smov 64   ;;  %s2009_s26 = smov 4  }
  0x13   :  { %36 = dma.hbm_to_vmem [thread:$0]  %s3079_s1, 576, %s31_s16, [#allocation6], %s2008_s25, %s2008_s25, %s2009_s26  }
  0x14   :  { %s2010_s29 = smov [#allocation2]   ;;  %s1911_s7 = scalar_lea.hbm %s3078_s0, 1536 }
  0x15   :  { %s18_s30 = sshll.u32 %s2010_s29, 4  ;;  %p1912_p8 = scmp.ne.s32.totalorder %s3078_s0, %s1911_s7  ;;  %s19_s30 = int_to_ptr.vmem [resolvable:$true] %s18_s30 }
  0x16   :  { %p1915_p9 = scmp.lt.u32.totalorder %s1911_s7, %s3078_s0 }
  0x18   :  { %p1917_p10 = pnand %p1915_p9, %p1912_p8 }
  0x1a   :  { %1920 = shalt.err (!%p1917_p10)
}
  0x1b   :  { %s1921_s12 = scalar_lea.vmem %s19_s30, 1536  ;;  %p1926_p12 = scmp.lt.s32.totalorder %s19_s30, %s19_s30 }
  0x1c   :  { %p1922_p11 = scmp.ne.s32.totalorder %s19_s30, %s1921_s12  ;;  %p1927_p13 = scmp.lt.s32.totalorder %s1921_s12, %s1921_s12 }
  0x1e   :  { %p1928_p0 = por %p1927_p13, %p1926_p12 }
  0x20   :  { %p1929_p1 = pnand %p1928_p0, %p1922_p11 }
  0x22   :  { %1932 = shalt.err (!%p1929_p1)
}
  0x23   :  { %s2011_s1 = smov 192   ;;  %s2012_s13 = smov 12  }
  0x24   :  { %24 = dma.hbm_to_vmem [thread:$0]  %s3078_s0, 1536, %s19_s30, [#allocation3], %s2011_s1, %s2011_s1, %s2012_s13  }
  0x25   :  { %s2013_s16 = smov [#allocation7]   ;;  %s1933_s20 = scalar_lea.hbm %s3080_s2, 256 }
  0x26   :  { %s42_s17 = sshll.u32 %s2013_s16, 4  ;;  %p1934_p2 = scmp.ne.s32.totalorder %s3080_s2, %s1933_s20  ;;  %s43_s17 = int_to_ptr.vmem [resolvable:$true] %s42_s17 }
  0x27   :  { %p1937_p3 = scmp.lt.u32.totalorder %s1933_s20, %s3080_s2 }
  0x29   :  { %p1939_p4 = pnand %p1937_p3, %p1934_p2 }
  0x2b   :  { %1942 = shalt.err (!%p1939_p4)
}
  0x2c   :  { %s1943_s25 = scalar_lea.vmem %s43_s17, 256  ;;  %p1948_p6 = scmp.lt.s32.totalorder %s43_s17, %s43_s17 }
  0x2d   :  { %p1944_p5 = scmp.ne.s32.totalorder %s43_s17, %s1943_s25  ;;  %p1949_p7 = scmp.lt.s32.totalorder %s1943_s25, %s1943_s25 }
  0x2f   :  { %p1950_p8 = por %p1949_p7, %p1948_p6 }
  0x31   :  { %p1951_p9 = pnand %p1950_p8, %p1944_p5 }
  0x33   :  { %1954 = shalt.err (!%p1951_p9)
}
  0x34   :  { %s2014_s0 = smov 128   ;;  %s2015_s26 = smov 8  }
  0x35   :  { %48 = dma.hbm_to_vmem [thread:$0]  %s3080_s2, 256, %s43_s17, [#allocation6], %s2014_s0, %s2014_s0, %s2015_s26  }
  0x36   :  { %s2016_s29 = smov [#allocation8]   ;;  %s1955_s7 = scalar_lea.hbm %s3081_s3, 128 }
  0x37   :  { %s55_s30 = sshll.u32 %s2016_s29, 4  ;;  %p1956_p10 = scmp.ne.s32.totalorder %s3081_s3, %s1955_s7  ;;  %s56_s30 = int_to_ptr.vmem [resolvable:$true] %s55_s30 }
  0x38   :  { %p1959_p11 = scmp.lt.u32.totalorder %s1955_s7, %s3081_s3 }
  0x3a   :  { %p1961_p12 = pnand %p1959_p11, %p1956_p10 }
  0x3c   :  { %1964 = shalt.err (!%p1961_p12)
}
  0x3d   :  { %s1965_s12 = scalar_lea.vmem %s56_s30, 128  ;;  %p1970_p0 = scmp.lt.s32.totalorder %s56_s30, %s56_s30 }
  0x3e   :  { %p1966_p13 = scmp.ne.s32.totalorder %s56_s30, %s1965_s12  ;;  %p1971_p1 = scmp.lt.s32.totalorder %s1965_s12, %s1965_s12 }
  0x40   :  { %p1972_p2 = por %p1971_p1, %p1970_p0 }
  0x42   :  { %p1973_p3 = pnand %p1972_p2, %p1966_p13 }
  0x44   :  { %1976 = shalt.err (!%p1973_p3)
}
  0x45   :  { %58 = dma.hbm_to_vmem [thread:$0]  %s3081_s3, 128, %s56_s30, [#allocation9]  }
  0x46   :  { %1999 = dma.done.wait [#allocation3], 1536  }
  0x47   :  { %2000 = vsyncadd [#allocation3], 4294965760 }
  0x48   :  { %2001 = dma.done.wait [#allocation6], 832  }
  0x49   :  { %2002 = vsyncadd [#allocation6], 4294966464 }
  0x4a   :  { %2003 = dma.done.wait [#allocation9], 128  }
  0x4b   :  { %2004 = vsyncadd [#allocation9], 4294967168  ;;  %v89_v0 = vlaneseq  ;;  %v388_v6 = vld [vmem:[#allocation7] sm:$0x22]  ;;  %v758_v7 = vld [vmem:[#allocation7] sm:$0x44] }
  0x4c   :  { %v1128_v8 = vld [vmem:[#allocation7] sm:$0x88]  ;;  %v1741_v9 = vcombine.low %v388_v6, %v388_v6  ;;  %v1742_v10 = vcombine.high %v388_v6, %v388_v6  ;;  %v1771_v11 = vcombine.low %v758_v7, %v758_v7  ;;  %v1772_v12 = vcombine.high %v758_v7, %v758_v7  ;;  %v80_v13 = vld [vmem:[#allocation7] sm:$0x11]  ;;  %v1498_v30 = vld [vmem:[#allocation7 + $0x8] sm:$0x11] }
  0x4d   :  { %v90_v1 = vshrl.u32 %v89_v0, 7  ;;  %v1801_v14 = vcombine.low %v1128_v8, %v1128_v8  ;;  %v2114_v15 = vcombine.high %v1128_v8, %v1128_v8  ;;  %v1715_v16 = vcombine.low %v80_v13, %v80_v13  ;;  %s2017_s3 = smov 2   ;;  %s2018_s13 = smov 9  }
  0x4e   :  { %v1716_v17 = vcombine.high %v80_v13, %v80_v13  ;;  %v395_v18 = vpack.i.b16 %v1741_v9, %v1741_v9  ;;  %v402_v19 = vpack.i.b16 %v1742_v10, %v1742_v10  ;;  %v765_v20 = vpack.i.b16 %v1771_v11, %v1771_v11  ;;  %s2019_s14 = smov 16   ;;  %s2020_s15 = smov 1   ;;  %v2136_v13 = vld [vmem:[#allocation2 + $0x14] sm:$0xf] }
  0x4f   :  { %v2108_v2 = vsub.s32 1, %v90_v1  ;;  %v2110_v3 = vsub.s32 2, %v90_v1  ;;  %v2112_v4 = vsub.s32 3, %v90_v1  ;;  %v91_v5 = vsub.s32 0, %v90_v1  ;;  %s2021_s16 = smov 18   ;;  %s2022_s17 = smov 10  }
  0x50   :  { %v772_v21 = vpack.i.b16 %v1772_v12, %v1772_v12  ;;  %v1135_v22 = vpack.i.b16 %v1801_v14, %v1801_v14  ;;  %v1142_v23 = vpack.i.b16 %v2114_v15, %v2114_v15  ;;  %v94_v24 = vpack.i.b16 %v1716_v17, %v1716_v17  ;;  %s2023_s18 = smov 17   ;;  %s2024_s19 = smov 126  }
  0x51   :  { %v123_v25 = vshrl.u32 %v1715_v16, 16  ;;  %v400_v26 = vrot.slane %v395_v18, %v2108_v2  ;;  %v407_v27 = vrot.slane %v402_v19, %v2108_v2  ;;  %v770_v28 = vrot.slane %v765_v20, %v2110_v3  ;;  %v2142_v18 = vld [vmem:[#allocation2 + $0x38] sm:$0xf]  ;;  %s2025_s20 = smov 119   ;;  %s2026_s21 = smov 112  }
  0x52   :  { %v777_v29 = vrot.slane %v772_v21, %v2110_v3  ;;  %v1140_v31 = vrot.slane %v1135_v22, %v2112_v4  ;;  %v1147_v32 = vrot.slane %v1142_v23, %v2112_v4  ;;  %v99_v33 = vrot.slane %v94_v24, %v91_v5  ;;  %v2148_v21 = vld [vmem:[#allocation2 + $0x50] sm:$0xf]  ;;  %v2150_v22 = vld [vmem:[#allocation2 + $0x5c] sm:$0xf]  ;;  %s2027_s22 = smov 127   ;;  %s2028_s23 = smov 120  }
  0x53   :  { %v124_v34 = vpack.i.b16 %v123_v25, %v123_v25  ;;  %v1743_v35 = vcombine.low %v400_v26, %v407_v27  ;;  %v130_v37 = vshrl.u32 %v1716_v17, 16  ;;  %v87_v38 = vpack.i.b16 %v1715_v16, %v1715_v16  ;;  %v2140_v16 = vld [vmem:[#allocation2 + $0x2c] sm:$0xf]  ;;  %s2030_s24 = smov 118   ;;  %s2031_s25 = smov 111  }
  0x54   :  { %v1773_v36 = vcombine.low %v770_v28, %v777_v29  ;;  %v1803_v39 = vcombine.low %v1140_v31, %v1147_v32  ;;  %v1831_v41 = vcombine.low %v1498_v30, %v1498_v30  ;;  %v1832_v42 = vcombine.high %v1498_v30, %v1498_v30  ;;  %s2032_s0 = smov 110  }
  0x55   :  { %v129_v40 = vrot.slane %v124_v34, %v91_v5  ;;  %413 = vrot.lane.b32.xlu0 %v1743_v35, %s2017_s3  ;;  %v131_v43 = vpack.i.b16 %v130_v37, %v130_v37  ;;  %v92_v44 = vrot.slane %v87_v38, %v91_v5  ;;  %v576_v45 = vshrl.u32 %v1741_v9, 16  ;;  %v2164_v34 = vld [vmem:[#allocation2 + $0x24] sm:$0xff] }
  0x56   :  { %783 = vrot.lane.b32.xlu1 %v1773_v36, %s2018_s13  ;;  %v583_v46 = vshrl.u32 %v1742_v10, 16  ;;  %v1505_v47 = vpack.i.b16 %v1831_v41, %v1831_v41  ;;  %v1512_v48 = vpack.i.b16 %v1832_v42, %v1832_v42  ;;  %v946_v49 = vshrl.u32 %v1771_v11, 16 }
  0x57   :  { %v953_v50 = vshrl.u32 %v1772_v12, 16  ;;  %v136_v51 = vrot.slane %v131_v43, %v91_v5  ;;  %v2124_v52 = vcombine.low %v92_v44, %v99_v33  ;;  %v577_v53 = vpack.i.b16 %v576_v45, %v576_v45  ;;  %v2134_v12 = vld [vmem:[#allocation2 + $0x8] sm:$0xf]  ;;  %v2162_v33 = vld [vmem:[#allocation2 + $0x18] sm:$0xff] }
  0x58   :  { %v584_v54 = vpack.i.b16 %v583_v46, %v583_v46  ;;  %v1510_v55 = vrot.slane %v1505_v47, %v91_v5  ;;  %v1517_v56 = vrot.slane %v1512_v48, %v91_v5  ;;  %v947_v57 = vpack.i.b16 %v946_v49, %v946_v49  ;;  %v2184_v47 = vld [vmem:[#allocation2 + $0x48] sm:$0xff]  ;;  %v2186_v48 = vld [vmem:[#allocation2 + $0x54] sm:$0xff] }
  0x59   :  { %v954_v58 = vpack.i.b16 %v953_v50, %v953_v50  ;;  %v1718_v59 = vcombine.low %v129_v40, %v136_v51  ;;  %v582_v60 = vrot.slane %v577_v53, %v2108_v2  ;;  %v1316_v62 = vshrl.u32 %v1801_v14, 16 }
  0x5a   :  { %1153 = vrot.lane.b32.xlu1 %v1803_v39, %s2019_s14  ;;  %v589_v61 = vrot.slane %v584_v54, %v2108_v2  ;;  %v1833_v63 = vcombine.low %v1510_v55, %v1517_v56  ;;  %v952_v0 = vrot.slane %v947_v57, %v2110_v3  ;;  %v1323_v6 = vshrl.u32 %v2114_v15, 16  ;;  %v2138_v15 = vld [vmem:[#allocation2 + $0x20] sm:$0xf] }
  0x5b   :  { %v959_v1 = vrot.slane %v954_v58, %v2110_v3  ;;  %142 = vrot.lane.b32.xlu0 %v1718_v59, %s2020_s15  ;;  %v1317_v5 = vpack.i.b16 %v1316_v62, %v1316_v62  ;;  %vm416_vm0 = vcmask 15360   ;;  %vm786_vm1 = vcmask 72704   ;;  %v2206_v59 = vld [vmem:[#allocation2] sm:$0xff] }
  0x5c   :  { %v1324_v8 = vpack.i.b16 %v1323_v6, %v1323_v6  ;;  %v1757_v9 = vcombine.low %v582_v60, %v589_v61  ;;  %vm1156_vm2 = vcmask 130048   ;;  %vm145_vm3 = vcmask 7168  }
  0x5d   :  { %v1787_v7 = vcombine.low %v952_v0, %v959_v1  ;;  %v1322_v10 = vrot.slane %v1317_v5, %v2112_v4  ;;  %vm598_vm4 = vcmask 64512   ;;  %v2215_v0 = vld [vmem:[#allocation2 + $0xc] sm:$0xff]  ;;  %vm968_vm5 = vcmask 80896  }
  0x5e   :  { %1523 = vrot.lane.b32.xlu1 %v1833_v63, %s2021_s16  ;;  %v1329_v2 = vrot.slane %v1324_v8, %v2112_v4  ;;  %v2144_v4 = vld [vmem:[#allocation2 + $0x44] sm:$0xf]  ;;  %vm1338_vm6 = vcmask 138240   ;;  %vm1526_vm7 = vcmask 146432   ;;  %vm259_vm8 = vcmask 523264  }
  0x5f   :  { %965 = vrot.lane.b32.xlu0 %v1787_v7, %s2022_s17  ;;  %vm513_vm9 = vcmask 1031168   ;;  %vm883_vm10 = vcmask 973824   ;;  %vm1253_vm11 = vcmask 916480   ;;  %vm242_vm12 = vcmask 1039360  }
  0x60   :  { %v1817_v11 = vcombine.low %v1322_v10, %v1329_v2  ;;  %vm695_vm13 = vcmask 982016   ;;  %vm1065_vm14 = vcmask 965632   ;;  %vm1435_vm15 = vcmask 908288  }
  0x62   :  { %595 = vrot.lane.b32.xlu1 %v1757_v9, %s2015_s26  ;;  %s2033_s26 = smov [#allocation10]  }
  0x63   :  { %1335 = vrot.lane.b32.xlu0 %v1817_v11, %s2023_s18  ;;  %s1704_s27 = sshll.u32 %s2033_s26, 4  ;;  %s1705_s27 = int_to_ptr.vmem [resolvable:$true] %s1704_s27 }
  0x64   :  { %s1977_s28 = scalar_lea.vmem %s1705_s27, 256  ;;  %p1982_p5 = scmp.lt.s32.totalorder %s1705_s27, %s1705_s27 }
  0x65   :  { %p1978_p4 = scmp.ne.s32.totalorder %s1705_s27, %s1977_s28  ;;  %p1983_p6 = scmp.lt.s32.totalorder %s1977_s28, %s1977_s28 }
  0x67   :  { %p1984_p7 = por %p1983_p6, %p1982_p5 }
  0x69   :  { %p1985_p8 = pnand %p1984_p7, %p1978_p4 }
  0xc7   :  { %v414_v3 = vpop.permute.xlu0 %413 }
  0xc8   :  { %v415_v14 = vrot.slane %v414_v3, 4  ;;  %v784_v17 = vpop.permute.xlu1 %783 }
  0xc9   :  { %v2154_v25 = vrot.slane %v784_v17, 4 }
  0xca   :  { %v421_v19 = vmul.bf16 %v415_v14, %v2134_v12  ;;  %v423_v20 = vmul.bf16 %v415_v14, %v2136_v13  ;;  %v425_v23 = vmul.bf16 %v415_v14, %v2138_v15  ;;  %v427_v24 = vmul.bf16 %v415_v14, %v2140_v16 }
  0xcb   :  { %v429_v27 = vmul.bf16 %v415_v14, %v2142_v18  ;;  %v431_v28 = vmul.bf16 %v415_v14, %v2144_v4  ;;  %v2158_v29 = vsel %vm416_vm0, %v415_v14, %v414_v3  ;;  %v433_v31 = vmul.bf16 %v415_v14, %v2148_v21 }
  0xcc   :  { %v1746_v26 = vcombine.low %v421_v19, %v423_v20  ;;  %v1749_v30 = vcombine.low %v425_v23, %v427_v24  ;;  %v435_v32 = vmul.bf16 %v415_v14, %v2150_v22  ;;  %v791_v35 = vmul.bf16 %v2154_v25, %v2134_v12  ;;  %v1154_v40 = vpop.permute.xlu1 %1153 }
  0xcd   :  { %v793_v36 = vmul.bf16 %v2154_v25, %v2136_v13  ;;  %v1752_v37 = vcombine.low %v429_v27, %v431_v28  ;;  %v424_v38 = vmul.bf16 %v2158_v29, %v2162_v33  ;;  %v426_v39 = vmul.bf16 %v2158_v29, %v2164_v34  ;;  %v143_v9 = vpop.permute.xlu0 %142 }
  0xce   :  { %493 = vrot.lane.b32.xlu1 %v1746_v26, %s2024_s19  ;;  %499 = vrot.lane.b32.xlu0 %v1749_v30, %s2024_s19  ;;  %v1755_v41 = vcombine.low %v433_v31, %v435_v32  ;;  %v795_v45 = vmul.bf16 %v2154_v25, %v2138_v15  ;;  %v797_v46 = vmul.bf16 %v2154_v25, %v2140_v16  ;;  %v2197_v55 = vrot.slane %v1154_v40, 4  ;;  %v2255_v26 = vld [vmem:[#allocation2 + $0x30] sm:$0xff]  ;;  %v2261_v31 = vld [vmem:[#allocation2 + $0x3c] sm:$0xff] }
  0xcf   :  { %v1776_v42 = vcombine.low %v791_v35, %v793_v36  ;;  %v1748_v43 = vcombine.high %v424_v38, %v426_v39  ;;  %v2191_v49 = vsel %vm786_vm1, %v2154_v25, %v784_v17  ;;  %v1747_v50 = vcombine.low %v424_v38, %v426_v39 }
  0xd0   :  { %v2178_v44 = vpop.permute.xlu1 %1523  ;;  %v432_v51 = vmul.bf16 %v2158_v29, %v2184_v47  ;;  %v434_v53 = vmul.bf16 %v2158_v29, %v2186_v48  ;;  %v1779_v54 = vcombine.low %v795_v45, %v797_v46  ;;  %v799_v56 = vmul.bf16 %v2154_v25, %v2142_v18 }
  0xd1   :  { %v801_v57 = vmul.bf16 %v2154_v25, %v2144_v4  ;;  %v803_v58 = vmul.bf16 %v2154_v25, %v2148_v21  ;;  %v805_v61 = vmul.bf16 %v2154_v25, %v2150_v22  ;;  %v1161_v62 = vmul.bf16 %v2197_v55, %v2134_v12 }
  0xd2   :  { %505 = vrot.lane.b32.xlu1 %v1752_v37, %s2024_s19  ;;  %511 = vrot.lane.b32.xlu0 %v1755_v41, %s2024_s19  ;;  %v1163_v63 = vmul.bf16 %v2197_v55, %v2136_v13  ;;  %v2219_v1 = vmul.bf16 %v2191_v49, %v2206_v59  ;;  %v1754_v6 = vcombine.high %v432_v51, %v434_v53  ;;  %v2253_v25 = vrot.slane %v143_v9, 4 }
  0xd3   :  { %v2223_v5 = vmul.bf16 %v2191_v49, %v2215_v0  ;;  %v1165_v7 = vmul.bf16 %v2197_v55, %v2138_v15  ;;  %v1167_v8 = vmul.bf16 %v2197_v55, %v2140_v16  ;;  %v1782_v10 = vcombine.low %v799_v56, %v801_v57  ;;  %v966_v57 = vpop.permute.xlu0 %965 }
  0xd4   :  { %v596_v60 = vpop.permute.xlu1 %595  ;;  %v2231_v2 = vmul.bf16 %v2191_v49, %v2162_v33  ;;  %v2235_v11 = vmul.bf16 %v2191_v49, %v2164_v34  ;;  %v2241_v14 = vsel %vm1156_vm2, %v2197_v55, %v1154_v40  ;;  %v2246_v17 = vmul.bf16 %v2158_v29, %v2206_v59 }
  0xd5   :  { %v2237_v3 = vrot.slane %v596_v60, 4  ;;  %v2250_v19 = vmul.bf16 %v2158_v29, %v2215_v0  ;;  %v1785_v20 = vcombine.low %v803_v58, %v805_v61  ;;  %v1753_v23 = vcombine.low %v432_v51, %v434_v53 }
  0xd6   :  { %497 = vrot.lane.b32.xlu1 %v1748_v43, %s2024_s19  ;;  %863 = vrot.lane.b32.xlu0 %v1776_v42, %s2025_s20  ;;  %v1806_v24 = vcombine.low %v1161_v62, %v1163_v63  ;;  %v1775_v27 = vcombine.high %v2219_v1, %v2223_v5  ;;  %v1809_v28 = vcombine.low %v1165_v7, %v1167_v8  ;;  %vm1623_vm0 = vcmask 900096  }
  0xd7   :  { %v1774_v30 = vcombine.low %v2219_v1, %v2223_v5  ;;  %v2265_v32 = vmul.bf16 %v2191_v49, %v2255_v26  ;;  %v1778_v35 = vcombine.high %v2231_v2, %v2235_v11  ;;  %v2273_v37 = vmul.bf16 %v2191_v49, %v2261_v31 }
  0xd8   :  { %v2277_v38 = vsel %vm598_vm4, %v2237_v3, %v596_v60  ;;  %v1745_v39 = vcombine.high %v2246_v17, %v2250_v19  ;;  %v2284_v40 = vmul.bf16 %v2158_v29, %v2255_v26  ;;  %v150_v41 = vmul.bf16 %v2253_v25, %v2134_v12 }
  0xd9   :  { %v152_v42 = vmul.bf16 %v2253_v25, %v2136_v13  ;;  %v2295_v45 = vsel %vm145_vm3, %v2253_v25, %v143_v9  ;;  %v2299_v46 = vmul.bf16 %v2158_v29, %v2261_v31  ;;  %v160_v53 = vmul.bf16 %v2253_v25, %v2144_v4 }
  0xda   :  { %495 = vrot.lane.b32.xlu1 %v1747_v50, %s2024_s19  ;;  %869 = vrot.lane.b32.xlu0 %v1779_v54, %s2025_s20  ;;  %v158_v50 = vmul.bf16 %v2253_v25, %v2142_v18  ;;  %v2309_v54 = vmul.bf16 %v2277_v38, %v2162_v33  ;;  %v2313_v56 = vmul.bf16 %v2277_v38, %v2164_v34  ;;  %v2343_v9 = vrot.slane %v966_v57, 4 }
  0xdb   :  { %v2303_v51 = vcombine.low %v150_v41, %v152_v42  ;;  %v603_v29 = vmul.bf16 %v2237_v3, %v2134_v12  ;;  %v605_v58 = vmul.bf16 %v2237_v3, %v2136_v13  ;;  %v607_v60 = vmul.bf16 %v2237_v3, %v2138_v15 }
  0xdc   :  { %v609_v61 = vmul.bf16 %v2237_v3, %v2140_v16  ;;  %v2326_v62 = vmul.bf16 %v2191_v49, %v2184_v47  ;;  %v2328_v63 = vcombine.low %v158_v50, %v160_v53  ;;  %v2337_v5 = vmul.bf16 %v2191_v49, %v2186_v48 }
  0xdd   :  { %v2339_v7 = vcombine.low %v603_v29, %v605_v58  ;;  %v1781_v49 = vcombine.high %v2265_v32, %v2273_v37  ;;  %v2361_v42 = vsel %vm968_vm5, %v2343_v9, %v966_v57  ;;  %v973_v29 = vmul.bf16 %v2343_v9, %v2134_v12 }
  0xde   :  { %509 = vrot.lane.b32.xlu1 %v1754_v6, %s2024_s19  ;;  %875 = vrot.lane.b32.xlu0 %v1782_v10, %s2025_s20  ;;  %v2341_v8 = vcombine.low %v607_v60, %v609_v61  ;;  %v611_v10 = vmul.bf16 %v2237_v3, %v2142_v18  ;;  %3101 = vst [vmem:[#allocation15_spill] sm:$0xff] %v2361_v42  ;;  %v1336_v6 = vpop.permute.xlu0 %1335 }
  0xdf   :  { %v975_v57 = vmul.bf16 %v2343_v9, %v2136_v13  ;;  %v977_v58 = vmul.bf16 %v2343_v9, %v2138_v15  ;;  %v2381_v60 = vmul.bf16 %v2361_v42, %v2206_v59  ;;  %v981_v1 = vmul.bf16 %v2343_v9, %v2142_v18 }
  0xe0   :  { %v983_v61 = vmul.bf16 %v2343_v9, %v2144_v4  ;;  %v162_v50 = vmul.bf16 %v2253_v25, %v2148_v21  ;;  %v2435_v41 = vrot.slane %v1336_v6, 4  ;;  %v3107_v36 = vcombine.low %v2246_v17, %v2250_v19 }
  0xe1   :  { %v985_v17 = vmul.bf16 %v2343_v9, %v2148_v21  ;;  %v987_v19 = vmul.bf16 %v2343_v9, %v2150_v22 }
  0xe2   :  { %507 = vrot.lane.b32.xlu1 %v1753_v23, %s2024_s19  ;;  %881 = vrot.lane.b32.xlu0 %v1785_v20, %s2025_s20  ;;  %v613_v20 = vmul.bf16 %v2237_v3, %v2144_v4  ;;  %v615_v23 = vmul.bf16 %v2237_v3, %v2148_v21  ;;  %v2484_v43 = vsel %vm1338_vm6, %v2435_v41, %v1336_v6 }
  0xe3   :  { %3108 = vst [vmem:[#allocation20_spill] sm:$0xff] %v2484_v43  ;;  %v1173_v6 = vmul.bf16 %v2197_v55, %v2148_v21 }
  0xe6   :  { %861 = vrot.lane.b32.xlu1 %v1775_v27, %s2025_s20  ;;  %1233 = vrot.lane.b32.xlu0 %v1806_v24, %s2026_s21  ;;  %v617_v24 = vmul.bf16 %v2237_v3, %v2150_v22  ;;  %v2366_v3 = vcombine.low %v611_v10, %v613_v20  ;;  %v156_v10 = vmul.bf16 %v2253_v25, %v2140_v16 }
  0xe7   :  { %v2391_v20 = vmul.bf16 %v2361_v42, %v2215_v0  ;;  %v2505_v27 = vmul.bf16 %v2295_v45, %v2206_v59 }
  0xe8   :  { %v2368_v53 = vcombine.low %v615_v23, %v617_v24  ;;  %v2393_v23 = vcombine.low %v973_v29, %v975_v57  ;;  %v2427_v29 = vmul.bf16 %v2361_v42, %v2162_v33  ;;  %v2431_v57 = vmul.bf16 %v2361_v42, %v2164_v34 }
  0xe9   :  { %3102 = vst [vmem:[#allocation16_spill] sm:$0xff] %v2391_v20  ;;  %v2460_v20 = vrot.slane %v2178_v44, 4 }
  0xea   :  { %859 = vrot.lane.b32.xlu1 %v1774_v30, %s2025_s20  ;;  %1239 = vrot.lane.b32.xlu0 %v1809_v28, %s2026_s21  ;;  %v979_v30 = vmul.bf16 %v2343_v9, %v2140_v16  ;;  %v154_v28 = vmul.bf16 %v2253_v25, %v2138_v15 }
  0xeb   :  { %v2510_v9 = vsel %vm1526_vm7, %v2460_v20, %v2178_v44  ;;  %v1343_v44 = vmul.bf16 %v2435_v41, %v2134_v12 }
  0xec   :  { %v2395_v24 = vcombine.low %v977_v58, %v979_v30  ;;  %v2413_v58 = vmul.bf16 %v2295_v45, %v2162_v33  ;;  %v2419_v30 = vcombine.low %v981_v1, %v983_v61  ;;  %v2443_v1 = vmul.bf16 %v2361_v42, %v2261_v31  ;;  %3112 = vst [vmem:[#allocation24_spill] sm:$0xff] %v2510_v9 }
  0xed   :  { %v1724_v61 = vcombine.low %v154_v28, %v156_v10  ;;  %v2494_v28 = vmul.bf16 %v2241_v14, %v2184_v47  ;;  %v2498_v10 = vmul.bf16 %v2241_v14, %v2186_v48 }
  0xee   :  { %867 = vrot.lane.b32.xlu1 %v1778_v35, %s2025_s20  ;;  %491 = vrot.lane.b32.xlu0 %v1745_v39, %s2024_s19  ;;  %3103 = vst [vmem:[#allocation17_spill] sm:$0xff] %v2419_v30  ;;  %v2423_v35 = vmul.bf16 %v2295_v45, %v2164_v34  ;;  %v2439_v39 = vmul.bf16 %v2361_v42, %v2255_v26  ;;  %3105 = vst [vmem:[#allocation19_spill] sm:$0xff] %v2443_v1 }
  0xef   :  { %v3106_v30 = vcombine.low %v2231_v2, %v2235_v11  ;;  %v164_v42 = vmul.bf16 %v2253_v25, %v2150_v22  ;;  %v2472_v2 = vmul.bf16 %v2241_v14, %v2206_v59  ;;  %v1169_v11 = vmul.bf16 %v2197_v55, %v2142_v18  ;;  %3110 = vst [vmem:[#allocation22_spill] sm:$0xff] %v2494_v28 }
  0xf0   :  { %3104 = vst [vmem:[#allocation18_spill] sm:$0xff] %v2439_v39  ;;  %v1171_v25 = vmul.bf16 %v2197_v55, %v2144_v4  ;;  %3111 = vst [vmem:[#allocation23_spill] sm:$0xff] %v2498_v10  ;;  %v3115_v39 = vcombine.low %v2265_v32, %v2273_v37  ;;  %v1347_v28 = vmul.bf16 %v2435_v41, %v2138_v15 }
  0xf1   :  { %v1351_v32 = vmul.bf16 %v2435_v41, %v2142_v18  ;;  %v3118_v10 = vcombine.high %v2326_v62, %v2337_v5 }
  0xf2   :  { %865 = vrot.lane.b32.xlu1 %v3106_v30, %s2025_s20  ;;  %489 = vrot.lane.b32.xlu0 %v3107_v36, %s2024_s19  ;;  %v2480_v30 = vmul.bf16 %v2241_v14, %v2215_v0  ;;  %v2490_v36 = vcombine.low %v1169_v11, %v1171_v25  ;;  %v2512_v11 = vcombine.low %v985_v17, %v987_v19 }
  0xf3   :  { %v1175_v25 = vmul.bf16 %v2197_v55, %v2150_v22  ;;  %v1345_v55 = vmul.bf16 %v2435_v41, %v2136_v13  ;;  %v2532_v19 = vmul.bf16 %v2484_v43, %v2206_v59 }
  0xf4   :  { %3109 = vst [vmem:[#allocation21_spill] sm:$0xff] %v2490_v36  ;;  %v3113_v36 = vcombine.high %v2284_v40, %v2299_v46 }
  0xf5   :  { %v2526_v17 = vcombine.low %v1173_v6, %v1175_v25  ;;  %v1531_v6 = vmul.bf16 %v2460_v20, %v2134_v12  ;;  %v1533_v25 = vmul.bf16 %v2460_v20, %v2136_v13  ;;  %v2554_v1 = vcombine.low %v1343_v44, %v1345_v55 }
  0xf6   :  { %873 = vrot.lane.b32.xlu1 %v1781_v49, %s2025_s20  ;;  %503 = vrot.lane.b32.xlu0 %v3113_v36, %s2024_s19  ;;  %v1730_v49 = vcombine.low %v162_v50, %v164_v42  ;;  %v2536_v42 = vmul.bf16 %v2484_v43, %v2215_v0  ;;  %v2540_v50 = vmul.bf16 %v2510_v9, %v2206_v59 }
  0xf7   :  { %3114 = vst [vmem:[#allocation25_spill] sm:$0xff] %v2526_v17  ;;  %v2544_v36 = vmul.bf16 %v2510_v9, %v2215_v0  ;;  %v3116_v12 = vcombine.low %v2284_v40, %v2299_v46  ;;  %v2570_v37 = vcombine.low %v1531_v6, %v1533_v25  ;;  %v2576_v44 = vmul.bf16 %v2484_v43, %v2162_v33 }
  0xf8   :  { %v2580_v55 = vmul.bf16 %v2484_v43, %v2164_v34  ;;  %v2584_v40 = vmul.bf16 %v2510_v9, %v2162_v33  ;;  %v2588_v46 = vmul.bf16 %v2510_v9, %v2164_v34  ;;  %v1535_v25 = vmul.bf16 %v2460_v20, %v2138_v15 }
  0xf9   :  { %v2617_v13 = vmul.bf16 %v2484_v43, %v2255_v26  ;;  %v151_v15 = vmul.bf16 %v2295_v45, %v2215_v0 }
  0xfa   :  { %871 = vrot.lane.b32.xlu1 %v3115_v39, %s2025_s20  ;;  %501 = vrot.lane.b32.xlu0 %v3116_v12, %s2024_s19  ;;  %v1349_v39 = vmul.bf16 %v2435_v41, %v2140_v16  ;;  %3117 = vst [vmem:[#allocation26_spill] sm:$0xff] %v2588_v46  ;;  %v1537_v12 = vmul.bf16 %v2460_v20, %v2140_v16 }
  0xfb   :  { %v2627_v16 = vmul.bf16 %v2510_v9, %v2255_v26  ;;  %v3120_v46 = vcombine.low %v2326_v62, %v2337_v5  ;;  %v1805_v62 = vcombine.high %v2472_v2, %v2480_v30 }
  0xfc   :  { %v2590_v6 = vcombine.low %v1347_v28, %v1349_v39  ;;  %v2611_v39 = vcombine.low %v1535_v25, %v1537_v12  ;;  %v2621_v28 = vmul.bf16 %v2484_v43, %v2261_v31  ;;  %v1539_v25 = vmul.bf16 %v2460_v20, %v2142_v18 }
  0xfd   :  { %v1545_v18 = vmul.bf16 %v2460_v20, %v2150_v22  ;;  %v1720_v43 = vcombine.high %v2505_v27, %v151_v15 }
  0xfe   :  { %879 = vrot.lane.b32.xlu1 %v3118_v10, %s2025_s20  ;;  %228 = vrot.lane.b32.xlu0 %v1724_v61, %s2027_s22  ;;  %3119 = vst [vmem:[#allocation27_spill] sm:$0xff] %v2611_v39  ;;  %v1353_v10 = vmul.bf16 %v2435_v41, %v2144_v4  ;;  %v2631_v61 = vmul.bf16 %v2510_v9, %v2261_v31 }
  0xff   :  { %v1825_v17 = vcombine.high %v2617_v13, %v2621_v28  ;;  %v1541_v39 = vmul.bf16 %v2460_v20, %v2144_v4 }
 0x100   :  { %v2635_v12 = vcombine.low %v1351_v32, %v1353_v10  ;;  %v1841_v9 = vcombine.high %v2627_v16, %v2631_v61  ;;  %v1355_v32 = vmul.bf16 %v2435_v41, %v2148_v21  ;;  %v1357_v10 = vmul.bf16 %v2435_v41, %v2150_v22 }
 0x101   :  { %v2656_v4 = vcombine.low %v1539_v25, %v1541_v39  ;;  %v107_v39 = vmul.bf16 %v2124_v52, %v2215_v0  ;;  %v1719_v25 = vcombine.low %v2505_v27, %v151_v15  ;;  %v1164_v22 = vmul.bf16 %v2241_v14, %v2162_v33 }
 0x102   :  { %877 = vrot.lane.b32.xlu1 %v3120_v46, %s2025_s20  ;;  %240 = vrot.lane.b32.xlu0 %v1730_v49, %s2027_s22  ;;  %v2660_v5 = vcombine.low %v1355_v32, %v1357_v10  ;;  %v1543_v46 = vmul.bf16 %v2460_v20, %v2148_v21  ;;  %v106_v49 = vmul.bf16 %v2124_v52, %v2206_v59 }
 0x103   :  { %v1804_v21 = vcombine.low %v2472_v2, %v2480_v30  ;;  %v1166_v20 = vmul.bf16 %v2241_v14, %v2164_v34  ;;  %v108_v27 = vmul.bf16 %v2124_v52, %v2162_v33  ;;  %v109_v2 = vmul.bf16 %v2124_v52, %v2164_v34 }
 0x104   :  { %v2668_v41 = vcombine.low %v1543_v46, %v1545_v18  ;;  %v159_v18 = vmul.bf16 %v2295_v45, %v2261_v31  ;;  %v1733_v32 = vcombine.high %v106_v49, %v107_v39  ;;  %v1732_v10 = vcombine.low %v106_v49, %v107_v39 }
 0x105   :  { %v1808_v30 = vcombine.high %v1164_v22, %v1166_v20  ;;  %v1734_v46 = vcombine.low %v108_v27, %v109_v2  ;;  %v110_v49 = vmul.bf16 %v2124_v52, %v2255_v26  ;;  %v111_v39 = vmul.bf16 %v2124_v52, %v2261_v31 }
 0x106   :  { %1231 = vrot.lane.b32.xlu1 %v1805_v62, %s2026_s21  ;;  %220 = vrot.lane.b32.xlu0 %v1720_v43, %s2027_s22  ;;  %v157_v43 = vmul.bf16 %v2295_v45, %v2255_v26  ;;  %v1735_v62 = vcombine.high %v108_v27, %v109_v2  ;;  %v2700_v33 = vmul.bf16 %v2241_v14, %v2255_v26 }
 0x107   :  { %347 = vmatprep.subr.bf16.mxu1 %v1733_v32  ;;  %v2704_v34 = vmul.bf16 %v2241_v14, %v2261_v31  ;;  %v1737_v32 = vcombine.high %v110_v49, %v111_v39  ;;  %v604_v2 = vmul.bf16 %v2277_v38, %v2215_v0  ;;  %v2029_v0 = vmov 0  }
 0x108   :  { %348 = vmatpush1.bf16.msra.mxu1 %v1732_v10  ;;  %v1726_v15 = vcombine.high %v157_v43, %v159_v18  ;;  %v1736_v10 = vcombine.low %v110_v49, %v111_v39  ;;  %v1725_v27 = vcombine.low %v157_v43, %v159_v18  ;;  %379 = vmatprep.mubr.bf16.mxu1 %v2029_v0 }
 0x109   :  { %349 = vmatprep.subr.bf16.mxu1 %v1735_v62  ;;  %295 = vmatprep.mubr.bf16.mxu0 %v2029_v0  ;;  %v610_v62 = vmul.bf16 %v2277_v38, %v2255_v26  ;;  %v614_v26 = vmul.bf16 %v2277_v38, %v2184_v47  ;;  %v161_v39 = vmul.bf16 %v2295_v45, %v2184_v47 }
 0x10a   :  { %1229 = vrot.lane.b32.xlu1 %v1804_v21, %s2026_s21  ;;  %218 = vrot.lane.b32.xlu0 %v1719_v25, %s2027_s22  ;;  %v1807_v21 = vcombine.low %v1164_v22, %v1166_v20  ;;  %v602_v25 = vmul.bf16 %v2277_v38, %v2206_v59  ;;  %v112_v22 = vmul.bf16 %v2124_v52, %v2184_v47 }
 0x10b   :  { %v113_v20 = vmul.bf16 %v2124_v52, %v2186_v48  ;;  %v1811_v59 = vcombine.high %v2700_v33, %v2704_v34  ;;  %v114_v52 = vld [vmem:[#allocation5] sm:$0xf]  ;;  %1874 = vset.pattern.permute.xlu0 %v2029_v0 }
 0x10c   :  { %350 = vmatpush1.bf16.msra.mxu1 %v1734_v46  ;;  %v1759_v18 = vcombine.high %v602_v25, %v604_v2  ;;  %v3122_v46 = vcombine.low %v2309_v54, %v2313_v56 }
 0x10d   :  { %351 = vmatprep.subr.bf16.mxu1 %v1737_v32  ;;  %v1739_v14 = vcombine.high %v112_v22, %v113_v20  ;;  %v1738_v43 = vcombine.low %v112_v22, %v113_v20  ;;  %v3130_v32 = vcombine.low %v2427_v29, %v2431_v57  ;;  %v3131_v22 = vld [vmem:[#allocation18_spill] sm:$0xff] }
 0x10e   :  { %1237 = vrot.lane.b32.xlu1 %v1808_v30, %s2026_s21  ;;  %232 = vrot.lane.b32.xlu0 %v1726_v15, %s2027_s22  ;;  %v1758_v30 = vcombine.low %v602_v25, %v604_v2  ;;  %v3121_v15 = vcombine.high %v2309_v54, %v2313_v56 }
 0x110   :  { %352 = vmatpush1.bf16.msra.mxu1 %v1736_v10 }
 0x111   :  { %353 = vmatprep.subr.bf16.mxu1 %v1739_v14 }
 0x112   :  { %1235 = vrot.lane.b32.xlu1 %v1807_v21, %s2026_s21  ;;  %230 = vrot.lane.b32.xlu0 %v1725_v27, %s2027_s22  ;;  %v163_v21 = vmul.bf16 %v2295_v45, %v2186_v48  ;;  %v3132_v45 = vld [vmem:[#allocation19_spill] sm:$0xff] }
 0x113   :  { %v3133_v20 = vcombine.high %v3131_v22, %v3132_v45 }
 0x114   :  { %354 = vmatpush1.bf16.msra.mxu1 %v1738_v43  ;;  %v1729_v27 = vcombine.high %v161_v39, %v163_v21  ;;  %v1810_v43 = vcombine.low %v2700_v33, %v2704_v34 }
 0x116   :  { %1243 = vrot.lane.b32.xlu1 %v1811_v59, %s2026_s21  ;;  %673 = vrot.lane.b32.xlu0 %v1759_v18, %s2028_s23  ;;  %v1728_v59 = vcombine.low %v161_v39, %v163_v21 }
 0x117   :  { %1740 = vmatmul.mubr.msk.bf16.vlgmr.msra.gmra.mrb[0].mxu1 %vm259_vm8, %v114_v52 }
 0x118   :  { %747 = vmatprep.mubr.bf16.mxu1 %v2029_v0 }
 0x11a   :  { %222 = vrot.lane.b32.xlu1 %v2303_v51, %s2027_s22  ;;  %671 = vrot.lane.b32.xlu0 %v1758_v30, %s2028_s23  ;;  %v612_v51 = vmul.bf16 %v2277_v38, %v2261_v31  ;;  %v616_v31 = vmul.bf16 %v2277_v38, %v2186_v48  ;;  %v3123_v38 = vld [vmem:[#allocation16_spill] sm:$0xff]  ;;  %v3135_v30 = vld [vmem:[#allocation15_spill] sm:$0xff] }
 0x11c   :  { %v1764_v49 = vcombine.low %v610_v62, %v612_v51  ;;  %v1768_v54 = vcombine.high %v614_v26, %v616_v31  ;;  %v1767_v56 = vcombine.low %v614_v26, %v616_v31 }
 0x11e   :  { %234 = vrot.lane.b32.xlu1 %v2328_v63, %s2027_s22  ;;  %679 = vrot.lane.b32.xlu0 %v3121_v15, %s2028_s23  ;;  %v1765_v63 = vcombine.high %v610_v62, %v612_v51  ;;  %v984_v15 = vmul.bf16 %v3135_v30, %v2184_v47  ;;  %v986_v62 = vmul.bf16 %v3135_v30, %v2186_v48  ;;  %v3136_v51 = vld [vmem:[#allocation21_spill] sm:$0xff]  ;;  %v3147_v30 = vld [vmem:[#allocation26_spill] sm:$0xff] }
 0x122   :  { %675 = vrot.lane.b32.xlu1 %v2339_v7, %s2028_s23  ;;  %677 = vrot.lane.b32.xlu0 %v3122_v46, %s2028_s23  ;;  %v3124_v7 = vcombine.high %v2381_v60, %v3123_v38 }
 0x126   :  { %681 = vrot.lane.b32.xlu1 %v2341_v8, %s2028_s23  ;;  %685 = vrot.lane.b32.xlu0 %v1765_v63, %s2028_s23  ;;  %v3125_v8 = vld [vmem:[#allocation17_spill] sm:$0xff] }
 0x12a   :  { %687 = vrot.lane.b32.xlu1 %v2366_v3, %s2028_s23  ;;  %683 = vrot.lane.b32.xlu0 %v1764_v49, %s2028_s23  ;;  %v3126_v3 = vcombine.low %v2381_v60, %v3123_v38  ;;  %v3129_v60 = vcombine.low %v2413_v58, %v2423_v35  ;;  %v1798_v49 = vcombine.high %v984_v15, %v986_v62  ;;  %v3138_v38 = vld [vmem:[#allocation23_spill] sm:$0xff] }
 0x12e   :  { %693 = vrot.lane.b32.xlu1 %v2368_v53, %s2028_s23  ;;  %691 = vrot.lane.b32.xlu0 %v1768_v54, %s2028_s23  ;;  %v3127_v53 = vcombine.high %v2413_v58, %v2423_v35  ;;  %v1797_v54 = vcombine.low %v984_v15, %v986_v62 }
 0x132   :  { %1045 = vrot.lane.b32.xlu1 %v2393_v23, %s2030_s24  ;;  %689 = vrot.lane.b32.xlu0 %v1767_v56, %s2028_s23  ;;  %v3128_v23 = vcombine.high %v2427_v29, %v2431_v57  ;;  %v3134_v29 = vcombine.low %v3131_v22, %v3132_v45  ;;  %v3137_v56 = vld [vmem:[#allocation22_spill] sm:$0xff]  ;;  %v3143_v22 = vcombine.high %v2540_v50, %v2544_v36 }
 0x136   :  { %1051 = vrot.lane.b32.xlu1 %v2395_v24, %s2030_s24  ;;  %1043 = vrot.lane.b32.xlu0 %v3124_v7, %s2030_s24  ;;  %v3139_v7 = vcombine.high %v3137_v56, %v3138_v38 }
 0x13a   :  { %1057 = vrot.lane.b32.xlu1 %v3125_v8, %s2030_s24  ;;  %1041 = vrot.lane.b32.xlu0 %v3126_v3, %s2030_s24 }
 0x13e   :  { %226 = vrot.lane.b32.xlu1 %v3127_v53, %s2027_s22  ;;  %1049 = vrot.lane.b32.xlu0 %v3128_v23, %s2030_s24  ;;  %v3140_v53 = vcombine.low %v3137_v56, %v3138_v38  ;;  %v3141_v23 = vld [vmem:[#allocation25_spill] sm:$0xff]  ;;  %v3153_v38 = vld [vmem:[#allocation20_spill] sm:$0xff] }
 0x140   :  { %v494_v24 = vpop.permute.xlu1 %493  ;;  %v500_v25 = vpop.permute.xlu0 %499 }
 0x142   :  { %224 = vrot.lane.b32.xlu1 %v3129_v60, %s2027_s22  ;;  %1047 = vrot.lane.b32.xlu0 %v3130_v32, %s2030_s24  ;;  %v3142_v60 = vcombine.high %v2532_v19, %v2536_v42 }
 0x144   :  { %v506_v10 = vpop.permute.xlu1 %505  ;;  %v512_v2 = vpop.permute.xlu0 %511 }
 0x146   :  { %238 = vrot.lane.b32.xlu1 %v1729_v27, %s2027_s22  ;;  %1055 = vrot.lane.b32.xlu0 %v3133_v20, %s2030_s24 }
 0x148   :  { %v498_v14 = vpop.permute.xlu1 %497  ;;  %v864_v58 = vpop.permute.xlu0 %863 }
 0x149   :  { %v2798_v35 = vsel %vm513_vm9, %v498_v14, %v500_v25 }
 0x14a   :  { %236 = vrot.lane.b32.xlu1 %v1728_v59, %s2027_s22  ;;  %1053 = vrot.lane.b32.xlu0 %v3134_v29, %s2030_s24  ;;  %v3145_v29 = vcombine.low %v2540_v50, %v2544_v36 }
 0x14c   :  { %v496_v57 = vpop.permute.xlu1 %495  ;;  %v870_v18 = vpop.permute.xlu0 %869 }
 0x14d   :  { %v2808_v52 = vsel %vm513_vm9, %v496_v57, %v498_v14 }
 0x14e   :  { %1241 = vrot.lane.b32.xlu1 %v1810_v43, %s2026_s21  ;;  %1245 = vrot.lane.b32.xlu0 %v3136_v51, %s2026_s21  ;;  %v3146_v43 = vcombine.high %v2576_v44, %v2580_v55 }
 0x150   :  { %v510_v46 = vpop.permute.xlu1 %509  ;;  %v876_v63 = vpop.permute.xlu0 %875 }
 0x151   :  { %v2818_v33 = vsel %vm513_vm9, %v510_v46, %v512_v2 }
 0x152   :  { %1063 = vrot.lane.b32.xlu1 %v2512_v11, %s2030_s24  ;;  %1061 = vrot.lane.b32.xlu0 %v1798_v49, %s2030_s24 }
 0x154   :  { %v508_v34 = vpop.permute.xlu1 %507  ;;  %v882_v26 = vpop.permute.xlu0 %881 }
 0x155   :  { %v2824_v31 = vsel %vm513_vm9, %v508_v34, %v510_v46  ;;  %v3150_v46 = vcombine.low %v2584_v40, %v3147_v30 }
 0x156   :  { %1249 = vrot.lane.b32.xlu1 %v3139_v7, %s2026_s21  ;;  %1059 = vrot.lane.b32.xlu0 %v1797_v54, %s2030_s24  ;;  %v1354_v7 = vmul.bf16 %v3153_v38, %v2184_v47 }
 0x158   :  { %v862_v8 = vpop.permute.xlu1 %861  ;;  %v1234_v3 = vpop.permute.xlu0 %1233 }
 0x159   :  { %v2832_v11 = vsel %vm883_vm10, %v862_v8, %v864_v58 }
 0x15a   :  { %1247 = vrot.lane.b32.xlu1 %v3140_v53, %s2026_s21  ;;  %1251 = vrot.lane.b32.xlu0 %v3141_v23, %s2026_s21 }
 0x15c   :  { %v860_v39 = vpop.permute.xlu1 %859  ;;  %v1240_v21 = vpop.permute.xlu0 %1239 }
 0x15d   :  { %v2841_v25 = vsel %vm883_vm10, %v860_v39, %v862_v8  ;;  %v1356_v8 = vmul.bf16 %v3153_v38, %v2186_v48 }
 0x15e   :  { %1415 = vrot.lane.b32.xlu1 %v2554_v1, %s2031_s25  ;;  %1413 = vrot.lane.b32.xlu0 %v3142_v60, %s2031_s25  ;;  %v3144_v1 = vcombine.low %v2532_v19, %v2536_v42 }
 0x15f   :  { %v1828_v39 = vcombine.high %v1354_v7, %v1356_v8 }
 0x160   :  { %v868_v32 = vpop.permute.xlu1 %867  ;;  %v492_v27 = vpop.permute.xlu0 %491 }
 0x161   :  { %v2850_v2 = vsel %vm883_vm10, %v868_v32, %v870_v18  ;;  %v2857_v45 = vsel %vm513_vm9, %v492_v27, %v494_v24 }
 0x162   :  { %1601 = vrot.lane.b32.xlu1 %v3143_v22, %s2032_s0  ;;  %1411 = vrot.lane.b32.xlu0 %v3144_v1, %s2031_s25  ;;  %v1686_v22 = vld [vmem:[#allocation8] sm:$0xff] }
 0x164   :  { %v866_v20 = vpop.permute.xlu1 %865  ;;  %v490_v59 = vpop.permute.xlu0 %489 }
 0x165   :  { %v2864_v14 = vsel %vm883_vm10, %v866_v20, %v868_v32  ;;  %v2867_v58 = vsel %vm513_vm9, %v490_v59, %v492_v27  ;;  %v1827_v32 = vcombine.low %v1354_v7, %v1356_v8  ;;  %v618_v7 = vld [vmem:[#allocation5 + $0xc] sm:$0xf] }
 0x166   :  { %1599 = vrot.lane.b32.xlu1 %v3145_v29, %s2032_s0  ;;  %1603 = vrot.lane.b32.xlu0 %v2570_v37, %s2032_s0 }
 0x168   :  { %v874_v24 = vpop.permute.xlu1 %873  ;;  %v504_v57 = vpop.permute.xlu0 %503 }
 0x169   :  { %v2876_v19 = vsel %vm883_vm10, %v874_v24, %v876_v63  ;;  %v2881_v42 = vsel %vm513_vm9, %v504_v57, %v506_v10  ;;  %v3149_v10 = vcombine.low %v2576_v44, %v2580_v55  ;;  %v3151_v63 = vld [vmem:[#allocation27_spill] sm:$0xff] }
 0x16a   :  { %1421 = vrot.lane.b32.xlu1 %v2590_v6, %s2031_s25  ;;  %1419 = vrot.lane.b32.xlu0 %v3146_v43, %s2031_s25  ;;  %v3148_v6 = vcombine.high %v2584_v40, %v3147_v30 }
 0x16c   :  { %v872_v50 = vpop.permute.xlu1 %871  ;;  %v502_v37 = vpop.permute.xlu0 %501 }
 0x16d   :  { %v2888_v36 = vsel %vm883_vm10, %v872_v50, %v874_v24  ;;  %v2891_v18 = vsel %vm513_vm9, %v502_v37, %v504_v57 }
 0x16e   :  { %1607 = vrot.lane.b32.xlu1 %v3148_v6, %s2032_s0  ;;  %1417 = vrot.lane.b32.xlu0 %v3149_v10, %s2031_s25 }
 0x170   :  { %v880_v15 = vpop.permute.xlu1 %879  ;;  %v2901_v62 = vpop.permute.xlu0 %228 }
 0x171   :  { %v2904_v51 = vsel %vm883_vm10, %v880_v15, %v882_v26 }
 0x172   :  { %1605 = vrot.lane.b32.xlu1 %v3150_v46, %s2032_s0  ;;  %1609 = vrot.lane.b32.xlu0 %v3151_v63, %s2032_s0 }
 0x174   :  { %v878_v49 = vpop.permute.xlu1 %877  ;;  %v2915_v44 = vpop.permute.xlu0 %240 }
 0x175   :  { %v2913_v34 = vsel %vm883_vm10, %v878_v49, %v880_v15 }
 0x176   :  { %1427 = vrot.lane.b32.xlu1 %v2635_v12, %s2031_s25  ;;  %1425 = vrot.lane.b32.xlu0 %v1825_v17, %s2031_s25  ;;  %v3152_v12 = vcombine.low %v2617_v13, %v2621_v28  ;;  %v3155_v28 = vld [vmem:[#allocation24_spill] sm:$0xff] }
 0x177   :  { %v1544_v53 = vmul.bf16 %v3155_v28, %v2186_v48 }
 0x178   :  { %v1232_v55 = vpop.permute.xlu1 %1231  ;;  %v221_v40 = vpop.permute.xlu0 %220 }
 0x179   :  { %v2924_v26 = vsel %vm1253_vm11, %v1232_v55, %v1234_v3  ;;  %v1542_v3 = vmul.bf16 %v3155_v28, %v2184_v47 }
 0x17a   :  { %1613 = vrot.lane.b32.xlu1 %v1841_v9, %s2032_s0  ;;  %1423 = vrot.lane.b32.xlu0 %v3152_v12, %s2031_s25  ;;  %v3154_v9 = vcombine.low %v2627_v16, %v2631_v61 }
 0x17b   :  { %v1844_v61 = vcombine.high %v1542_v3, %v1544_v53 }
 0x17c   :  { %v1230_v54 = vpop.permute.xlu1 %1229  ;;  %v219_v17 = vpop.permute.xlu0 %218 }
 0x17d   :  { %v2935_v56 = vsel %vm1253_vm11, %v1230_v54, %v1232_v55  ;;  %v243_v59 = vsel %vm242_vm12, %v219_v17, %v221_v40 }
 0x17e   :  { %1611 = vrot.lane.b32.xlu1 %v3154_v9, %s2032_s0  ;;  %1615 = vrot.lane.b32.xlu0 %v2656_v4, %s2032_s0 }
 0x180   :  { %v1238_v13 = vpop.permute.xlu1 %1237  ;;  %v2951_v23 = vpop.permute.xlu0 %232 }
 0x181   :  { %v2954_v60 = vsel %vm1253_vm11, %v1238_v13, %v1240_v21  ;;  %v1843_v21 = vcombine.low %v1542_v3, %v1544_v53 }
 0x182   :  { %1433 = vrot.lane.b32.xlu1 %v2660_v5, %s2031_s25  ;;  %1431 = vrot.lane.b32.xlu0 %v1828_v39, %s2031_s25 }
 0x184   :  { %v1236_v16 = vpop.permute.xlu1 %1235  ;;  %v2962_v47 = vpop.permute.xlu0 %230 }
 0x185   :  { %v2960_v4 = vsel %vm1253_vm11, %v1236_v16, %v1238_v13 }
 0x186   :  { %1619 = vrot.lane.b32.xlu1 %v1844_v61, %s2032_s0  ;;  %1429 = vrot.lane.b32.xlu0 %v1827_v32, %s2031_s25 }
 0x188   :  { %v2966_v48 = vpop.permute.xlu1 %1243  ;;  %v674_v27 = vpop.permute.xlu0 %673 }
 0x18a   :  { %1617 = vrot.lane.b32.xlu1 %v1843_v21, %s2032_s0  ;;  %1621 = vrot.lane.b32.xlu0 %v2668_v41, %s2032_s0 }
 0x18c   :  { %v223_v5 = vpop.permute.xlu1 %222  ;;  %v672_v1 = vpop.permute.xlu0 %671 }
 0x18d   :  { %v244_v20 = vsel %vm242_vm12, %v221_v40, %v223_v5  ;;  %v696_v41 = vsel %vm695_vm13, %v672_v1, %v674_v27 }
 0x18e   :  { %263 = vmatprep.subr.bf16.mxu0 %v244_v20  ;;  %1689 = vperm.xlu0 %1874, %v1686_v22  }
 0x18f   :  { %264 = vmatpush1.bf16.msra.mxu0 %v243_v59 }
 0x190   :  { %v235_v29 = vpop.permute.xlu1 %234  ;;  %v680_v24 = vpop.permute.xlu0 %679 }
 0x191   :  { %v248_v1 = vsel %vm242_vm12, %v2951_v23, %v235_v29 }
 0x194   :  { %v676_v57 = vpop.permute.xlu1 %675  ;;  %v678_v43 = vpop.permute.xlu0 %677 }
 0x195   :  { %v697_v50 = vsel %vm695_vm13, %v674_v27, %v676_v57  ;;  %v698_v10 = vsel %vm695_vm13, %v678_v43, %v680_v24 }
 0x196   :  { %715 = vmatprep.subr.bf16.mxu1 %v697_v50 }
 0x197   :  { %716 = vmatpush1.bf16.msra.mxu1 %v696_v41 }
 0x198   :  { %v682_v37 = vpop.permute.xlu1 %681  ;;  %v686_v30 = vpop.permute.xlu0 %685 }
 0x199   :  { %v699_v6 = vsel %vm695_vm13, %v680_v24, %v682_v37  ;;  %v165_v37 = vld [vmem:[#allocation5 + $0x4] sm:$0xf] }
 0x19a   :  { %717 = vmatprep.subr.bf16.mxu1 %v699_v6 }
 0x19b   :  { %718 = vmatpush1.bf16.msra.mxu1 %v698_v10 }
 0x19c   :  { %v688_v15 = vpop.permute.xlu1 %687  ;;  %v684_v46 = vpop.permute.xlu0 %683 }
 0x19d   :  { %v701_v63 = vsel %vm695_vm13, %v686_v30, %v688_v15  ;;  %v700_v49 = vsel %vm695_vm13, %v684_v46, %v686_v30 }
 0x19e   :  { %719 = vmatprep.subr.bf16.mxu1 %v701_v63 }
 0x19f   :  { %720 = vmatpush1.bf16.msra.mxu1 %v700_v49 }
 0x1a0   :  { %v694_v55 = vpop.permute.xlu1 %693  ;;  %v692_v40 = vpop.permute.xlu0 %691 }
 0x1a1   :  { %v703_v12 = vsel %vm695_vm13, %v692_v40, %v694_v55 }
 0x1a2   :  { %721 = vmatprep.subr.bf16.mxu1 %v703_v12  ;;  %v806_v12 = vld [vmem:[#allocation5 + $0x10] sm:$0xf] }
 0x1a4   :  { %v1046_v54 = vpop.permute.xlu1 %1045  ;;  %v690_v17 = vpop.permute.xlu0 %689 }
 0x1a5   :  { %v702_v38 = vsel %vm695_vm13, %v690_v17, %v692_v40 }
 0x1a6   :  { %722 = vmatpush1.bf16.msra.mxu1 %v702_v38 }
 0x1a8   :  { %v1052_v8 = vpop.permute.xlu1 %1051  ;;  %v1044_v9 = vpop.permute.xlu0 %1043 }
 0x1a9   :  { %v1067_v13 = vsel %vm1065_vm14, %v1044_v9, %v1046_v54  ;;  %1770 = vmatmul.mubr.msk.bf16.vlgmr.msra.gmra.mrb[4].mxu1 %vm259_vm8, %v618_v7 }
 0x1aa   :  { %1085 = vmatprep.subr.bf16.mxu1 %v1067_v13  ;;  %1117 = vmatprep.mubr.bf16.mxu1 %v2029_v0  ;;  %v1176_v13 = vld [vmem:[#allocation5 + $0x18] sm:$0xf] }
 0x1ac   :  { %v1058_v28 = vpop.permute.xlu1 %1057  ;;  %v1042_v3 = vpop.permute.xlu0 %1041 }
 0x1ad   :  { %v1066_v53 = vsel %vm1065_vm14, %v1042_v3, %v1044_v9 }
 0x1ae   :  { %1086 = vmatpush1.bf16.msra.mxu1 %v1066_v53 }
 0x1b0   :  { %v227_v39 = vpop.permute.xlu1 %226  ;;  %v1050_v16 = vpop.permute.xlu0 %1049 }
 0x1b1   :  { %v246_v61 = vsel %vm242_vm12, %v227_v39, %v2901_v62  ;;  %v1069_v32 = vsel %vm1065_vm14, %v1050_v16, %v1052_v8  ;;  %v247_v62 = vsel %vm242_vm12, %v2962_v47, %v2951_v23 }
 0x1b2   :  { %265 = vmatprep.subr.bf16.mxu0 %v246_v61  ;;  %1087 = vmatprep.subr.bf16.mxu1 %v1069_v32 }
 0x1b4   :  { %v225_v21 = vpop.permute.xlu1 %224  ;;  %v1048_v27 = vpop.permute.xlu0 %1047 }
 0x1b5   :  { %v245_v5 = vsel %vm242_vm12, %v225_v21, %v227_v39  ;;  %v1068_v22 = vsel %vm1065_vm14, %v1048_v27, %v1050_v16 }
 0x1b6   :  { %266 = vmatpush1.bf16.msra.mxu0 %v245_v5  ;;  %1088 = vmatpush1.bf16.msra.mxu1 %v1068_v22 }
 0x1b7   :  { %267 = vmatprep.subr.bf16.mxu0 %v248_v1 }
 0x1b8   :  { %v239_v20 = vpop.permute.xlu1 %238  ;;  %v1056_v59 = vpop.permute.xlu0 %1055 }
 0x1b9   :  { %v250_v24 = vsel %vm242_vm12, %v239_v20, %v2915_v44  ;;  %v1071_v57 = vsel %vm1065_vm14, %v1056_v59, %v1058_v28 }
 0x1ba   :  { %268 = vmatpush1.bf16.msra.mxu0 %v247_v62  ;;  %1089 = vmatprep.subr.bf16.mxu1 %v1071_v57 }
 0x1bb   :  { %269 = vmatprep.subr.bf16.mxu0 %v250_v24 }
 0x1bc   :  { %v237_v43 = vpop.permute.xlu1 %236  ;;  %v1054_v50 = vpop.permute.xlu0 %1053 }
 0x1bd   :  { %v249_v29 = vsel %vm242_vm12, %v237_v43, %v239_v20  ;;  %v1070_v41 = vsel %vm1065_vm14, %v1054_v50, %v1056_v59  ;;  %v1546_v43 = vld [vmem:[#allocation5 + $0x20] sm:$0xf] }
 0x1be   :  { %270 = vmatpush1.bf16.msra.mxu0 %v249_v29  ;;  %1090 = vmatpush1.bf16.msra.mxu1 %v1070_v41 }
 0x1bf   :  { %533 = vmatprep.subr.bf16.mxu0 %v2857_v45 }
 0x1c0   :  { %v3001_v23 = vpop.permute.xlu1 %1241  ;;  %v3003_v47 = vpop.permute.xlu0 %1245 }
 0x1c1   :  { %1731 = vmatmul.mubr.msk.bf16.vlgmr.msra.gmra.mrb[0].mxu0 %vm259_vm8, %v165_v37  ;;  %v1258_v17 = vsel %vm1253_vm11, %v3001_v23, %v2966_v48 }
 0x1c2   :  { %534 = vmatpush1.bf16.msra.mxu0 %v2867_v58  ;;  %565 = vmatprep.mubr.bf16.mxu0 %v2029_v0 }
 0x1c3   :  { %535 = vmatprep.subr.bf16.mxu0 %v2798_v35  ;;  %v988_v35 = vld [vmem:[#allocation5 + $0x14] sm:$0xf] }
 0x1c4   :  { %v1064_v44 = vpop.permute.xlu1 %1063  ;;  %v1062_v30 = vpop.permute.xlu0 %1061 }
 0x1c5   :  { %v1073_v6 = vsel %vm1065_vm14, %v1062_v30, %v1064_v44 }
 0x1c6   :  { %536 = vmatpush1.bf16.msra.mxu0 %v2808_v52  ;;  %1091 = vmatprep.subr.bf16.mxu1 %v1073_v6  ;;  %v436_v52 = vld [vmem:[#allocation5 + $0x8] sm:$0xf] }
 0x1c7   :  { %537 = vmatprep.subr.bf16.mxu0 %v2881_v42 }
 0x1c8   :  { %v3012_v45 = vpop.permute.xlu1 %1249  ;;  %v1060_v10 = vpop.permute.xlu0 %1059 }
 0x1c9   :  { %v1072_v15 = vsel %vm1065_vm14, %v1060_v10, %v1062_v30 }
 0x1ca   :  { %538 = vmatpush1.bf16.msra.mxu0 %v2891_v18  ;;  %1092 = vmatpush1.bf16.msra.mxu1 %v1072_v15 }
 0x1cb   :  { %539 = vmatprep.subr.bf16.mxu0 %v2818_v33 }
 0x1cc   :  { %v1248_v58 = vpop.permute.xlu1 %1247  ;;  %v1252_v46 = vpop.permute.xlu0 %1251 }
 0x1cd   :  { %1800 = vmatmul.mubr.msk.bf16.vlgmr.msra.gmra.mrb[8].mxu1 %vm259_vm8, %v988_v35  ;;  %v1260_v7 = vsel %vm1253_vm11, %v1248_v58, %v3012_v45 }
 0x1ce   :  { %540 = vmatpush1.bf16.msra.mxu0 %v2824_v31  ;;  %1487 = vmatprep.mubr.bf16.mxu1 %v2029_v0 }
 0x1cf   :  { %903 = vmatprep.subr.bf16.mxu0 %v2832_v11 }
 0x1d0   :  { %v1416_v42 = vpop.permute.xlu1 %1415  ;;  %v1414_v63 = vpop.permute.xlu0 %1413 }
 0x1d1   :  { %1756 = vmatmul.mubr.msk.bf16.vlgmr.msra.gmra.mrb[4].mxu0 %vm259_vm8, %v436_v52  ;;  %v1437_v33 = vsel %vm1435_vm15, %v1414_v63, %v1416_v42 }
 0x1d2   :  { %904 = vmatpush1.bf16.msra.mxu0 %v2841_v25  ;;  %935 = vmatprep.mubr.bf16.mxu0 %v2029_v0 }
 0x1d3   :  { %1455 = vmatprep.subr.bf16.mxu1 %v1437_v33  ;;  %905 = vmatprep.subr.bf16.mxu0 %v2850_v2 }
 0x1d4   :  { %v1602_v31 = vpop.permute.xlu1 %1601  ;;  %v1412_v18 = vpop.permute.xlu0 %1411 }
 0x1d5   :  { %v1436_v11 = vsel %vm1435_vm15, %v1412_v18, %v1414_v63 }
 0x1d6   :  { %906 = vmatpush1.bf16.msra.mxu0 %v2864_v14  ;;  %1456 = vmatpush1.bf16.msra.mxu1 %v1436_v11 }
 0x1d7   :  { %907 = vmatprep.subr.bf16.mxu0 %v2876_v19 }
 0x1d8   :  { %v1600_v49 = vpop.permute.xlu1 %1599  ;;  %v1604_v55 = vpop.permute.xlu0 %1603 }
 0x1d9   :  { %v1624_v3 = vsel %vm1623_vm0, %v1600_v49, %v1602_v31 }
 0x1da   :  { %908 = vmatpush1.bf16.msra.mxu0 %v2888_v36 }
 0x1db   :  { %909 = vmatprep.subr.bf16.mxu0 %v2904_v51 }
 0x1dc   :  { %v1422_v25 = vpop.permute.xlu1 %1421  ;;  %v1420_v40 = vpop.permute.xlu0 %1419 }
 0x1dd   :  { %v1439_v2 = vsel %vm1435_vm15, %v1420_v40, %v1422_v25 }
 0x1de   :  { %910 = vmatpush1.bf16.msra.mxu0 %v2913_v34  ;;  %1457 = vmatprep.subr.bf16.mxu1 %v1439_v2  ;;  %v1259_v34 = vsel %vm1253_vm11, %v2966_v48, %v3003_v47  ;;  %v1625_v48 = vsel %vm1623_vm0, %v1602_v31, %v1604_v55 }
 0x1df   :  { %1273 = vmatprep.subr.bf16.mxu0 %v2924_v26 }
 0x1e0   :  { %v1608_v14 = vpop.permute.xlu1 %1607  ;;  %v1418_v54 = vpop.permute.xlu0 %1417 }
 0x1e1   :  { %1786 = vmatmul.mubr.msk.bf16.vlgmr.msra.gmra.mrb[8].mxu0 %vm259_vm8, %v806_v12  ;;  %v1438_v19 = vsel %vm1435_vm15, %v1418_v54, %v1420_v40 }
 0x1e2   :  { %1274 = vmatpush1.bf16.msra.mxu0 %v2935_v56  ;;  %1305 = vmatprep.mubr.bf16.mxu0 %v2029_v0 }
 0x1e3   :  { %1458 = vmatpush1.bf16.msra.mxu1 %v1438_v19  ;;  %1275 = vmatprep.subr.bf16.mxu0 %v2954_v60  ;;  %v1261_v60 = vsel %vm1253_vm11, %v3012_v45, %v1252_v46 }
 0x1e4   :  { %v1606_v36 = vpop.permute.xlu1 %1605  ;;  %v1610_v51 = vpop.permute.xlu0 %1609 }
 0x1e5   :  { %v1627_v39 = vsel %vm1623_vm0, %v1608_v14, %v1610_v51  ;;  %v1626_v61 = vsel %vm1623_vm0, %v1606_v36, %v1608_v14 }
 0x1e6   :  { %1276 = vmatpush1.bf16.msra.mxu0 %v2960_v4 }
 0x1e7   :  { %1277 = vmatprep.subr.bf16.mxu0 %v1259_v34 }
 0x1e8   :  { %v1428_v26 = vpop.permute.xlu1 %1427  ;;  %v1426_v56 = vpop.permute.xlu0 %1425 }
 0x1e9   :  { %v1441_v38 = vsel %vm1435_vm15, %v1426_v56, %v1428_v26 }
 0x1ea   :  { %1278 = vmatpush1.bf16.msra.mxu0 %v1258_v17  ;;  %1459 = vmatprep.subr.bf16.mxu1 %v1441_v38  ;;  %v381_v50 = vpop.f32.mrb[0].mxu1 }
 0x1eb   :  { %1279 = vmatprep.subr.bf16.mxu0 %v1261_v60  ;;  %v383_v29 = vpop.f32.mrb[1].mxu1 }
 0x1ec   :  { %v1614_v4 = vpop.permute.xlu1 %1613  ;;  %v1424_v8 = vpop.permute.xlu0 %1423 }
 0x1ed   :  { %v1440_v9 = vsel %vm1435_vm15, %v1424_v8, %v1426_v56  ;;  %v385_v41 = vpop.f32.mrb[2].mxu1 }
 0x1ee   :  { %1280 = vmatpush1.bf16.msra.mxu0 %v1260_v7  ;;  %1460 = vmatpush1.bf16.msra.mxu1 %v1440_v9  ;;  %v386_v37 = vpop.f32.mrb[3].mxu1 }
 0x1ef   :  { %1643 = vmatprep.subr.bf16.mxu0 %v1625_v48 }
 0x1f0   :  { %v1612_v28 = vpop.permute.xlu1 %1611  ;;  %v1616_v53 = vpop.permute.xlu0 %1615 }
 0x1f1   :  { %1816 = vmatmul.mubr.msk.bf16.vlgmr.msra.gmra.mrb[12].mxu0 %vm259_vm8, %v1176_v13  ;;  %v1629_v27 = vsel %vm1623_vm0, %v1614_v4, %v1616_v53  ;;  %v1628_v22 = vsel %vm1623_vm0, %v1612_v28, %v1614_v4 }
 0x1f2   :  { %1644 = vmatpush1.bf16.msra.mxu0 %v1624_v3  ;;  %1675 = vmatprep.mubr.bf16.mxu0 %v2029_v0  ;;  %v1358_v0 = vld [vmem:[#allocation5 + $0x1c] sm:$0xf] }
 0x1f3   :  { %1645 = vmatprep.subr.bf16.mxu0 %v1627_v39 }
 0x1f4   :  { %v1434_v16 = vpop.permute.xlu1 %1433  ;;  %v1432_v32 = vpop.permute.xlu0 %1431 }
 0x1f5   :  { %v1443_v21 = vsel %vm1435_vm15, %v1432_v32, %v1434_v16 }
 0x1f6   :  { %1646 = vmatpush1.bf16.msra.mxu0 %v1626_v61  ;;  %1461 = vmatprep.subr.bf16.mxu1 %v1443_v21 }
 0x1f7   :  { %1647 = vmatprep.subr.bf16.mxu0 %v1629_v27 }
 0x1f8   :  { %v1620_v5 = vpop.permute.xlu1 %1619  ;;  %v1430_v1 = vpop.permute.xlu0 %1429 }
 0x1f9   :  { %v1442_v20 = vsel %vm1435_vm15, %v1430_v1, %v1432_v32 }
 0x1fa   :  { %1648 = vmatpush1.bf16.msra.mxu0 %v1628_v22  ;;  %1462 = vmatpush1.bf16.msra.mxu1 %v1442_v20 }
 0x1fc   :  { %v1618_v59 = vpop.permute.xlu1 %1617  ;;  %v1622_v24 = vpop.permute.xlu0 %1621 }
 0x1fd   :  { %v1630_v62 = vsel %vm1623_vm0, %v1618_v59, %v1620_v5  ;;  %1830 = vmatmul.mubr.msk.bf16.vlgmr.msra.gmra.mrb[12].mxu1 %vm259_vm8, %v1358_v0  ;;  %v1631_v57 = vsel %vm1623_vm0, %v1620_v5, %v1622_v24 }
 0x1fe   :  { %1649 = vmatprep.subr.bf16.mxu0 %v1631_v57 }
 0x1ff   :  { %1650 = vmatpush1.bf16.msra.mxu0 %v1630_v62 }
 0x202   :  { %1846 = vmatmul.mubr.msk.bf16.vlgmr.msra.gmra.mrb[16].mxu0 %vm259_vm8, %v1546_v43 }
 0x20d   :  { %v1690_v53 = vpop.permute.xlu0 %1689 }
 0x27c   :  { %v749_v23 = vpop.f32.mrb[4].mxu1 }
 0x27d   :  { %v751_v47 = vpop.f32.mrb[5].mxu1 }
 0x27e   :  { %v753_v44 = vpop.f32.mrb[6].mxu1 }
 0x27f   :  { %v754_v30 = vpop.f32.mrb[7].mxu1 }
 0x294   :  { %v297_v6 = vpop.f32.mrb[0].mxu0 }
 0x295   :  { %v299_v45 = vpop.f32.mrb[1].mxu0  ;;  %v382_v10 = vadd.f32 %v381_v50, %v297_v6 }
 0x296   :  { %v301_v15 = vpop.f32.mrb[2].mxu0  ;;  %v384_v35 = vadd.f32 %v383_v29, %v299_v45 }
 0x297   :  { %v302_v58 = vpop.f32.mrb[3].mxu0 }
 0x2a0   :  { %v1119_v46 = vpop.f32.mrb[8].mxu1 }
 0x2a1   :  { %v1121_v52 = vpop.f32.mrb[9].mxu1 }
 0x2a2   :  { %v1123_v42 = vpop.f32.mrb[10].mxu1 }
 0x2a3   :  { %v1124_v33 = vpop.f32.mrb[11].mxu1 }
 0x2a4   :  { %v567_v63 = vpop.f32.mrb[4].mxu0 }
 0x2a5   :  { %v574_v31 = vadd.f32 %v567_v63, %v382_v10  ;;  %v569_v18 = vpop.f32.mrb[5].mxu0 }
 0x2a6   :  { %v575_v11 = vadd.f32 %v569_v18, %v384_v35  ;;  %v571_v49 = vpop.f32.mrb[6].mxu0 }
 0x2a7   :  { %v756_v55 = vadd.f32 %v749_v23, %v574_v31  ;;  %v572_v25 = vpop.f32.mrb[7].mxu0 }
 0x2a8   :  { %v757_v40 = vadd.f32 %v751_v47, %v575_v11 }
 0x2b4   :  { %v937_v2 = vpop.f32.mrb[8].mxu0 }
 0x2b5   :  { %v944_v12 = vadd.f32 %v937_v2, %v756_v55  ;;  %v939_v14 = vpop.f32.mrb[9].mxu0 }
 0x2b6   :  { %v945_v54 = vadd.f32 %v939_v14, %v757_v40  ;;  %v941_v19 = vpop.f32.mrb[10].mxu0 }
 0x2b7   :  { %v1126_v36 = vadd.f32 %v1119_v46, %v944_v12  ;;  %v942_v51 = vpop.f32.mrb[11].mxu0 }
 0x2b8   :  { %v1127_v34 = vadd.f32 %v1121_v52, %v945_v54 }
 0x2c4   :  { %v1307_v26 = vpop.f32.mrb[12].mxu0 }
 0x2c5   :  { %v1314_v17 = vadd.f32 %v1307_v26, %v1126_v36  ;;  %v1309_v56 = vpop.f32.mrb[13].mxu0 }
 0x2c6   :  { %v1315_v38 = vadd.f32 %v1309_v56, %v1127_v34  ;;  %v1311_v60 = vpop.f32.mrb[14].mxu0 }
 0x2c7   :  { %v1312_v4 = vpop.f32.mrb[15].mxu0 }
 0x2d0   :  { %v1489_v7 = vpop.f32.mrb[12].mxu1 }
 0x2d1   :  { %v1496_v8 = vadd.f32 %v1489_v7, %v1314_v17  ;;  %v1491_v9 = vpop.f32.mrb[13].mxu1 }
 0x2d2   :  { %v1497_v48 = vadd.f32 %v1491_v9, %v1315_v38  ;;  %v1493_v13 = vpop.f32.mrb[14].mxu1 }
 0x2d3   :  { %v1494_v28 = vpop.f32.mrb[15].mxu1 }
 0x2d5   :  { %v1677_v3 = vpop.f32.mrb[16].mxu0 }
 0x2d6   :  { %v1684_v39 = vadd.f32 %v1677_v3, %v1496_v8  ;;  %v1679_v16 = vpop.f32.mrb[17].mxu0 }
 0x2d7   :  { %v1685_v61 = vadd.f32 %v1679_v16, %v1497_v48  ;;  %v1681_v32 = vpop.f32.mrb[18].mxu0 }
 0x2d8   :  { %v1692_v21 = vadd.f32 %v1690_v53, %v1684_v39  ;;  %v1682_v27 = vpop.f32.mrb[19].mxu0 }
 0x2d9   :  { %v1693_v5 = vadd.f32 %v1690_v53, %v1685_v61 }
 0x2da   :  { %1885 = vtanh.f32 %v1692_v21 }
 0x2db   :  { %1887 = vtanh.f32 %v1693_v5 }
 0x2e4   :  { %v1886_v22 = vpop.eup %1885 }
 0x2e5   :  { %v1888_v1 = vpop.eup %1887  ;;  %1696 = vst [vmem:[#allocation10] sm:$0xff] %v1886_v22 }
 0x2e6   :  { %1697 = vst [vmem:[#allocation10 + $0x8] sm:$0xff] %v1888_v1 }
 0x2e7   :  { %1988 = shalt.err (!%p1985_p8)
}
 0x2e8   :  { %s1989_s5 = scalar_lea.hbm %s3082_s4, 256 }
 0x2e9   :  { %p1990_p9 = scmp.ne.s32.totalorder %s3082_s4, %s1989_s5  ;;  %p1993_p10 = scmp.lt.u32.totalorder %s1989_s5, %s3082_s4 }
 0x2eb   :  { %p1995_p11 = pnand %p1993_p10, %p1990_p9 }
 0x2ed   :  { %1998 = shalt.err (!%p1995_p11)
}
 0x2ee   :  { %1707 = dma.vmem_to_hbm [thread:$0]  %s1705_s27, 256, %s3082_s4, [#allocation4]  }
 0x2ef   :  { %2005 = dma.done.wait [#allocation4], 256  }
 0x2f0   :  { %2006 = vsyncadd [#allocation4], 4294967040 }
 0x2f1   :  { %1711 = vsyncpa [#allocation3], 1 }
 0x2f2   :  { %1712 = vsyncpa [#allocation6], 1 }
 0x2f3   :  { %1713 = vsyncpa [#allocation9], 1 }
 0x2f4   :  { %1714 = vsyncpa [#allocation4], 1 }

// kernel: generator_forward.4
= control target key start
LH: loop header
LB: loop body
LE: loop exit
PB: predicated region body
PF: predicated region fallthrough
CT: control target
= control target key end

     0   :  { %11 = vsyncpa [#allocation3], 0  ;;  %s5990_s0 = inlined_call_operand.hbm [shape: bf16[74,128], index: 0, kind: input, shape index: {}]   ;;  %s5991_s1 = inlined_call_operand.hbm [shape: bf16[1152,256], index: 1, kind: input, shape index: {}]   ;;  %s5992_s2 = inlined_call_operand.hbm [shape: bf16[64,9], index: 2, kind: input, shape index: {}]   ;;  %s5993_s3 = inlined_call_operand.hbm [shape: f32[256,256], index: 3, kind: input, shape index: {}]   ;;  %s5994_s4 = inlined_call_operand.hbm [shape: f32[1,256], index: 4, kind: input, shape index: {}]   ;;  %s5995_s5 = inlined_call_operand.hbm [shape: f32[1,256], index: 5, kind: input, shape index: {}]   ;;  %s5996_s6 = inlined_call_operand.hbm [shape: bf16[64,256], index: 6, kind: output, shape index: {}]  }
   0x1   :  { %12 = vsyncpa [#allocation6], 0 }
   0x2   :  { %13 = vsyncpa [#allocation9], 0 }
   0x3   :  { %14 = vsyncpa [#allocation12], 0 }
   0x4   :  { %15 = vsyncpa [#allocation4], 0  ;;  %s4846_s21 = smov [#allocation5]   ;;  %s4682_s25 = scalar_lea.hbm %s5991_s1, 18432 }
   0x5   :  { %s33_s22 = sshll.u32 %s4846_s21, 4  ;;  %p4683_p0 = scmp.ne.s32.totalorder %s5991_s1, %s4682_s25  ;;  %s34_s22 = int_to_ptr.vmem [resolvable:$true] %s33_s22 }
   0x6   :  { %p4686_p1 = scmp.lt.u32.totalorder %s4682_s25, %s5991_s1 }
   0x8   :  { %p4688_p2 = pnand %p4686_p1, %p4683_p0 }
   0xa   :  { %4691 = shalt.err (!%p4688_p2)
}
   0xb   :  { %s4692_s30 = scalar_lea.vmem %s34_s22, 18432  ;;  %p4697_p4 = scmp.lt.s32.totalorder %s34_s22, %s34_s22 }
   0xc   :  { %p4693_p3 = scmp.ne.s32.totalorder %s34_s22, %s4692_s30  ;;  %p4698_p5 = scmp.lt.s32.totalorder %s4692_s30, %s4692_s30 }
   0xe   :  { %p4699_p6 = por %p4698_p5, %p4697_p4 }
  0x10   :  { %p4700_p7 = pnand %p4699_p6, %p4693_p3 }
  0x12   :  { %4703 = shalt.err (!%p4700_p7)
}
  0x13   :  { %s4847_s7 = smov 128   ;;  %s4848_s8 = smov 8  }
  0x14   :  { %39 = dma.hbm_to_vmem [thread:$0]  %s5991_s1, 18432, %s34_s22, [#allocation6], %s4847_s7, %s4847_s7, %s4848_s8  }
  0x15   :  { %s4849_s11 = smov [#allocation8]   ;;  %s4704_s15 = scalar_lea.hbm %s5993_s3, 8192 }
  0x16   :  { %s57_s12 = sshll.u32 %s4849_s11, 4  ;;  %p4705_p8 = scmp.ne.s32.totalorder %s5993_s3, %s4704_s15  ;;  %s58_s12 = int_to_ptr.vmem [resolvable:$true] %s57_s12 }
  0x17   :  { %p4708_p9 = scmp.lt.u32.totalorder %s4704_s15, %s5993_s3 }
  0x19   :  { %p4710_p10 = pnand %p4708_p9, %p4705_p8 }
  0x1b   :  { %4713 = shalt.err (!%p4710_p10)
}
  0x1c   :  { %s4714_s20 = scalar_lea.vmem %s58_s12, 8192  ;;  %p4719_p12 = scmp.lt.s32.totalorder %s58_s12, %s58_s12 }
  0x1d   :  { %p4715_p11 = scmp.ne.s32.totalorder %s58_s12, %s4714_s20  ;;  %p4720_p13 = scmp.lt.s32.totalorder %s4714_s20, %s4714_s20 }
  0x1f   :  { %p4721_p0 = por %p4720_p13, %p4719_p12 }
  0x21   :  { %p4722_p1 = pnand %p4721_p0, %p4715_p11 }
  0x23   :  { %4725 = shalt.err (!%p4722_p1)
}
  0x24   :  { %s4850_s1 = smov 256   ;;  %s4851_s21 = smov 16  }
  0x25   :  { %63 = dma.hbm_to_vmem [thread:$0]  %s5993_s3, 8192, %s58_s12, [#allocation9], %s4850_s1, %s4850_s1, %s4851_s21  }
  0x26   :  { %s4852_s24 = smov [#allocation2]   ;;  %s4726_s28 = scalar_lea.hbm %s5990_s0, 640 }
  0x27   :  { %s21_s25 = sshll.u32 %s4852_s24, 4  ;;  %p4727_p2 = scmp.ne.s32.totalorder %s5990_s0, %s4726_s28  ;;  %s22_s25 = int_to_ptr.vmem [resolvable:$true] %s21_s25 }
  0x28   :  { %p4730_p3 = scmp.lt.u32.totalorder %s4726_s28, %s5990_s0 }
  0x2a   :  { %p4732_p4 = pnand %p4730_p3, %p4727_p2 }
  0x2c   :  { %4735 = shalt.err (!%p4732_p4)
}
  0x2d   :  { %s4736_s11 = scalar_lea.vmem %s22_s25, 640  ;;  %p4741_p6 = scmp.lt.s32.totalorder %s22_s25, %s22_s25 }
  0x2e   :  { %p4737_p5 = scmp.ne.s32.totalorder %s22_s25, %s4736_s11  ;;  %p4742_p7 = scmp.lt.s32.totalorder %s4736_s11, %s4736_s11 }
  0x30   :  { %p4743_p8 = por %p4742_p7, %p4741_p6 }
  0x32   :  { %p4744_p9 = pnand %p4743_p8, %p4737_p5 }
  0x34   :  { %4747 = shalt.err (!%p4744_p9)
}
  0x35   :  { %s4853_s3 = smov 64   ;;  %s4854_s12 = smov 4  }
  0x36   :  { %27 = dma.hbm_to_vmem [thread:$0]  %s5990_s0, 640, %s22_s25, [#allocation3], %s4853_s3, %s4853_s3, %s4854_s12  }
  0x37   :  { %s4855_s15 = smov [#allocation7]   ;;  %s4856_s17 = smov [#allocation10]  }
  0x38   :  { %s45_s16 = sshll.u32 %s4855_s15, 4  ;;  %s70_s18 = sshll.u32 %s4856_s17, 4  ;;  %s46_s16 = int_to_ptr.vmem [resolvable:$true] %s45_s16  ;;  %s71_s18 = int_to_ptr.vmem [resolvable:$true] %s70_s18 }
  0x39   :  { %s4748_s1 = scalar_lea.hbm %s5992_s2, 512 }
  0x3a   :  { %p4749_p10 = scmp.ne.s32.totalorder %s5992_s2, %s4748_s1  ;;  %p4752_p11 = scmp.lt.u32.totalorder %s4748_s1, %s5992_s2 }
  0x3c   :  { %p4754_p12 = pnand %p4752_p11, %p4749_p10 }
  0x3e   :  { %4757 = shalt.err (!%p4754_p12)
}
  0x3f   :  { %s4758_s0 = scalar_lea.vmem %s46_s16, 512  ;;  %p4763_p0 = scmp.lt.s32.totalorder %s46_s16, %s46_s16 }
  0x40   :  { %p4759_p13 = scmp.ne.s32.totalorder %s46_s16, %s4758_s0  ;;  %p4764_p1 = scmp.lt.s32.totalorder %s4758_s0, %s4758_s0 }
  0x42   :  { %p4765_p2 = por %p4764_p1, %p4763_p0 }
  0x44   :  { %p4766_p3 = pnand %p4765_p2, %p4759_p13 }
  0x46   :  { %4769 = shalt.err (!%p4766_p3)
}
  0x47   :  { %51 = dma.hbm_to_vmem [thread:$0]  %s5992_s2, 512, %s46_s16, [#allocation6], %s4853_s3, %s4853_s3, %s4854_s12  }
  0x48   :  { %s4770_s29 = scalar_lea.hbm %s5994_s4, 32 }
  0x49   :  { %p4771_p4 = scmp.ne.s32.totalorder %s5994_s4, %s4770_s29  ;;  %p4774_p5 = scmp.lt.u32.totalorder %s4770_s29, %s5994_s4 }
  0x4b   :  { %p4776_p6 = pnand %p4774_p5, %p4771_p4 }
  0x4d   :  { %4779 = shalt.err (!%p4776_p6)
}
  0x4e   :  { %s4780_s13 = scalar_lea.vmem %s71_s18, 32  ;;  %p4785_p8 = scmp.lt.s32.totalorder %s71_s18, %s71_s18 }
  0x4f   :  { %p4781_p7 = scmp.ne.s32.totalorder %s71_s18, %s4780_s13  ;;  %p4786_p9 = scmp.lt.s32.totalorder %s4780_s13, %s4780_s13 }
  0x51   :  { %p4787_p10 = por %p4786_p9, %p4785_p8 }
  0x53   :  { %p4788_p11 = pnand %p4787_p10, %p4781_p7 }
  0x55   :  { %4791 = shalt.err (!%p4788_p11)
}
  0x56   :  { %73 = dma.hbm_to_vmem [thread:$0]  %s5994_s4, 32, %s71_s18, [#allocation9]  }
  0x57   :  { %s4857_s12 = smov [#allocation11]   ;;  %s4792_s17 = scalar_lea.hbm %s5995_s5, 32 }
  0x58   :  { %s80_s14 = sshll.u32 %s4857_s12, 4  ;;  %p4793_p12 = scmp.ne.s32.totalorder %s5995_s5, %s4792_s17  ;;  %s81_s14 = int_to_ptr.vmem [resolvable:$true] %s80_s14 }
  0x59   :  { %p4796_p13 = scmp.lt.u32.totalorder %s4792_s17, %s5995_s5 }
  0x5b   :  { %p4798_p0 = pnand %p4796_p13, %p4793_p12 }
  0x5d   :  { %4801 = shalt.err (!%p4798_p0)
}
  0x5e   :  { %s4802_s22 = scalar_lea.vmem %s81_s14, 32  ;;  %p4807_p2 = scmp.lt.s32.totalorder %s81_s14, %s81_s14 }
  0x5f   :  { %p4803_p1 = scmp.ne.s32.totalorder %s81_s14, %s4802_s22  ;;  %p4808_p3 = scmp.lt.s32.totalorder %s4802_s22, %s4802_s22 }
  0x61   :  { %p4809_p4 = por %p4808_p3, %p4807_p2 }
  0x63   :  { %p4810_p5 = pnand %p4809_p4, %p4803_p1 }
  0x65   :  { %4813 = shalt.err (!%p4810_p5)
}
  0x66   :  { %83 = dma.hbm_to_vmem [thread:$0]  %s5995_s5, 32, %s81_s14, [#allocation12]  }
  0x67   :  { %4836 = dma.done.wait [#allocation3], 640  }
  0x68   :  { %4837 = vsyncadd [#allocation3], 4294966656 }
  0x69   :  { %4838 = dma.done.wait [#allocation6], 18944  }
  0x6a   :  { %4839 = vsyncadd [#allocation6], 4294948352 }
  0x6b   :  { %4840 = dma.done.wait [#allocation9], 8224  }
  0x6c   :  { %4841 = vsyncadd [#allocation9], 4294959072 }
  0x6d   :  { %4842 = dma.done.wait [#allocation12], 32  }
  0x6e   :  { %4843 = vsyncadd [#allocation12], 4294967264  ;;  %v4858_v0 = vmov 3   ;;  %v4859_v1 = vmov 0   ;;  %v4982_v2 = vld [vmem:[#allocation7 + $0x8] sm:$0xf]  ;;  %v127_v53 = vlaneseq }
  0x6f   :  { %4430 = vset.pattern.permute.xlu1 %v4858_v0  ;;  %4429 = vset.pattern.permute.xlu0 %v4858_v0  ;;  %v4984_v3 = vld [vmem:[#allocation7] sm:$0xf]  ;;  %v4988_v4 = vld [vmem:[#allocation7 + $0xc] sm:$0xf]  ;;  %v4990_v5 = vld [vmem:[#allocation7 + $0x4] sm:$0xf] }
  0x70   :  { %1508 = vmatprep.mubr.bf16.mxu0 %v4859_v1  ;;  %620 = vmatprep.mubr.bf16.mxu1 %v4859_v1  ;;  %v4454_v6 = vld [vmem:[#allocation5 + $0x184] ss:$8 sps:$4 sm:$0xff]   ;;  %v4456_v7 = vld [vmem:[#allocation5 + $0x180] ss:$8 sps:$4 sm:$0xff]   ;;  %v4457_v8 = vld [vmem:[#allocation5 + $0x194] ss:$8 sps:$4 sm:$0xff]  }
  0x71   :  { %1226 = vperm.xlu1 %4430, %v4982_v2   ;;  %1204 = vperm.xlu0 %4429, %v4984_v3   ;;  %v4994_v9 = vld [vmem:[#allocation7 + $0x14] sm:$0xf]  ;;  %v4996_v10 = vld [vmem:[#allocation7 + $0x10] sm:$0xf]  ;;  %v4460_v12 = vld [vmem:[#allocation5 + $0x1a4] ss:$8 sps:$4 sm:$0xff]  }
  0x72   :  { %1476 = vmatprep.subr.bf16.mxu0 %v4454_v6  ;;  %v4459_v11 = vld [vmem:[#allocation5 + $0x190] ss:$8 sps:$4 sm:$0xff]   ;;  %v5000_v13 = vld [vmem:[#allocation7 + $0x1c] sm:$0xf]  ;;  %v4462_v15 = vld [vmem:[#allocation5 + $0x1a0] ss:$8 sps:$4 sm:$0xff]  }
  0x73   :  { %1477 = vmatpush1.bf16.msra.mxu0 %v4456_v7  ;;  %v5002_v14 = vld [vmem:[#allocation7 + $0x18] sm:$0xf]  ;;  %v4463_v16 = vld [vmem:[#allocation5 + $0x1b4] ss:$8 sps:$4 sm:$0xff]   ;;  %v4466_v18 = vld [vmem:[#allocation5 + $0x1c4] ss:$8 sps:$4 sm:$0xff]  }
  0x74   :  { %1478 = vmatprep.subr.bf16.mxu0 %v4457_v8  ;;  %v4465_v17 = vld [vmem:[#allocation5 + $0x1b0] ss:$8 sps:$4 sm:$0xff]   ;;  %v4860_v19 = vmov 4   ;;  %v4468_v20 = vld [vmem:[#allocation5 + $0x1c0] ss:$8 sps:$4 sm:$0xff]   ;;  %v4861_v28 = vmov 5  }
  0x75   :  { %1237 = vperm.xlu1 %4430, %v4988_v4   ;;  %1215 = vperm.xlu0 %4429, %v4990_v5   ;;  %v4469_v21 = vld [vmem:[#allocation5 + $0x1d4] ss:$8 sps:$4 sm:$0xff]   ;;  %v4471_v22 = vld [vmem:[#allocation5 + $0x1d0] ss:$8 sps:$4 sm:$0xff]   ;;  %v4472_v23 = vld [vmem:[#allocation5 + $0x1e4] ss:$8 sps:$4 sm:$0xff]  }
  0x76   :  { %v4474_v24 = vld [vmem:[#allocation5 + $0x1e0] ss:$8 sps:$4 sm:$0xff]   ;;  %v4475_v25 = vld [vmem:[#allocation5 + $0x1f4] ss:$8 sps:$4 sm:$0xff]   ;;  %v4477_v26 = vld [vmem:[#allocation5 + $0x1f0] ss:$8 sps:$4 sm:$0xff]  }
  0x77   :  { %1479 = vmatpush1.bf16.msra.mxu0 %v4459_v11  ;;  %v4480_v27 = vld [vmem:[#allocation5 + $0x204] ss:$8 sps:$4 sm:$0xff]   ;;  %v4862_v29 = vmov 1   ;;  %v4504_v31 = vld [vmem:[#allocation5 + $0x80] ss:$8 sps:$4 sm:$0xff]   ;;  %v4863_v33 = vmov 6  }
  0x78   :  { %1480 = vmatprep.subr.bf16.mxu0 %v4460_v12  ;;  %v4499_v30 = vld [vmem:[#allocation5 + $0x84] ss:$8 sps:$4 sm:$0xff]   ;;  %v4505_v32 = vld [vmem:[#allocation5 + $0x94] ss:$8 sps:$4 sm:$0xff]   ;;  %v4510_v34 = vld [vmem:[#allocation5 + $0x90] ss:$8 sps:$4 sm:$0xff]  }
  0x79   :  { %1259 = vperm.xlu1 %4430, %v4994_v9   ;;  %1248 = vperm.xlu0 %4429, %v4996_v10   ;;  %v4511_v35 = vld [vmem:[#allocation5 + $0xa4] ss:$8 sps:$4 sm:$0xff]   ;;  %v4516_v36 = vld [vmem:[#allocation5 + $0xa0] ss:$8 sps:$4 sm:$0xff]   ;;  %v4517_v37 = vld [vmem:[#allocation5 + $0xb4] ss:$8 sps:$4 sm:$0xff]  }
  0x7a   :  { %588 = vmatprep.subr.bf16.mxu1 %v4499_v30  ;;  %v4522_v38 = vld [vmem:[#allocation5 + $0xb0] ss:$8 sps:$4 sm:$0xff]   ;;  %v4523_v39 = vld [vmem:[#allocation5 + $0xc4] ss:$8 sps:$4 sm:$0xff]   ;;  %v4528_v40 = vld [vmem:[#allocation5 + $0xc0] ss:$8 sps:$4 sm:$0xff]  }
  0x7b   :  { %1481 = vmatpush1.bf16.msra.mxu0 %v4462_v15  ;;  %589 = vmatpush1.bf16.msra.mxu1 %v4504_v31  ;;  %v4529_v41 = vld [vmem:[#allocation5 + $0xd4] ss:$8 sps:$4 sm:$0xff]   ;;  %v4534_v42 = vld [vmem:[#allocation5 + $0xd0] ss:$8 sps:$4 sm:$0xff]   ;;  %v4535_v43 = vld [vmem:[#allocation5 + $0xe4] ss:$8 sps:$4 sm:$0xff]  }
  0x7c   :  { %1482 = vmatprep.subr.bf16.mxu0 %v4463_v16  ;;  %590 = vmatprep.subr.bf16.mxu1 %v4505_v32  ;;  %v4864_v44 = vmov 7   ;;  %v4540_v45 = vld [vmem:[#allocation5 + $0xe0] ss:$8 sps:$4 sm:$0xff]   ;;  %v4541_v46 = vld [vmem:[#allocation5 + $0xf4] ss:$8 sps:$4 sm:$0xff]   ;;  %v4865_v48 = vmov 2  }
  0x7d   :  { %1281 = vperm.xlu1 %4430, %v5000_v13   ;;  %1270 = vperm.xlu0 %4429, %v5002_v14   ;;  %v4546_v47 = vld [vmem:[#allocation5 + $0xf0] ss:$8 sps:$4 sm:$0xff]   ;;  %v4866_v49 = vmov 8   ;;  %v4564_v50 = vld [vmem:[#allocation5 + $0x4] ss:$8 sps:$4 sm:$0xff]   ;;  %v5058_v55 = vshrl.u32 %v127_v53, 7 }
  0x7e   :  { %v4867_v51 = vmov 839922192   ;;  %vm1299_vm0 = vcmask 1041408   ;;  %vm1300_vm1 = vcmask 1045508   ;;  %v5078_v15 = vld [vmem:[#allocation2 + $0x4] sm:$0xf] }
  0x7f   :  { %1483 = vmatpush1.bf16.msra.mxu0 %v4465_v17  ;;  %591 = vmatpush1.bf16.msra.mxu1 %v4510_v34  ;;  %v125_v52 = vunpack.c.l.s4 %v4867_v51  ;;  %vm5074_vm2 = vmor %vm1299_vm0, %vm1300_vm1  ;;  %vm1382_vm3 = vcmask 1045504   ;;  %v4478_v53 = vld [vmem:[#allocation5 + $0x200] ss:$8 sps:$4 sm:$0xff]   ;;  %vm1654_vm4 = vsmask.f32 2304  ;;  %vm2108_vm7 = vcmask 1042432  }
  0x80   :  { %1484 = vmatprep.subr.bf16.mxu0 %v4466_v18  ;;  %592 = vmatprep.subr.bf16.mxu1 %v4511_v35  ;;  %vm1655_vm5 = vsmask.f32 6416  ;;  %vm2109_vm8 = vcmask 1046532   ;;  %vm1793_vm9 = vsmask.f32 5376  ;;  %vm2191_vm15 = vcmask 1044480  }
  0x81   :  { %4432 = vset.pattern.permute.xlu1 %v4860_v19  ;;  %4431 = vset.pattern.permute.xlu0 %v4860_v19  ;;  %v126_v54 = vunpack.c.0.s8 %v125_v52  ;;  %v5080_v19 = vld [vmem:[#allocation2] sm:$0xc]  ;;  %vm5154_vm6 = vmor %vm1654_vm4, %vm1655_vm5  ;;  %vm336_vm10 = vsmask.f32 256  ;;  %vm337_vm11 = vsmask.f32 4368 }
  0x82   :  { %1578 = vperm.xlu1 %4432, %v4990_v5   ;;  %1567 = vperm.xlu0 %4431, %v4984_v3   ;;  %vm5235_vm12 = vmor %vm2108_vm7, %vm2109_vm8  ;;  %vm467_vm14 = vsmask.f32 7424  ;;  %vm935_vm0 = vcmask 1040384   ;;  %vm936_vm1 = vcmask 1044484   ;;  %s4869_s5 = smov [#allocation13]  }
  0x83   :  { %1485 = vmatpush1.bf16.msra.mxu0 %v4468_v20  ;;  %593 = vmatpush1.bf16.msra.mxu1 %v4516_v36  ;;  %v5064_v56 = vsub.s32 %v126_v54, %v5058_v55  ;;  %vm5279_vm13 = vmor %vm336_vm10, %vm337_vm11  ;;  %s3931_s23 = sshll.u32 %s4869_s5, 4  ;;  %s3932_s23 = int_to_ptr.vmem [resolvable:$true] %s3931_s23 }
  0x84   :  { %1486 = vmatprep.subr.bf16.mxu0 %v4469_v21  ;;  %594 = vmatprep.subr.bf16.mxu1 %v4517_v37  ;;  %v5099_v37 = vld [vmem:[#allocation2 + $0x14] sm:$0xf]  ;;  %s4814_s24 = scalar_lea.vmem %s3932_s23, 1024  ;;  %p4819_p7 = scmp.lt.s32.totalorder %s3932_s23, %s3932_s23 }
  0x85   :  { %p4815_p6 = scmp.ne.s32.totalorder %s3932_s23, %s4814_s24  ;;  %p4820_p8 = scmp.lt.s32.totalorder %s4814_s24, %s4814_s24 }
  0x86   :  { %1589 = vperm.xlu1 %4432, %v4982_v2   ;;  %1600 = vperm.xlu0 %4431, %v4988_v4  }
  0x87   :  { %1487 = vmatpush1.bf16.msra.mxu0 %v4471_v22  ;;  %595 = vmatpush1.bf16.msra.mxu1 %v4522_v38  ;;  %v5085_v22 = vld [vmem:[#allocation2 + $0xc] sm:$0xf]  ;;  %p4821_p9 = por %p4820_p8, %p4819_p7 }
  0x88   :  { %1488 = vmatprep.subr.bf16.mxu0 %v4472_v23  ;;  %596 = vmatprep.subr.bf16.mxu1 %v4523_v39  ;;  %v5102_v39 = vld [vmem:[#allocation2 + $0x10] sm:$0xf] }
  0x89   :  { %p4822_p10 = pnand %p4821_p9, %p4815_p6 }
  0x8a   :  { %1611 = vperm.xlu1 %4432, %v4996_v10   ;;  %1622 = vperm.xlu0 %4431, %v4994_v9  }
  0x8b   :  { %1489 = vmatpush1.bf16.msra.mxu0 %v4474_v24  ;;  %597 = vmatpush1.bf16.msra.mxu1 %v4528_v40  ;;  %v5089_v24 = vld [vmem:[#allocation2 + $0x8] sm:$0xf] }
  0x8c   :  { %1490 = vmatprep.subr.bf16.mxu0 %v4475_v25  ;;  %598 = vmatprep.subr.bf16.mxu1 %v4529_v41 }
  0x8e   :  { %1633 = vperm.xlu1 %4432, %v5002_v14   ;;  %1644 = vperm.xlu0 %4431, %v5000_v13  }
  0x8f   :  { %1491 = vmatpush1.bf16.msra.mxu0 %v4477_v26  ;;  %599 = vmatpush1.bf16.msra.mxu1 %v4534_v42 }
  0x90   :  { %1922 = vmatprep.subr.bf16.mxu0 %v4480_v27  ;;  %600 = vmatprep.subr.bf16.mxu1 %v4535_v43 }
  0x92   :  { %4433 = vset.pattern.permute.xlu1 %v4861_v28  ;;  %4434 = vset.pattern.permute.xlu0 %v4861_v28 }
  0x93   :  { %2013 = vperm.xlu1 %4433, %v4984_v3   ;;  %2024 = vperm.xlu0 %4434, %v4990_v5  }
  0x94   :  { %601 = vmatpush1.bf16.msra.mxu1 %v4540_v45 }
  0x95   :  { %602 = vmatprep.subr.bf16.mxu1 %v4541_v46 }
  0x97   :  { %2035 = vperm.xlu1 %4433, %v4982_v2   ;;  %2057 = vperm.xlu0 %4434, %v4996_v10  }
  0x98   :  { %603 = vmatpush1.bf16.msra.mxu1 %v4546_v47 }
  0x99   :  { %765 = vmatprep.subr.bf16.mxu1 %v4564_v50 }
  0x9b   :  { %2046 = vperm.xlu1 %4433, %v4988_v4   ;;  %2079 = vperm.xlu0 %4434, %v5002_v14  }
  0x9f   :  { %2068 = vperm.xlu1 %4433, %v4994_v9   ;;  %4435 = vset.pattern.permute.xlu0 %v4862_v29 }
  0xa0   :  { %249 = vperm.xlu0 %4435, %v4984_v3  }
  0xa3   :  { %2090 = vperm.xlu1 %4433, %v5000_v13  }
  0xa4   :  { %282 = vperm.xlu0 %4435, %v4988_v4  }
  0xa7   :  { %4436 = vset.pattern.permute.xlu1 %v4862_v29 }
  0xa8   :  { %260 = vperm.xlu1 %4436, %v4990_v5   ;;  %304 = vperm.xlu0 %4435, %v4994_v9  }
  0xac   :  { %271 = vperm.xlu1 %4436, %v4982_v2   ;;  %4438 = vset.pattern.permute.xlu0 %v4863_v33 }
  0xad   :  { %2387 = vperm.xlu0 %4438, %v4990_v5  }
  0xb0   :  { %293 = vperm.xlu1 %4436, %v4996_v10  }
  0xb1   :  { %2398 = vperm.xlu0 %4438, %v4982_v2  }
  0xb4   :  { %4437 = vset.pattern.permute.xlu1 %v4863_v33 }
  0xb5   :  { %2376 = vperm.xlu1 %4437, %v4984_v3   ;;  %2420 = vperm.xlu0 %4438, %v4996_v10  }
  0xb9   :  { %4439 = vset.pattern.permute.xlu1 %v4862_v29  ;;  %2453 = vperm.xlu0 %4438, %v5000_v13  }
  0xba   :  { %315 = vperm.xlu1 %4439, %v5002_v14  }
  0xbd   :  { %4443 = vset.pattern.permute.xlu0 %v4864_v44 }
  0xbe   :  { %326 = vperm.xlu1 %4439, %v5000_v13   ;;  %2690 = vperm.xlu0 %4443, %v4984_v3  }
  0xc2   :  { %4440 = vset.pattern.permute.xlu1 %v4863_v33  ;;  %2723 = vperm.xlu0 %4443, %v4988_v4  }
  0xc3   :  { %2409 = vperm.xlu1 %4440, %v4988_v4  }
  0xc6   :  { %2767 = vperm.xlu0 %4443, %v5000_v13  }
  0xc7   :  { %2431 = vperm.xlu1 %4440, %v4994_v9  }
  0xca   :  { %4447 = vset.pattern.permute.xlu0 %v4859_v1 }
  0xcb   :  { %4441 = vset.pattern.permute.xlu1 %v4864_v44  ;;  %121 = vperm.xlu0 %4447, %v4984_v3  }
  0xcc   :  { %2701 = vperm.xlu1 %4441, %v4990_v5  }
  0xcf   :  { %169 = vperm.xlu0 %4447, %v4996_v10  }
  0xd0   :  { %2712 = vperm.xlu1 %4441, %v4982_v2  }
  0xd3   :  { %205 = vperm.xlu0 %4447, %v5000_v13  }
  0xd4   :  { %4442 = vset.pattern.permute.xlu1 %v4863_v33 }
  0xd5   :  { %2442 = vperm.xlu1 %4442, %v5002_v14  }
  0xd7   :  { %4450 = vset.pattern.permute.xlu0 %v4865_v48 }
  0xd8   :  { %851 = vperm.xlu0 %4450, %v4990_v5  }
  0xd9   :  { %4444 = vset.pattern.permute.xlu1 %v4864_v44 }
  0xda   :  { %2734 = vperm.xlu1 %4444, %v4996_v10  }
  0xdc   :  { %4452 = vset.pattern.permute.xlu0 %v4866_v49 }
  0xdd   :  { %3127 = vperm.xlu0 %4452, %v4990_v5  }
  0xde   :  { %2745 = vperm.xlu1 %4444, %v4994_v9  }
  0xe1   :  { %3149 = vperm.xlu0 %4452, %v4988_v4  }
  0xe2   :  { %4445 = vset.pattern.permute.xlu1 %v4859_v1 }
  0xe3   :  { %133 = vperm.xlu1 %4445, %v4990_v5  }
  0xe5   :  { %3160 = vperm.xlu0 %4452, %v4996_v10  }
  0xe7   :  { %4446 = vset.pattern.permute.xlu1 %v4864_v44 }
  0xe8   :  { %2756 = vperm.xlu1 %4446, %v5002_v14  }
  0xe9   :  { %3171 = vperm.xlu0 %4452, %v4994_v9  }
  0xec   :  { %4448 = vset.pattern.permute.xlu1 %v4859_v1 }
  0xed   :  { %145 = vperm.xlu1 %4448, %v4982_v2   ;;  %3182 = vperm.xlu0 %4452, %v5002_v14  }
  0xf0   :  { %v1227_v57 = vpop.permute.xlu1 %1226  ;;  %v1205_v58 = vpop.permute.xlu0 %1204 }
  0xf1   :  { %v1235_v59 = vrot.slane %v1227_v57, %v5064_v56  ;;  %v1213_v60 = vrot.slane %v1205_v58, %v5064_v56  ;;  %157 = vperm.xlu1 %4448, %v4988_v4   ;;  %3193 = vperm.xlu0 %4452, %v5000_v13  }
  0xf3   :  { %v1307_v61 = vrot.slane %v1235_v59, 6  ;;  %v1302_v62 = vrot.slane %v1213_v60, 6  ;;  %v4483_v60 = vld [vmem:[#allocation5 + $0x214] ss:$8 sps:$4 sm:$0xff]  }
  0xf4   :  { %v1238_v63 = vpop.permute.xlu1 %1237  ;;  %v1216_v0 = vpop.permute.xlu0 %1215 }
  0xf5   :  { %v1246_v5 = vrot.slane %v1238_v63, %v5064_v56  ;;  %181 = vperm.xlu1 %4448, %v4994_v9   ;;  %v1309_v6 = vrot.slane %v1307_v61, 4  ;;  %v1224_v7 = vrot.slane %v1216_v0, %v5064_v56  ;;  %v1303_v12 = vrot.slane %v1302_v62, 4 }
  0xf6   :  { %v1334_v29 = vmul.bf16 %v1302_v62, %v5080_v19 }
  0xf7   :  { %v1310_v11 = vrot.slane %v1246_v5, 6  ;;  %v1304_v16 = vrot.slane %v1224_v7, 6 }
  0xf8   :  { %v1260_v17 = vpop.permute.xlu1 %1259  ;;  %v1249_v18 = vpop.permute.xlu0 %1248 }
  0xf9   :  { %v1268_v20 = vrot.slane %v1260_v17, %v5064_v56  ;;  %v1257_v21 = vrot.slane %v1249_v18, %v5064_v56  ;;  %193 = vperm.xlu1 %4448, %v5002_v14   ;;  %v1311_v23 = vsel %vm5074_vm2, %v1309_v6, %v1310_v11  ;;  %v1305_v25 = vsel %vm5074_vm2, %v1303_v12, %v1304_v16  ;;  %v4481_v17 = vld [vmem:[#allocation5 + $0x210] ss:$8 sps:$4 sm:$0xff]  }
  0xfa   :  { %v1306_v26 = vrot.slane %v1304_v16, 4  ;;  %v1335_v27 = vmul.bf16 %v1305_v25, %v5078_v15  ;;  %v1312_v30 = vrot.slane %v1310_v11, 4  ;;  %v1337_v34 = vmul.bf16 %v1311_v23, %v5085_v22  ;;  %v4486_v23 = vld [vmem:[#allocation5 + $0x224] ss:$8 sps:$4 sm:$0xff]   ;;  %v5130_v25 = vld [vmem:[#allocation2 + $0x1c] sm:$0xf] }
  0xfb   :  { %v1313_v28 = vrot.slane %v1257_v21, 6  ;;  %v1316_v36 = vrot.slane %v1268_v20, 6 }
  0xfc   :  { %v1308_v31 = vsel %vm5074_vm2, %v1306_v26, %v1307_v61  ;;  %v1282_v32 = vpop.permute.xlu1 %1281  ;;  %v1271_v33 = vpop.permute.xlu0 %1270  ;;  %v4008_v42 = vcombine.low %v1334_v29, %v1335_v27 }
  0xfd   :  { %v1336_v35 = vmul.bf16 %v1308_v31, %v5089_v24  ;;  %v1315_v38 = vrot.slane %v1313_v28, 4  ;;  %4449 = vset.pattern.permute.xlu1 %v4865_v48  ;;  %v1314_v40 = vsel %vm5074_vm2, %v1312_v30, %v1313_v28  ;;  %v1279_v41 = vrot.slane %v1271_v33, %v5064_v56 }
  0xfe   :  { %840 = vperm.xlu1 %4449, %v4984_v3   ;;  %v1290_v46 = vrot.slane %v1282_v32, %v5064_v56  ;;  %v1338_v50 = vmul.bf16 %v1314_v40, %v5102_v39  ;;  %v1383_v54 = vrot.slane %v4008_v42, 2  ;;  %v1318_v18 = vrot.slane %v1316_v36, 4  ;;  %v4484_v42 = vld [vmem:[#allocation5 + $0x220] ss:$8 sps:$4 sm:$0xff]  }
  0xff   :  { %v1317_v43 = vsel %vm5074_vm2, %v1315_v38, %v1316_v36  ;;  %v5110_v44 = vcombine.low %v1336_v35, %v1337_v34  ;;  %v1319_v47 = vrot.slane %v1279_v41, 6  ;;  %v5135_v34 = vld [vmem:[#allocation2 + $0x18] sm:$0xf] }
 0x100   :  { %v1339_v45 = vmul.bf16 %v1317_v43, %v5099_v37  ;;  %v5122_v0 = vrot.slane %v1290_v46, 6  ;;  %v4489_v46 = vld [vmem:[#allocation5 + $0x234] ss:$8 sps:$4 sm:$0xff]  }
 0x101   :  { %v1579_v51 = vpop.permute.xlu1 %1578  ;;  %v1568_v52 = vpop.permute.xlu0 %1567  ;;  %v1384_v57 = vrot.slane %v5110_v44, 2  ;;  %v1321_v58 = vrot.slane %v1319_v47, 4 }
 0x102   :  { %v1587_v59 = vrot.slane %v1579_v51, %v5064_v56  ;;  %862 = vperm.xlu1 %4449, %v4982_v2   ;;  %v1576_v61 = vrot.slane %v1568_v52, %v5064_v56  ;;  %v5120_v63 = vcombine.low %v1338_v50, %v1339_v45  ;;  %v1324_v50 = vrot.slane %v5122_v0, 4 }
 0x103   :  { %v1385_v62 = vsel %vm1382_vm3, %v1383_v54, %v1384_v57  ;;  %v1323_v20 = vsel %vm5074_vm2, %v1321_v58, %v5122_v0 }
 0x104   :  { %v1667_v5 = vshrl.u32 %v1587_v59, 16  ;;  %v1670_v6 = vshll.u32 %v1587_v59, 16  ;;  %1509 = vmatmul.mubr.bf16.vlgmr.msra.gmra.mrb[0].mxu0 %v1385_v62  ;;  %v1658_v7 = vshrl.u32 %v1576_v61, 16  ;;  %v1661_v11 = vshll.u32 %v1576_v61, 16  ;;  %v4487_v61 = vld [vmem:[#allocation5 + $0x230] ss:$8 sps:$4 sm:$0xff]  }
 0x105   :  { %1923 = vmatpush1.bf16.msra.mxu0 %v4478_v53  ;;  %v1590_v12 = vpop.permute.xlu1 %1589  ;;  %v1601_v16 = vpop.permute.xlu0 %1600  ;;  %1518 = vmatprep.mubr.bf16.mxu0 %v4859_v1  ;;  %v1386_v29 = vrot.slane %v5120_v63, 2 }
 0x106   :  { %v1598_v21 = vrot.slane %v1590_v12, %v5064_v56  ;;  %4451 = vset.pattern.permute.xlu1 %v4866_v49  ;;  %1924 = vmatprep.subr.bf16.mxu0 %v4483_v60  ;;  %v1660_v26 = vrot.slane %v1658_v7, 5  ;;  %v1663_v27 = vrot.slane %v1661_v11, 6  ;;  %v1609_v28 = vrot.slane %v1601_v16, %v5064_v56 }
 0x107   :  { %3116 = vperm.xlu1 %4451, %v4984_v3   ;;  %v1669_v30 = vrot.slane %v1667_v5, 5  ;;  %v1672_v31 = vrot.slane %v1670_v6, 6  ;;  %v1320_v49 = vsel %vm5074_vm2, %v1318_v18, %v1319_v47  ;;  %v1341_v3 = vmul.bf16 %v1323_v20, %v5130_v25  ;;  %v1202_v47 = vld [vmem:[#allocation2 + $0x20] sm:$0x3]  ;;  %v4492_v6 = vld [vmem:[#allocation5 + $0x244] ss:$8 sps:$4 sm:$0xff]   ;;  %vm5598_vm2 = vmor %vm935_vm0, %vm936_vm1 }
 0x108   :  { %v1677_v32 = vshrl.u32 %v1598_v21, 16  ;;  %v1680_v33 = vshll.u32 %v1598_v21, 16  ;;  %v5139_v35 = vor.u32 %v1663_v27, %v1660_v26  ;;  %v1687_v36 = vshrl.u32 %v1609_v28, 16  ;;  %v4490_v26 = vld [vmem:[#allocation5 + $0x240] ss:$8 sps:$4 sm:$0xff]  }
 0x109   :  { %v1690_v38 = vshll.u32 %v1609_v28, 16  ;;  %1925 = vmatpush1.bf16.msra.mxu0 %v4481_v17  ;;  %v1612_v40 = vpop.permute.xlu1 %1611  ;;  %v1623_v41 = vpop.permute.xlu0 %1622  ;;  %v1387_v8 = vsel %vm1382_vm3, %v1384_v57, %v1386_v29  ;;  %v1340_v51 = vmul.bf16 %v1320_v49, %v5135_v34  ;;  %v1673_v52 = vor.u32 %v1672_v31, %v1669_v30 }
 0x10a   :  { %v1679_v43 = vrot.slane %v1677_v32, 5  ;;  %v1682_v44 = vrot.slane %v1680_v33, 6  ;;  %v1620_v45 = vrot.slane %v1612_v40, %v5064_v56  ;;  %1926 = vmatprep.subr.bf16.mxu0 %v4486_v23  ;;  %v1631_v53 = vrot.slane %v1623_v41, %v5064_v56  ;;  %v4495_v32 = vld [vmem:[#allocation5 + $0x254] ss:$8 sps:$4 sm:$0xff]  }
 0x10b   :  { %3138 = vperm.xlu1 %4451, %v4982_v2   ;;  %v1665_v54 = vrot.slane %v5139_v35, 4  ;;  %v1689_v59 = vrot.slane %v1687_v36, 5  ;;  %v1692_v60 = vrot.slane %v1690_v38, 6  ;;  %v5158_v7 = vcombine.low %v1340_v51, %v1341_v3 }
 0x10c   :  { %1519 = vmatmul.mubr.bf16.gmra.mrb[4].mxu0 %v1387_v8  ;;  %v1683_v58 = vor.u32 %v1682_v44, %v1679_v43  ;;  %v1697_v62 = vshrl.u32 %v1620_v45, 16  ;;  %v1700_v0 = vshll.u32 %v1620_v45, 16  ;;  %v1342_v11 = vmul.bf16 %v1324_v50, %v1202_v47  ;;  %v4493_v44 = vld [vmem:[#allocation5 + $0x250] ss:$8 sps:$4 sm:$0xff]   ;;  %v4498_v47 = vld [vmem:[#allocation5 + $0x264] ss:$8 sps:$4 sm:$0xff]  }
 0x10d   :  { %1927 = vmatpush1.bf16.msra.mxu0 %v4484_v42  ;;  %v1634_v2 = vpop.permute.xlu1 %1633  ;;  %1528 = vmatprep.mubr.bf16.mxu0 %v4859_v1  ;;  %v1645_v5 = vpop.permute.xlu0 %1644  ;;  %v1707_v12 = vshrl.u32 %v1631_v53, 16  ;;  %v1710_v16 = vshll.u32 %v1631_v53, 16  ;;  %v1675_v18 = vrot.slane %v1673_v52, 4  ;;  %v1674_v20 = vsel %vm5154_vm6, %v1665_v54, %v1673_v52 }
 0x10e   :  { %1928 = vmatprep.subr.bf16.mxu0 %v4489_v46  ;;  %v1642_v17 = vrot.slane %v1634_v2, %v5064_v56  ;;  %v1685_v21 = vrot.slane %v1683_v58, 4  ;;  %v1693_v23 = vor.u32 %v1692_v60, %v1689_v59  ;;  %v1699_v27 = vrot.slane %v1697_v62, 5  ;;  %v4503_v62 = vld [vmem:[#allocation5 + $0x274] ss:$8 sps:$4 sm:$0xff]  }
 0x10f   :  { %4453 = vset.pattern.permute.xlu1 %v4865_v48  ;;  %v1702_v28 = vrot.slane %v1700_v0, 6  ;;  %v1388_v48 = vrot.slane %v5158_v7, 2  ;;  %v1653_v49 = vrot.slane %v1645_v5, %v5064_v56  ;;  %v1745_v36 = vmul.bf16 %v5139_v35, %v5080_v19 }
 0x110   :  { %873 = vperm.xlu1 %4453, %v4988_v4   ;;  %v1717_v30 = vshrl.u32 %v1642_v17, 16  ;;  %v1720_v4 = vshll.u32 %v1642_v17, 16  ;;  %v1746_v38 = vmul.bf16 %v1674_v20, %v5078_v15  ;;  %v1709_v40 = vrot.slane %v1707_v12, 5 }
 0x111   :  { %1929 = vmatpush1.bf16.msra.mxu0 %v4487_v61  ;;  %v1712_v41 = vrot.slane %v1710_v16, 6  ;;  %v4012_v42 = vcombine.low %v1342_v11, %v1342_v11  ;;  %v1684_v3 = vsel %vm5154_vm6, %v1675_v18, %v1683_v58  ;;  %v1694_v43 = vsel %vm5154_vm6, %v1685_v21, %v1693_v23  ;;  %v4501_v18 = vld [vmem:[#allocation5 + $0x270] ss:$8 sps:$4 sm:$0xff]  }
 0x112   :  { %v5165_v31 = vpop.permute.xlu1 %2013  ;;  %1930 = vmatprep.subr.bf16.mxu0 %v4492_v6  ;;  %v5168_v33 = vpop.permute.xlu0 %2024  ;;  %v1703_v45 = vor.u32 %v1702_v28, %v1699_v27  ;;  %v1719_v46 = vrot.slane %v1717_v30, 5  ;;  %v1722_v8 = vrot.slane %v1720_v4, 6  ;;  %v1389_v19 = vsel %vm1382_vm3, %v1386_v29, %v1388_v48  ;;  %v4496_v29 = vld [vmem:[#allocation5 + $0x260] ss:$8 sps:$4 sm:$0xff]   ;;  %v4509_v28 = vld [vmem:[#allocation5 + $0x284] ss:$8 sps:$4 sm:$0xff]  }
 0x113   :  { %v1727_v50 = vshrl.u32 %v1653_v49, 16  ;;  %v1730_v51 = vshll.u32 %v1653_v49, 16  ;;  %v4029_v52 = vcombine.low %v1745_v36, %v1746_v38  ;;  %v1713_v53 = vor.u32 %v1712_v41, %v1709_v40 }
 0x114   :  { %884 = vperm.xlu1 %4453, %v4996_v10   ;;  %1529 = vmatmul.mubr.bf16.gmra.mrb[8].mxu0 %v1389_v19  ;;  %v1747_v54 = vmul.bf16 %v1684_v3, %v5089_v24  ;;  %v1695_v58 = vrot.slane %v1693_v23, 4  ;;  %v1748_v63 = vmul.bf16 %v1694_v43, %v5085_v22  ;;  %v1390_v59 = vrot.slane %v4012_v42, 2 }
 0x115   :  { %1931 = vmatpush1.bf16.msra.mxu0 %v4490_v26  ;;  %1538 = vmatprep.mubr.bf16.mxu0 %v4859_v1  ;;  %v1705_v60 = vrot.slane %v1703_v45, 4  ;;  %v1723_v2 = vor.u32 %v1722_v8, %v1719_v46  ;;  %v1729_v0 = vrot.slane %v1727_v50, 5  ;;  %v1732_v5 = vrot.slane %v1730_v51, 6 }
 0x116   :  { %v2036_v35 = vpop.permute.xlu1 %2035  ;;  %1932 = vmatprep.subr.bf16.mxu0 %v4495_v32  ;;  %v5182_v10 = vpop.permute.xlu0 %2057  ;;  %v1795_v7 = vshrl.u32 %v4029_v52, 16  ;;  %v1798_v11 = vshll.u32 %v4029_v52, 16  ;;  %v1715_v12 = vrot.slane %v1713_v53, 4  ;;  %v4030_v16 = vcombine.low %v1747_v54, %v1748_v63  ;;  %v5241_v52 = vld [vmem:[#allocation2 + $0x20] sm:$0x7] }
 0x117   :  { %v1704_v17 = vsel %vm5154_vm6, %v1695_v58, %v1703_v45  ;;  %v1714_v20 = vsel %vm5154_vm6, %v1705_v60, %v1713_v53  ;;  %v1725_v21 = vrot.slane %v1723_v2, 4  ;;  %v2044_v23 = vrot.slane %v2036_v35, %v5064_v56  ;;  %v4507_v63 = vld [vmem:[#allocation5 + $0x280] ss:$8 sps:$4 sm:$0xff]  }
 0x118   :  { %895 = vperm.xlu1 %4453, %v4994_v9   ;;  %v2022_v9 = vrot.slane %v5165_v31, %v5064_v56  ;;  %v1391_v26 = vsel %vm1382_vm3, %v1388_v48, %v1390_v59  ;;  %v1733_v30 = vor.u32 %v1732_v5, %v1729_v0  ;;  %v1797_v32 = vrot.slane %v1795_v7, 2  ;;  %v4515_v0 = vld [vmem:[#allocation5 + $0x294] ss:$8 sps:$4 sm:$0xff]  }
 0x119   :  { %1933 = vmatpush1.bf16.msra.mxu0 %v4493_v44  ;;  %v1800_v4 = vrot.slane %v1798_v11, 3  ;;  %v5207_v49 = vsel %vm5154_vm6, %v1715_v12, %v1723_v2  ;;  %v2033_v48 = vrot.slane %v5168_v33, %v5064_v56  ;;  %v1749_v36 = vmul.bf16 %v1704_v17, %v5102_v39 }
 0x11a   :  { %v5188_v61 = vpop.permute.xlu1 %2046  ;;  %1934 = vmatprep.subr.bf16.mxu0 %v4498_v47  ;;  %v5192_v6 = vpop.permute.xlu0 %2079  ;;  %v1750_v38 = vmul.bf16 %v1714_v20, %v5099_v37  ;;  %v1803_v40 = vshrl.u32 %v4030_v16, 16  ;;  %v5217_v41 = vsel %vm5154_vm6, %v1725_v21, %v1733_v30  ;;  %v5219_v42 = vrot.slane %v2044_v23, 5  ;;  %v4513_v20 = vld [vmem:[#allocation5 + $0x290] ss:$8 sps:$4 sm:$0xff]  }
 0x11b   :  { %v2066_v33 = vrot.slane %v5182_v10, %v5064_v56  ;;  %v1751_v43 = vmul.bf16 %v5207_v49, %v5135_v34  ;;  %v1735_v44 = vrot.slane %v1733_v30, 4  ;;  %v5228_v8 = vrot.slane %v2033_v48, 5  ;;  %v4525_v49 = vld [vmem:[#allocation5 + $0x2b0] ss:$8 sps:$4 sm:$0xff]  }
 0x11c   :  { %906 = vperm.xlu1 %4453, %v5002_v14   ;;  %v5203_v14 = vrot.slane %v2022_v9, 5  ;;  %1539 = vmatmul.mubr.bf16.gmra.mrb[12].mxu0 %v1391_v26  ;;  %v1805_v57 = vrot.slane %v1803_v40, 2  ;;  %v1801_v19 = vor.u32 %v1800_v4, %v1797_v32  ;;  %v1752_v10 = vmul.bf16 %v5217_v41, %v5130_v25  ;;  %v5258_v32 = vld [vmem:[#allocation2] sm:$0xf] }
 0x11d   :  { %1935 = vmatpush1.bf16.msra.mxu0 %v4496_v29  ;;  %1954 = vmatprep.mubr.bf16.mxu0 %v4859_v1  ;;  %v2055_v51 = vrot.slane %v5188_v61, %v5064_v56  ;;  %v4031_v53 = vcombine.low %v1749_v36, %v1750_v38  ;;  %v2118_v58 = vrot.slane %v5219_v42, 4  ;;  %v5245_v2 = vrot.slane %v2066_v33, 5  ;;  %v4521_v36 = vld [vmem:[#allocation5 + $0x2a4] ss:$8 sps:$4 sm:$0xff]  }
 0x11e   :  { %v5201_v27 = vpop.permute.xlu1 %2068  ;;  %1936 = vmatprep.subr.bf16.mxu0 %v4503_v62  ;;  %v2112_v45 = vrot.slane %v5203_v14, 4  ;;  %v2088_v62 = vrot.slane %v5192_v6, %v5064_v56  ;;  %vm1018_vm3 = vcmask 1046528  }
 0x11f   :  { %v250_v31 = vpop.permute.xlu0 %249  ;;  %v1812_v9 = vshrl.u32 %v4031_v53, 16  ;;  %v1815_v61 = vshll.u32 %v4031_v53, 16  ;;  %v5263_v48 = vrot.slane %v2055_v51, 5  ;;  %v5553_v51 = vld [vmem:[#allocation2 + $0x18] sm:$0xf] }
 0x120   :  { %917 = vperm.xlu1 %4453, %v5000_v13   ;;  %v1806_v13 = vshll.u32 %v4030_v16, 16  ;;  %v258_v47 = vrot.slane %v250_v31, %v5064_v56  ;;  %v5252_v7 = vsel %vm5235_vm12, %v2112_v45, %v5228_v8 }
 0x121   :  { %1937 = vmatpush1.bf16.msra.mxu0 %v4501_v18  ;;  %v1753_v18 = vmul.bf16 %v1735_v44, %v5241_v52  ;;  %v1814_v21 = vrot.slane %v1812_v9, 2  ;;  %v1817_v23 = vrot.slane %v1815_v61, 3  ;;  %v4527_v9 = vld [vmem:[#allocation5 + $0x2b4] ss:$8 sps:$4 sm:$0xff]  }
 0x122   :  { %v5223_v3 = vpop.permute.xlu1 %2090  ;;  %2285 = vmatprep.subr.bf16.mxu0 %v4509_v28  ;;  %v1808_v35 = vrot.slane %v1806_v13, 3  ;;  %v340_v59 = vshrl.u32 %v258_v47, 16  ;;  %v343_v60 = vshll.u32 %v258_v47, 16  ;;  %v2115_v28 = vrot.slane %v5228_v8, 4 }
 0x123   :  { %v283_v46 = vpop.permute.xlu0 %282  ;;  %v5265_v40 = vor.u32 %v1817_v23, %v1814_v21  ;;  %v5275_v47 = vcombine.low %v1753_v18, %v1753_v18 }
 0x124   :  { %v291_v54 = vrot.slane %v283_v46, %v5064_v56  ;;  %v1809_v29 = vor.u32 %v1808_v35, %v1805_v57  ;;  %v342_v16 = vrot.slane %v340_v59, 7  ;;  %v2077_v35 = vrot.slane %v5201_v27, %v5064_v56  ;;  %v4519_v59 = vld [vmem:[#allocation5 + $0x2a0] ss:$8 sps:$4 sm:$0xff]  }
 0x126   :  { %v1810_v11 = vsel %vm1793_vm9, %v1801_v19, %v1809_v29  ;;  %v366_v26 = vshrl.u32 %v291_v54, 16  ;;  %v5260_v4 = vor.u32 %v343_v60, %v342_v16  ;;  %v369_v13 = vshll.u32 %v291_v54, 16 }
 0x127   :  { %v261_v5 = vpop.permute.xlu1 %260  ;;  %v305_v17 = vpop.permute.xlu0 %304  ;;  %1955 = vmatmul.mubr.bf16.vlgmr.msra.gmra.mrb[0].mxu0 %v1810_v11  ;;  %v346_v45 = vrot.slane %v342_v16, 4  ;;  %v1819_v54 = vsel %vm1793_vm9, %v1809_v29, %v5265_v40  ;;  %v4032_v29 = vcombine.low %v1751_v43, %v1752_v10  ;;  %v1830_v10 = vshrl.u32 %v5275_v47, 16 }
 0x128   :  { %v269_v12 = vrot.slane %v261_v5, %v5064_v56  ;;  %2286 = vmatpush1.bf16.msra.mxu0 %v4507_v63  ;;  %1964 = vmatprep.mubr.bf16.mxu0 %v4859_v1  ;;  %v5267_v33 = vrot.slane %v366_v26, 7  ;;  %v313_v46 = vrot.slane %v305_v17, %v5064_v56  ;;  %v419_v53 = vmul.bf16 %v5260_v4, %v5258_v32 }
 0x129   :  { %2287 = vmatprep.subr.bf16.mxu0 %v4515_v0  ;;  %v1824_v41 = vshll.u32 %v4032_v29, 16  ;;  %v1832_v8 = vrot.slane %v1830_v10, 2 }
 0x12a   :  { %v348_v30 = vshrl.u32 %v269_v12, 16  ;;  %v351_v31 = vshll.u32 %v269_v12, 16  ;;  %v371_v27 = vor.u32 %v369_v13, %v5267_v33  ;;  %v373_v5 = vrot.slane %v5267_v33, 4 }
 0x12b   :  { %v272_v38 = vpop.permute.xlu1 %271  ;;  %v384_v11 = vshrl.u32 %v313_v46, 16  ;;  %v387_v12 = vshll.u32 %v313_v46, 16  ;;  %v1833_v13 = vshll.u32 %v5275_v47, 16  ;;  %v1826_v46 = vrot.slane %v1824_v41, 3 }
 0x12c   :  { %v350_v44 = vrot.slane %v348_v30, 7  ;;  %v280_v57 = vrot.slane %v272_v38, %v5064_v56  ;;  %v5271_v19 = vpop.permute.xlu0 %2387  ;;  %2288 = vmatpush1.bf16.msra.mxu0 %v4513_v20  ;;  %v1821_v30 = vshrl.u32 %v4032_v29, 16  ;;  %v4533_v38 = vld [vmem:[#allocation5 + $0x2c4] ss:$8 sps:$4 sm:$0xff]   ;;  %v2011_v29 = vld [vmem:[#allocation2] sm:$0x8] }
 0x12d   :  { %2289 = vmatprep.subr.bf16.mxu0 %v4521_v36  ;;  %v5301_v26 = vrot.slane %v384_v11, 7  ;;  %v4531_v11 = vld [vmem:[#allocation5 + $0x2c0] ss:$8 sps:$4 sm:$0xff]  }
 0x12e   :  { %v353_v63 = vor.u32 %v351_v31, %v350_v44  ;;  %v357_v60 = vshrl.u32 %v280_v57, 16  ;;  %v360_v0 = vshll.u32 %v280_v57, 16  ;;  %v355_v16 = vrot.slane %v350_v44, 4 }
 0x12f   :  { %v294_v61 = vpop.permute.xlu1 %293  ;;  %1965 = vmatmul.mubr.bf16.gmra.mrb[4].mxu0 %v1819_v54  ;;  %v389_v36 = vor.u32 %v387_v12, %v5301_v26  ;;  %v1823_v33 = vrot.slane %v1821_v30, 2 }
 0x130   :  { %v354_v17 = vsel %vm5279_vm13, %v346_v45, %v353_v63  ;;  %v359_v18 = vrot.slane %v357_v60, 7  ;;  %v302_v20 = vrot.slane %v294_v61, %v5064_v56  ;;  %v5298_v21 = vpop.permute.xlu0 %2398  ;;  %2290 = vmatpush1.bf16.msra.mxu0 %v4519_v59  ;;  %1974 = vmatprep.mubr.bf16.mxu0 %v4859_v1  ;;  %v2124_v59 = vrot.slane %v5245_v2, 4 }
 0x131   :  { %v420_v23 = vmul.bf16 %v354_v17, %v5078_v15  ;;  %2291 = vmatprep.subr.bf16.mxu0 %v4527_v9  ;;  %v1827_v12 = vor.u32 %v1826_v46, %v1823_v33  ;;  %v4539_v17 = vld [vmem:[#allocation5 + $0x2d4] ss:$8 sps:$4 sm:$0xff]   ;;  %v4545_v33 = vld [vmem:[#allocation5 + $0x2e4] ss:$8 sps:$4 sm:$0xff]  }
 0x132   :  { %v362_v31 = vor.u32 %v360_v0, %v359_v18  ;;  %v364_v32 = vrot.slane %v359_v18, 4  ;;  %v375_v43 = vshrl.u32 %v302_v20, 16  ;;  %v378_v4 = vshll.u32 %v302_v20, 16 }
 0x133   :  { %v3946_v60 = vcombine.low %v419_v53, %v420_v23  ;;  %v2120_v53 = vsel %vm5235_vm12, %v2118_v58, %v5263_v48  ;;  %v1828_v23 = vsel %vm1793_vm9, %v5265_v40, %v1827_v12 }
 0x134   :  { %v363_v44 = vsel %vm5279_vm13, %v355_v16, %v362_v31  ;;  %v372_v45 = vsel %vm5279_vm13, %v364_v32, %v371_v27  ;;  %v377_v57 = vrot.slane %v375_v43, 7  ;;  %v5311_v54 = vpop.permute.xlu1 %2376  ;;  %v5313_v63 = vpop.permute.xlu0 %2420  ;;  %v2117_v27 = vsel %vm5235_vm12, %v2115_v28, %v5219_v42  ;;  %2292 = vmatpush1.bf16.msra.mxu0 %v4525_v49  ;;  %v4537_v43 = vld [vmem:[#allocation5 + $0x2d0] ss:$8 sps:$4 sm:$0xff]  }
 0x135   :  { %v421_v0 = vmul.bf16 %v363_v44, %v5089_v24  ;;  %v422_v47 = vmul.bf16 %v372_v45, %v5085_v22  ;;  %v5328_v16 = vrot.slane %v2077_v35, 5  ;;  %2293 = vmatprep.subr.bf16.mxu0 %v4533_v38  ;;  %v1835_v42 = vrot.slane %v1833_v13, 3 }
 0x136   :  { %v380_v9 = vor.u32 %v378_v4, %v377_v57  ;;  %v382_v61 = vrot.slane %v377_v57, 4  ;;  %v469_v41 = vshrl.u32 %v3946_v60, 16  ;;  %v471_v31 = vshll.u32 %v3946_v60, 16 }
 0x137   :  { %v5330_v18 = vcombine.low %v421_v0, %v422_v47  ;;  %1975 = vmatmul.mubr.bf16.gmra.mrb[8].mxu0 %v1828_v23  ;;  %v2143_v49 = vmul.bf16 %v5203_v14, %v2011_v29  ;;  %v2145_v4 = vmul.bf16 %v2117_v27, %v5089_v24  ;;  %v2146_v38 = vmul.bf16 %v2120_v53, %v5085_v22  ;;  %v4543_v47 = vld [vmem:[#allocation5 + $0x2e0] ss:$8 sps:$4 sm:$0xff]   ;;  %v4570_v23 = vld [vmem:[#allocation5 + $0x14] ss:$8 sps:$4 sm:$0xff]  }
 0x138   :  { %v381_v28 = vsel %vm5279_vm13, %v373_v5, %v380_v9  ;;  %v390_v20 = vsel %vm5279_vm13, %v382_v61, %v389_v36  ;;  %v5340_v32 = vpop.permute.xlu0 %2453  ;;  %v2144_v5 = vmul.bf16 %v5252_v7, %v5078_v15  ;;  %2294 = vmatpush1.bf16.msra.mxu0 %v4531_v11  ;;  %1984 = vmatprep.mubr.bf16.mxu0 %v4859_v1  ;;  %v2121_v36 = vrot.slane %v5263_v48, 4  ;;  %v4549_v9 = vld [vmem:[#allocation5 + $0x2f4] ss:$8 sps:$4 sm:$0xff]  }
 0x139   :  { %v423_v30 = vmul.bf16 %v381_v28, %v5102_v39  ;;  %v424_v58 = vmul.bf16 %v390_v20, %v5099_v37  ;;  %v316_v35 = vpop.permute.xlu1 %315  ;;  %v476_v10 = vshll.u32 %v5330_v18, 16  ;;  %2295 = vmatprep.subr.bf16.mxu0 %v4539_v17  ;;  %v473_v14 = vrot.slane %v471_v31, 1  ;;  %v4562_v17 = vld [vmem:[#allocation5] ss:$8 sps:$4 sm:$0xff]   ;;  %v4552_v31 = vld [vmem:[#allocation5 + $0x304] ss:$8 sps:$4 sm:$0xff]  }
 0x13a   :  { %v324_v40 = vrot.slane %v316_v35, %v5064_v56  ;;  %v1836_v15 = vor.u32 %v1835_v42, %v1832_v8  ;;  %v2126_v45 = vsel %vm5235_vm12, %v2124_v59, %v5328_v16  ;;  %v5357_v57 = vrot.slane %v2088_v62, 5  ;;  %v4547_v35 = vld [vmem:[#allocation5 + $0x2f0] ss:$8 sps:$4 sm:$0xff]  }
 0x13b   :  { %v478_v7 = vrot.slane %v476_v10, 1  ;;  %v474_v48 = vor.u32 %v473_v14, %v469_v41  ;;  %v5359_v46 = vcombine.low %v423_v30, %v424_v58  ;;  %v2099_v22 = vrot.slane %v5223_v3, %v5064_v56 }
 0x13c   :  { %v393_v13 = vshrl.u32 %v324_v40, 16  ;;  %v396_v44 = vshll.u32 %v324_v40, 16  ;;  %v391_v60 = vrot.slane %v5301_v26, 4  ;;  %2296 = vmatpush1.bf16.msra.mxu0 %v4537_v43  ;;  %v5365_v59 = vcombine.low %v2145_v4, %v2146_v38  ;;  %v247_v43 = vld [vmem:[#allocation2 + $0x20] sm:$0x1] }
 0x13d   :  { %v327_v24 = vpop.permute.xlu1 %326  ;;  %v2123_v6 = vsel %vm5235_vm12, %v2121_v36, %v5245_v2  ;;  %2297 = vmatprep.subr.bf16.mxu0 %v4545_v33  ;;  %v479_v62 = vsel %vm467_vm14, %v474_v48, %v478_v7  ;;  %v484_v61 = vshll.u32 %v5359_v46, 16  ;;  %v2691_v3 = vpop.permute.xlu0 %2690  ;;  %v1837_v26 = vsel %vm1793_vm9, %v1827_v12, %v1836_v15  ;;  %v4550_v15 = vld [vmem:[#allocation5 + $0x300] ss:$8 sps:$4 sm:$0xff]   ;;  %v4555_v48 = vld [vmem:[#allocation5 + $0x314] ss:$8 sps:$4 sm:$0xff]  }
 0x13e   :  { %v395_v0 = vrot.slane %v393_v13, 7  ;;  %v335_v27 = vrot.slane %v327_v24, %v5064_v56  ;;  %621 = vmatmul.mubr.bf16.vlgmr.msra.gmra.mrb[0].mxu1 %v479_v62  ;;  %v4050_v8 = vcombine.low %v2143_v49, %v2144_v5  ;;  %v2148_v28 = vmul.bf16 %v2126_v45, %v5099_v37 }
 0x13f   :  { %v2130_v20 = vrot.slane %v5357_v57, 4  ;;  %1985 = vmatmul.mubr.bf16.gmra.mrb[12].mxu0 %v1837_v26  ;;  %630 = vmatprep.mubr.bf16.mxu1 %v4859_v1  ;;  %v480_v2 = vshrl.u32 %v5330_v18, 16  ;;  %v5377_v42 = vrot.slane %v2099_v22, 5  ;;  %v2147_v41 = vmul.bf16 %v2123_v6, %v5102_v39 }
 0x140   :  { %v398_v11 = vor.u32 %v396_v44, %v395_v0  ;;  %v402_v29 = vshrl.u32 %v335_v27, 16  ;;  %v405_v53 = vshll.u32 %v335_v27, 16  ;;  %v400_v30 = vrot.slane %v395_v0, 4  ;;  %2298 = vmatpush1.bf16.msra.mxu0 %v4543_v47  ;;  %2317 = vmatprep.mubr.bf16.mxu0 %v4859_v1  ;;  %v4576_v27 = vld [vmem:[#allocation5 + $0x24] ss:$8 sps:$4 sm:$0xff]  }
 0x141   :  { %2299 = vmatprep.subr.bf16.mxu0 %v4549_v9  ;;  %v486_v49 = vrot.slane %v484_v61, 1  ;;  %v5386_v18 = vrot.slane %v2691_v3, %v5064_v56  ;;  %v2193_v5 = vrot.slane %v5365_v59, 3  ;;  %766 = vmatpush1.bf16.msra.mxu1 %v4562_v17  ;;  %v2127_v4 = vrot.slane %v5328_v16, 4  ;;  %v2724_v39 = vpop.permute.xlu0 %2723  ;;  %v4553_v61 = vld [vmem:[#allocation5 + $0x310] ss:$8 sps:$4 sm:$0xff]  }
 0x142   :  { %v399_v12 = vsel %vm5279_vm13, %v391_v60, %v398_v11  ;;  %v404_v58 = vrot.slane %v402_v29, 7  ;;  %v5382_v37 = vpop.permute.xlu1 %2409  ;;  %v482_v38 = vor.u32 %v480_v2, %v478_v7  ;;  %v5391_v33 = vcombine.low %v2147_v41, %v2148_v28  ;;  %767 = vmatprep.subr.bf16.mxu1 %v4570_v23  ;;  %v4568_v60 = vld [vmem:[#allocation5 + $0x10] ss:$8 sps:$4 sm:$0xff]   ;;  %v4558_v3 = vld [vmem:[#allocation5 + $0x324] ss:$8 sps:$4 sm:$0xff]  }
 0x143   :  { %v425_v36 = vmul.bf16 %v399_v12, %v5135_v34  ;;  %v2192_v14 = vrot.slane %v4050_v8, 3  ;;  %v2132_v13 = vsel %vm5235_vm12, %v2130_v20, %v5377_v42  ;;  %v2778_v22 = vshrl.u32 %v5386_v18, 16  ;;  %v4582_v20 = vld [vmem:[#allocation5 + $0x34] ss:$8 sps:$4 sm:$0xff]   ;;  %v4556_v23 = vld [vmem:[#allocation5 + $0x320] ss:$8 sps:$4 sm:$0xff]  }
 0x144   :  { %v407_v40 = vor.u32 %v405_v53, %v404_v58  ;;  %v409_v10 = vrot.slane %v404_v58, 4  ;;  %2300 = vmatpush1.bf16.msra.mxu0 %v4547_v35  ;;  %v487_v7 = vsel %vm467_vm14, %v482_v38, %v486_v49  ;;  %v5405_v47 = vrot.slane %v2724_v39, %v5064_v56  ;;  %v4574_v53 = vld [vmem:[#allocation5 + $0x20] ss:$8 sps:$4 sm:$0xff]   ;;  %v2680_v41 = vld [vmem:[#allocation2 + $0x4] sm:$0xf] }
 0x145   :  { %2591 = vmatprep.subr.bf16.mxu0 %v4552_v31  ;;  %v2194_v0 = vsel %vm2191_vm15, %v2192_v14, %v2193_v5  ;;  %v2129_v59 = vsel %vm5235_vm12, %v2127_v4, %v5357_v57  ;;  %v2195_v6 = vrot.slane %v5391_v33, 3  ;;  %v2150_v9 = vmul.bf16 %v2132_v13, %v5130_v25  ;;  %768 = vmatpush1.bf16.msra.mxu1 %v4568_v60  ;;  %v4588_v14 = vld [vmem:[#allocation5 + $0x44] ss:$8 sps:$4 sm:$0xff]  }
 0x146   :  { %v408_v44 = vsel %vm5279_vm13, %v400_v30, %v407_v40  ;;  %v5398_v45 = vpop.permute.xlu1 %2431  ;;  %v427_v24 = vmul.bf16 %v409_v10, %v247_v43  ;;  %631 = vmatmul.mubr.bf16.gmra.mrb[4].mxu1 %v487_v7  ;;  %v2781_v11 = vshll.u32 %v5386_v18, 16  ;;  %v2780_v29 = vrot.slane %v2778_v22, 7  ;;  %769 = vmatprep.subr.bf16.mxu1 %v4576_v27  ;;  %v4561_v43 = vld [vmem:[#allocation5 + $0x334] ss:$8 sps:$4 sm:$0xff]   ;;  %v4567_v22 = vld [vmem:[#allocation5 + $0x344] ss:$8 sps:$4 sm:$0xff]  }
 0x147   :  { %v426_v16 = vmul.bf16 %v408_v44, %v5130_v25  ;;  %2318 = vmatmul.mubr.bf16.vlgmr.msra.gmra.mrb[0].mxu0 %v2194_v0  ;;  %640 = vmatprep.mubr.bf16.mxu1 %v4859_v1  ;;  %v488_v50 = vshrl.u32 %v5359_v46, 16  ;;  %v2149_v8 = vmul.bf16 %v2129_v59, %v5135_v34  ;;  %v2804_v28 = vshrl.u32 %v5405_v47, 16  ;;  %v4586_v27 = vld [vmem:[#allocation5 + $0x40] ss:$8 sps:$4 sm:$0xff]  }
 0x148   :  { %2592 = vmatpush1.bf16.msra.mxu0 %v4550_v15  ;;  %2327 = vmatprep.mubr.bf16.mxu0 %v4859_v1  ;;  %v3950_v17 = vcombine.low %v427_v24, %v427_v24  ;;  %v2133_v2 = vrot.slane %v5377_v42, 4  ;;  %v2196_v12 = vsel %vm2191_vm15, %v2193_v5, %v2195_v6  ;;  %v2807_v34 = vshll.u32 %v5405_v47, 16  ;;  %v4580_v5 = vld [vmem:[#allocation5 + $0x30] ss:$8 sps:$4 sm:$0xff]   ;;  %v5432_v15 = vld [vmem:[#allocation2 + $0x8] sm:$0xf] }
 0x149   :  { %v3949_v62 = vcombine.low %v425_v36, %v426_v16  ;;  %2593 = vmatprep.subr.bf16.mxu0 %v4555_v48  ;;  %v490_v46 = vor.u32 %v488_v50, %v486_v49  ;;  %v5424_v31 = vcombine.low %v2149_v8, %v2150_v9  ;;  %v2783_v18 = vor.u32 %v2781_v11, %v2780_v29  ;;  %v4559_v16 = vld [vmem:[#allocation5 + $0x330] ss:$8 sps:$4 sm:$0xff]  }
 0x14a   :  { %v500_v4 = vshll.u32 %v3950_v17, 16  ;;  %770 = vmatpush1.bf16.msra.mxu1 %v4574_v53  ;;  %v2784_v36 = vrot.slane %v2780_v29, 4  ;;  %v5428_v39 = vrot.slane %v2804_v28, 7  ;;  %v2151_v13 = vmul.bf16 %v2133_v2, %v5241_v52  ;;  %v4565_v53 = vld [vmem:[#allocation5 + $0x340] ss:$8 sps:$4 sm:$0xff]   ;;  %v2768_v17 = vpop.permute.xlu0 %2767 }
 0x14b   :  { %v2702_v26 = vpop.permute.xlu1 %2701  ;;  %v492_v57 = vshll.u32 %v3949_v62, 16  ;;  %v496_v10 = vshrl.u32 %v3949_v62, 16  ;;  %771 = vmatprep.subr.bf16.mxu1 %v4582_v20  ;;  %v2857_v48 = vmul.bf16 %v2783_v18, %v2680_v41  ;;  %v2197_v60 = vrot.slane %v5424_v31, 3  ;;  %v4573_v28 = vld [vmem:[#allocation5 + $0x354] ss:$8 sps:$4 sm:$0xff]  }
 0x14c   :  { %v2710_v25 = vrot.slane %v2702_v26, %v5064_v56  ;;  %2594 = vmatpush1.bf16.msra.mxu0 %v4553_v61  ;;  %v502_v47 = vrot.slane %v500_v4, 1  ;;  %v2809_v9 = vor.u32 %v2807_v34, %v5428_v39  ;;  %v5442_v26 = vld [vmem:[#allocation2 + $0xc] sm:$0xf]  ;;  %v4054_v8 = vcombine.low %v2151_v13, %v2151_v13  ;;  %v4592_v2 = vld [vmem:[#allocation5 + $0x50] ss:$8 sps:$4 sm:$0xff]  }
 0x14d   :  { %v494_v30 = vrot.slane %v492_v57, 1  ;;  %2595 = vmatprep.subr.bf16.mxu0 %v4558_v3  ;;  %v4594_v3 = vld [vmem:[#allocation5 + $0x54] ss:$8 sps:$4 sm:$0xff]   ;;  %v5444_v57 = vld [vmem:[#allocation2 + $0x10] sm:$0xf] }
 0x14e   :  { %v2786_v58 = vshrl.u32 %v2710_v25, 16  ;;  %v2789_v35 = vshll.u32 %v2710_v25, 16  ;;  %772 = vmatpush1.bf16.msra.mxu1 %v4580_v5  ;;  %v2199_v4 = vrot.slane %v4054_v8, 3 }
 0x14f   :  { %v2713_v40 = vpop.permute.xlu1 %2712  ;;  %v495_v42 = vsel %vm467_vm14, %v490_v46, %v494_v30  ;;  %2328 = vmatmul.mubr.bf16.gmra.mrb[4].mxu0 %v2196_v12  ;;  %v498_v0 = vor.u32 %v496_v10, %v494_v30  ;;  %773 = vmatprep.subr.bf16.mxu1 %v4588_v14  ;;  %v2198_v46 = vsel %vm2191_vm15, %v2195_v6, %v2197_v60  ;;  %v4600_v30 = vld [vmem:[#allocation5 + $0x64] ss:$8 sps:$4 sm:$0xff]   ;;  %v4598_v10 = vld [vmem:[#allocation5 + $0x60] ss:$8 sps:$4 sm:$0xff]  }
 0x150   :  { %v2788_v49 = vrot.slane %v2786_v58, 7  ;;  %v2721_v38 = vrot.slane %v2713_v40, %v5064_v56  ;;  %641 = vmatmul.mubr.bf16.gmra.mrb[8].mxu1 %v495_v42  ;;  %2596 = vmatpush1.bf16.msra.mxu0 %v4556_v23  ;;  %v4579_v42 = vld [vmem:[#allocation5 + $0x364] ss:$8 sps:$4 sm:$0xff]   ;;  %v2385_v14 = vrot.slane %v5311_v54, %v5064_v56 }
 0x151   :  { %650 = vmatprep.mubr.bf16.mxu1 %v4859_v1  ;;  %2337 = vmatprep.mubr.bf16.mxu0 %v4859_v1  ;;  %v503_v20 = vsel %vm467_vm14, %v498_v0, %v502_v47  ;;  %v5469_v0 = vrot.slane %v2768_v17, %v5064_v56  ;;  %v2396_v47 = vrot.slane %v5271_v19, %v5064_v56  ;;  %v104_v17 = vld [vmem:[#allocation2 + $0x4] sm:$0xf] }
 0x152   :  { %v2791_v44 = vor.u32 %v2789_v35, %v2788_v49  ;;  %v2795_v24 = vshrl.u32 %v2721_v38, 16  ;;  %v2798_v7 = vshll.u32 %v2721_v38, 16  ;;  %2597 = vmatprep.subr.bf16.mxu0 %v4561_v43  ;;  %v2793_v59 = vrot.slane %v2788_v49, 4  ;;  %774 = vmatpush1.bf16.msra.mxu1 %v4586_v27  ;;  %v4571_v43 = vld [vmem:[#allocation5 + $0x350] ss:$8 sps:$4 sm:$0xff]  }
 0x153   :  { %775 = vmatprep.subr.bf16.mxu1 %v4594_v3  ;;  %v4606_v38 = vld [vmem:[#allocation5 + $0x74] ss:$8 sps:$4 sm:$0xff]  }
 0x154   :  { %v2792_v52 = vsel %vm5279_vm13, %v2784_v36, %v2791_v44  ;;  %v2797_v62 = vrot.slane %v2795_v24, 7  ;;  %v5439_v61 = vpop.permute.xlu1 %2442  ;;  %2598 = vmatpush1.bf16.msra.mxu0 %v4559_v16  ;;  %v122_v36 = vpop.permute.xlu0 %121  ;;  %v2811_v24 = vrot.slane %v5428_v39, 4  ;;  %v4585_v27 = vld [vmem:[#allocation5 + $0x374] ss:$8 sps:$4 sm:$0xff]  }
 0x155   :  { %v2858_v11 = vmul.bf16 %v2792_v52, %v5432_v15  ;;  %2599 = vmatprep.subr.bf16.mxu0 %v4567_v22  ;;  %v130_v54 = vrot.slane %v122_v36, %v5064_v56 }
 0x156   :  { %v2800_v29 = vor.u32 %v2798_v7, %v2797_v62  ;;  %v2802_v50 = vrot.slane %v2797_v62, 4  ;;  %776 = vmatpush1.bf16.msra.mxu1 %v4592_v2  ;;  %v2200_v62 = vsel %vm2191_vm15, %v2197_v60, %v2199_v4  ;;  %v5492_v2 = vld [vmem:[#allocation2 + $0x14] sm:$0xf]  ;;  %v2418_v4 = vrot.slane %v5382_v37, %v5064_v56  ;;  %v5514_v37 = vld [vmem:[#allocation2 + $0x24] sm:$0x1] }
 0x157   :  { %v4091_v25 = vcombine.low %v2857_v48, %v2858_v11  ;;  %2338 = vmatmul.mubr.bf16.gmra.mrb[8].mxu0 %v2198_v46  ;;  %777 = vmatprep.subr.bf16.mxu1 %v4600_v30  ;;  %v4577_v48 = vld [vmem:[#allocation5 + $0x360] ss:$8 sps:$4 sm:$0xff]   ;;  %v103_v11 = vld [vmem:[#allocation2] sm:$0xf]  ;;  %v4591_v46 = vld [vmem:[#allocation5 + $0x384] ss:$8 sps:$4 sm:$0xff]  }
 0x158   :  { %v2801_v23 = vsel %vm5279_vm13, %v2793_v59, %v2800_v29  ;;  %v2810_v12 = vsel %vm5279_vm13, %v2802_v50, %v2809_v9  ;;  %651 = vmatmul.mubr.bf16.gmra.mrb[12].mxu1 %v503_v20  ;;  %2600 = vmatpush1.bf16.msra.mxu0 %v4565_v53  ;;  %v4604_v59 = vld [vmem:[#allocation5 + $0x70] ss:$8 sps:$4 sm:$0xff]   ;;  %v4621_v29 = vld [vmem:[#allocation5 + $0x104] ss:$8 sps:$4 sm:$0xff]   ;;  %v5479_v50 = vld [vmem:[#allocation2 + $0x4] sm:$0xf] }
 0x159   :  { %v2906_v58 = vshrl.u32 %v4091_v25, 16  ;;  %v2908_v35 = vshll.u32 %v4091_v25, 16  ;;  %v2859_v41 = vmul.bf16 %v2801_v23, %v5442_v26  ;;  %v2860_v34 = vmul.bf16 %v2810_v12, %v5444_v57  ;;  %v2735_v18 = vpop.permute.xlu1 %2734  ;;  %797 = vmatprep.mubr.bf16.mxu1 %v4859_v1  ;;  %2347 = vmatprep.mubr.bf16.mxu0 %v4859_v1  ;;  %v4583_v53 = vld [vmem:[#allocation5 + $0x370] ss:$8 sps:$4 sm:$0xff]   ;;  %v5494_v23 = vld [vmem:[#allocation2 + $0x8] sm:$0xf] }
 0x15a   :  { %v2743_v40 = vrot.slane %v2735_v18, %v5064_v56  ;;  %2601 = vmatprep.subr.bf16.mxu0 %v4573_v28  ;;  %778 = vmatpush1.bf16.msra.mxu1 %v4598_v10  ;;  %v2463_v19 = vmul.bf16 %v5479_v50, %v2385_v14  ;;  %v2840_v20 = vshrl.u32 %v5469_v0, 16  ;;  %v2464_v12 = vmul.bf16 %v5494_v23, %v2396_v47 }
 0x15b   :  { %v2910_v33 = vrot.slane %v2908_v35, 1  ;;  %v5461_v6 = vcombine.low %v2859_v41, %v2860_v34  ;;  %779 = vmatprep.subr.bf16.mxu1 %v4606_v38  ;;  %v5499_v41 = vld [vmem:[#allocation2 + $0x18] sm:$0xf]  ;;  %v2843_v14 = vshll.u32 %v5469_v0, 16  ;;  %v5517_v0 = vld [vmem:[#allocation2 + $0xc] sm:$0xf] }
 0x15c   :  { %v2813_v5 = vshrl.u32 %v2743_v40, 16  ;;  %v2816_v49 = vshll.u32 %v2743_v40, 16  ;;  %2602 = vmatpush1.bf16.msra.mxu0 %v4571_v43  ;;  %v2407_v43 = vrot.slane %v5298_v21, %v5064_v56  ;;  %v4071_v10 = vcombine.low %v2463_v19, %v2464_v12 }
 0x15d   :  { %v2746_v13 = vpop.permute.xlu1 %2745  ;;  %v2911_v44 = vor.u32 %v2910_v33, %v2906_v58  ;;  %v2913_v16 = vshll.u32 %v5461_v6, 16  ;;  %2603 = vmatprep.subr.bf16.mxu0 %v4579_v42  ;;  %v215_v58 = vmul.bf16 %v130_v54, %v103_v11  ;;  %v4589_v33 = vld [vmem:[#allocation5 + $0x380] ss:$8 sps:$4 sm:$0xff]   ;;  %v2842_v42 = vrot.slane %v2840_v20, 7 }
 0x15e   :  { %v2815_v7 = vrot.slane %v2813_v5, 7  ;;  %v2754_v22 = vrot.slane %v2746_v13, %v5064_v56  ;;  %780 = vmatpush1.bf16.msra.mxu1 %v4604_v59  ;;  %v4597_v5 = vld [vmem:[#allocation5 + $0x394] ss:$8 sps:$4 sm:$0xff]   ;;  %v5520_v54 = vld [vmem:[#allocation2 + $0x10] sm:$0xf]  ;;  %v2429_v20 = vrot.slane %v5313_v63, %v5064_v56 }
 0x15f   :  { %v5474_v52 = vrot.slane %v2913_v16, 1  ;;  %2348 = vmatmul.mubr.bf16.gmra.mrb[12].mxu0 %v2200_v62  ;;  %1112 = vmatprep.subr.bf16.mxu1 %v4621_v29  ;;  %v2847_v13 = vrot.slane %v2842_v42, 4  ;;  %v4627_v16 = vld [vmem:[#allocation5 + $0x114] ss:$8 sps:$4 sm:$0xff]   ;;  %v2466_v59 = vmul.bf16 %v5520_v54, %v2418_v4  ;;  %v2845_v62 = vor.u32 %v2843_v14, %v2842_v42  ;;  %v4625_v29 = vld [vmem:[#allocation5 + $0x110] ss:$8 sps:$4 sm:$0xff]  }
 0x160   :  { %v2818_v39 = vor.u32 %v2816_v49, %v2815_v7  ;;  %v2822_v9 = vshrl.u32 %v2754_v22, 16  ;;  %v2825_v3 = vshll.u32 %v2754_v22, 16  ;;  %v2820_v60 = vrot.slane %v2815_v7, 4  ;;  %2604 = vmatpush1.bf16.msra.mxu0 %v4577_v48  ;;  %2623 = vmatprep.mubr.bf16.mxu0 %v4859_v1  ;;  %v4595_v48 = vld [vmem:[#allocation5 + $0x390] ss:$8 sps:$4 sm:$0xff]  }
 0x161   :  { %v5484_v8 = vsel %vm467_vm14, %v2911_v44, %v5474_v52  ;;  %2605 = vmatprep.subr.bf16.mxu0 %v4585_v27  ;;  %v4619_v44 = vld [vmem:[#allocation5 + $0x100] ss:$8 sps:$4 sm:$0xff]   ;;  %v2917_v7 = vshrl.u32 %v5461_v6, 16  ;;  %v2465_v27 = vmul.bf16 %v5517_v0, %v2407_v43  ;;  %v2865_v19 = vmul.bf16 %v2847_v13, %v5514_v37  ;;  %v4609_v43 = vld [vmem:[#allocation5 + $0x3b4] ss:$8 sps:$4 sm:$0xff]  }
 0x162   :  { %v2819_v31 = vsel %vm5279_vm13, %v2811_v24, %v2818_v39  ;;  %v5488_v25 = vrot.slane %v2822_v9, 7  ;;  %v134_v28 = vpop.permute.xlu1 %133  ;;  %v4603_v39 = vld [vmem:[#allocation5 + $0x3a4] ss:$8 sps:$4 sm:$0xff]  }
 0x163   :  { %v142_v30 = vrot.slane %v134_v28, %v5064_v56  ;;  %v2861_v18 = vmul.bf16 %v2819_v31, %v5492_v2  ;;  %v4633_v31 = vld [vmem:[#allocation5 + $0x124] ss:$8 sps:$4 sm:$0xff]  }
 0x164   :  { %v2827_v35 = vor.u32 %v2825_v3, %v5488_v25  ;;  %2606 = vmatpush1.bf16.msra.mxu0 %v4583_v53  ;;  %v4601_v3 = vld [vmem:[#allocation5 + $0x3a0] ss:$8 sps:$4 sm:$0xff]   ;;  %v2829_v12 = vrot.slane %v5488_v25, 4  ;;  %v106_v42 = vld [vmem:[#allocation2 + $0xc] sm:$0xf] }
 0x165   :  { %v216_v34 = vmul.bf16 %v142_v30, %v104_v17  ;;  %3025 = vmatprep.subr.bf16.mxu0 %v4591_v46  ;;  %v105_v53 = vld [vmem:[#allocation2 + $0x8] sm:$0xf]  ;;  %v5549_v14 = vld [vmem:[#allocation2 + $0x14] sm:$0xf] }
 0x166   :  { %v2828_v40 = vsel %vm5279_vm13, %v2820_v60, %v2827_v35  ;;  %v2919_v60 = vor.u32 %v2917_v7, %v5474_v52  ;;  %v5533_v35 = vld [vmem:[#allocation2 + $0x1c] sm:$0xf]  ;;  %v4072_v52 = vcombine.low %v2465_v27, %v2466_v59  ;;  %v2467_v13 = vmul.bf16 %v5549_v14, %v2429_v20  ;;  %v4612_v7 = vld [vmem:[#allocation5 + $0x3c4] ss:$8 sps:$4 sm:$0xff]   ;;  %v4637_v59 = vld [vmem:[#allocation5 + $0x130] ss:$8 sps:$4 sm:$0xff]  }
 0x167   :  { %v2757_v49 = vpop.permute.xlu1 %2756  ;;  %v3967_v36 = vcombine.low %v215_v58, %v216_v34  ;;  %v2862_v38 = vmul.bf16 %v2828_v40, %v5499_v41  ;;  %2624 = vmatmul.mubr.bf16.vlgmr.msra.gmra.mrb[0].mxu0 %v4071_v10  ;;  %v5531_v58 = vpop.permute.xlu0 %169  ;;  %v5535_v34 = vld [vmem:[#allocation2 + $0x20] sm:$0xf]  ;;  %v4631_v10 = vld [vmem:[#allocation5 + $0x120] ss:$8 sps:$4 sm:$0xff]  }
 0x168   :  { %v2765_v21 = vrot.slane %v2757_v49, %v5064_v56  ;;  %3026 = vmatpush1.bf16.msra.mxu0 %v4589_v33  ;;  %2633 = vmatprep.mubr.bf16.mxu0 %v4859_v1  ;;  %v4639_v49 = vld [vmem:[#allocation5 + $0x134] ss:$8 sps:$4 sm:$0xff]  }
 0x169   :  { %798 = vmatmul.mubr.bf16.vlgmr.msra.gmra.mrb[0].mxu1 %v3967_v36  ;;  %v5511_v24 = vcombine.low %v2861_v18, %v2862_v38  ;;  %3027 = vmatprep.subr.bf16.mxu0 %v4597_v5  ;;  %v2440_v18 = vrot.slane %v5398_v45, %v5064_v56  ;;  %v4095_v5 = vcombine.low %v2865_v19, %v2865_v19  ;;  %v4610_v19 = vld [vmem:[#allocation5 + $0x3c0] ss:$8 sps:$4 sm:$0xff]  }
 0x16a   :  { %v2831_v22 = vshrl.u32 %v2765_v21, 16  ;;  %v2834_v47 = vshll.u32 %v2765_v21, 16  ;;  %807 = vmatprep.mubr.bf16.mxu1 %v4859_v1  ;;  %1113 = vmatpush1.bf16.msra.mxu1 %v4619_v44  ;;  %v4607_v21 = vld [vmem:[#allocation5 + $0x3b0] ss:$8 sps:$4 sm:$0xff]  }
 0x16b   :  { %v2921_v6 = vshll.u32 %v5511_v24, 16  ;;  %1114 = vmatprep.subr.bf16.mxu1 %v4627_v16  ;;  %v2468_v44 = vmul.bf16 %v5553_v51, %v2440_v18  ;;  %v5557_v27 = vpop.permute.xlu0 %205 }
 0x16c   :  { %v2833_v9 = vrot.slane %v2831_v22, 7  ;;  %v146_v11 = vpop.permute.xlu1 %145  ;;  %3028 = vmatpush1.bf16.msra.mxu0 %v4595_v48  ;;  %v2925_v22 = vshrl.u32 %v5511_v24, 16  ;;  %v107_v24 = vld [vmem:[#allocation2 + $0x10] sm:$0xf] }
 0x16d   :  { %v154_v17 = vrot.slane %v146_v11, %v5064_v56  ;;  %v2923_v28 = vrot.slane %v2921_v6, 1  ;;  %3029 = vmatprep.subr.bf16.mxu0 %v4603_v39  ;;  %v2937_v39 = vshll.u32 %v4095_v5, 16  ;;  %v178_v6 = vrot.slane %v5531_v58, %v5064_v56  ;;  %v4618_v5 = vld [vmem:[#allocation5 + $0x3e4] ss:$8 sps:$4 sm:$0xff]  }
 0x16e   :  { %v2836_v46 = vor.u32 %v2834_v47, %v2833_v9  ;;  %v2838_v30 = vrot.slane %v2833_v9, 4  ;;  %1115 = vmatpush1.bf16.msra.mxu1 %v4625_v29  ;;  %v2462_v29 = vrot.slane %v5340_v32, %v5064_v56 }
 0x16f   :  { %v5540_v40 = vsel %vm467_vm14, %v2919_v60, %v2923_v28  ;;  %v217_v25 = vmul.bf16 %v154_v17, %v105_v53  ;;  %2634 = vmatmul.mubr.bf16.gmra.mrb[4].mxu0 %v4072_v52  ;;  %1116 = vmatprep.subr.bf16.mxu1 %v4633_v31  ;;  %v108_v53 = vld [vmem:[#allocation2 + $0x14] sm:$0xf]  ;;  %v2451_v17 = vrot.slane %v5439_v61, %v5064_v56  ;;  %v4615_v60 = vld [vmem:[#allocation5 + $0x3d4] ss:$8 sps:$4 sm:$0xff]   ;;  %v2939_v32 = vrot.slane %v2937_v39, 1 }
 0x170   :  { %v2837_v63 = vsel %vm5279_vm13, %v2829_v12, %v2836_v46  ;;  %v158_v33 = vpop.permute.xlu1 %157  ;;  %v2846_v4 = vsel %vm5279_vm13, %v2838_v30, %v2845_v62  ;;  %3030 = vmatpush1.bf16.msra.mxu0 %v4601_v3  ;;  %2643 = vmatprep.mubr.bf16.mxu0 %v4859_v1  ;;  %v4645_v3 = vld [vmem:[#allocation5 + $0x144] ss:$8 sps:$4 sm:$0xff]   ;;  %v4073_v31 = vcombine.low %v2467_v13, %v2468_v44  ;;  %v2374_v46 = vld [vmem:[#allocation2 + $0x20] sm:$0xf]  ;;  %v4643_v30 = vld [vmem:[#allocation5 + $0x140] ss:$8 sps:$4 sm:$0xff]  }
 0x171   :  { %v166_v45 = vrot.slane %v158_v33, %v5064_v56  ;;  %v2863_v36 = vmul.bf16 %v2837_v63, %v5533_v35  ;;  %v2864_v38 = vmul.bf16 %v2846_v4, %v5535_v34  ;;  %3031 = vmatprep.subr.bf16.mxu0 %v4609_v43  ;;  %v2927_v20 = vor.u32 %v2925_v22, %v2923_v28  ;;  %v4651_v63 = vld [vmem:[#allocation5 + $0x154] ss:$8 sps:$4 sm:$0xff]   ;;  %v5570_v28 = vpop.permute.xlu0 %851  ;;  %v4657_v44 = vld [vmem:[#allocation5 + $0x164] ss:$8 sps:$4 sm:$0xff]   ;;  %v4655_v39 = vld [vmem:[#allocation5 + $0x160] ss:$8 sps:$4 sm:$0xff]  }
 0x172   :  { %1117 = vmatpush1.bf16.msra.mxu1 %v4631_v10  ;;  %v219_v18 = vmul.bf16 %v178_v6, %v107_v24  ;;  %v5573_v10 = vld [vmem:[#allocation2 + $0x1c] sm:$0xf]  ;;  %v3502_v24 = vld [vmem:[#allocation8 + $0x18] sm:$0xff] }
 0x173   :  { %v218_v16 = vmul.bf16 %v166_v45, %v106_v42  ;;  %v4094_v48 = vcombine.low %v2863_v36, %v2864_v38  ;;  %1118 = vmatprep.subr.bf16.mxu1 %v4639_v49  ;;  %v2470_v42 = vmul.bf16 %v2462_v29, %v2374_v46  ;;  %v2469_v4 = vmul.bf16 %v5573_v10, %v2451_v17  ;;  %v4649_v45 = vld [vmem:[#allocation5 + $0x150] ss:$8 sps:$4 sm:$0xff]   ;;  %v3500_v29 = vld [vmem:[#allocation8 + $0x8] sm:$0xff] }
 0x174   :  { %v182_v47 = vpop.permute.xlu1 %181  ;;  %3032 = vmatpush1.bf16.msra.mxu0 %v4607_v21  ;;  %v214_v36 = vrot.slane %v5557_v27, %v5064_v56  ;;  %v4628_v46 = vld [vmem:[#allocation5 + $0x400] ss:$8 sps:$4 sm:$0xff]  }
 0x175   :  { %v190_v62 = vrot.slane %v182_v47, %v5064_v56  ;;  %v3968_v9 = vcombine.low %v217_v25, %v218_v16  ;;  %v2929_v11 = vshll.u32 %v4094_v48, 16  ;;  %3033 = vmatprep.subr.bf16.mxu0 %v4612_v7  ;;  %v2933_v58 = vshrl.u32 %v4094_v48, 16  ;;  %v4613_v25 = vld [vmem:[#allocation5 + $0x3d0] ss:$8 sps:$4 sm:$0xff]   ;;  %v110_v16 = vld [vmem:[#allocation2 + $0x1c] sm:$0xf] }
 0x176   :  { %1119 = vmatpush1.bf16.msra.mxu1 %v4637_v59  ;;  %v109_v7 = vld [vmem:[#allocation2 + $0x18] sm:$0xf]  ;;  %v4616_v48 = vld [vmem:[#allocation5 + $0x3e0] ss:$8 sps:$4 sm:$0xff]   ;;  %v4074_v22 = vcombine.low %v2469_v4, %v2470_v42  ;;  %v4624_v47 = vld [vmem:[#allocation5 + $0x3f4] ss:$8 sps:$4 sm:$0xff]   ;;  %v3128_v59 = vpop.permute.xlu0 %3127  ;;  %v222_v27 = vmul.bf16 %v214_v36, %v110_v16 }
 0x177   :  { %808 = vmatmul.mubr.bf16.gmra.mrb[4].mxu1 %v3968_v9  ;;  %v2931_v12 = vrot.slane %v2929_v11, 1  ;;  %2644 = vmatmul.mubr.bf16.gmra.mrb[8].mxu0 %v4073_v31  ;;  %v220_v52 = vmul.bf16 %v190_v62, %v108_v53  ;;  %v4663_v9 = vld [vmem:[#allocation5 + $0x174] ss:$8 sps:$4 sm:$0xff]   ;;  %v4622_v11 = vld [vmem:[#allocation5 + $0x3f0] ss:$8 sps:$4 sm:$0xff]   ;;  %v5585_v31 = vpack.c.bf16 %v3502_v24, %v3500_v29 }
 0x178   :  { %817 = vmatprep.mubr.bf16.mxu1 %v4859_v1  ;;  %v194_v43 = vpop.permute.xlu1 %193  ;;  %1120 = vmatprep.subr.bf16.mxu1 %v4645_v3  ;;  %v4661_v53 = vld [vmem:[#allocation5 + $0x170] ss:$8 sps:$4 sm:$0xff]   ;;  %v4648_v16 = vld [vmem:[#allocation5 + $0x434] ss:$8 sps:$4 sm:$0xff]  }
 0x179   :  { %v5568_v61 = vsel %vm467_vm14, %v2927_v20, %v2931_v12  ;;  %3034 = vmatpush1.bf16.msra.mxu0 %v4610_v19  ;;  %2653 = vmatprep.mubr.bf16.mxu0 %v4859_v1  ;;  %v2935_v33 = vor.u32 %v2933_v58, %v2931_v12  ;;  %v202_v38 = vrot.slane %v194_v43, %v5064_v56  ;;  %v4630_v19 = vld [vmem:[#allocation5 + $0x404] ss:$8 sps:$4 sm:$0xff]   ;;  %v4636_v58 = vld [vmem:[#allocation5 + $0x414] ss:$8 sps:$4 sm:$0xff]   ;;  %v4634_v43 = vld [vmem:[#allocation5 + $0x410] ss:$8 sps:$4 sm:$0xff]  }
 0x17a   :  { %3035 = vmatprep.subr.bf16.mxu0 %v4615_v60  ;;  %1121 = vmatpush1.bf16.msra.mxu1 %v4643_v30  ;;  %v3969_v21 = vcombine.low %v219_v18, %v220_v52  ;;  %v860_v60 = vrot.slane %v5570_v28, %v5064_v56  ;;  %v3150_v12 = vpop.permute.xlu0 %3149 }
 0x17b   :  { %v5577_v49 = vsel %vm467_vm14, %v2935_v33, %v2939_v32  ;;  %1122 = vmatprep.subr.bf16.mxu1 %v4651_v63  ;;  %v221_v6 = vmul.bf16 %v202_v38, %v109_v7 }
 0x17c   :  { %v940_v32 = vrot.slane %v860_v60, 7 }
 0x17d   :  { %v841_v13 = vpop.permute.xlu1 %840  ;;  %3036 = vmatpush1.bf16.msra.mxu0 %v4613_v25  ;;  %v3970_v17 = vcombine.low %v221_v6, %v222_v27  ;;  %v3136_v25 = vrot.slane %v3128_v59, %v5064_v56 }
 0x17e   :  { %3037 = vmatprep.subr.bf16.mxu0 %v4618_v5  ;;  %1123 = vmatpush1.bf16.msra.mxu1 %v4649_v45  ;;  %v849_v3 = vrot.slane %v841_v13, %v5064_v56  ;;  %v3161_v33 = vpop.permute.xlu0 %3160  ;;  %v942_v5 = vrot.slane %v940_v32, 4  ;;  %v838_v45 = vld [vmem:[#allocation2] sm:$0xe]  ;;  %v4640_v13 = vld [vmem:[#allocation5 + $0x420] ss:$8 sps:$4 sm:$0xff]  }
 0x17f   :  { %818 = vmatmul.mubr.bf16.gmra.mrb[8].mxu1 %v3969_v21  ;;  %2654 = vmatmul.mubr.bf16.gmra.mrb[12].mxu0 %v4074_v22  ;;  %v3213_v21 = vrot.slane %v3136_v25, 7  ;;  %v4652_v25 = vld [vmem:[#allocation5 + $0x440] ss:$8 sps:$4 sm:$0xff]  }
 0x180   :  { %827 = vmatprep.mubr.bf16.mxu1 %v4859_v1  ;;  %1124 = vmatprep.subr.bf16.mxu1 %v4657_v44  ;;  %v5589_v20 = vrot.slane %v849_v3, 7  ;;  %v3158_v44 = vrot.slane %v3150_v12, %v5064_v56  ;;  %v4646_v3 = vld [vmem:[#allocation5 + $0x430] ss:$8 sps:$4 sm:$0xff]  }
 0x181   :  { %v863_v62 = vpop.permute.xlu1 %862  ;;  %3038 = vmatpush1.bf16.msra.mxu0 %v4616_v48  ;;  %3057 = vmatprep.mubr.bf16.mxu0 %v4859_v1  ;;  %v3215_v29 = vrot.slane %v3213_v21, 4  ;;  %v3501_v12 = vld [vmem:[#allocation8 + $0x10] sm:$0xff] }
 0x182   :  { %3039 = vmatprep.subr.bf16.mxu0 %v4624_v47  ;;  %1125 = vmatpush1.bf16.msra.mxu1 %v4655_v39  ;;  %v939_v18 = vrot.slane %v5589_v20, 4  ;;  %v871_v52 = vrot.slane %v863_v62, %v5064_v56  ;;  %v970_v47 = vmul.bf16 %v5589_v20, %v838_v45  ;;  %v3169_v62 = vrot.slane %v3161_v33, %v5064_v56 }
 0x183   :  { %1126 = vmatprep.subr.bf16.mxu1 %v4663_v9  ;;  %v3172_v9 = vpop.permute.xlu0 %3171  ;;  %v5617_v24 = vrot.slane %v3158_v44, 7 }
 0x184   :  { %v941_v36 = vsel %vm5598_vm2, %v939_v18, %v940_v32  ;;  %v943_v38 = vrot.slane %v871_v52, 7 }
 0x185   :  { %3040 = vmatpush1.bf16.msra.mxu0 %v4622_v11  ;;  %v971_v59 = vmul.bf16 %v5479_v50, %v941_v36  ;;  %v4654_v50 = vld [vmem:[#allocation5 + $0x444] ss:$8 sps:$4 sm:$0xff]  }
 0x186   :  { %v3117_v30 = vpop.permute.xlu1 %3116  ;;  %3384 = vmatprep.subr.bf16.mxu0 %v4630_v19  ;;  %1127 = vmatpush1.bf16.msra.mxu1 %v4661_v53  ;;  %v944_v27 = vsel %vm5598_vm2, %v942_v5, %v943_v38  ;;  %v945_v6 = vrot.slane %v943_v38, 4  ;;  %v3499_v53 = vld [vmem:[#allocation8] sm:$0xff] }
 0x187   :  { %828 = vmatmul.mubr.bf16.gmra.mrb[12].mxu1 %v3970_v17  ;;  %4150 = vmatprep.subr.bf16.mxu1 %v5585_v31  ;;  %v3125_v42 = vrot.slane %v3117_v30, %v5064_v56  ;;  %v3506_v30 = vld [vmem:[#allocation8 + $0x38] sm:$0xff]  ;;  %v972_v32 = vmul.bf16 %v5494_v23, %v944_v27  ;;  %v5628_v5 = vpack.c.bf16 %v3501_v12, %v3499_v53  ;;  %v3183_v36 = vpop.permute.xlu0 %3182 }
 0x188   :  { %1144 = vmatprep.mubr.bf16.mxu1 %v4859_v1  ;;  %3058 = vmatmul.mubr.bf16.vlgmr.msra.gmra.mrb[0].mxu0 %v5484_v8  ;;  %v4642_v8 = vld [vmem:[#allocation5 + $0x424] ss:$8 sps:$4 sm:$0xff]   ;;  %v3114_v23 = vld [vmem:[#allocation2 + $0x4] sm:$0xe] }
 0x189   :  { %3385 = vmatpush1.bf16.msra.mxu0 %v4628_v46  ;;  %3067 = vmatprep.mubr.bf16.mxu0 %v4859_v1  ;;  %v5607_v48 = vrot.slane %v3125_v42, 7  ;;  %v3504_v46 = vld [vmem:[#allocation8 + $0x28] sm:$0xff]  ;;  %v4660_v42 = vld [vmem:[#allocation5 + $0x454] ss:$8 sps:$4 sm:$0xff]  }
 0x18a   :  { %v3139_v63 = vpop.permute.xlu1 %3138  ;;  %3386 = vmatprep.subr.bf16.mxu0 %v4636_v58  ;;  %v3987_v58 = vcombine.low %v970_v47, %v971_v59  ;;  %v5630_v45 = vpack.c.bf16 %v3506_v30, %v3504_v46  ;;  %v3221_v59 = vrot.slane %v5617_v24, 4  ;;  %v3507_v46 = vld [vmem:[#allocation8 + $0x40] sm:$0xff]  ;;  %v3509_v30 = vld [vmem:[#allocation8 + $0x50] sm:$0xff] }
 0x18b   :  { %v3147_v4 = vrot.slane %v3139_v63, %v5064_v56  ;;  %v3180_v63 = vrot.slane %v3172_v9, %v5064_v56  ;;  %v3503_v9 = vld [vmem:[#allocation8 + $0x20] sm:$0xff] }
 0x18d   :  { %3387 = vmatpush1.bf16.msra.mxu0 %v4634_v43  ;;  %v3216_v39 = vrot.slane %v3147_v4, 7  ;;  %v3222_v43 = vrot.slane %v3169_v62, 7 }
 0x18e   :  { %3388 = vmatprep.subr.bf16.mxu0 %v4642_v8 }
 0x18f   :  { %v874_v7 = vpop.permute.xlu1 %873  ;;  %v3218_v18 = vrot.slane %v3216_v39, 4  ;;  %v3224_v27 = vrot.slane %v3222_v43, 4 }
 0x190   :  { %v882_v22 = vrot.slane %v874_v7, %v5064_v56  ;;  %3068 = vmatmul.mubr.bf16.gmra.mrb[4].mxu0 %v5540_v40  ;;  %v3212_v40 = vrot.slane %v5607_v48, 4  ;;  %v3217_v7 = vsel %vm5598_vm2, %v3215_v29, %v3216_v39  ;;  %v3505_v39 = vld [vmem:[#allocation8 + $0x30] sm:$0xff] }
 0x191   :  { %3389 = vmatpush1.bf16.msra.mxu0 %v4640_v13  ;;  %3077 = vmatprep.mubr.bf16.mxu0 %v4859_v1 }
 0x192   :  { %v946_v11 = vrot.slane %v882_v22, 7  ;;  %3390 = vmatprep.subr.bf16.mxu0 %v4648_v16  ;;  %v1019_v16 = vrot.slane %v3987_v58, 1  ;;  %v3220_v22 = vsel %vm5598_vm2, %v3218_v18, %v5617_v24  ;;  %v3223_v58 = vsel %vm5598_vm2, %v3221_v59, %v3222_v43 }
 0x193   :  { %v885_v19 = vpop.permute.xlu1 %884  ;;  %v3246_v53 = vmul.bf16 %v3220_v22, %v5444_v57  ;;  %v4664_v57 = vld [vmem:[#allocation5 + $0x460] ss:$8 sps:$4 sm:$0xff]  }
 0x194   :  { %v947_v17 = vsel %vm5598_vm2, %v945_v6, %v946_v11  ;;  %v948_v60 = vrot.slane %v946_v11, 4  ;;  %v893_v20 = vrot.slane %v885_v19, %v5064_v56  ;;  %v5645_v6 = vrot.slane %v3180_v63, 7 }
 0x195   :  { %v973_v52 = vmul.bf16 %v5517_v0, %v947_v17  ;;  %3391 = vmatpush1.bf16.msra.mxu0 %v4646_v3  ;;  %v3214_v0 = vsel %vm5598_vm2, %v3212_v40, %v3213_v21  ;;  %v4658_v21 = vld [vmem:[#allocation5 + $0x450] ss:$8 sps:$4 sm:$0xff]   ;;  %v3243_v3 = vmul.bf16 %v5607_v48, %v3114_v23  ;;  %v3245_v19 = vmul.bf16 %v3217_v7, %v5442_v26  ;;  %v3194_v26 = vpop.permute.xlu0 %3193 }
 0x196   :  { %v949_v8 = vrot.slane %v893_v20, 7  ;;  %3392 = vmatprep.subr.bf16.mxu0 %v4654_v50  ;;  %v3244_v11 = vmul.bf16 %v3214_v0, %v5432_v15  ;;  %v3508_v15 = vld [vmem:[#allocation8 + $0x48] sm:$0xff]  ;;  %v3510_v17 = vld [vmem:[#allocation8 + $0x58] sm:$0xff]  ;;  %v5663_v20 = vpack.c.bf16 %v3505_v39, %v3503_v9  ;;  %v3202_v0 = vrot.slane %v3194_v26, %v5064_v56 }
 0x197   :  { %v5626_v33 = vcombine.low %v972_v32, %v973_v52  ;;  %v896_v4 = vpop.permute.xlu1 %895  ;;  %v4669_v32 = vld [vmem:[#allocation5 + $0x474] ss:$8 sps:$4 sm:$0xff]   ;;  %v5671_v63 = vpack.c.bf16 %v3510_v17, %v3508_v15  ;;  %v3247_v7 = vmul.bf16 %v3223_v58, %v5492_v2  ;;  %v3511_v58 = vld [vmem:[#allocation8 + $0x60] sm:$0xff] }
 0x198   :  { %v950_v38 = vsel %vm5598_vm2, %v948_v60, %v949_v8  ;;  %v951_v13 = vrot.slane %v949_v8, 4  ;;  %v904_v44 = vrot.slane %v896_v4, %v5064_v56  ;;  %3078 = vmatmul.mubr.bf16.gmra.mrb[8].mxu0 %v5568_v61  ;;  %v4666_v61 = vld [vmem:[#allocation5 + $0x464] ss:$8 sps:$4 sm:$0xff]   ;;  %v4113_v8 = vcombine.low %v3245_v19, %v3246_v53 }
 0x199   :  { %v1020_v47 = vrot.slane %v5626_v33, 1  ;;  %3393 = vmatpush1.bf16.msra.mxu0 %v4652_v25  ;;  %3087 = vmatprep.mubr.bf16.mxu0 %v4859_v1  ;;  %v974_v29 = vmul.bf16 %v5520_v54, %v950_v38  ;;  %v3191_v54 = vrot.slane %v3183_v36, %v5064_v56  ;;  %v4112_v25 = vcombine.low %v3243_v3, %v3244_v11  ;;  %v4681_v33 = vld [vmem:[#allocation2 + $0x20] sm:$0x1] }
 0x19a   :  { %v952_v62 = vrot.slane %v904_v44, 7  ;;  %3394 = vmatprep.subr.bf16.mxu0 %v4660_v42  ;;  %v5677_v36 = vpack.c.bf16 %v3509_v30, %v3507_v46  ;;  %v4667_v44 = vld [vmem:[#allocation5 + $0x470] ss:$8 sps:$4 sm:$0xff]   ;;  %v3292_v59 = vrot.slane %v4113_v8, 1  ;;  %v3231_v2 = vrot.slane %v3202_v0, 7  ;;  %v3519_v0 = vld [vmem:[#allocation8 + $0xa0] sm:$0xff] }
 0x19b   :  { %v907_v50 = vpop.permute.xlu1 %906  ;;  %v1021_v24 = vsel %vm1018_vm3, %v1019_v16, %v1020_v47  ;;  %v3228_v23 = vrot.slane %v3191_v54, 7  ;;  %v3514_v46 = vld [vmem:[#allocation8 + $0x78] sm:$0xff] }
 0x19c   :  { %v953_v40 = vsel %vm5598_vm2, %v951_v13, %v952_v62  ;;  %v915_v48 = vrot.slane %v907_v50, %v5064_v56  ;;  %1145 = vmatmul.mubr.bf16.vlgmr.msra.gmra.mrb[0].mxu1 %v1021_v24  ;;  %v954_v42 = vrot.slane %v952_v62, 4 }
 0x19d   :  { %v975_v60 = vmul.bf16 %v5549_v14, %v953_v40  ;;  %1154 = vmatprep.mubr.bf16.mxu1 %v4859_v1  ;;  %4152 = vmatpush1.bf16.msra.mxu1 %v5628_v5  ;;  %v3226_v14 = vsel %vm5598_vm2, %v3224_v27, %v5645_v6  ;;  %v3230_v9 = vrot.slane %v3228_v23, 4 }
 0x19e   :  { %3395 = vmatpush1.bf16.msra.mxu0 %v4658_v21  ;;  %v955_v12 = vrot.slane %v915_v48, 7  ;;  %4154 = vmatprep.subr.bf16.mxu1 %v5630_v45  ;;  %v3291_v21 = vrot.slane %v4112_v25, 1  ;;  %v3233_v48 = vrot.slane %v3231_v2, 4  ;;  %v3517_v25 = vld [vmem:[#allocation8 + $0x90] sm:$0xff] }
 0x19f   :  { %3396 = vmatprep.subr.bf16.mxu0 %v4666_v61  ;;  %v918_v18 = vpop.permute.xlu1 %917  ;;  %v3989_v52 = vcombine.low %v974_v29, %v975_v60  ;;  %v3232_v61 = vsel %vm5598_vm2, %v3230_v9, %v3231_v2  ;;  %v3532_v2 = vld [vmem:[#allocation8 + $0x108] sm:$0xff] }
 0x1a0   :  { %v926_v4 = vrot.slane %v918_v18, %v5064_v56  ;;  %3088 = vmatmul.mubr.bf16.gmra.mrb[12].mxu0 %v5577_v49  ;;  %v956_v38 = vsel %vm5598_vm2, %v954_v42, %v955_v12  ;;  %v957_v13 = vrot.slane %v955_v12, 4  ;;  %v3227_v56 = vrot.slane %v5645_v6, 4  ;;  %v3512_v12 = vld [vmem:[#allocation8 + $0x68] sm:$0xff]  ;;  %v3518_v18 = vld [vmem:[#allocation8 + $0x98] sm:$0xff] }
 0x1a1   :  { %v1022_v43 = vrot.slane %v3989_v52, 1  ;;  %4156 = vmatpush1.bf16.msra.mxu1 %v5663_v20  ;;  %3416 = vmatprep.mubr.bf16.mxu0 %v4859_v1  ;;  %v3248_v49 = vmul.bf16 %v3226_v14, %v5499_v41  ;;  %v976_v6 = vmul.bf16 %v5553_v51, %v956_v38  ;;  %v3293_v3 = vsel %vm1018_vm3, %v3291_v21, %v3292_v59  ;;  %v3513_v14 = vld [vmem:[#allocation8 + $0x70] sm:$0xff]  ;;  %v3515_v52 = vld [vmem:[#allocation8 + $0x80] sm:$0xff]  ;;  %v3520_v42 = vld [vmem:[#allocation8 + $0xa8] sm:$0xff] }
 0x1a2   :  { %3397 = vmatpush1.bf16.msra.mxu0 %v4664_v57  ;;  %v958_v16 = vrot.slane %v926_v4, 7  ;;  %4158 = vmatprep.subr.bf16.mxu1 %v5671_v63  ;;  %v3229_v29 = vsel %vm5598_vm2, %v3227_v56, %v3228_v23  ;;  %v3250_v19 = vmul.bf16 %v3232_v61, %v5535_v34  ;;  %v3251_v54 = vmul.bf16 %v3233_v48, %v5514_v37  ;;  %v3516_v37 = vld [vmem:[#allocation8 + $0x88] sm:$0xff]  ;;  %v3522_v4 = vld [vmem:[#allocation8 + $0xb8] sm:$0xff]  ;;  %v3525_v56 = vld [vmem:[#allocation8 + $0xd0] sm:$0xff] }
 0x1a3   :  { %3398 = vmatprep.subr.bf16.mxu0 %v4669_v32  ;;  %v1023_v22 = vsel %vm1018_vm3, %v1020_v47, %v1022_v43  ;;  %v4114_v11 = vcombine.low %v3247_v7, %v3248_v49  ;;  %v3249_v24 = vmul.bf16 %v3229_v29, %v5533_v35  ;;  %v5712_v30 = vpack.c.bf16 %v3514_v46, %v3512_v12  ;;  %v3530_v21 = vld [vmem:[#allocation8 + $0xf8] sm:$0xff]  ;;  %v3535_v61 = vld [vmem:[#allocation8 + $0x120] sm:$0xff]  ;;  %v3549_v12 = vld [vmem:[#allocation8 + $0x190] sm:$0xff] }
 0x1a4   :  { %v959_v27 = vsel %vm5598_vm2, %v957_v13, %v958_v16  ;;  %v960_v62 = vrot.slane %v958_v16, 4  ;;  %1155 = vmatmul.mubr.bf16.gmra.mrb[4].mxu1 %v1023_v22  ;;  %v4116_v35 = vcombine.low %v3251_v54, %v3251_v54  ;;  %v5714_v32 = vpack.c.bf16 %v3513_v14, %v3511_v58  ;;  %v3524_v13 = vld [vmem:[#allocation8 + $0xc8] sm:$0xff]  ;;  %v3523_v16 = vld [vmem:[#allocation8 + $0xc0] sm:$0xff]  ;;  %v3554_v14 = vld [vmem:[#allocation8 + $0x1b8] sm:$0xff] }
 0x1a5   :  { %v977_v41 = vmul.bf16 %v5573_v10, %v959_v27  ;;  %1164 = vmatprep.mubr.bf16.mxu1 %v4859_v1  ;;  %4160 = vmatpush1.bf16.msra.mxu1 %v5677_v36  ;;  %v3294_v53 = vrot.slane %v4114_v11, 1  ;;  %v4115_v15 = vcombine.low %v3249_v24, %v3250_v19  ;;  %v5720_v8 = vpack.c.bf16 %v3517_v25, %v3515_v52  ;;  %v3528_v22 = vld [vmem:[#allocation8 + $0xe8] sm:$0xff]  ;;  %v3527_v27 = vld [vmem:[#allocation8 + $0xe0] sm:$0xff]  ;;  %v3538_v11 = vld [vmem:[#allocation8 + $0x138] sm:$0xff] }
 0x1a6   :  { %3399 = vmatpush1.bf16.msra.mxu0 %v4667_v44  ;;  %v978_v47 = vmul.bf16 %v4681_v33, %v960_v62  ;;  %v3298_v26 = vrot.slane %v4116_v35, 1  ;;  %4162 = vmatprep.subr.bf16.mxu1 %v5712_v30  ;;  %v5724_v23 = vpack.c.bf16 %v3522_v4, %v3520_v42  ;;  %v3526_v44 = vld [vmem:[#allocation8 + $0xd8] sm:$0xff]  ;;  %v5732_v49 = vpack.c.bf16 %v3525_v56, %v3523_v16  ;;  %v3529_v62 = vld [vmem:[#allocation8 + $0xf0] sm:$0xff]  ;;  %v3539_v19 = vld [vmem:[#allocation8 + $0x140] sm:$0xff] }
 0x1a7   :  { %v3990_v39 = vcombine.low %v976_v6, %v977_v41  ;;  %v3295_v28 = vsel %vm1018_vm3, %v3292_v59, %v3294_v53  ;;  %v3296_v60 = vrot.slane %v4115_v15, 1  ;;  %v5729_v7 = vpack.c.bf16 %v3526_v44, %v3524_v13  ;;  %v3534_v6 = vld [vmem:[#allocation8 + $0x118] sm:$0xff]  ;;  %v3531_v41 = vld [vmem:[#allocation8 + $0x100] sm:$0xff]  ;;  %v3548_v35 = vld [vmem:[#allocation8 + $0x188] sm:$0xff] }
 0x1a8   :  { %v3991_v10 = vcombine.low %v978_v47, %v978_v47  ;;  %v5736_v59 = vpack.c.bf16 %v3530_v21, %v3528_v22  ;;  %v5738_v9 = vpack.c.bf16 %v3529_v62, %v3527_v27  ;;  %v5741_v33 = vpack.c.bf16 %v3534_v6, %v3532_v2  ;;  %v3533_v47 = vld [vmem:[#allocation8 + $0x110] sm:$0xff]  ;;  %v3542_v24 = vld [vmem:[#allocation8 + $0x158] sm:$0xff]  ;;  %v3543_v54 = vld [vmem:[#allocation8 + $0x160] sm:$0xff] }
 0x1a9   :  { %3417 = vmatmul.mubr.bf16.vlgmr.msra.gmra.mrb[0].mxu0 %v3293_v3  ;;  %v1024_v51 = vrot.slane %v3990_v39, 1  ;;  %v3297_v34 = vsel %vm1018_vm3, %v3294_v53, %v3296_v60  ;;  %v3299_v57 = vsel %vm1018_vm3, %v3296_v60, %v3298_v26  ;;  %4164 = vmatpush1.bf16.msra.mxu1 %v5714_v32  ;;  %v5744_v39 = vpack.c.bf16 %v3533_v47, %v3531_v41  ;;  %v3536_v3 = vld [vmem:[#allocation8 + $0x128] sm:$0xff]  ;;  %v3546_v15 = vld [vmem:[#allocation8 + $0x178] sm:$0xff]  ;;  %v3545_v60 = vld [vmem:[#allocation8 + $0x170] sm:$0xff] }
 0x1aa   :  { %3426 = vmatprep.mubr.bf16.mxu0 %v4859_v1  ;;  %v1026_v40 = vrot.slane %v3991_v10, 1  ;;  %v5748_v29 = vpack.c.bf16 %v3538_v11, %v3536_v3  ;;  %v3550_v26 = vld [vmem:[#allocation8 + $0x198] sm:$0xff]  ;;  %v3552_v58 = vld [vmem:[#allocation8 + $0x1a8] sm:$0xff]  ;;  %v3551_v52 = vld [vmem:[#allocation8 + $0x1a0] sm:$0xff] }
 0x1ab   :  { %v1025_v50 = vsel %vm1018_vm3, %v1022_v43, %v1024_v51  ;;  %v3521_v43 = vld [vmem:[#allocation8 + $0xb0] sm:$0xff]  ;;  %v5765_v46 = vpack.c.bf16 %v3550_v26, %v3548_v35  ;;  %v3556_v42 = vld [vmem:[#allocation8 + $0x1c8] sm:$0xff]  ;;  %v3558_v4 = vld [vmem:[#allocation8 + $0x1d8] sm:$0xff] }
 0x1ac   :  { %1165 = vmatmul.mubr.bf16.gmra.mrb[8].mxu1 %v1025_v50  ;;  %v1027_v17 = vsel %vm1018_vm3, %v1024_v51, %v1026_v40  ;;  %v5727_v38 = vpack.c.bf16 %v3521_v43, %v3519_v0  ;;  %v3537_v51 = vld [vmem:[#allocation8 + $0x130] sm:$0xff]  ;;  %v3540_v50 = vld [vmem:[#allocation8 + $0x148] sm:$0xff]  ;;  %v5777_v43 = vpack.c.bf16 %v3558_v4, %v3556_v42  ;;  %v3555_v13 = vld [vmem:[#allocation8 + $0x1c0] sm:$0xff] }
 0x1ad   :  { %1174 = vmatprep.mubr.bf16.mxu1 %v4859_v1  ;;  %v5750_v10 = vpack.c.bf16 %v3537_v51, %v3535_v61  ;;  %v5753_v53 = vpack.c.bf16 %v3542_v24, %v3540_v50  ;;  %v3541_v40 = vld [vmem:[#allocation8 + $0x150] sm:$0xff]  ;;  %v3560_v16 = vld [vmem:[#allocation8 + $0x1e8] sm:$0xff]  ;;  %v3562_v56 = vld [vmem:[#allocation8 + $0x1f8] sm:$0xff] }
 0x1ae   :  { %v5756_v48 = vpack.c.bf16 %v3541_v40, %v3539_v19  ;;  %v3553_v25 = vld [vmem:[#allocation8 + $0x1b0] sm:$0xff]  ;;  %v5783_v21 = vpack.c.bf16 %v3562_v56, %v3560_v16  ;;  %v3559_v27 = vld [vmem:[#allocation8 + $0x1e0] sm:$0xff] }
 0x1af   :  { %v5774_v0 = vpack.c.bf16 %v3553_v25, %v3551_v52  ;;  %v3557_v44 = vld [vmem:[#allocation8 + $0x1d0] sm:$0xff] }
 0x1b0   :  { %v5780_v22 = vpack.c.bf16 %v3557_v44, %v3555_v13  ;;  %v3561_v62 = vld [vmem:[#allocation8 + $0x1f0] sm:$0xff] }
 0x1b1   :  { %3427 = vmatmul.mubr.bf16.gmra.mrb[4].mxu0 %v3295_v28  ;;  %v3544_v28 = vld [vmem:[#allocation8 + $0x168] sm:$0xff]  ;;  %v5786_v2 = vpack.c.bf16 %v3561_v62, %v3559_v27 }
 0x1b2   :  { %3436 = vmatprep.mubr.bf16.mxu0 %v4859_v1 }
 0x1b4   :  { %1175 = vmatmul.mubr.bf16.gmra.mrb[12].mxu1 %v1027_v17  ;;  %v5760_v17 = vpack.c.bf16 %v3546_v15, %v3544_v28 }
 0x1b9   :  { %3437 = vmatmul.mubr.bf16.gmra.mrb[8].mxu0 %v3297_v34  ;;  %v5763_v34 = vpack.c.bf16 %v3545_v60, %v3543_v54 }
 0x1ba   :  { %3446 = vmatprep.mubr.bf16.mxu0 %v4859_v1  ;;  %v5718_v1 = vpack.c.bf16 %v3518_v18, %v3516_v37  ;;  %v5771_v18 = vpack.c.bf16 %v3554_v14, %v3552_v58 }
 0x1bc   :  { %4166 = vmatprep.subr.bf16.mxu1 %v5718_v1 }
 0x1bd   :  { %4168 = vmatpush1.bf16.msra.mxu1 %v5720_v8 }
 0x1be   :  { %4170 = vmatprep.subr.bf16.mxu1 %v5724_v23 }
 0x1c1   :  { %3447 = vmatmul.mubr.bf16.gmra.mrb[12].mxu0 %v3299_v57  ;;  %4172 = vmatpush1.bf16.msra.mxu1 %v5727_v38  ;;  %v3547_v57 = vld [vmem:[#allocation8 + $0x180] sm:$0xff] }
 0x1c2   :  { %4174 = vmatprep.subr.bf16.mxu1 %v5729_v7  ;;  %v5768_v37 = vpack.c.bf16 %v3549_v12, %v3547_v57 }
 0x1c5   :  { %4176 = vmatpush1.bf16.msra.mxu1 %v5732_v49 }
 0x1c6   :  { %4178 = vmatprep.subr.bf16.mxu1 %v5736_v59 }
 0x1c9   :  { %4180 = vmatpush1.bf16.msra.mxu1 %v5738_v9 }
 0x1ca   :  { %4182 = vmatprep.subr.bf16.mxu1 %v5741_v33 }
 0x1cd   :  { %4184 = vmatpush1.bf16.msra.mxu1 %v5744_v39 }
 0x1ce   :  { %4186 = vmatprep.subr.bf16.mxu1 %v5748_v29 }
 0x1d1   :  { %4188 = vmatpush1.bf16.msra.mxu1 %v5750_v10 }
 0x1d2   :  { %4190 = vmatprep.subr.bf16.mxu1 %v5753_v53 }
 0x1d5   :  { %4192 = vmatpush1.bf16.msra.mxu1 %v5756_v48 }
 0x1d6   :  { %4194 = vmatprep.subr.bf16.mxu1 %v5760_v17 }
 0x1d9   :  { %4196 = vmatpush1.bf16.msra.mxu1 %v5763_v34 }
 0x1da   :  { %4198 = vmatprep.subr.bf16.mxu1 %v5765_v46 }
 0x1dd   :  { %4200 = vmatpush1.bf16.msra.mxu1 %v5768_v37 }
 0x1de   :  { %4202 = vmatprep.subr.bf16.mxu1 %v5771_v18 }
 0x1e1   :  { %4204 = vmatpush1.bf16.msra.mxu1 %v5774_v0 }
 0x1e2   :  { %4206 = vmatprep.subr.bf16.mxu1 %v5777_v43 }
 0x1e5   :  { %4208 = vmatpush1.bf16.msra.mxu1 %v5780_v22 }
 0x1e6   :  { %4210 = vmatprep.subr.bf16.mxu1 %v5783_v21 }
 0x1e9   :  { %4212 = vmatpush1.bf16.msra.mxu1 %v5786_v2 }
 0x1ea   :  { %4214 = vmatprep.subr.bf16.mxu1 %v5585_v31 }
 0x26f   :  { %v1146_v6 = vpop.f32.mrb[0].mxu1 }
 0x270   :  { %v1148_v41 = vpop.f32.mrb[1].mxu1 }
 0x271   :  { %v1150_v47 = vpop.f32.mrb[2].mxu1 }
 0x272   :  { %v1152_v3 = vpop.f32.mrb[3].mxu1 }
 0x277   :  { %v1156_v11 = vpop.f32.mrb[4].mxu1 }
 0x278   :  { %v1158_v61 = vpop.f32.mrb[5].mxu1 }
 0x279   :  { %v1160_v51 = vpop.f32.mrb[6].mxu1 }
 0x27a   :  { %v1162_v50 = vpop.f32.mrb[7].mxu1 }
 0x27c   :  { %v3418_v24 = vpop.f32.mrb[0].mxu0 }
 0x27d   :  { %v5791_v19 = vadd.f32 %v3418_v24, %v1146_v6  ;;  %v3420_v40 = vpop.f32.mrb[1].mxu0 }
 0x27e   :  { %v5793_v28 = vadd.f32 %v3420_v40, %v1148_v41  ;;  %v3422_v15 = vpop.f32.mrb[2].mxu0 }
 0x27f   :  { %v5795_v54 = vadd.f32 %v3422_v15, %v1150_v47  ;;  %v3424_v60 = vpop.f32.mrb[3].mxu0  ;;  %v1166_v35 = vpop.f32.mrb[8].mxu1 }
 0x280   :  { %v5797_v31 = vadd.f32 %v3424_v60, %v1152_v3  ;;  %v1168_v26 = vpop.f32.mrb[9].mxu1 }
 0x281   :  { %v1170_v57 = vpop.f32.mrb[10].mxu1  ;;  %v3473_v27 = vadd.f32 %v5795_v54, %v5791_v19 }
 0x282   :  { %v1172_v12 = vpop.f32.mrb[11].mxu1  ;;  %v3486_v6 = vadd.f32 %v5797_v31, %v5793_v28 }
 0x284   :  { %v3428_v58 = vpop.f32.mrb[4].mxu0 }
 0x285   :  { %v5799_v14 = vadd.f32 %v3428_v58, %v1156_v11  ;;  %v3430_v52 = vpop.f32.mrb[5].mxu0 }
 0x286   :  { %v5801_v25 = vadd.f32 %v3430_v52, %v1158_v61  ;;  %v3432_v42 = vpop.f32.mrb[6].mxu0 }
 0x287   :  { %v5803_v4 = vadd.f32 %v3432_v42, %v1160_v51  ;;  %v3434_v13 = vpop.f32.mrb[7].mxu0  ;;  %v1176_v44 = vpop.f32.mrb[12].mxu1  ;;  %v3474_v47 = vadd.f32 %v5799_v14, %v3473_v27 }
 0x288   :  { %v5805_v16 = vadd.f32 %v3434_v13, %v1162_v50  ;;  %v1178_v56 = vpop.f32.mrb[13].mxu1  ;;  %v3487_v3 = vadd.f32 %v5801_v25, %v3486_v6 }
 0x289   :  { %v1180_v62 = vpop.f32.mrb[14].mxu1  ;;  %v3475_v40 = vadd.f32 %v5803_v4, %v3474_v47 }
 0x28a   :  { %v1182_v41 = vpop.f32.mrb[15].mxu1  ;;  %v3488_v58 = vadd.f32 %v5805_v16, %v3487_v3 }
 0x28c   :  { %v3438_v11 = vpop.f32.mrb[8].mxu0 }
 0x28d   :  { %v5813_v61 = vadd.f32 %v3438_v11, %v1166_v35  ;;  %v3440_v51 = vpop.f32.mrb[9].mxu0 }
 0x28e   :  { %v5815_v24 = vadd.f32 %v3440_v51, %v1168_v26  ;;  %v3442_v50 = vpop.f32.mrb[10].mxu0 }
 0x28f   :  { %6010 = vst [vmem:[#allocation19_spill] sm:$0xff] %v5813_v61  ;;  %v5818_v15 = vadd.f32 %v3442_v50, %v1170_v57  ;;  %v3444_v60 = vpop.f32.mrb[11].mxu0  ;;  %v3476_v42 = vadd.f32 %v5813_v61, %v3475_v40 }
 0x290   :  { %v5821_v52 = vadd.f32 %v3444_v60, %v1172_v12  ;;  %v3489_v13 = vadd.f32 %v5815_v24, %v3488_v58 }
 0x291   :  { %6011 = vst [vmem:[#allocation20_spill] sm:$0xff] %v5818_v15  ;;  %v3477_v35 = vadd.f32 %v5818_v15, %v3476_v42 }
 0x292   :  { %v3490_v11 = vadd.f32 %v5821_v52, %v3489_v13 }
 0x294   :  { %v3448_v27 = vpop.f32.mrb[12].mxu0 }
 0x295   :  { %v5826_v6 = vadd.f32 %v3448_v27, %v1176_v44  ;;  %v3450_v26 = vpop.f32.mrb[13].mxu0 }
 0x296   :  { %v5829_v47 = vadd.f32 %v3450_v26, %v1178_v56  ;;  %v3452_v57 = vpop.f32.mrb[14].mxu0 }
 0x297   :  { %6012 = vst [vmem:[#allocation21_spill] sm:$0xff] %v5826_v6  ;;  %v3478_v51 = vadd.f32 %v5826_v6, %v3477_v35  ;;  %v5832_v3 = vadd.f32 %v3452_v57, %v1180_v62  ;;  %v3454_v12 = vpop.f32.mrb[15].mxu0 }
 0x298   :  { %v3491_v50 = vadd.f32 %v5829_v47, %v3490_v11  ;;  %v5835_v40 = vadd.f32 %v3454_v12, %v1182_v41 }
 0x299   :  { %v3479_v60 = vadd.f32 %v5832_v3, %v3478_v51 }
 0x29a   :  { %v3492_v44 = vadd.f32 %v5835_v40, %v3491_v50 }
 0x29b   :  { %v3480_v58 = vrot.slane %v3479_v60, 4 }
 0x29c   :  { %v3493_v42 = vrot.slane %v3492_v44, 4 }
 0x29d   :  { %v3481_v27 = vadd.f32 %v3480_v58, %v3479_v60 }
 0x29e   :  { %v3494_v13 = vadd.f32 %v3493_v42, %v3492_v44  ;;  %v6015_v41 = vld [vmem:[#allocation21_spill] sm:$0xff] }
 0x29f   :  { %v3482_v56 = vrot.slane %v3481_v27, 2 }
 0x2a0   :  { %v3495_v26 = vrot.slane %v3494_v13, 2 }
 0x2a1   :  { %v3483_v15 = vadd.f32 %v3482_v56, %v3481_v27 }
 0x2a2   :  { %v3496_v61 = vadd.f32 %v3495_v26, %v3494_v13 }
 0x2a3   :  { %v3484_v35 = vrot.slane %v3483_v15, 1 }
 0x2a4   :  { %v3497_v62 = vrot.slane %v3496_v61, 1 }
 0x2a5   :  { %v3485_v6 = vadd.f32 %v3484_v35, %v3483_v15 }
 0x2a6   :  { %v3498_v57 = vadd.f32 %v3497_v62, %v3496_v61 }
 0x2a8   :  { %3627 = vmatprep.mubr.f32.mxu1 %v3498_v57 }
 0x2a9   :  { %3628 = vmatmul.mubr.f32.vlgmr.msra.gmra.mrb[16].mxu1 %v3485_v6 }
 0x2aa   :  { %4216 = vmatpush1.bf16.msra.mxu1 %v5628_v5  ;;  %v5871_v5 = vsub.s32 0, %v5058_v55 }
 0x2ab   :  { %4218 = vmatprep.subr.bf16.mxu1 %v5630_v45 }
 0x2ae   :  { %4220 = vmatpush1.bf16.msra.mxu1 %v5663_v20 }
 0x2af   :  { %4222 = vmatprep.subr.bf16.mxu1 %v5671_v63 }
 0x2b2   :  { %4224 = vmatpush1.bf16.msra.mxu1 %v5677_v36 }
 0x2b3   :  { %4226 = vmatprep.subr.bf16.mxu1 %v5712_v30 }
 0x2b6   :  { %4228 = vmatpush1.bf16.msra.mxu1 %v5714_v32 }
 0x2b7   :  { %4230 = vmatprep.subr.bf16.mxu1 %v5718_v1 }
 0x2ba   :  { %4232 = vmatpush1.bf16.msra.mxu1 %v5720_v8 }
 0x2bb   :  { %4234 = vmatprep.subr.bf16.mxu1 %v5724_v23 }
 0x2be   :  { %4236 = vmatpush1.bf16.msra.mxu1 %v5727_v38 }
 0x2bf   :  { %4238 = vmatprep.subr.bf16.mxu1 %v5729_v7 }
 0x2c2   :  { %4240 = vmatpush1.bf16.msra.mxu1 %v5732_v49 }
 0x2c3   :  { %4242 = vmatprep.subr.bf16.mxu1 %v5736_v59 }
 0x2c6   :  { %4244 = vmatpush1.bf16.msra.mxu1 %v5738_v9 }
 0x2c7   :  { %4246 = vmatprep.subr.bf16.mxu1 %v5741_v33 }
 0x2ca   :  { %4248 = vmatpush1.bf16.msra.mxu1 %v5744_v39 }
 0x2cb   :  { %4250 = vmatprep.subr.bf16.mxu1 %v5748_v29 }
 0x2ce   :  { %4252 = vmatpush1.bf16.msra.mxu1 %v5750_v10 }
 0x2cf   :  { %4254 = vmatprep.subr.bf16.mxu1 %v5753_v53 }
 0x2d2   :  { %4256 = vmatpush1.bf16.msra.mxu1 %v5756_v48 }
 0x2d3   :  { %4258 = vmatprep.subr.bf16.mxu1 %v5760_v17 }
 0x2d6   :  { %4260 = vmatpush1.bf16.msra.mxu1 %v5763_v34 }
 0x2d7   :  { %4262 = vmatprep.subr.bf16.mxu1 %v5765_v46 }
 0x2da   :  { %4264 = vmatpush1.bf16.msra.mxu1 %v5768_v37 }
 0x2db   :  { %4266 = vmatprep.subr.bf16.mxu1 %v5771_v18  ;;  %v6013_v18 = vld [vmem:[#allocation19_spill] sm:$0xff] }
 0x2de   :  { %4268 = vmatpush1.bf16.msra.mxu1 %v5774_v0 }
 0x2df   :  { %4270 = vmatprep.subr.bf16.mxu1 %v5777_v43 }
 0x2e2   :  { %4272 = vmatpush1.bf16.msra.mxu1 %v5780_v22 }
 0x2e3   :  { %4274 = vmatprep.subr.bf16.mxu1 %v5783_v21 }
 0x2e6   :  { %4276 = vmatpush1.bf16.msra.mxu1 %v5786_v2 }
 0x37c   :  { %v3629_v45 = vpop.f32.mrb[16].mxu1 }
 0x37d   :  { %v3634_v20 = vmul.f32 0.00390625, %v3629_v45  ;;  %v3631_v63 = vpop.f32.mrb[17].mxu1 }
 0x37e   :  { %v3635_v36 = vmul.f32 0.00390625, %v3631_v63 }
 0x37f   :  { %v3639_v30 = vrot.slane %v3634_v20, %v5871_v5 }
 0x380   :  { %v3643_v32 = vrot.slane %v3635_v36, %v5871_v5 }
 0x381   :  { %v5885_v38 = vsub.f32 %v5791_v19, %v3639_v30  ;;  %v5888_v7 = vsub.f32 %v5795_v54, %v3639_v30  ;;  %v5898_v33 = vsub.f32 %v5799_v14, %v3639_v30  ;;  %v5906_v53 = vsub.f32 %v5803_v4, %v3639_v30 }
 0x382   :  { %v5876_v1 = vsub.f32 %v5793_v28, %v3643_v32  ;;  %v5879_v8 = vsub.f32 %v5797_v31, %v3643_v32  ;;  %v5882_v23 = vsub.f32 %v5801_v25, %v3643_v32  ;;  %v5891_v49 = vsub.f32 %v5805_v16, %v3643_v32  ;;  %v6014_v28 = vld [vmem:[#allocation20_spill] sm:$0xff] }
 0x383   :  { %v5901_v39 = vsub.f32 %v5815_v24, %v3643_v32  ;;  %v3660_v48 = vmul.f32 %v5885_v38, %v5885_v38  ;;  %v3662_v17 = vmul.f32 %v5888_v7, %v5888_v7  ;;  %v5913_v34 = vsub.f32 %v5821_v52, %v3643_v32 }
 0x384   :  { %v3661_v59 = vmul.f32 %v5876_v1, %v5876_v1  ;;  %v3663_v9 = vmul.f32 %v5879_v8, %v5879_v8  ;;  %v3665_v29 = vmul.f32 %v5882_v23, %v5882_v23  ;;  %v3667_v46 = vmul.f32 %v5891_v49, %v5891_v49 }
 0x385   :  { %v5918_v0 = vsub.f32 %v6013_v18, %v3639_v30  ;;  %v3664_v43 = vmul.f32 %v5898_v33, %v5898_v33  ;;  %v3676_v22 = vadd.f32 %v3662_v17, %v3660_v48  ;;  %v5923_v21 = vsub.f32 %v5829_v47, %v3643_v32 }
 0x386   :  { %v3689_v10 = vadd.f32 %v3663_v9, %v3661_v59  ;;  %v3669_v2 = vmul.f32 %v5901_v39, %v5901_v39  ;;  %v5928_v54 = vsub.f32 %v6014_v28, %v3639_v30  ;;  %v3666_v31 = vmul.f32 %v5906_v53, %v5906_v53  ;;  %v3775_v28 = vld [vmem:[#allocation10] sm:$0x3] }
 0x387   :  { %v3677_v14 = vadd.f32 %v3676_v22, %v3664_v43  ;;  %v5933_v25 = vsub.f32 %v5835_v40, %v3643_v32  ;;  %v3671_v4 = vmul.f32 %v5913_v34, %v5913_v34  ;;  %v5938_v61 = vsub.f32 %v6015_v41, %v3639_v30 }
 0x388   :  { %v3690_v37 = vadd.f32 %v3689_v10, %v3665_v29  ;;  %v3668_v24 = vmul.f32 %v5918_v0, %v5918_v0  ;;  %v3673_v52 = vmul.f32 %v5923_v21, %v5923_v21  ;;  %v5945_v11 = vsub.f32 %v5832_v3, %v3639_v30 }
 0x389   :  { %v3678_v15 = vadd.f32 %v3677_v14, %v3666_v31  ;;  %v3670_v47 = vmul.f32 %v5928_v54, %v5928_v54  ;;  %v3675_v12 = vmul.f32 %v5933_v25, %v5933_v25  ;;  %v3672_v40 = vmul.f32 %v5938_v61, %v5938_v61 }
 0x38a   :  { %v3691_v19 = vadd.f32 %v3690_v37, %v3667_v46  ;;  %v3674_v58 = vmul.f32 %v5945_v11, %v5945_v11  ;;  %v4868_v17 = vmov 1966171168   ;;  %v3806_v31 = vsub.s32 1, %v5058_v55 }
 0x38b   :  { %v3679_v51 = vadd.f32 %v3678_v15, %v3668_v24  ;;  %v3784_v46 = vunpack.c.l.s4 %v4868_v17 }
 0x38c   :  { %v3692_v16 = vadd.f32 %v3691_v19, %v3669_v2 }
 0x38d   :  { %v3680_v60 = vadd.f32 %v3679_v51, %v3670_v47  ;;  %v3785_v37 = vunpack.c.0.s8 %v3784_v46 }
 0x38e   :  { %v3693_v6 = vadd.f32 %v3692_v16, %v3671_v4  ;;  %v3826_v4 = vld [vmem:[#allocation11] sm:$0x3] }
 0x38f   :  { %v3681_v42 = vadd.f32 %v3680_v60, %v3672_v40  ;;  %v3788_v43 = vsub.s32 %v3785_v37, %v5058_v55  ;;  %v3831_v15 = vrot.slane %v3826_v4, %v5871_v5 }
 0x390   :  { %v3694_v50 = vadd.f32 %v3693_v6, %v3673_v52  ;;  %v3835_v52 = vrot.slane %v3826_v4, %v3806_v31 }
 0x391   :  { %v3682_v3 = vadd.f32 %v3681_v42, %v3674_v58 }
 0x392   :  { %v3695_v44 = vadd.f32 %v3694_v50, %v3675_v12 }
 0x393   :  { %v3683_v56 = vrot.slane %v3682_v3, 4 }
 0x394   :  { %v3696_v27 = vrot.slane %v3695_v44, 4 }
 0x395   :  { %v3684_v35 = vadd.f32 %v3683_v56, %v3682_v3 }
 0x396   :  { %v3697_v13 = vadd.f32 %v3696_v27, %v3695_v44 }
 0x397   :  { %v3685_v57 = vrot.slane %v3684_v35, 2 }
 0x398   :  { %v3698_v26 = vrot.slane %v3697_v13, 2 }
 0x399   :  { %v3686_v20 = vadd.f32 %v3685_v57, %v3684_v35 }
 0x39a   :  { %v3699_v62 = vadd.f32 %v3698_v26, %v3697_v13 }
 0x39b   :  { %v3687_v36 = vrot.slane %v3686_v20, 1 }
 0x39c   :  { %v3700_v45 = vrot.slane %v3699_v62, 1 }
 0x39d   :  { %v3688_v30 = vadd.f32 %v3687_v36, %v3686_v20 }
 0x39e   :  { %v3701_v63 = vadd.f32 %v3700_v45, %v3699_v62 }
 0x3a0   :  { %3766 = vmatprep.mubr.f32.mxu1 %v3701_v63 }
 0x3a1   :  { %3767 = vmatmul.mubr.f32.vlgmr.msra.gmra.mrb[18].mxu1 %v3688_v30 }
 0x474   :  { %v3768_v32 = vpop.f32.mrb[18].mxu1 }
 0x475   :  { %v3773_v59 = vmul.f32 0.00390625, %v3768_v32  ;;  %v3770_v9 = vpop.f32.mrb[19].mxu1 }
 0x476   :  { %v3774_v29 = vmul.f32 0.00390625, %v3770_v9 }
 0x477   :  { %v3776_v10 = vadd.f32 1e-05, %v3773_v59 }
 0x478   :  { %v3777_v48 = vadd.f32 1e-05, %v3774_v29 }
 0x479   :  { %4670 = vrsqrt.f32 %v3776_v10 }
 0x47a   :  { %4672 = vrsqrt.f32 %v3777_v48 }
 0x483   :  { %v4671_v18 = vpop.eup %4670 }
 0x484   :  { %v4673_v22 = vpop.eup %4672 }
 0x485   :  { %v3782_v2 = vcombine.low %v4671_v18, %v4673_v22 }
 0x487   :  { %v3789_v19 = vrot.slane %v3782_v2, %v3788_v43 }
 0x489   :  { %v3796_v14 = vrot.slane %v3789_v19, %v3788_v43 }
 0x48b   :  { %v3798_v16 = vmul.f32 %v3796_v14, %v3775_v28 }
 0x48d   :  { %v3803_v41 = vrot.slane %v3798_v16, %v5871_v5  ;;  %v3807_v24 = vrot.slane %v3798_v16, %v3806_v31 }
 0x48f   :  { %v3810_v6 = vmul.f32 %v3803_v41, %v5885_v38  ;;  %v3811_v47 = vmul.f32 %v3807_v24, %v5876_v1  ;;  %v3812_v51 = vmul.f32 %v3803_v41, %v5888_v7  ;;  %v3813_v12 = vmul.f32 %v3807_v24, %v5879_v8 }
 0x490   :  { %v3814_v50 = vmul.f32 %v3803_v41, %v5898_v33  ;;  %v3815_v55 = vmul.f32 %v3807_v24, %v5882_v23  ;;  %v3816_v40 = vmul.f32 %v3803_v41, %v5906_v53  ;;  %v3817_v60 = vmul.f32 %v3807_v24, %v5891_v49 }
 0x491   :  { %v3818_v44 = vmul.f32 %v3803_v41, %v5918_v0  ;;  %v3819_v5 = vmul.f32 %v3807_v24, %v5901_v39  ;;  %v3820_v38 = vmul.f32 %v3803_v41, %v5928_v54  ;;  %v3821_v1 = vmul.f32 %v3807_v24, %v5913_v34 }
 0x492   :  { %v3822_v7 = vmul.f32 %v3803_v41, %v5938_v61  ;;  %v3823_v8 = vmul.f32 %v3807_v24, %v5923_v21  ;;  %v3824_v33 = vmul.f32 %v3803_v41, %v5945_v11  ;;  %v3825_v23 = vmul.f32 %v3807_v24, %v5933_v25 }
 0x493   :  { %v3838_v58 = vadd.f32 %v3831_v15, %v3810_v6  ;;  %v3839_v53 = vadd.f32 %v3835_v52, %v3811_v47  ;;  %v3840_v42 = vadd.f32 %v3831_v15, %v3812_v51  ;;  %v3841_v49 = vadd.f32 %v3835_v52, %v3813_v12 }
 0x494   :  { %v3842_v27 = vadd.f32 %v3831_v15, %v3814_v50  ;;  %v3843_v0 = vadd.f32 %v3835_v52, %v3815_v55  ;;  %v3844_v3 = vadd.f32 %v3831_v15, %v3816_v40  ;;  %v3845_v39 = vadd.f32 %v3835_v52, %v3817_v60 }
 0x495   :  { %v3846_v13 = vadd.f32 %v3831_v15, %v3818_v44  ;;  %v3847_v54 = vadd.f32 %v3835_v52, %v3819_v5  ;;  %v3848_v56 = vadd.f32 %v3831_v15, %v3820_v38  ;;  %v3849_v34 = vadd.f32 %v3835_v52, %v3821_v1 }
 0x496   :  { %v3850_v26 = vadd.f32 %v3831_v15, %v3822_v7  ;;  %v3851_v61 = vadd.f32 %v3835_v52, %v3823_v8  ;;  %v3852_v35 = vadd.f32 %v3831_v15, %v3824_v33  ;;  %v3853_v21 = vadd.f32 %v3835_v52, %v3825_v23 }
 0x497   :  { %v3854_v62 = vmax.f32 %v3838_v58, 0.0  ;;  %v3855_v11 = vmax.f32 %v3839_v53, 0.0  ;;  %v3856_v57 = vmax.f32 %v3840_v42, 0.0  ;;  %v3857_v25 = vmax.f32 %v3841_v49, 0.0 }
 0x498   :  { %v3858_v45 = vmax.f32 %v3842_v27, 0.0  ;;  %v3859_v20 = vmax.f32 %v3843_v0, 0.0  ;;  %v3860_v63 = vmax.f32 %v3844_v3, 0.0  ;;  %v3861_v36 = vmax.f32 %v3845_v39, 0.0 }
 0x499   :  { %v3862_v30 = vmax.f32 %v3846_v13, 0.0  ;;  %v3863_v32 = vmax.f32 %v3847_v54, 0.0  ;;  %v3864_v59 = vmax.f32 %v3848_v56, 0.0  ;;  %v3865_v9 = vmax.f32 %v3849_v34, 0.0 }
 0x49a   :  { %v3866_v29 = vmax.f32 %v3850_v26, 0.0  ;;  %v3867_v10 = vmax.f32 %v3851_v61, 0.0  ;;  %v3868_v48 = vmax.f32 %v3852_v35, 0.0  ;;  %v3869_v17 = vmax.f32 %v3853_v21, 0.0 }
 0x49b   :  { %v4141_v46 = vpack.c.bf16 %v3855_v11, %v3854_v62  ;;  %v4142_v37 = vpack.c.bf16 %v3857_v25, %v3856_v57  ;;  %v4143_v18 = vpack.c.bf16 %v3859_v20, %v3858_v45  ;;  %v4144_v43 = vpack.c.bf16 %v3861_v36, %v3860_v63 }
 0x49c   :  { %v4145_v22 = vpack.c.bf16 %v3863_v32, %v3862_v30  ;;  %v4146_v2 = vpack.c.bf16 %v3865_v9, %v3864_v59  ;;  %v4147_v19 = vpack.c.bf16 %v3867_v10, %v3866_v29  ;;  %v4148_v28 = vpack.c.bf16 %v3869_v17, %v3868_v48 }
 0x49d   :  { %3918 = vst [vmem:[#allocation13] sm:$0xff] %v4141_v46  ;;  %3919 = vst [vmem:[#allocation13 + $0x8] sm:$0xff] %v4142_v37 }
 0x49e   :  { %3920 = vst [vmem:[#allocation13 + $0x10] sm:$0xff] %v4143_v18  ;;  %3921 = vst [vmem:[#allocation13 + $0x18] sm:$0xff] %v4144_v43 }
 0x49f   :  { %3922 = vst [vmem:[#allocation13 + $0x20] sm:$0xff] %v4145_v22  ;;  %3923 = vst [vmem:[#allocation13 + $0x28] sm:$0xff] %v4146_v2 }
 0x4a0   :  { %3924 = vst [vmem:[#allocation13 + $0x30] sm:$0xff] %v4147_v19  ;;  %3925 = vst [vmem:[#allocation13 + $0x38] sm:$0xff] %v4148_v28 }
 0x4a1   :  { %4825 = shalt.err (!%p4822_p10)
}
 0x4a2   :  { %s4826_s26 = scalar_lea.hbm %s5996_s6, 1024 }
 0x4a3   :  { %p4827_p11 = scmp.ne.s32.totalorder %s5996_s6, %s4826_s26  ;;  %p4830_p12 = scmp.lt.u32.totalorder %s4826_s26, %s5996_s6 }
 0x4a5   :  { %p4832_p13 = pnand %p4830_p12, %p4827_p11 }
 0x4a7   :  { %4835 = shalt.err (!%p4832_p13)
}
 0x4a8   :  { %3937 = dma.vmem_to_hbm [thread:$0]  %s3932_s23, 1024, %s5996_s6, [#allocation4], %s4847_s7, %s4847_s7, %s4848_s8  }
 0x4a9   :  { %4844 = dma.done.wait [#allocation4], 1024  }
 0x4aa   :  { %4845 = vsyncadd [#allocation4], 4294966272 }
 0x4ab   :  { %3941 = vsyncpa [#allocation3], 1 }
 0x4ac   :  { %3942 = vsyncpa [#allocation6], 1 }
 0x4ad   :  { %3943 = vsyncpa [#allocation9], 1 }
 0x4ae   :  { %3944 = vsyncpa [#allocation12], 1 }
 0x4af   :  { %3945 = vsyncpa [#allocation4], 1 }

// kernel: generator_forward.3
= control target key start
LH: loop header
LB: loop body
LE: loop exit
PB: predicated region body
PF: predicated region fallthrough
CT: control target
= control target key end

     0   :  { %12 = vsyncpa [#allocation3], 0  ;;  %s11011_s0 = inlined_call_operand.hbm [shape: bf16[4,32], index: 0, kind: input, shape index: {}]   ;;  %s11012_s1 = inlined_call_operand.hbm [shape: bf16[32,1024], index: 1, kind: input, shape index: {}]   ;;  %s11013_s2 = inlined_call_operand.hbm [shape: f32[1,1024], index: 2, kind: input, shape index: {}]   ;;  %s11014_s3 = inlined_call_operand.hbm [shape: f32[1,1024], index: 3, kind: input, shape index: {}]   ;;  %s11015_s4 = inlined_call_operand.hbm [shape: bf16[1024,2048], index: 4, kind: input, shape index: {}]   ;;  %s11016_s5 = inlined_call_operand.hbm [shape: f32[1,2048], index: 5, kind: input, shape index: {}]   ;;  %s11017_s6 = inlined_call_operand.hbm [shape: f32[1,2048], index: 6, kind: input, shape index: {}]   ;;  %s11018_s7 = inlined_call_operand.hbm [shape: bf16[4,2048], index: 7, kind: output, shape index: {}]  }
   0x1   :  { %13 = vsyncpa [#allocation6], 0 }
   0x2   :  { %14 = vsyncpa [#allocation9], 0 }
   0x3   :  { %15 = vsyncpa [#allocation12], 0 }
   0x4   :  { %16 = vsyncpa [#allocation4], 0  ;;  %s10347_s24 = smov [#allocation5]   ;;  %s10161_s28 = scalar_lea.hbm %s11012_s1, 2048 }
   0x5   :  { %s32_s25 = sshll.u32 %s10347_s24, 4  ;;  %p10162_p0 = scmp.ne.s32.totalorder %s11012_s1, %s10161_s28  ;;  %s33_s25 = int_to_ptr.vmem [resolvable:$true] %s32_s25 }
   0x6   :  { %p10165_p1 = scmp.lt.u32.totalorder %s10161_s28, %s11012_s1 }
   0x8   :  { %p10167_p2 = pnand %p10165_p1, %p10162_p0 }
   0xa   :  { %10170 = shalt.err (!%p10167_p2)
}
   0xb   :  { %s10171_s10 = scalar_lea.vmem %s33_s25, 2048  ;;  %p10176_p4 = scmp.lt.s32.totalorder %s33_s25, %s33_s25 }
   0xc   :  { %p10172_p3 = scmp.ne.s32.totalorder %s33_s25, %s10171_s10  ;;  %p10177_p5 = scmp.lt.s32.totalorder %s10171_s10, %s10171_s10 }
   0xe   :  { %p10178_p6 = por %p10177_p5, %p10176_p4 }
  0x10   :  { %p10179_p7 = pnand %p10178_p6, %p10172_p3 }
  0x12   :  { %10182 = shalt.err (!%p10179_p7)
}
  0x13   :  { %s10348_s11 = smov 512   ;;  %s10349_s12 = smov 32  }
  0x14   :  { %38 = dma.hbm_to_vmem [thread:$0]  %s11012_s1, 2048, %s33_s25, [#allocation6], %s10348_s11, %s10348_s11, %s10349_s12  }
  0x15   :  { %s10350_s15 = smov [#allocation8]   ;;  %s10351_s17 = smov [#allocation11]  }
  0x16   :  { %s55_s16 = sshll.u32 %s10350_s15, 4  ;;  %s77_s18 = sshll.u32 %s10351_s17, 4  ;;  %s56_s16 = int_to_ptr.vmem [resolvable:$true] %s55_s16  ;;  %s78_s18 = int_to_ptr.vmem [resolvable:$true] %s77_s18 }
  0x17   :  { %s10183_s21 = scalar_lea.hbm %s11014_s3, 128 }
  0x18   :  { %p10184_p8 = scmp.ne.s32.totalorder %s11014_s3, %s10183_s21  ;;  %p10187_p9 = scmp.lt.u32.totalorder %s10183_s21, %s11014_s3 }
  0x1a   :  { %p10189_p10 = pnand %p10187_p9, %p10184_p8 }
  0x1c   :  { %10192 = shalt.err (!%p10189_p10)
}
  0x1d   :  { %s10193_s1 = scalar_lea.vmem %s56_s16, 128  ;;  %p10198_p12 = scmp.lt.s32.totalorder %s56_s16, %s56_s16 }
  0x1e   :  { %p10194_p11 = scmp.ne.s32.totalorder %s56_s16, %s10193_s1  ;;  %p10199_p13 = scmp.lt.s32.totalorder %s10193_s1, %s10193_s1 }
  0x20   :  { %p10200_p0 = por %p10199_p13, %p10198_p12 }
  0x22   :  { %p10201_p1 = pnand %p10200_p0, %p10194_p11 }
  0x24   :  { %10204 = shalt.err (!%p10201_p1)
}
  0x25   :  { %58 = dma.hbm_to_vmem [thread:$0]  %s11014_s3, 128, %s56_s16, [#allocation9]  }
  0x26   :  { %s10205_s30 = scalar_lea.hbm %s11016_s5, 256 }
  0x27   :  { %p10206_p2 = scmp.ne.s32.totalorder %s11016_s5, %s10205_s30  ;;  %p10209_p3 = scmp.lt.u32.totalorder %s10205_s30, %s11016_s5 }
  0x29   :  { %p10211_p4 = pnand %p10209_p3, %p10206_p2 }
  0x2b   :  { %10214 = shalt.err (!%p10211_p4)
}
  0x2c   :  { %s10215_s12 = scalar_lea.vmem %s78_s18, 256  ;;  %p10220_p6 = scmp.lt.s32.totalorder %s78_s18, %s78_s18 }
  0x2d   :  { %p10216_p5 = scmp.ne.s32.totalorder %s78_s18, %s10215_s12  ;;  %p10221_p7 = scmp.lt.s32.totalorder %s10215_s12, %s10215_s12 }
  0x2f   :  { %p10222_p8 = por %p10221_p7, %p10220_p6 }
  0x31   :  { %p10223_p9 = pnand %p10222_p8, %p10216_p5 }
  0x33   :  { %10226 = shalt.err (!%p10223_p9)
}
  0x34   :  { %80 = dma.hbm_to_vmem [thread:$0]  %s11016_s5, 256, %s78_s18, [#allocation12]  }
  0x35   :  { %s10352_s14 = smov [#allocation2]   ;;  %s10353_s16 = smov [#allocation7]  }
  0x36   :  { %s23_s15 = sshll.u32 %s10352_s14, 4  ;;  %s45_s17 = sshll.u32 %s10353_s16, 4  ;;  %s24_s15 = int_to_ptr.vmem [resolvable:$true] %s23_s15  ;;  %s46_s17 = int_to_ptr.vmem [resolvable:$true] %s45_s17 }
  0x37   :  { %s10227_s21 = scalar_lea.hbm %s11011_s0, 32 }
  0x38   :  { %p10228_p10 = scmp.ne.s32.totalorder %s11011_s0, %s10227_s21  ;;  %p10231_p11 = scmp.lt.u32.totalorder %s10227_s21, %s11011_s0 }
  0x3a   :  { %p10233_p12 = pnand %p10231_p11, %p10228_p10 }
  0x3c   :  { %10236 = shalt.err (!%p10233_p12)
}
  0x3d   :  { %s10237_s5 = scalar_lea.vmem %s24_s15, 32  ;;  %p10242_p0 = scmp.lt.s32.totalorder %s24_s15, %s24_s15 }
  0x3e   :  { %p10238_p13 = scmp.ne.s32.totalorder %s24_s15, %s10237_s5  ;;  %p10243_p1 = scmp.lt.s32.totalorder %s10237_s5, %s10237_s5 }
  0x40   :  { %p10244_p2 = por %p10243_p1, %p10242_p0 }
  0x42   :  { %p10245_p3 = pnand %p10244_p2, %p10238_p13 }
  0x44   :  { %10248 = shalt.err (!%p10245_p3)
}
  0x45   :  { %26 = dma.hbm_to_vmem [thread:$0]  %s11011_s0, 32, %s24_s15, [#allocation3]  }
  0x46   :  { %s10249_s28 = scalar_lea.hbm %s11013_s2, 128 }
  0x47   :  { %p10250_p4 = scmp.ne.s32.totalorder %s11013_s2, %s10249_s28  ;;  %p10253_p5 = scmp.lt.u32.totalorder %s10249_s28, %s11013_s2 }
  0x49   :  { %p10255_p6 = pnand %p10253_p5, %p10250_p4 }
  0x4b   :  { %10258 = shalt.err (!%p10255_p6)
}
  0x4c   :  { %s10259_s10 = scalar_lea.vmem %s46_s17, 128  ;;  %p10264_p8 = scmp.lt.s32.totalorder %s46_s17, %s46_s17 }
  0x4d   :  { %p10260_p7 = scmp.ne.s32.totalorder %s46_s17, %s10259_s10  ;;  %p10265_p9 = scmp.lt.s32.totalorder %s10259_s10, %s10259_s10 }
  0x4f   :  { %p10266_p10 = por %p10265_p9, %p10264_p8 }
  0x51   :  { %p10267_p11 = pnand %p10266_p10, %p10260_p7 }
  0x53   :  { %10270 = shalt.err (!%p10267_p11)
}
  0x54   :  { %48 = dma.hbm_to_vmem [thread:$0]  %s11013_s2, 128, %s46_s17, [#allocation6]  }
  0x55   :  { %s10354_s12 = smov [#allocation10]   ;;  %s10271_s15 = scalar_lea.hbm %s11015_s4, 131072 }
  0x56   :  { %s64_s3 = sshll.u32 %s10354_s12, 4  ;;  %p10272_p12 = scmp.ne.s32.totalorder %s11015_s4, %s10271_s15  ;;  %s65_s3 = int_to_ptr.vmem [resolvable:$true] %s64_s3 }
  0x57   :  { %p10275_p13 = scmp.lt.u32.totalorder %s10271_s15, %s11015_s4 }
  0x59   :  { %p10277_p0 = pnand %p10275_p13, %p10272_p12 }
  0x5b   :  { %10280 = shalt.err (!%p10277_p0)
}
  0x5c   :  { %s10281_s22 = scalar_lea.vmem %s65_s3, 131072  ;;  %p10286_p2 = scmp.lt.s32.totalorder %s65_s3, %s65_s3 }
  0x5d   :  { %p10282_p1 = scmp.ne.s32.totalorder %s65_s3, %s10281_s22  ;;  %p10287_p3 = scmp.lt.s32.totalorder %s10281_s22, %s10281_s22 }
  0x5f   :  { %p10288_p4 = por %p10287_p3, %p10286_p2 }
  0x61   :  { %p10289_p5 = pnand %p10288_p4, %p10282_p1 }
  0x63   :  { %10292 = shalt.err (!%p10289_p5)
}
  0x64   :  { %s10355_s2 = smov 1024   ;;  %s10356_s17 = smov 64  }
  0x65   :  { %70 = dma.hbm_to_vmem [thread:$0]  %s11015_s4, 131072, %s65_s3, [#allocation9], %s10355_s2, %s10355_s2, %s10356_s17  }
  0x66   :  { %s10357_s26 = smov [#allocation13]   ;;  %s10293_s25 = scalar_lea.hbm %s11017_s6, 256 }
  0x67   :  { %s87_s5 = sshll.u32 %s10357_s26, 4  ;;  %p10294_p6 = scmp.ne.s32.totalorder %s11017_s6, %s10293_s25  ;;  %s88_s5 = int_to_ptr.vmem [resolvable:$true] %s87_s5 }
  0x68   :  { %p10297_p7 = scmp.lt.u32.totalorder %s10293_s25, %s11017_s6 }
  0x6a   :  { %p10299_p8 = pnand %p10297_p7, %p10294_p6 }
  0x6c   :  { %10302 = shalt.err (!%p10299_p8)
}
  0x6d   :  { %s10303_s8 = scalar_lea.vmem %s88_s5, 256  ;;  %p10308_p10 = scmp.lt.s32.totalorder %s88_s5, %s88_s5 }
  0x6e   :  { %p10304_p9 = scmp.ne.s32.totalorder %s88_s5, %s10303_s8  ;;  %p10309_p11 = scmp.lt.s32.totalorder %s10303_s8, %s10303_s8 }
  0x70   :  { %p10310_p12 = por %p10309_p11, %p10308_p10 }
  0x72   :  { %p10311_p13 = pnand %p10310_p12, %p10304_p9 }
  0x74   :  { %10314 = shalt.err (!%p10311_p13)
}
  0x75   :  { %90 = dma.hbm_to_vmem [thread:$0]  %s11017_s6, 256, %s88_s5, [#allocation12]  }
  0x76   :  { %10337 = dma.done.wait [#allocation3], 32  }
  0x77   :  { %10338 = vsyncadd [#allocation3], 4294967264 }
  0x78   :  { %10339 = dma.done.wait [#allocation6], 2176  }
  0x79   :  { %10340 = vsyncadd [#allocation6], 4294965120 }
  0x7a   :  { %10341 = dma.done.wait [#allocation9], 131200  }
  0x7b   :  { %10342 = vsyncadd [#allocation9], 4294836096 }
  0x7c   :  { %10343 = dma.done.wait [#allocation12], 512  }
  0x7d   :  { %10344 = vsyncadd [#allocation12], 4294966784  ;;  %v10358_v0 = vmov 0   ;;  %v114_v1 = vld [vmem:[#allocation5] sm:$0xff]  ;;  %v115_v3 = vld [vmem:[#allocation5 + $0x8] sm:$0xff]  ;;  %vm210_vm0 = vcmask 261120  }
  0x7e   :  { %246 = vmatprep.mubr.bf16.mxu0 %v10358_v0  ;;  %287 = vmatprep.mubr.bf16.mxu1 %v10358_v0  ;;  %v118_v2 = vld [vmem:[#allocation5 + $0x20] sm:$0xff]  ;;  %v119_v5 = vld [vmem:[#allocation5 + $0x28] sm:$0xff]  ;;  %v116_v15 = vld [vmem:[#allocation5 + $0x10] sm:$0xff]  ;;  %vm378_vm1 = vcmask 1043456   ;;  %s10361_s6 = smov [#allocation14]  }
  0x7f   :  { %v8951_v4 = vcombine.high %v114_v1, %v118_v2  ;;  %v8950_v6 = vcombine.low %v114_v1, %v118_v2  ;;  %v122_v7 = vld [vmem:[#allocation5 + $0x40] sm:$0xff]  ;;  %v8953_v9 = vcombine.high %v115_v3, %v119_v5  ;;  %v8952_v10 = vcombine.low %v115_v3, %v119_v5  ;;  %v123_v12 = vld [vmem:[#allocation5 + $0x48] sm:$0xff]  ;;  %v120_v16 = vld [vmem:[#allocation5 + $0x30] sm:$0xff]  ;;  %s8938_s10 = sshll.u32 %s10361_s6, 4  ;;  %s8939_s10 = int_to_ptr.vmem [resolvable:$true] %s8938_s10 }
  0x80   :  { %v126_v8 = vld [vmem:[#allocation5 + $0x60] sm:$0xff]  ;;  %v127_v13 = vld [vmem:[#allocation5 + $0x68] sm:$0xff]  ;;  %v117_v17 = vld [vmem:[#allocation5 + $0x18] sm:$0xff]  ;;  %v8955_v21 = vcombine.high %v116_v15, %v120_v16  ;;  %v8954_v28 = vcombine.low %v116_v15, %v120_v16  ;;  %s10315_s0 = scalar_lea.vmem %s8939_s10, 512  ;;  %p10320_p1 = scmp.lt.s32.totalorder %s8939_s10, %s8939_s10 }
  0x81   :  { %v8959_v11 = vcombine.high %v122_v7, %v126_v8  ;;  %214 = vmatprep.subr.bf16.mxu0 %v8951_v4  ;;  %v8961_v14 = vcombine.high %v123_v12, %v127_v13  ;;  %255 = vmatprep.subr.bf16.mxu1 %v8953_v9  ;;  %v8958_v18 = vcombine.low %v122_v7, %v126_v8  ;;  %v121_v19 = vld [vmem:[#allocation5 + $0x38] sm:$0xff]  ;;  %v124_v23 = vld [vmem:[#allocation5 + $0x50] sm:$0xff]  ;;  %p10316_p0 = scmp.ne.s32.totalorder %s8939_s10, %s10315_s0  ;;  %p10321_p2 = scmp.lt.s32.totalorder %s10315_s0, %s10315_s0 }
  0x82   :  { %215 = vmatpush1.bf16.msra.mxu0 %v8950_v6  ;;  %256 = vmatpush1.bf16.msra.mxu1 %v8952_v10  ;;  %v8960_v20 = vcombine.low %v123_v12, %v127_v13  ;;  %v8957_v22 = vcombine.high %v117_v17, %v121_v19  ;;  %v128_v24 = vld [vmem:[#allocation5 + $0x70] sm:$0xff]  ;;  %v125_v25 = vld [vmem:[#allocation5 + $0x58] sm:$0xff]  ;;  %v8956_v29 = vcombine.low %v117_v17, %v121_v19 }
  0x83   :  { %216 = vmatprep.subr.bf16.mxu0 %v8959_v11  ;;  %257 = vmatprep.subr.bf16.mxu1 %v8961_v14  ;;  %v129_v26 = vld [vmem:[#allocation5 + $0x78] sm:$0xff]  ;;  %v8963_v30 = vcombine.high %v124_v23, %v128_v24  ;;  %v8962_v32 = vcombine.low %v124_v23, %v128_v24  ;;  %v714_v34 = vld [vmem:[#allocation10] sm:$0xff]  ;;  %p10322_p3 = por %p10321_p2, %p10320_p1 }
  0x84   :  { %v113_v27 = vld [vmem:[#allocation2] sm:$0x3]  ;;  %v8965_v31 = vcombine.high %v125_v25, %v129_v26  ;;  %v8964_v33 = vcombine.low %v125_v25, %v129_v26  ;;  %v722_v35 = vld [vmem:[#allocation10 + $0x40] sm:$0xff] }
  0x85   :  { %v715_v36 = vld [vmem:[#allocation10 + $0x8] sm:$0xff]  ;;  %v8971_v37 = vcombine.high %v714_v34, %v722_v35  ;;  %v8970_v39 = vcombine.low %v714_v34, %v722_v35  ;;  %v730_v42 = vld [vmem:[#allocation10 + $0x80] sm:$0xff]  ;;  %p10323_p4 = pnand %p10322_p3, %p10316_p0 }
  0x86   :  { %217 = vmatpush1.bf16.msra.mxu0 %v8958_v18  ;;  %258 = vmatpush1.bf16.msra.mxu1 %v8960_v20  ;;  %v723_v38 = vld [vmem:[#allocation10 + $0x48] sm:$0xff]  ;;  %v738_v43 = vld [vmem:[#allocation10 + $0xc0] sm:$0xff] }
  0x87   :  { %296 = vmatprep.subr.bf16.mxu0 %v8955_v21  ;;  %337 = vmatprep.subr.bf16.mxu1 %v8957_v22  ;;  %v8972_v40 = vcombine.low %v715_v36, %v723_v38  ;;  %v8973_v41 = vcombine.high %v715_v36, %v723_v38  ;;  %v731_v44 = vld [vmem:[#allocation10 + $0x88] sm:$0xff]  ;;  %v8987_v45 = vcombine.high %v730_v42, %v738_v43  ;;  %v746_v50 = vld [vmem:[#allocation10 + $0x100] sm:$0xff] }
  0x88   :  { %v739_v46 = vld [vmem:[#allocation10 + $0xc8] sm:$0xff]  ;;  %v8986_v47 = vcombine.low %v730_v42, %v738_v43  ;;  %v754_v51 = vld [vmem:[#allocation10 + $0x140] sm:$0xff] }
  0x89   :  { %8966 = vmatmul.mubr.msk.bf16.vlgmr.msra.gmra.mrb[0].mxu0 %vm210_vm0, %v113_v27  ;;  %8967 = vmatmul.mubr.msk.bf16.vlgmr.msra.gmra.mrb[0].mxu1 %vm210_vm0, %v113_v27  ;;  %v8988_v48 = vcombine.low %v731_v44, %v739_v46  ;;  %v8989_v49 = vcombine.high %v731_v44, %v739_v46  ;;  %v747_v52 = vld [vmem:[#allocation10 + $0x108] sm:$0xff]  ;;  %v9003_v53 = vcombine.high %v746_v50, %v754_v51  ;;  %v762_v58 = vld [vmem:[#allocation10 + $0x180] sm:$0xff] }
  0x8a   :  { %297 = vmatpush1.bf16.msra.mxu0 %v8954_v28  ;;  %338 = vmatpush1.bf16.msra.mxu1 %v8956_v29  ;;  %v755_v54 = vld [vmem:[#allocation10 + $0x148] sm:$0xff]  ;;  %v9002_v55 = vcombine.low %v746_v50, %v754_v51  ;;  %v770_v59 = vld [vmem:[#allocation10 + $0x1c0] sm:$0xff] }
  0x8b   :  { %298 = vmatprep.subr.bf16.mxu0 %v8963_v30  ;;  %339 = vmatprep.subr.bf16.mxu1 %v8965_v31  ;;  %v9004_v56 = vcombine.low %v747_v52, %v755_v54  ;;  %v9005_v57 = vcombine.high %v747_v52, %v755_v54  ;;  %v763_v60 = vld [vmem:[#allocation10 + $0x188] sm:$0xff]  ;;  %v9019_v61 = vcombine.high %v762_v58, %v770_v59  ;;  %v778_v2 = vld [vmem:[#allocation10 + $0x200] sm:$0xff] }
  0x8c   :  { %328 = vmatprep.mubr.bf16.mxu0 %v10358_v0  ;;  %369 = vmatprep.mubr.bf16.mxu1 %v10358_v0  ;;  %v771_v62 = vld [vmem:[#allocation10 + $0x1c8] sm:$0xff]  ;;  %v9018_v63 = vcombine.low %v762_v58, %v770_v59  ;;  %v786_v3 = vld [vmem:[#allocation10 + $0x240] sm:$0xff] }
  0x8d   :  { %v9020_v0 = vcombine.low %v763_v60, %v771_v62  ;;  %v9021_v1 = vcombine.high %v763_v60, %v771_v62  ;;  %v779_v4 = vld [vmem:[#allocation10 + $0x208] sm:$0xff]  ;;  %v9035_v5 = vcombine.high %v778_v2, %v786_v3  ;;  %v9034_v7 = vcombine.low %v778_v2, %v786_v3  ;;  %v794_v10 = vld [vmem:[#allocation10 + $0x280] sm:$0xff] }
  0x8e   :  { %299 = vmatpush1.bf16.msra.mxu0 %v8962_v32  ;;  %340 = vmatpush1.bf16.msra.mxu1 %v8964_v33  ;;  %v787_v6 = vld [vmem:[#allocation10 + $0x248] sm:$0xff]  ;;  %v802_v11 = vld [vmem:[#allocation10 + $0x2c0] sm:$0xff] }
  0x8f   :  { %6858 = vmatprep.subr.bf16.mxu0 %v8971_v37  ;;  %7022 = vmatprep.subr.bf16.mxu1 %v8973_v41  ;;  %v9036_v8 = vcombine.low %v779_v4, %v787_v6  ;;  %v9037_v9 = vcombine.high %v779_v4, %v787_v6  ;;  %v795_v12 = vld [vmem:[#allocation10 + $0x288] sm:$0xff]  ;;  %v9051_v13 = vcombine.high %v794_v10, %v802_v11  ;;  %v810_v18 = vld [vmem:[#allocation10 + $0x300] sm:$0xff] }
  0x90   :  { %v803_v14 = vld [vmem:[#allocation10 + $0x2c8] sm:$0xff]  ;;  %v9050_v15 = vcombine.low %v794_v10, %v802_v11  ;;  %v818_v19 = vld [vmem:[#allocation10 + $0x340] sm:$0xff] }
  0x91   :  { %8968 = vmatmul.mubr.msk.bf16.vlgmr.msra.gmra.mrb[4].mxu0 %vm210_vm0, %v113_v27  ;;  %8969 = vmatmul.mubr.msk.bf16.vlgmr.msra.gmra.mrb[4].mxu1 %vm210_vm0, %v113_v27  ;;  %v9052_v16 = vcombine.low %v795_v12, %v803_v14  ;;  %v9053_v17 = vcombine.high %v795_v12, %v803_v14  ;;  %v811_v20 = vld [vmem:[#allocation10 + $0x308] sm:$0xff]  ;;  %v9067_v21 = vcombine.high %v810_v18, %v818_v19  ;;  %v826_v26 = vld [vmem:[#allocation10 + $0x380] sm:$0xff] }
  0x92   :  { %6859 = vmatpush1.bf16.msra.mxu0 %v8970_v39  ;;  %7023 = vmatpush1.bf16.msra.mxu1 %v8972_v40  ;;  %v819_v22 = vld [vmem:[#allocation10 + $0x348] sm:$0xff]  ;;  %v9066_v23 = vcombine.low %v810_v18, %v818_v19  ;;  %v834_v27 = vld [vmem:[#allocation10 + $0x3c0] sm:$0xff] }
  0x93   :  { %6860 = vmatprep.subr.bf16.mxu0 %v8987_v45  ;;  %7024 = vmatprep.subr.bf16.mxu1 %v8989_v49  ;;  %v9068_v24 = vcombine.low %v811_v20, %v819_v22  ;;  %v9069_v25 = vcombine.high %v811_v20, %v819_v22  ;;  %v827_v28 = vld [vmem:[#allocation10 + $0x388] sm:$0xff]  ;;  %v9083_v29 = vcombine.high %v826_v26, %v834_v27  ;;  %v842_v34 = vld [vmem:[#allocation10 + $0x400] sm:$0xff] }
  0x94   :  { %v835_v30 = vld [vmem:[#allocation10 + $0x3c8] sm:$0xff]  ;;  %v9082_v31 = vcombine.low %v826_v26, %v834_v27  ;;  %v850_v35 = vld [vmem:[#allocation10 + $0x440] sm:$0xff] }
  0x95   :  { %v9084_v32 = vcombine.low %v827_v28, %v835_v30  ;;  %v9085_v33 = vcombine.high %v827_v28, %v835_v30  ;;  %v843_v36 = vld [vmem:[#allocation10 + $0x408] sm:$0xff]  ;;  %v9099_v37 = vcombine.high %v842_v34, %v850_v35  ;;  %v9098_v39 = vcombine.low %v842_v34, %v850_v35  ;;  %v858_v42 = vld [vmem:[#allocation10 + $0x480] sm:$0xff] }
  0x96   :  { %6861 = vmatpush1.bf16.msra.mxu0 %v8986_v47  ;;  %7025 = vmatpush1.bf16.msra.mxu1 %v8988_v48  ;;  %v851_v38 = vld [vmem:[#allocation10 + $0x448] sm:$0xff]  ;;  %v866_v43 = vld [vmem:[#allocation10 + $0x4c0] sm:$0xff] }
  0x97   :  { %6862 = vmatprep.subr.bf16.mxu0 %v9003_v53  ;;  %7026 = vmatprep.subr.bf16.mxu1 %v9005_v57  ;;  %v9100_v40 = vcombine.low %v843_v36, %v851_v38  ;;  %v9101_v41 = vcombine.high %v843_v36, %v851_v38  ;;  %v859_v44 = vld [vmem:[#allocation10 + $0x488] sm:$0xff]  ;;  %v9115_v45 = vcombine.high %v858_v42, %v866_v43  ;;  %v874_v50 = vld [vmem:[#allocation10 + $0x500] sm:$0xff] }
  0x98   :  { %v867_v46 = vld [vmem:[#allocation10 + $0x4c8] sm:$0xff]  ;;  %v9114_v47 = vcombine.low %v858_v42, %v866_v43  ;;  %v882_v51 = vld [vmem:[#allocation10 + $0x540] sm:$0xff] }
  0x99   :  { %v9116_v48 = vcombine.low %v859_v44, %v867_v46  ;;  %v9117_v49 = vcombine.high %v859_v44, %v867_v46  ;;  %v875_v52 = vld [vmem:[#allocation10 + $0x508] sm:$0xff]  ;;  %v9131_v53 = vcombine.high %v874_v50, %v882_v51  ;;  %v890_v58 = vld [vmem:[#allocation10 + $0x580] sm:$0xff] }
  0x9a   :  { %6863 = vmatpush1.bf16.msra.mxu0 %v9002_v55  ;;  %7027 = vmatpush1.bf16.msra.mxu1 %v9004_v56  ;;  %v883_v54 = vld [vmem:[#allocation10 + $0x548] sm:$0xff]  ;;  %v9130_v55 = vcombine.low %v874_v50, %v882_v51  ;;  %v898_v59 = vld [vmem:[#allocation10 + $0x5c0] sm:$0xff] }
  0x9b   :  { %6864 = vmatprep.subr.bf16.mxu0 %v9019_v61  ;;  %7028 = vmatprep.subr.bf16.mxu1 %v9021_v1  ;;  %v9132_v56 = vcombine.low %v875_v52, %v883_v54  ;;  %v9133_v57 = vcombine.high %v875_v52, %v883_v54  ;;  %v891_v60 = vld [vmem:[#allocation10 + $0x588] sm:$0xff]  ;;  %v9147_v61 = vcombine.high %v890_v58, %v898_v59  ;;  %v906_v2 = vld [vmem:[#allocation10 + $0x600] sm:$0xff] }
  0x9c   :  { %v899_v62 = vld [vmem:[#allocation10 + $0x5c8] sm:$0xff]  ;;  %v914_v3 = vld [vmem:[#allocation10 + $0x640] sm:$0xff] }
  0x9d   :  { %v9149_v1 = vcombine.high %v891_v60, %v899_v62  ;;  %v907_v4 = vld [vmem:[#allocation10 + $0x608] sm:$0xff]  ;;  %v922_v10 = vld [vmem:[#allocation10 + $0x680] sm:$0xff] }
  0x9e   :  { %6865 = vmatpush1.bf16.msra.mxu0 %v9018_v63  ;;  %7029 = vmatpush1.bf16.msra.mxu1 %v9020_v0  ;;  %v9146_v63 = vcombine.low %v890_v58, %v898_v59  ;;  %v9148_v0 = vcombine.low %v891_v60, %v899_v62  ;;  %v915_v6 = vld [vmem:[#allocation10 + $0x648] sm:$0xff]  ;;  %v930_v11 = vld [vmem:[#allocation10 + $0x6c0] sm:$0xff] }
  0x9f   :  { %6866 = vmatprep.subr.bf16.mxu0 %v9035_v5  ;;  %7030 = vmatprep.subr.bf16.mxu1 %v9037_v9  ;;  %v9163_v5 = vcombine.high %v906_v2, %v914_v3  ;;  %v9165_v9 = vcombine.high %v907_v4, %v915_v6  ;;  %v923_v12 = vld [vmem:[#allocation10 + $0x688] sm:$0xff]  ;;  %v938_v18 = vld [vmem:[#allocation10 + $0x700] sm:$0xff] }
  0xa0   :  { %v931_v14 = vld [vmem:[#allocation10 + $0x6c8] sm:$0xff]  ;;  %v946_v19 = vld [vmem:[#allocation10 + $0x740] sm:$0xff] }
  0xa1   :  { %v939_v20 = vld [vmem:[#allocation10 + $0x708] sm:$0xff]  ;;  %v954_v26 = vld [vmem:[#allocation10 + $0x780] sm:$0xff] }
  0xa2   :  { %6867 = vmatpush1.bf16.msra.mxu0 %v9034_v7  ;;  %7031 = vmatpush1.bf16.msra.mxu1 %v9036_v8  ;;  %v9162_v7 = vcombine.low %v906_v2, %v914_v3  ;;  %v9164_v8 = vcombine.low %v907_v4, %v915_v6  ;;  %v947_v22 = vld [vmem:[#allocation10 + $0x748] sm:$0xff]  ;;  %v962_v27 = vld [vmem:[#allocation10 + $0x7c0] sm:$0xff] }
  0xa3   :  { %6868 = vmatprep.subr.bf16.mxu0 %v9051_v13  ;;  %7032 = vmatprep.subr.bf16.mxu1 %v9053_v17  ;;  %v9179_v13 = vcombine.high %v922_v10, %v930_v11  ;;  %v9181_v17 = vcombine.high %v923_v12, %v931_v14  ;;  %v955_v28 = vld [vmem:[#allocation10 + $0x788] sm:$0xff]  ;;  %v10490_v34 = vld [vmem:[#allocation10 + $0x800] sm:$0xff] }
  0xa4   :  { %v963_v30 = vld [vmem:[#allocation10 + $0x7c8] sm:$0xff]  ;;  %v10492_v35 = vld [vmem:[#allocation10 + $0x840] sm:$0xff] }
  0xa5   :  { %v10494_v36 = vld [vmem:[#allocation10 + $0x808] sm:$0xff] }
  0xa6   :  { %6869 = vmatpush1.bf16.msra.mxu0 %v9050_v15  ;;  %7033 = vmatpush1.bf16.msra.mxu1 %v9052_v16  ;;  %v9178_v15 = vcombine.low %v922_v10, %v930_v11  ;;  %v9180_v16 = vcombine.low %v923_v12, %v931_v14  ;;  %v10498_v38 = vld [vmem:[#allocation10 + $0x848] sm:$0xff] }
  0xa7   :  { %6870 = vmatprep.subr.bf16.mxu0 %v9067_v21  ;;  %7034 = vmatprep.subr.bf16.mxu1 %v9069_v25  ;;  %v9195_v21 = vcombine.high %v938_v18, %v946_v19  ;;  %v9197_v25 = vcombine.high %v939_v20, %v947_v22 }
  0xaa   :  { %6871 = vmatpush1.bf16.msra.mxu0 %v9066_v23  ;;  %7035 = vmatpush1.bf16.msra.mxu1 %v9068_v24  ;;  %v9194_v23 = vcombine.low %v938_v18, %v946_v19  ;;  %v9196_v24 = vcombine.low %v939_v20, %v947_v22 }
  0xab   :  { %6872 = vmatprep.subr.bf16.mxu0 %v9083_v29  ;;  %7036 = vmatprep.subr.bf16.mxu1 %v9085_v33  ;;  %v9211_v29 = vcombine.high %v954_v26, %v962_v27  ;;  %v9213_v33 = vcombine.high %v955_v28, %v963_v30 }
  0xae   :  { %6873 = vmatpush1.bf16.msra.mxu0 %v9082_v31  ;;  %7037 = vmatpush1.bf16.msra.mxu1 %v9084_v32  ;;  %v9210_v31 = vcombine.low %v954_v26, %v962_v27  ;;  %v9212_v32 = vcombine.low %v955_v28, %v963_v30 }
  0xaf   :  { %6874 = vmatprep.subr.bf16.mxu0 %v9099_v37  ;;  %7038 = vmatprep.subr.bf16.mxu1 %v9101_v41  ;;  %v9227_v37 = vcombine.high %v10490_v34, %v10492_v35  ;;  %v9229_v41 = vcombine.high %v10494_v36, %v10498_v38 }
  0xb2   :  { %6875 = vmatpush1.bf16.msra.mxu0 %v9098_v39  ;;  %7039 = vmatpush1.bf16.msra.mxu1 %v9100_v40  ;;  %v9226_v39 = vcombine.low %v10490_v34, %v10492_v35  ;;  %v9228_v40 = vcombine.low %v10494_v36, %v10498_v38  ;;  %v1026_v34 = vld [vmem:[#allocation10 + $0x9c0] sm:$0xff]  ;;  %v1019_v35 = vld [vmem:[#allocation10 + $0x988] sm:$0xff] }
  0xb3   :  { %6876 = vmatprep.subr.bf16.mxu0 %v9115_v45  ;;  %7040 = vmatprep.subr.bf16.mxu1 %v9117_v49 }
  0xb6   :  { %6877 = vmatpush1.bf16.msra.mxu0 %v9114_v47  ;;  %7041 = vmatpush1.bf16.msra.mxu1 %v9116_v48 }
  0xb7   :  { %6878 = vmatprep.subr.bf16.mxu0 %v9131_v53  ;;  %7042 = vmatprep.subr.bf16.mxu1 %v9133_v57 }
  0xba   :  { %6879 = vmatpush1.bf16.msra.mxu0 %v9130_v55  ;;  %7043 = vmatpush1.bf16.msra.mxu1 %v9132_v56 }
  0xbb   :  { %6880 = vmatprep.subr.bf16.mxu0 %v9147_v61  ;;  %7044 = vmatprep.subr.bf16.mxu1 %v9149_v1 }
  0xbe   :  { %6881 = vmatpush1.bf16.msra.mxu0 %v9146_v63  ;;  %7045 = vmatpush1.bf16.msra.mxu1 %v9148_v0 }
  0xbf   :  { %6882 = vmatprep.subr.bf16.mxu0 %v9163_v5  ;;  %7046 = vmatprep.subr.bf16.mxu1 %v9165_v9 }
  0xc2   :  { %6883 = vmatpush1.bf16.msra.mxu0 %v9162_v7  ;;  %7047 = vmatpush1.bf16.msra.mxu1 %v9164_v8 }
  0xc3   :  { %6884 = vmatprep.subr.bf16.mxu0 %v9179_v13  ;;  %7048 = vmatprep.subr.bf16.mxu1 %v9181_v17 }
  0xc6   :  { %6885 = vmatpush1.bf16.msra.mxu0 %v9178_v15  ;;  %7049 = vmatpush1.bf16.msra.mxu1 %v9180_v16 }
  0xc7   :  { %6886 = vmatprep.subr.bf16.mxu0 %v9195_v21  ;;  %7050 = vmatprep.subr.bf16.mxu1 %v9197_v25 }
  0xca   :  { %6887 = vmatpush1.bf16.msra.mxu0 %v9194_v23  ;;  %7051 = vmatpush1.bf16.msra.mxu1 %v9196_v24 }
  0xcb   :  { %6888 = vmatprep.subr.bf16.mxu0 %v9211_v29  ;;  %7052 = vmatprep.subr.bf16.mxu1 %v9213_v33 }
  0xce   :  { %6889 = vmatpush1.bf16.msra.mxu0 %v9210_v31  ;;  %7053 = vmatpush1.bf16.msra.mxu1 %v9212_v32 }
  0xcf   :  { %6899 = vmatprep.subr.bf16.mxu0 %v9227_v37  ;;  %7063 = vmatprep.subr.bf16.mxu1 %v9229_v41 }
 0x15c   :  { %v248_v42 = vpop.f32.mrb[0].mxu0  ;;  %v289_v44 = vpop.f32.mrb[0].mxu1 }
 0x15d   :  { %v379_v43 = vsel %vm378_vm1, %v248_v42, 0.0  ;;  %v250_v45 = vpop.f32.mrb[1].mxu0  ;;  %v393_v47 = vsel %vm378_vm1, %v289_v44, 0.0  ;;  %v291_v49 = vpop.f32.mrb[1].mxu1 }
 0x15e   :  { %v380_v46 = vrot.slane %v379_v43, 4  ;;  %v386_v48 = vsel %vm378_vm1, %v250_v45, 0.0  ;;  %v252_v50 = vpop.f32.mrb[2].mxu0  ;;  %v394_v51 = vrot.slane %v393_v47, 4  ;;  %v400_v53 = vsel %vm378_vm1, %v291_v49, 0.0  ;;  %v293_v54 = vpop.f32.mrb[2].mxu1 }
 0x15f   :  { %v387_v52 = vrot.slane %v386_v48, 4  ;;  %v253_v55 = vpop.f32.mrb[3].mxu0  ;;  %v401_v57 = vrot.slane %v400_v53, 4  ;;  %v294_v58 = vpop.f32.mrb[3].mxu1 }
 0x160   :  { %v381_v56 = vadd.f32 %v380_v46, %v379_v43  ;;  %v395_v59 = vadd.f32 %v394_v51, %v393_v47 }
 0x161   :  { %v388_v60 = vadd.f32 %v387_v52, %v386_v48  ;;  %v402_v62 = vadd.f32 %v401_v57, %v400_v53 }
 0x162   :  { %v382_v61 = vrot.slane %v381_v56, 2  ;;  %v396_v63 = vrot.slane %v395_v59, 2 }
 0x163   :  { %v389_v0 = vrot.slane %v388_v60, 2  ;;  %v403_v2 = vrot.slane %v402_v62, 2 }
 0x164   :  { %v383_v1 = vadd.f32 %v382_v61, %v381_v56  ;;  %v10510_v3 = vpop.f32.mrb[4].mxu0  ;;  %v397_v4 = vadd.f32 %v396_v63, %v395_v59  ;;  %v10514_v7 = vpop.f32.mrb[4].mxu1 }
 0x165   :  { %v390_v5 = vadd.f32 %v389_v0, %v388_v60  ;;  %v407_v6 = vsel %vm378_vm1, %v10510_v3, 0.0  ;;  %v10516_v8 = vpop.f32.mrb[5].mxu0  ;;  %v404_v10 = vadd.f32 %v403_v2, %v402_v62  ;;  %v421_v12 = vsel %vm378_vm1, %v10514_v7, 0.0  ;;  %v10520_v13 = vpop.f32.mrb[5].mxu1 }
 0x166   :  { %v384_v9 = vrot.slane %v383_v1, 1  ;;  %v408_v11 = vrot.slane %v407_v6, 4  ;;  %v334_v14 = vpop.f32.mrb[6].mxu0  ;;  %v398_v15 = vrot.slane %v397_v4, 1  ;;  %v422_v17 = vrot.slane %v421_v12, 4  ;;  %v375_v19 = vpop.f32.mrb[6].mxu1 }
 0x167   :  { %v391_v16 = vrot.slane %v390_v5, 1  ;;  %v414_v18 = vsel %vm378_vm1, %v10516_v8, 0.0  ;;  %v335_v20 = vpop.f32.mrb[7].mxu0  ;;  %v405_v22 = vrot.slane %v404_v10, 1  ;;  %v376_v25 = vpop.f32.mrb[7].mxu1  ;;  %v428_v29 = vsel %vm378_vm1, %v10520_v13, 0.0 }
 0x168   :  { %v385_v21 = vadd.f32 %v384_v9, %v383_v1  ;;  %v409_v23 = vadd.f32 %v408_v11, %v407_v6  ;;  %v415_v24 = vrot.slane %v414_v18, 4  ;;  %v399_v26 = vadd.f32 %v398_v15, %v397_v4 }
 0x169   :  { %v392_v27 = vadd.f32 %v391_v16, %v390_v5  ;;  %v423_v28 = vadd.f32 %v422_v17, %v421_v12  ;;  %v406_v31 = vadd.f32 %v405_v22, %v404_v10  ;;  %v429_v46 = vrot.slane %v428_v29, 4 }
 0x16a   :  { %v435_v30 = vmul.f32 0.25, %v385_v21  ;;  %v410_v32 = vrot.slane %v409_v23, 2  ;;  %v416_v33 = vadd.f32 %v415_v24, %v414_v18  ;;  %v437_v37 = vmul.f32 0.25, %v399_v26 }
 0x16b   :  { %v436_v41 = vmul.f32 0.25, %v392_v27  ;;  %v424_v43 = vrot.slane %v423_v28, 2  ;;  %v438_v48 = vmul.f32 0.25, %v406_v31  ;;  %v430_v55 = vadd.f32 %v429_v46, %v428_v29 }
 0x16c   :  { %v10526_v47 = vsub.f32 %v248_v42, %v435_v30  ;;  %v411_v50 = vadd.f32 %v410_v32, %v409_v23  ;;  %v417_v51 = vrot.slane %v416_v33, 2  ;;  %v10528_v52 = vsub.f32 %v289_v44, %v437_v37 }
 0x16d   :  { %v10530_v53 = vsub.f32 %v250_v45, %v436_v41  ;;  %v425_v54 = vadd.f32 %v424_v43, %v423_v28  ;;  %v10534_v57 = vsub.f32 %v291_v49, %v438_v48  ;;  %v431_v44 = vrot.slane %v430_v55, 2 }
 0x16e   :  { %v451_v56 = vmul.f32 %v10526_v47, %v10526_v47  ;;  %v412_v58 = vrot.slane %v411_v50, 1  ;;  %v418_v59 = vadd.f32 %v417_v51, %v416_v33  ;;  %v453_v42 = vmul.f32 %v10528_v52, %v10528_v52 }
 0x16f   :  { %v452_v60 = vmul.f32 %v10530_v53, %v10530_v53  ;;  %v426_v61 = vrot.slane %v425_v54, 1  ;;  %v454_v62 = vmul.f32 %v10534_v57, %v10534_v57  ;;  %v432_v19 = vadd.f32 %v431_v44, %v430_v55 }
 0x170   :  { %v459_v45 = vsel %vm378_vm1, %v451_v56, 0.0  ;;  %v413_v63 = vadd.f32 %v412_v58, %v411_v50  ;;  %v419_v0 = vrot.slane %v418_v59, 1  ;;  %v473_v49 = vsel %vm378_vm1, %v453_v42, 0.0 }
 0x171   :  { %v460_v1 = vrot.slane %v459_v45, 4  ;;  %v466_v2 = vsel %vm378_vm1, %v452_v60, 0.0  ;;  %v427_v4 = vadd.f32 %v426_v61, %v425_v54  ;;  %v474_v5 = vrot.slane %v473_v49, 4 }
 0x172   :  { %v467_v6 = vrot.slane %v466_v2, 4  ;;  %v480_v9 = vsel %vm378_vm1, %v454_v62, 0.0  ;;  %v439_v10 = vmul.f32 0.25, %v413_v63  ;;  %v420_v15 = vadd.f32 %v419_v0, %v418_v59 }
 0x173   :  { %v461_v11 = vadd.f32 %v460_v1, %v459_v45  ;;  %v481_v12 = vrot.slane %v480_v9, 4  ;;  %v441_v14 = vmul.f32 0.25, %v427_v4  ;;  %v475_v16 = vadd.f32 %v474_v5, %v473_v49 }
 0x174   :  { %v468_v17 = vadd.f32 %v467_v6, %v466_v2  ;;  %v10547_v18 = vsub.f32 %v10510_v3, %v439_v10  ;;  %v440_v23 = vmul.f32 0.25, %v420_v15  ;;  %v433_v27 = vrot.slane %v432_v19, 1 }
 0x175   :  { %v462_v20 = vrot.slane %v461_v11, 2  ;;  %v482_v21 = vadd.f32 %v481_v12, %v480_v9  ;;  %v10550_v22 = vsub.f32 %v10514_v7, %v441_v14  ;;  %v476_v24 = vrot.slane %v475_v16, 2 }
 0x176   :  { %v469_v25 = vrot.slane %v468_v17, 2  ;;  %v455_v26 = vmul.f32 %v10547_v18, %v10547_v18  ;;  %v10557_v3 = vsub.f32 %v10516_v8, %v440_v23  ;;  %v434_v33 = vadd.f32 %v433_v27, %v432_v19 }
 0x177   :  { %v463_v28 = vadd.f32 %v462_v20, %v461_v11  ;;  %v483_v29 = vrot.slane %v482_v21, 2  ;;  %v457_v30 = vmul.f32 %v10550_v22, %v10550_v22  ;;  %v477_v31 = vadd.f32 %v476_v24, %v475_v16 }
 0x178   :  { %v470_v32 = vadd.f32 %v469_v25, %v468_v17  ;;  %v487_v7 = vsel %vm378_vm1, %v455_v26, 0.0  ;;  %v456_v54 = vmul.f32 %v10557_v3, %v10557_v3  ;;  %v442_v58 = vmul.f32 0.25, %v434_v33 }
 0x179   :  { %v464_v37 = vrot.slane %v463_v28, 1  ;;  %v484_v41 = vadd.f32 %v483_v29, %v482_v21  ;;  %v488_v43 = vrot.slane %v487_v7, 4  ;;  %v501_v46 = vsel %vm378_vm1, %v457_v30, 0.0 }
 0x17a   :  { %v478_v48 = vrot.slane %v477_v31, 1  ;;  %v471_v50 = vrot.slane %v470_v32, 1  ;;  %v502_v51 = vrot.slane %v501_v46, 4  ;;  %v494_v61 = vsel %vm378_vm1, %v456_v54, 0.0 }
 0x17b   :  { %v465_v55 = vadd.f32 %v464_v37, %v463_v28  ;;  %v485_v56 = vrot.slane %v484_v41, 1  ;;  %v489_v8 = vadd.f32 %v488_v43, %v487_v7  ;;  %v495_v63 = vrot.slane %v494_v61, 4 }
 0x17c   :  { %v479_v59 = vadd.f32 %v478_v48, %v477_v31  ;;  %v472_v42 = vadd.f32 %v471_v50, %v470_v32  ;;  %v503_v60 = vadd.f32 %v502_v51, %v501_v46  ;;  %v10565_v2 = vsub.f32 %v10520_v13, %v442_v58 }
 0x17d   :  { %v515_v44 = vmul.f32 0.25, %v465_v55  ;;  %v486_v45 = vadd.f32 %v485_v56, %v484_v41  ;;  %v490_v62 = vrot.slane %v489_v8, 2  ;;  %v496_v9 = vadd.f32 %v495_v63, %v494_v61 }
 0x17e   :  { %v517_v0 = vmul.f32 0.25, %v479_v59  ;;  %v516_v1 = vmul.f32 0.25, %v472_v42  ;;  %v504_v49 = vrot.slane %v503_v60, 2  ;;  %v458_v14 = vmul.f32 %v10565_v2, %v10565_v2 }
 0x17f   :  { %v524_v4 = vadd.f32 1e-05, %v515_v44  ;;  %v518_v5 = vmul.f32 0.25, %v486_v45  ;;  %v491_v6 = vadd.f32 %v490_v62, %v489_v8  ;;  %v497_v17 = vrot.slane %v496_v9, 2 }
 0x180   :  { %v526_v10 = vadd.f32 1e-05, %v517_v0  ;;  %v525_v11 = vadd.f32 1e-05, %v516_v1  ;;  %v505_v12 = vadd.f32 %v504_v49, %v503_v60  ;;  %v508_v20 = vsel %vm378_vm1, %v458_v14, 0.0 }
 0x181   :  { %10113 = vrsqrt.f32 %v524_v4  ;;  %v527_v15 = vadd.f32 1e-05, %v518_v5  ;;  %v492_v16 = vrot.slane %v491_v6, 1  ;;  %v498_v21 = vadd.f32 %v497_v17, %v496_v9  ;;  %v10584_v17 = vld [vmem:[#allocation8] sm:$0xff] }
 0x182   :  { %10115 = vrsqrt.f32 %v526_v10  ;;  %v506_v19 = vrot.slane %v505_v12, 1  ;;  %v509_v23 = vrot.slane %v508_v20, 4  ;;  %v10359_v24 = vmov 1966171168  }
 0x183   :  { %10117 = vrsqrt.f32 %v525_v11  ;;  %v493_v13 = vadd.f32 %v492_v16, %v491_v6  ;;  %v553_v25 = vunpack.c.l.s4 %v10359_v24  ;;  %v555_v26 = vlaneseq }
 0x184   :  { %10119 = vrsqrt.f32 %v527_v15  ;;  %v507_v28 = vadd.f32 %v506_v19, %v505_v12  ;;  %v499_v29 = vrot.slane %v498_v21, 1  ;;  %v510_v30 = vadd.f32 %v509_v23, %v508_v20  ;;  %v523_v15 = vld [vmem:[#allocation7] sm:$0xff] }
 0x185   :  { %v519_v27 = vmul.f32 0.25, %v493_v13  ;;  %v554_v33 = vunpack.c.0.s8 %v553_v25  ;;  %v10570_v37 = vshrl.u32 %v555_v26, 7 }
 0x186   :  { %v500_v32 = vadd.f32 %v499_v29, %v498_v21  ;;  %v511_v7 = vrot.slane %v510_v30, 2  ;;  %v521_v41 = vmul.f32 0.25, %v507_v28 }
 0x187   :  { %v528_v31 = vadd.f32 1e-05, %v519_v27  ;;  %v10573_v55 = vsub.s32 %v554_v33, %v10570_v37  ;;  %v10582_v16 = vsub.s32 7, %v10570_v37  ;;  %v10587_v20 = vsub.s32 1, %v10570_v37 }
 0x188   :  { %v520_v43 = vmul.f32 0.25, %v500_v32  ;;  %v512_v46 = vadd.f32 %v511_v7, %v510_v30  ;;  %v530_v8 = vadd.f32 1e-05, %v521_v41  ;;  %v10590_v13 = vsub.s32 0, %v10570_v37 }
 0x189   :  { %10121 = vrsqrt.f32 %v528_v31  ;;  %v10593_v21 = vsub.s32 3, %v10570_v37  ;;  %v10596_v23 = vsub.s32 2, %v10570_v37  ;;  %v10599_v24 = vsub.s32 5, %v10570_v37 }
 0x18a   :  { %v529_v50 = vadd.f32 1e-05, %v520_v43  ;;  %v513_v51 = vrot.slane %v512_v46, 1  ;;  %v681_v26 = vrot.slane %v10584_v17, %v10582_v16  ;;  %v10604_v27 = vsub.s32 4, %v10570_v37 }
 0x18b   :  { %v10114_v48 = vpop.eup %10113  ;;  %v657_v28 = vrot.slane %v10584_v17, %v10587_v20  ;;  %v653_v29 = vrot.slane %v10584_v17, %v10590_v13  ;;  %v665_v30 = vrot.slane %v10584_v17, %v10593_v21  ;;  %v661_v31 = vrot.slane %v10584_v17, %v10596_v23 }
 0x18c   :  { %v10116_v54 = vpop.eup %10115  ;;  %10123 = vrsqrt.f32 %v529_v50  ;;  %v514_v58 = vadd.f32 %v513_v51, %v512_v46  ;;  %v10623_v50 = vsub.s32 6, %v10570_v37 }
 0x18d   :  { %v10118_v56 = vpop.eup %10117  ;;  %10125 = vrsqrt.f32 %v530_v8 }
 0x18e   :  { %v10120_v59 = vpop.eup %10119  ;;  %v548_v42 = vcombine.low %v10114_v48, %v10118_v56  ;;  %v522_v61 = vmul.f32 0.25, %v514_v58  ;;  %v673_v48 = vrot.slane %v10584_v17, %v10599_v24 }
 0x18f   :  { %v549_v60 = vcombine.low %v10116_v54, %v10120_v59 }
 0x190   :  { %v558_v44 = vrot.slane %v548_v42, %v10573_v55  ;;  %v531_v62 = vadd.f32 1e-05, %v522_v61 }
 0x191   :  { %v565_v45 = vrot.slane %v549_v60, %v10573_v55 }
 0x192   :  { %10127 = vrsqrt.f32 %v531_v62 }
 0x193   :  { %v580_v63 = vcombine.low %v558_v44, %v565_v45  ;;  %v10122_v0 = vpop.eup %10121 }
 0x195   :  { %v588_v12 = vrot.slane %v580_v63, %v10573_v55 }
 0x196   :  { %v10124_v1 = vpop.eup %10123 }
 0x197   :  { %v550_v49 = vcombine.low %v10122_v0, %v10124_v1  ;;  %v10126_v4 = vpop.eup %10125  ;;  %v994_v0 = vld [vmem:[#allocation10 + $0x8c0] sm:$0xff]  ;;  %v987_v1 = vld [vmem:[#allocation10 + $0x888] sm:$0xff] }
 0x199   :  { %v572_v6 = vrot.slane %v550_v49, %v10573_v55 }
 0x19c   :  { %v10128_v5 = vpop.eup %10127 }
 0x19d   :  { %v551_v9 = vcombine.low %v10126_v4, %v10128_v5  ;;  %v669_v5 = vrot.slane %v10584_v17, %v10604_v27 }
 0x19f   :  { %v579_v10 = vrot.slane %v551_v9, %v10573_v55  ;;  %v1002_v9 = vld [vmem:[#allocation10 + $0x900] sm:$0xff] }
 0x1a1   :  { %v581_v11 = vcombine.low %v572_v6, %v579_v10  ;;  %v677_v10 = vrot.slane %v10584_v17, %v10623_v50 }
 0x1a3   :  { %v595_v14 = vrot.slane %v581_v11, %v10573_v55 }
 0x1a5   :  { %v596_v19 = vcombine.low %v588_v12, %v595_v14  ;;  %v1010_v12 = vld [vmem:[#allocation10 + $0x940] sm:$0xff]  ;;  %v1003_v14 = vld [vmem:[#allocation10 + $0x908] sm:$0xff] }
 0x1a6   :  { %v9258_v36 = vcombine.low %v1002_v9, %v1010_v12 }
 0x1a7   :  { %v598_v25 = vmul.f32 %v596_v19, %v523_v15  ;;  %v1011_v15 = vld [vmem:[#allocation10 + $0x948] sm:$0xff] }
 0x1a8   :  { %v9260_v38 = vcombine.low %v1003_v14, %v1011_v15 }
 0x1a9   :  { %v631_v32 = vrot.slane %v598_v25, %v10582_v16  ;;  %v607_v7 = vrot.slane %v598_v25, %v10587_v20  ;;  %v603_v33 = vrot.slane %v598_v25, %v10590_v13  ;;  %v615_v41 = vrot.slane %v598_v25, %v10593_v21 }
 0x1aa   :  { %v611_v43 = vrot.slane %v598_v25, %v10596_v23  ;;  %v623_v46 = vrot.slane %v598_v25, %v10599_v24 }
 0x1ab   :  { %v647_v51 = vmul.f32 %v631_v32, %v10565_v2  ;;  %v641_v54 = vmul.f32 %v607_v7, %v10530_v53  ;;  %v640_v56 = vmul.f32 %v603_v33, %v10526_v47  ;;  %v643_v8 = vmul.f32 %v615_v41, %v10534_v57  ;;  %v986_v53 = vld [vmem:[#allocation10 + $0x880] sm:$0xff]  ;;  %v1035_v41 = vld [vmem:[#allocation10 + $0xa08] sm:$0xff] }
 0x1ac   :  { %v642_v58 = vmul.f32 %v611_v43, %v10528_v52  ;;  %v645_v59 = vmul.f32 %v623_v46, %v10557_v3  ;;  %v619_v47 = vrot.slane %v598_v25, %v10604_v27  ;;  %v627_v57 = vrot.slane %v598_v25, %v10623_v50  ;;  %v995_v3 = vld [vmem:[#allocation10 + $0x8c8] sm:$0xff]  ;;  %v1034_v7 = vld [vmem:[#allocation10 + $0xa00] sm:$0xff] }
 0x1ad   :  { %v10631_v42 = vadd.f32 %v681_v26, %v647_v51  ;;  %v691_v60 = vadd.f32 %v657_v28, %v641_v54  ;;  %v690_v61 = vadd.f32 %v653_v29, %v640_v56  ;;  %v693_v44 = vadd.f32 %v665_v30, %v643_v8  ;;  %v1018_v30 = vld [vmem:[#allocation10 + $0x980] sm:$0xff]  ;;  %v1043_v43 = vld [vmem:[#allocation10 + $0xa48] sm:$0xff] }
 0x1ae   :  { %v10633_v45 = vadd.f32 %v661_v31, %v642_v58  ;;  %v10635_v62 = vadd.f32 %v673_v48, %v645_v59  ;;  %v9243_v6 = vcombine.high %v986_v53, %v994_v0  ;;  %v9245_v11 = vcombine.high %v987_v1, %v995_v3  ;;  %v1042_v33 = vld [vmem:[#allocation10 + $0xa40] sm:$0xff]  ;;  %v1051_v58 = vld [vmem:[#allocation10 + $0xa88] sm:$0xff] }
 0x1af   :  { %v699_v2 = vmax.f32 %v691_v60, 0.0  ;;  %v698_v63 = vmax.f32 %v690_v61, 0.0  ;;  %v701_v52 = vmax.f32 %v693_v44, 0.0  ;;  %v644_v19 = vmul.f32 %v619_v47, %v10547_v18  ;;  %v1050_v56 = vld [vmem:[#allocation10 + $0xa80] sm:$0xff]  ;;  %v1059_v59 = vld [vmem:[#allocation10 + $0xac8] sm:$0xff] }
 0x1b0   :  { %v646_v25 = vmul.f32 %v627_v57, %v10550_v22  ;;  %v9242_v17 = vcombine.low %v986_v53, %v994_v0  ;;  %v9244_v28 = vcombine.low %v987_v1, %v995_v3  ;;  %v9259_v18 = vcombine.high %v1002_v9, %v1010_v12  ;;  %v1058_v8 = vld [vmem:[#allocation10 + $0xac0] sm:$0xff]  ;;  %v1067_v0 = vld [vmem:[#allocation10 + $0xb08] sm:$0xff] }
 0x1b1   :  { %v10639_v49 = vpack.c.bf16 %v699_v2, %v699_v2  ;;  %v10641_v4 = vpack.c.bf16 %v698_v63, %v698_v63  ;;  %v10653_v26 = vpack.c.bf16 %v701_v52, %v701_v52  ;;  %v10661_v29 = vadd.f32 %v669_v5, %v644_v19  ;;  %v1066_v63 = vld [vmem:[#allocation10 + $0xb00] sm:$0xff]  ;;  %v1075_v47 = vld [vmem:[#allocation10 + $0xb48] sm:$0xff] }
 0x1b2   :  { %v9261_v22 = vcombine.high %v1003_v14, %v1011_v15  ;;  %v10665_v31 = vadd.f32 %v677_v10, %v646_v25  ;;  %v9274_v46 = vcombine.low %v1018_v30, %v1026_v34  ;;  %v9291_v51 = vcombine.high %v1034_v7, %v1042_v33  ;;  %v1074_v53 = vld [vmem:[#allocation10 + $0xb40] sm:$0xff]  ;;  %v1083_v9 = vld [vmem:[#allocation10 + $0xb88] sm:$0xff] }
 0x1b3   :  { %6890 = vmatprep.mubr.bf16.mxu0 %v10639_v49  ;;  %7054 = vmatprep.mubr.bf16.mxu1 %v10639_v49  ;;  %v9293_v54 = vcombine.high %v1035_v41, %v1043_v43  ;;  %v9290_v60 = vcombine.low %v1034_v7, %v1042_v33  ;;  %v9292_v61 = vcombine.low %v1035_v41, %v1043_v43  ;;  %v1082_v5 = vld [vmem:[#allocation10 + $0xb80] sm:$0xff]  ;;  %v1091_v10 = vld [vmem:[#allocation10 + $0xbc8] sm:$0xff] }
 0x1b4   :  { %6891 = vmatmul.mubr.bf16.vlgmr.msra.gmra.mrb[8].mxu0 %v10641_v4  ;;  %7055 = vmatmul.mubr.bf16.vlgmr.msra.gmra.mrb[8].mxu1 %v10641_v4  ;;  %v9307_v44 = vcombine.high %v1050_v56, %v1058_v8  ;;  %v9309_v2 = vcombine.high %v1051_v58, %v1059_v59  ;;  %v9306_v57 = vcombine.low %v1050_v56, %v1058_v8  ;;  %v1098_v19 = vld [vmem:[#allocation10 + $0xc00] sm:$0xff] }
 0x1b5   :  { %6900 = vmatpush1.bf16.msra.mxu0 %v9226_v39  ;;  %7064 = vmatpush1.bf16.msra.mxu1 %v9228_v40  ;;  %v1027_v39 = vld [vmem:[#allocation10 + $0x9c8] sm:$0xff]  ;;  %v9275_v40 = vcombine.high %v1018_v30, %v1026_v34  ;;  %v9308_v52 = vcombine.low %v1051_v58, %v1059_v59  ;;  %v9323_v1 = vcombine.high %v1066_v63, %v1074_v53  ;;  %v1106_v25 = vld [vmem:[#allocation10 + $0xc40] sm:$0xff] }
 0x1b6   :  { %6931 = vmatprep.mubr.bf16.mxu0 %v10653_v26  ;;  %7095 = vmatprep.mubr.bf16.mxu1 %v10653_v26  ;;  %v9277_v32 = vcombine.high %v1019_v35, %v1027_v39  ;;  %v9276_v48 = vcombine.low %v1019_v35, %v1027_v39  ;;  %v9325_v3 = vcombine.high %v1067_v0, %v1075_v47  ;;  %v1114_v35 = vld [vmem:[#allocation10 + $0xc80] sm:$0xff] }
 0x1b7   :  { %6901 = vmatprep.subr.bf16.mxu0 %v9243_v6  ;;  %7065 = vmatprep.subr.bf16.mxu1 %v9245_v11  ;;  %v1090_v6 = vld [vmem:[#allocation10 + $0xbc0] sm:$0xff]  ;;  %v9322_v11 = vcombine.low %v1066_v63, %v1074_v53  ;;  %v9324_v12 = vcombine.low %v1067_v0, %v1075_v47  ;;  %v9341_v15 = vcombine.high %v1083_v9, %v1091_v10 }
 0x1b8   :  { %v9339_v14 = vcombine.high %v1082_v5, %v1090_v6  ;;  %v9355_v30 = vcombine.high %v1098_v19, %v1106_v25  ;;  %v1122_v39 = vld [vmem:[#allocation10 + $0xcc0] sm:$0xff] }
 0x1b9   :  { %6902 = vmatpush1.bf16.msra.mxu0 %v9242_v17  ;;  %7066 = vmatpush1.bf16.msra.mxu1 %v9244_v28  ;;  %v1099_v17 = vld [vmem:[#allocation10 + $0xc08] sm:$0xff]  ;;  %v9371_v7 = vcombine.high %v1114_v35, %v1122_v39  ;;  %v1130_v41 = vld [vmem:[#allocation10 + $0xd00] sm:$0xff] }
 0x1ba   :  { %6903 = vmatprep.subr.bf16.mxu0 %v9259_v18  ;;  %7067 = vmatprep.subr.bf16.mxu1 %v9261_v22  ;;  %v1107_v28 = vld [vmem:[#allocation10 + $0xc48] sm:$0xff]  ;;  %v9338_v18 = vcombine.low %v1082_v5, %v1090_v6  ;;  %v9340_v22 = vcombine.low %v1083_v9, %v1091_v10  ;;  %v1138_v43 = vld [vmem:[#allocation10 + $0xd40] sm:$0xff] }
 0x1bb   :  { %v9357_v34 = vcombine.high %v1099_v17, %v1107_v28  ;;  %v9387_v56 = vcombine.high %v1130_v41, %v1138_v43  ;;  %v1146_v58 = vld [vmem:[#allocation10 + $0xd80] sm:$0xff] }
 0x1bc   :  { %v1154_v59 = vld [vmem:[#allocation10 + $0xdc0] sm:$0xff] }
 0x1bd   :  { %6904 = vmatpush1.bf16.msra.mxu0 %v9258_v36  ;;  %7068 = vmatpush1.bf16.msra.mxu1 %v9260_v38  ;;  %v1115_v36 = vld [vmem:[#allocation10 + $0xc88] sm:$0xff]  ;;  %v9403_v63 = vcombine.high %v1146_v58, %v1154_v59  ;;  %v1162_v0 = vld [vmem:[#allocation10 + $0xe00] sm:$0xff] }
 0x1be   :  { %6905 = vmatprep.subr.bf16.mxu0 %v9275_v40  ;;  %7069 = vmatprep.subr.bf16.mxu1 %v9277_v32  ;;  %v1123_v38 = vld [vmem:[#allocation10 + $0xcc8] sm:$0xff]  ;;  %v9354_v40 = vcombine.low %v1098_v19, %v1106_v25  ;;  %v9356_v32 = vcombine.low %v1099_v17, %v1107_v28  ;;  %v1170_v47 = vld [vmem:[#allocation10 + $0xe40] sm:$0xff] }
 0x1bf   :  { %v9373_v33 = vcombine.high %v1115_v36, %v1123_v38  ;;  %v9419_v5 = vcombine.high %v1162_v0, %v1170_v47  ;;  %v1178_v9 = vld [vmem:[#allocation10 + $0xe80] sm:$0xff] }
 0x1c0   :  { %v1186_v10 = vld [vmem:[#allocation10 + $0xec0] sm:$0xff] }
 0x1c1   :  { %6906 = vmatpush1.bf16.msra.mxu0 %v9274_v46  ;;  %7070 = vmatpush1.bf16.msra.mxu1 %v9276_v48  ;;  %v1131_v46 = vld [vmem:[#allocation10 + $0xd08] sm:$0xff]  ;;  %v9435_v19 = vcombine.high %v1178_v9, %v1186_v10  ;;  %v1194_v17 = vld [vmem:[#allocation10 + $0xf00] sm:$0xff] }
 0x1c2   :  { %6907 = vmatprep.subr.bf16.mxu0 %v9291_v51  ;;  %7071 = vmatprep.subr.bf16.mxu1 %v9293_v54  ;;  %v1139_v48 = vld [vmem:[#allocation10 + $0xd48] sm:$0xff]  ;;  %v9370_v51 = vcombine.low %v1114_v35, %v1122_v39  ;;  %v9372_v54 = vcombine.low %v1115_v36, %v1123_v38  ;;  %v1202_v28 = vld [vmem:[#allocation10 + $0xf40] sm:$0xff] }
 0x1c3   :  { %v9389_v8 = vcombine.high %v1131_v46, %v1139_v48  ;;  %v9451_v35 = vcombine.high %v1194_v17, %v1202_v28  ;;  %v1210_v36 = vld [vmem:[#allocation10 + $0xf80] sm:$0xff] }
 0x1c4   :  { %v1218_v38 = vld [vmem:[#allocation10 + $0xfc0] sm:$0xff] }
 0x1c5   :  { %6908 = vmatpush1.bf16.msra.mxu0 %v9290_v60  ;;  %7072 = vmatpush1.bf16.msra.mxu1 %v9292_v61  ;;  %v1147_v60 = vld [vmem:[#allocation10 + $0xd88] sm:$0xff] }
 0x1c6   :  { %6909 = vmatprep.subr.bf16.mxu0 %v9307_v44  ;;  %7073 = vmatprep.subr.bf16.mxu1 %v9309_v2  ;;  %v1155_v61 = vld [vmem:[#allocation10 + $0xdc8] sm:$0xff]  ;;  %v9386_v44 = vcombine.low %v1130_v41, %v1138_v43  ;;  %v9388_v2 = vcombine.low %v1131_v46, %v1139_v48  ;;  %v9467_v41 = vcombine.high %v1210_v36, %v1218_v38  ;;  %v1226_v46 = vld [vmem:[#allocation10 + $0x1000] sm:$0xff] }
 0x1c7   :  { %v9405_v53 = vcombine.high %v1147_v60, %v1155_v61  ;;  %v1234_v48 = vld [vmem:[#allocation10 + $0x1040] sm:$0xff] }
 0x1c9   :  { %6910 = vmatpush1.bf16.msra.mxu0 %v9306_v57  ;;  %7074 = vmatpush1.bf16.msra.mxu1 %v9308_v52  ;;  %v1163_v57 = vld [vmem:[#allocation10 + $0xe08] sm:$0xff] }
 0x1ca   :  { %6911 = vmatprep.subr.bf16.mxu0 %v9323_v1  ;;  %7075 = vmatprep.subr.bf16.mxu1 %v9325_v3  ;;  %v1171_v52 = vld [vmem:[#allocation10 + $0xe48] sm:$0xff]  ;;  %v9402_v1 = vcombine.low %v1146_v58, %v1154_v59  ;;  %v9404_v3 = vcombine.low %v1147_v60, %v1155_v61  ;;  %v700_v58 = vmax.f32 %v10633_v45, 0.0  ;;  %v9483_v59 = vcombine.high %v1226_v46, %v1234_v48 }
 0x1cb   :  { %v9421_v6 = vcombine.high %v1163_v57, %v1171_v52  ;;  %v703_v61 = vmax.f32 %v10635_v62, 0.0  ;;  %v1259_v62 = vld [vmem:[#allocation10 + $0x1108] sm:$0xff] }
 0x1cd   :  { %6912 = vmatpush1.bf16.msra.mxu0 %v9322_v11  ;;  %7076 = vmatpush1.bf16.msra.mxu1 %v9324_v12  ;;  %v1179_v11 = vld [vmem:[#allocation10 + $0xe88] sm:$0xff] }
 0x1ce   :  { %6913 = vmatprep.subr.bf16.mxu0 %v9339_v14  ;;  %7077 = vmatprep.subr.bf16.mxu1 %v9341_v15  ;;  %v1187_v12 = vld [vmem:[#allocation10 + $0xec8] sm:$0xff]  ;;  %v9418_v14 = vcombine.low %v1162_v0, %v1170_v47  ;;  %v9420_v15 = vcombine.low %v1163_v57, %v1171_v52  ;;  %v9482_v0 = vcombine.low %v1226_v46, %v1234_v48 }
 0x1cf   :  { %v9437_v25 = vcombine.high %v1179_v11, %v1187_v12  ;;  %v10669_v47 = vpack.c.bf16 %v700_v58, %v700_v58  ;;  %v10671_v52 = vpack.c.bf16 %v703_v61, %v703_v61  ;;  %v1323_v58 = vld [vmem:[#allocation10 + $0x1308] sm:$0xff] }
 0x1d1   :  { %6914 = vmatpush1.bf16.msra.mxu0 %v9338_v18  ;;  %7078 = vmatpush1.bf16.msra.mxu1 %v9340_v22  ;;  %v1195_v18 = vld [vmem:[#allocation10 + $0xf08] sm:$0xff] }
 0x1d2   :  { %6915 = vmatprep.subr.bf16.mxu0 %v9355_v30  ;;  %7079 = vmatprep.subr.bf16.mxu1 %v9357_v34  ;;  %v1203_v22 = vld [vmem:[#allocation10 + $0xf48] sm:$0xff]  ;;  %v9434_v30 = vcombine.low %v1178_v9, %v1186_v10  ;;  %v9436_v34 = vcombine.low %v1179_v11, %v1187_v12 }
 0x1d3   :  { %v9453_v39 = vcombine.high %v1195_v18, %v1203_v22 }
 0x1d5   :  { %6916 = vmatpush1.bf16.msra.mxu0 %v9354_v40  ;;  %7080 = vmatpush1.bf16.msra.mxu1 %v9356_v32  ;;  %v1211_v40 = vld [vmem:[#allocation10 + $0xf88] sm:$0xff] }
 0x1d6   :  { %6917 = vmatprep.subr.bf16.mxu0 %v9371_v7  ;;  %7081 = vmatprep.subr.bf16.mxu1 %v9373_v33  ;;  %v1219_v32 = vld [vmem:[#allocation10 + $0xfc8] sm:$0xff]  ;;  %v9450_v7 = vcombine.low %v1194_v17, %v1202_v28  ;;  %v9452_v33 = vcombine.low %v1195_v18, %v1203_v22 }
 0x1d7   :  { %v9469_v43 = vcombine.high %v1211_v40, %v1219_v32 }
 0x1d9   :  { %6918 = vmatpush1.bf16.msra.mxu0 %v9370_v51  ;;  %7082 = vmatpush1.bf16.msra.mxu1 %v9372_v54  ;;  %v1227_v51 = vld [vmem:[#allocation10 + $0x1008] sm:$0xff] }
 0x1da   :  { %6919 = vmatprep.subr.bf16.mxu0 %v9387_v56  ;;  %7083 = vmatprep.subr.bf16.mxu1 %v9389_v8  ;;  %v1235_v54 = vld [vmem:[#allocation10 + $0x1048] sm:$0xff]  ;;  %v9466_v56 = vcombine.low %v1210_v36, %v1218_v38  ;;  %v9468_v8 = vcombine.low %v1211_v40, %v1219_v32 }
 0x1db   :  { %v9485_v60 = vcombine.high %v1227_v51, %v1235_v54  ;;  %v9484_v57 = vcombine.low %v1227_v51, %v1235_v54 }
 0x1dd   :  { %6920 = vmatpush1.bf16.msra.mxu0 %v9386_v44  ;;  %7084 = vmatpush1.bf16.msra.mxu1 %v9388_v2  ;;  %v1242_v44 = vld [vmem:[#allocation10 + $0x1080] sm:$0xff] }
 0x1de   :  { %6921 = vmatprep.subr.bf16.mxu0 %v9403_v63  ;;  %7085 = vmatprep.subr.bf16.mxu1 %v9405_v53  ;;  %v1250_v2 = vld [vmem:[#allocation10 + $0x10c0] sm:$0xff]  ;;  %v1243_v63 = vld [vmem:[#allocation10 + $0x1088] sm:$0xff] }
 0x1df   :  { %v1251_v53 = vld [vmem:[#allocation10 + $0x10c8] sm:$0xff]  ;;  %v9498_v9 = vcombine.low %v1242_v44, %v1250_v2 }
 0x1e0   :  { %v9501_v45 = vcombine.high %v1243_v63, %v1251_v53  ;;  %v9500_v10 = vcombine.low %v1243_v63, %v1251_v53  ;;  %v1338_v63 = vld [vmem:[#allocation10 + $0x1380] sm:$0xff] }
 0x1e1   :  { %6922 = vmatpush1.bf16.msra.mxu0 %v9402_v1  ;;  %7086 = vmatpush1.bf16.msra.mxu1 %v9404_v3  ;;  %v9499_v1 = vcombine.high %v1242_v44, %v1250_v2  ;;  %v1258_v3 = vld [vmem:[#allocation10 + $0x1100] sm:$0xff] }
 0x1e2   :  { %6923 = vmatprep.subr.bf16.mxu0 %v9419_v5  ;;  %7087 = vmatprep.subr.bf16.mxu1 %v9421_v6  ;;  %v1266_v5 = vld [vmem:[#allocation10 + $0x1140] sm:$0xff]  ;;  %v1267_v6 = vld [vmem:[#allocation10 + $0x1148] sm:$0xff] }
 0x1e3   :  { %v9515_v11 = vcombine.high %v1258_v3, %v1266_v5  ;;  %v9517_v12 = vcombine.high %v1259_v62, %v1267_v6  ;;  %v9514_v17 = vcombine.low %v1258_v3, %v1266_v5  ;;  %v9516_v28 = vcombine.low %v1259_v62, %v1267_v6  ;;  %v1346_v53 = vld [vmem:[#allocation10 + $0x13c0] sm:$0xff] }
 0x1e4   :  { %v9595_v3 = vcombine.high %v1338_v63, %v1346_v53  ;;  %v1354_v62 = vld [vmem:[#allocation10 + $0x1400] sm:$0xff] }
 0x1e5   :  { %6924 = vmatpush1.bf16.msra.mxu0 %v9418_v14  ;;  %7088 = vmatpush1.bf16.msra.mxu1 %v9420_v15  ;;  %v1274_v14 = vld [vmem:[#allocation10 + $0x1180] sm:$0xff] }
 0x1e6   :  { %6925 = vmatprep.subr.bf16.mxu0 %v9435_v19  ;;  %7089 = vmatprep.subr.bf16.mxu1 %v9437_v25  ;;  %v1282_v15 = vld [vmem:[#allocation10 + $0x11c0] sm:$0xff]  ;;  %v1275_v19 = vld [vmem:[#allocation10 + $0x1188] sm:$0xff] }
 0x1e7   :  { %v1283_v25 = vld [vmem:[#allocation10 + $0x11c8] sm:$0xff]  ;;  %v9531_v18 = vcombine.high %v1274_v14, %v1282_v15  ;;  %v9530_v36 = vcombine.low %v1274_v14, %v1282_v15  ;;  %v1362_v6 = vld [vmem:[#allocation10 + $0x1440] sm:$0xff] }
 0x1e8   :  { %v9533_v22 = vcombine.high %v1275_v19, %v1283_v25  ;;  %v9532_v38 = vcombine.low %v1275_v19, %v1283_v25  ;;  %v9611_v14 = vcombine.high %v1354_v62, %v1362_v6  ;;  %v1370_v19 = vld [vmem:[#allocation10 + $0x1480] sm:$0xff] }
 0x1e9   :  { %6926 = vmatpush1.bf16.msra.mxu0 %v9434_v30  ;;  %7090 = vmatpush1.bf16.msra.mxu1 %v9436_v34  ;;  %v1290_v30 = vld [vmem:[#allocation10 + $0x1200] sm:$0xff] }
 0x1ea   :  { %6927 = vmatprep.subr.bf16.mxu0 %v9451_v35  ;;  %7091 = vmatprep.subr.bf16.mxu1 %v9453_v39  ;;  %v1298_v34 = vld [vmem:[#allocation10 + $0x1240] sm:$0xff]  ;;  %v1291_v35 = vld [vmem:[#allocation10 + $0x1208] sm:$0xff] }
 0x1eb   :  { %v1299_v39 = vld [vmem:[#allocation10 + $0x1248] sm:$0xff]  ;;  %v9547_v40 = vcombine.high %v1290_v30, %v1298_v34  ;;  %v9546_v46 = vcombine.low %v1290_v30, %v1298_v34  ;;  %v1378_v25 = vld [vmem:[#allocation10 + $0x14c0] sm:$0xff] }
 0x1ec   :  { %v9549_v32 = vcombine.high %v1291_v35, %v1299_v39  ;;  %v9548_v48 = vcombine.low %v1291_v35, %v1299_v39  ;;  %v9627_v30 = vcombine.high %v1370_v19, %v1378_v25  ;;  %v1386_v35 = vld [vmem:[#allocation10 + $0x1500] sm:$0xff] }
 0x1ed   :  { %6928 = vmatpush1.bf16.msra.mxu0 %v9450_v7  ;;  %7092 = vmatpush1.bf16.msra.mxu1 %v9452_v33  ;;  %v1306_v7 = vld [vmem:[#allocation10 + $0x1280] sm:$0xff] }
 0x1ee   :  { %6929 = vmatprep.subr.bf16.mxu0 %v9467_v41  ;;  %7093 = vmatprep.subr.bf16.mxu1 %v9469_v43  ;;  %v1314_v33 = vld [vmem:[#allocation10 + $0x12c0] sm:$0xff]  ;;  %v1307_v41 = vld [vmem:[#allocation10 + $0x1288] sm:$0xff] }
 0x1ef   :  { %v1315_v43 = vld [vmem:[#allocation10 + $0x12c8] sm:$0xff]  ;;  %v9563_v51 = vcombine.high %v1306_v7, %v1314_v33  ;;  %v1394_v39 = vld [vmem:[#allocation10 + $0x1540] sm:$0xff] }
 0x1f0   :  { %v9565_v54 = vcombine.high %v1307_v41, %v1315_v43  ;;  %v9564_v61 = vcombine.low %v1307_v41, %v1315_v43  ;;  %v1402_v41 = vld [vmem:[#allocation10 + $0x1580] sm:$0xff] }
 0x1f1   :  { %6930 = vmatpush1.bf16.msra.mxu0 %v9466_v56  ;;  %7094 = vmatpush1.bf16.msra.mxu1 %v9468_v8  ;;  %v1322_v56 = vld [vmem:[#allocation10 + $0x1300] sm:$0xff] }
 0x1f2   :  { %6940 = vmatprep.subr.bf16.mxu0 %v9483_v59  ;;  %7104 = vmatprep.subr.bf16.mxu1 %v9485_v60  ;;  %v1330_v8 = vld [vmem:[#allocation10 + $0x1340] sm:$0xff]  ;;  %v1331_v59 = vld [vmem:[#allocation10 + $0x1348] sm:$0xff]  ;;  %v9562_v60 = vcombine.low %v1306_v7, %v1314_v33  ;;  %v9643_v7 = vcombine.high %v1386_v35, %v1394_v39 }
 0x1f3   :  { %v9579_v44 = vcombine.high %v1322_v56, %v1330_v8  ;;  %v9581_v2 = vcombine.high %v1323_v58, %v1331_v59  ;;  %v1410_v43 = vld [vmem:[#allocation10 + $0x15c0] sm:$0xff] }
 0x1f4   :  { %6932 = vmatmul.mubr.bf16.vlgmr.msra.gmra.mrb[8].mxu0 %v10669_v47  ;;  %7096 = vmatmul.mubr.bf16.vlgmr.msra.gmra.mrb[8].mxu1 %v10669_v47 }
 0x1f5   :  { %6941 = vmatpush1.bf16.msra.mxu0 %v9482_v0  ;;  %6972 = vmatprep.mubr.bf16.mxu0 %v10671_v52  ;;  %v1339_v0 = vld [vmem:[#allocation10 + $0x1388] sm:$0xff] }
 0x1f6   :  { %7105 = vmatpush1.bf16.msra.mxu1 %v9484_v57  ;;  %7136 = vmatprep.mubr.bf16.mxu1 %v10671_v52  ;;  %v1347_v57 = vld [vmem:[#allocation10 + $0x13c8] sm:$0xff] }
 0x1f7   :  { %6942 = vmatprep.subr.bf16.mxu0 %v9499_v1  ;;  %7106 = vmatprep.subr.bf16.mxu1 %v9501_v45  ;;  %v9578_v1 = vcombine.low %v1322_v56, %v1330_v8  ;;  %v9580_v45 = vcombine.low %v1323_v58, %v1331_v59  ;;  %v9597_v5 = vcombine.high %v1339_v0, %v1347_v57  ;;  %v1418_v58 = vld [vmem:[#allocation10 + $0x1600] sm:$0xff] }
 0x1f8   :  { %v9659_v56 = vcombine.high %v1402_v41, %v1410_v43  ;;  %v1426_v59 = vld [vmem:[#allocation10 + $0x1640] sm:$0xff] }
 0x1f9   :  { %6943 = vmatpush1.bf16.msra.mxu0 %v9498_v9  ;;  %v1355_v9 = vld [vmem:[#allocation10 + $0x1408] sm:$0xff] }
 0x1fa   :  { %7107 = vmatpush1.bf16.msra.mxu1 %v9500_v10  ;;  %6944 = vmatprep.subr.bf16.mxu0 %v9515_v11  ;;  %v1363_v10 = vld [vmem:[#allocation10 + $0x1448] sm:$0xff]  ;;  %v9594_v11 = vcombine.low %v1338_v63, %v1346_v53  ;;  %v9675_v63 = vcombine.high %v1418_v58, %v1426_v59 }
 0x1fb   :  { %7108 = vmatprep.subr.bf16.mxu1 %v9517_v12  ;;  %v9596_v12 = vcombine.low %v1339_v0, %v1347_v57  ;;  %v9613_v15 = vcombine.high %v1355_v9, %v1363_v10  ;;  %v1434_v0 = vld [vmem:[#allocation10 + $0x1680] sm:$0xff] }
 0x1fc   :  { %v1442_v57 = vld [vmem:[#allocation10 + $0x16c0] sm:$0xff] }
 0x1fd   :  { %6945 = vmatpush1.bf16.msra.mxu0 %v9514_v17  ;;  %v1371_v17 = vld [vmem:[#allocation10 + $0x1488] sm:$0xff] }
 0x1fe   :  { %7109 = vmatpush1.bf16.msra.mxu1 %v9516_v28  ;;  %6946 = vmatprep.subr.bf16.mxu0 %v9531_v18  ;;  %v1379_v28 = vld [vmem:[#allocation10 + $0x14c8] sm:$0xff]  ;;  %v9610_v18 = vcombine.low %v1354_v62, %v1362_v6  ;;  %v9691_v62 = vcombine.high %v1434_v0, %v1442_v57 }
 0x1ff   :  { %7110 = vmatprep.subr.bf16.mxu1 %v9533_v22  ;;  %v9612_v22 = vcombine.low %v1355_v9, %v1363_v10  ;;  %v9629_v34 = vcombine.high %v1371_v17, %v1379_v28  ;;  %v1450_v9 = vld [vmem:[#allocation10 + $0x1700] sm:$0xff] }
 0x200   :  { %v1458_v10 = vld [vmem:[#allocation10 + $0x1740] sm:$0xff] }
 0x201   :  { %6947 = vmatpush1.bf16.msra.mxu0 %v9530_v36  ;;  %v1387_v36 = vld [vmem:[#allocation10 + $0x1508] sm:$0xff] }
 0x202   :  { %7111 = vmatpush1.bf16.msra.mxu1 %v9532_v38  ;;  %6948 = vmatprep.subr.bf16.mxu0 %v9547_v40  ;;  %v1395_v38 = vld [vmem:[#allocation10 + $0x1548] sm:$0xff]  ;;  %v9626_v40 = vcombine.low %v1370_v19, %v1378_v25  ;;  %v9707_v19 = vcombine.high %v1450_v9, %v1458_v10 }
 0x203   :  { %7112 = vmatprep.subr.bf16.mxu1 %v9549_v32  ;;  %v9628_v32 = vcombine.low %v1371_v17, %v1379_v28  ;;  %v9645_v33 = vcombine.high %v1387_v36, %v1395_v38  ;;  %v1466_v17 = vld [vmem:[#allocation10 + $0x1780] sm:$0xff] }
 0x204   :  { %v1474_v28 = vld [vmem:[#allocation10 + $0x17c0] sm:$0xff] }
 0x205   :  { %6949 = vmatpush1.bf16.msra.mxu0 %v9546_v46  ;;  %v1403_v46 = vld [vmem:[#allocation10 + $0x1588] sm:$0xff] }
 0x206   :  { %7113 = vmatpush1.bf16.msra.mxu1 %v9548_v48  ;;  %6950 = vmatprep.subr.bf16.mxu0 %v9563_v51  ;;  %v1411_v48 = vld [vmem:[#allocation10 + $0x15c8] sm:$0xff]  ;;  %v9642_v51 = vcombine.low %v1386_v35, %v1394_v39  ;;  %v9723_v35 = vcombine.high %v1466_v17, %v1474_v28 }
 0x207   :  { %7114 = vmatprep.subr.bf16.mxu1 %v9565_v54  ;;  %v9644_v54 = vcombine.low %v1387_v36, %v1395_v38  ;;  %v9661_v8 = vcombine.high %v1403_v46, %v1411_v48  ;;  %v1482_v36 = vld [vmem:[#allocation10 + $0x1800] sm:$0xff] }
 0x208   :  { %v1490_v38 = vld [vmem:[#allocation10 + $0x1840] sm:$0xff] }
 0x209   :  { %6951 = vmatpush1.bf16.msra.mxu0 %v9562_v60  ;;  %v1419_v60 = vld [vmem:[#allocation10 + $0x1608] sm:$0xff] }
 0x20a   :  { %7115 = vmatpush1.bf16.msra.mxu1 %v9564_v61  ;;  %6952 = vmatprep.subr.bf16.mxu0 %v9579_v44  ;;  %v1427_v61 = vld [vmem:[#allocation10 + $0x1648] sm:$0xff]  ;;  %v9658_v44 = vcombine.low %v1402_v41, %v1410_v43  ;;  %v702_v41 = vmax.f32 %v10661_v29, 0.0  ;;  %v9739_v43 = vcombine.high %v1482_v36, %v1490_v38  ;;  %v1522_v29 = vld [vmem:[#allocation10 + $0x1940] sm:$0xff] }
 0x20b   :  { %7116 = vmatprep.subr.bf16.mxu1 %v9581_v2  ;;  %v9660_v2 = vcombine.low %v1403_v46, %v1411_v48  ;;  %v9677_v53 = vcombine.high %v1419_v60, %v1427_v61  ;;  %v705_v48 = vmax.f32 %v10631_v42, 0.0 }
 0x20d   :  { %6953 = vmatpush1.bf16.msra.mxu0 %v9578_v1  ;;  %v1435_v1 = vld [vmem:[#allocation10 + $0x1688] sm:$0xff] }
 0x20e   :  { %7117 = vmatpush1.bf16.msra.mxu1 %v9580_v45  ;;  %6954 = vmatprep.subr.bf16.mxu0 %v9595_v3  ;;  %v1443_v45 = vld [vmem:[#allocation10 + $0x16c8] sm:$0xff]  ;;  %v9674_v3 = vcombine.low %v1418_v58, %v1426_v59  ;;  %v10679_v59 = vpack.c.bf16 %v702_v41, %v702_v41 }
 0x20f   :  { %7118 = vmatprep.subr.bf16.mxu1 %v9597_v5  ;;  %v9676_v5 = vcombine.low %v1419_v60, %v1427_v61  ;;  %v9693_v6 = vcombine.high %v1435_v1, %v1443_v45  ;;  %v1507_v58 = vld [vmem:[#allocation10 + $0x18c8] sm:$0xff] }
 0x210   :  { %v1579_v41 = vld [vmem:[#allocation10 + $0x1b08] sm:$0xff] }
 0x211   :  { %6955 = vmatpush1.bf16.msra.mxu0 %v9594_v11  ;;  %v1451_v11 = vld [vmem:[#allocation10 + $0x1708] sm:$0xff] }
 0x212   :  { %7119 = vmatpush1.bf16.msra.mxu1 %v9596_v12  ;;  %6956 = vmatprep.subr.bf16.mxu0 %v9611_v14  ;;  %v1459_v12 = vld [vmem:[#allocation10 + $0x1748] sm:$0xff]  ;;  %v9690_v14 = vcombine.low %v1434_v0, %v1442_v57 }
 0x213   :  { %7120 = vmatprep.subr.bf16.mxu1 %v9613_v15  ;;  %v9692_v15 = vcombine.low %v1435_v1, %v1443_v45  ;;  %v9709_v25 = vcombine.high %v1451_v11, %v1459_v12 }
 0x215   :  { %6957 = vmatpush1.bf16.msra.mxu0 %v9610_v18  ;;  %v1467_v18 = vld [vmem:[#allocation10 + $0x1788] sm:$0xff] }
 0x216   :  { %7121 = vmatpush1.bf16.msra.mxu1 %v9612_v22  ;;  %6958 = vmatprep.subr.bf16.mxu0 %v9627_v30  ;;  %v1475_v22 = vld [vmem:[#allocation10 + $0x17c8] sm:$0xff]  ;;  %v9706_v30 = vcombine.low %v1450_v9, %v1458_v10 }
 0x217   :  { %7122 = vmatprep.subr.bf16.mxu1 %v9629_v34  ;;  %v9708_v34 = vcombine.low %v1451_v11, %v1459_v12  ;;  %v9725_v39 = vcombine.high %v1467_v18, %v1475_v22 }
 0x219   :  { %6959 = vmatpush1.bf16.msra.mxu0 %v9626_v40  ;;  %v1483_v40 = vld [vmem:[#allocation10 + $0x1808] sm:$0xff] }
 0x21a   :  { %7123 = vmatpush1.bf16.msra.mxu1 %v9628_v32  ;;  %6960 = vmatprep.subr.bf16.mxu0 %v9643_v7  ;;  %v1491_v32 = vld [vmem:[#allocation10 + $0x1848] sm:$0xff]  ;;  %v9722_v7 = vcombine.low %v1466_v17, %v1474_v28 }
 0x21b   :  { %7124 = vmatprep.subr.bf16.mxu1 %v9645_v33  ;;  %v9724_v33 = vcombine.low %v1467_v18, %v1475_v22  ;;  %v9741_v46 = vcombine.high %v1483_v40, %v1491_v32  ;;  %v9740_v60 = vcombine.low %v1483_v40, %v1491_v32 }
 0x21d   :  { %6961 = vmatpush1.bf16.msra.mxu0 %v9642_v51  ;;  %v1498_v51 = vld [vmem:[#allocation10 + $0x1880] sm:$0xff] }
 0x21e   :  { %7125 = vmatpush1.bf16.msra.mxu1 %v9644_v54  ;;  %6962 = vmatprep.subr.bf16.mxu0 %v9659_v56  ;;  %v1506_v54 = vld [vmem:[#allocation10 + $0x18c0] sm:$0xff]  ;;  %v9738_v56 = vcombine.low %v1482_v36, %v1490_v38 }
 0x21f   :  { %7126 = vmatprep.subr.bf16.mxu1 %v9661_v8  ;;  %v1499_v8 = vld [vmem:[#allocation10 + $0x1888] sm:$0xff]  ;;  %v9755_v61 = vcombine.high %v1498_v51, %v1506_v54  ;;  %v9754_v0 = vcombine.low %v1498_v51, %v1506_v54 }
 0x220   :  { %v9757_v42 = vcombine.high %v1499_v8, %v1507_v58  ;;  %v9756_v57 = vcombine.low %v1499_v8, %v1507_v58  ;;  %v1602_v8 = vld [vmem:[#allocation10 + $0x1bc0] sm:$0xff]  ;;  %v1595_v58 = vld [vmem:[#allocation10 + $0x1b88] sm:$0xff] }
 0x221   :  { %6963 = vmatpush1.bf16.msra.mxu0 %v9658_v44  ;;  %v1514_v44 = vld [vmem:[#allocation10 + $0x1900] sm:$0xff] }
 0x222   :  { %7127 = vmatpush1.bf16.msra.mxu1 %v9660_v2  ;;  %6964 = vmatprep.subr.bf16.mxu0 %v9675_v63  ;;  %v10681_v2 = vpack.c.bf16 %v705_v48, %v705_v48  ;;  %v1515_v63 = vld [vmem:[#allocation10 + $0x1908] sm:$0xff]  ;;  %v9771_v1 = vcombine.high %v1514_v44, %v1522_v29  ;;  %v9770_v9 = vcombine.low %v1514_v44, %v1522_v29 }
 0x223   :  { %7128 = vmatprep.subr.bf16.mxu1 %v9677_v53  ;;  %v1523_v53 = vld [vmem:[#allocation10 + $0x1948] sm:$0xff] }
 0x224   :  { %v9773_v45 = vcombine.high %v1515_v63, %v1523_v53  ;;  %v9772_v10 = vcombine.low %v1515_v63, %v1523_v53  ;;  %v1610_v63 = vld [vmem:[#allocation10 + $0x1c00] sm:$0xff] }
 0x225   :  { %6965 = vmatpush1.bf16.msra.mxu0 %v9674_v3  ;;  %v1530_v3 = vld [vmem:[#allocation10 + $0x1980] sm:$0xff] }
 0x226   :  { %7129 = vmatpush1.bf16.msra.mxu1 %v9676_v5  ;;  %6966 = vmatprep.subr.bf16.mxu0 %v9691_v62  ;;  %v1538_v5 = vld [vmem:[#allocation10 + $0x19c0] sm:$0xff]  ;;  %v1531_v62 = vld [vmem:[#allocation10 + $0x1988] sm:$0xff] }
 0x227   :  { %7130 = vmatprep.subr.bf16.mxu1 %v9693_v6  ;;  %v1539_v6 = vld [vmem:[#allocation10 + $0x19c8] sm:$0xff]  ;;  %v9787_v11 = vcombine.high %v1530_v3, %v1538_v5  ;;  %v9786_v17 = vcombine.low %v1530_v3, %v1538_v5  ;;  %v1618_v53 = vld [vmem:[#allocation10 + $0x1c40] sm:$0xff] }
 0x228   :  { %v9789_v12 = vcombine.high %v1531_v62, %v1539_v6  ;;  %v9788_v28 = vcombine.low %v1531_v62, %v1539_v6  ;;  %v9867_v3 = vcombine.high %v1610_v63, %v1618_v53  ;;  %v1626_v62 = vld [vmem:[#allocation10 + $0x1c80] sm:$0xff] }
 0x229   :  { %6967 = vmatpush1.bf16.msra.mxu0 %v9690_v14  ;;  %v1546_v14 = vld [vmem:[#allocation10 + $0x1a00] sm:$0xff] }
 0x22a   :  { %7131 = vmatpush1.bf16.msra.mxu1 %v9692_v15  ;;  %6968 = vmatprep.subr.bf16.mxu0 %v9707_v19  ;;  %v1554_v15 = vld [vmem:[#allocation10 + $0x1a40] sm:$0xff]  ;;  %v1547_v19 = vld [vmem:[#allocation10 + $0x1a08] sm:$0xff] }
 0x22b   :  { %7132 = vmatprep.subr.bf16.mxu1 %v9709_v25  ;;  %v1555_v25 = vld [vmem:[#allocation10 + $0x1a48] sm:$0xff]  ;;  %v9803_v18 = vcombine.high %v1546_v14, %v1554_v15  ;;  %v9802_v36 = vcombine.low %v1546_v14, %v1554_v15  ;;  %v1634_v6 = vld [vmem:[#allocation10 + $0x1cc0] sm:$0xff] }
 0x22c   :  { %v9805_v22 = vcombine.high %v1547_v19, %v1555_v25  ;;  %v9804_v38 = vcombine.low %v1547_v19, %v1555_v25  ;;  %v9883_v14 = vcombine.high %v1626_v62, %v1634_v6  ;;  %v1642_v19 = vld [vmem:[#allocation10 + $0x1d00] sm:$0xff] }
 0x22d   :  { %6969 = vmatpush1.bf16.msra.mxu0 %v9706_v30  ;;  %v1562_v30 = vld [vmem:[#allocation10 + $0x1a80] sm:$0xff] }
 0x22e   :  { %7133 = vmatpush1.bf16.msra.mxu1 %v9708_v34  ;;  %6970 = vmatprep.subr.bf16.mxu0 %v9723_v35  ;;  %v1570_v34 = vld [vmem:[#allocation10 + $0x1ac0] sm:$0xff]  ;;  %v1563_v35 = vld [vmem:[#allocation10 + $0x1a88] sm:$0xff] }
 0x22f   :  { %7134 = vmatprep.subr.bf16.mxu1 %v9725_v39  ;;  %v1571_v39 = vld [vmem:[#allocation10 + $0x1ac8] sm:$0xff]  ;;  %v9819_v40 = vcombine.high %v1562_v30, %v1570_v34  ;;  %v1650_v25 = vld [vmem:[#allocation10 + $0x1d40] sm:$0xff] }
 0x230   :  { %v9821_v32 = vcombine.high %v1563_v35, %v1571_v39  ;;  %v9820_v48 = vcombine.low %v1563_v35, %v1571_v39  ;;  %v1658_v35 = vld [vmem:[#allocation10 + $0x1d80] sm:$0xff] }
 0x231   :  { %6971 = vmatpush1.bf16.msra.mxu0 %v9722_v7  ;;  %v1578_v7 = vld [vmem:[#allocation10 + $0x1b00] sm:$0xff] }
 0x232   :  { %7135 = vmatpush1.bf16.msra.mxu1 %v9724_v33  ;;  %6981 = vmatprep.subr.bf16.mxu0 %v9739_v43  ;;  %v1586_v33 = vld [vmem:[#allocation10 + $0x1b40] sm:$0xff]  ;;  %v1587_v43 = vld [vmem:[#allocation10 + $0x1b48] sm:$0xff] }
 0x233   :  { %7145 = vmatprep.subr.bf16.mxu1 %v9741_v46  ;;  %v9818_v46 = vcombine.low %v1562_v30, %v1570_v34  ;;  %v9835_v51 = vcombine.high %v1578_v7, %v1586_v33  ;;  %v9837_v54 = vcombine.high %v1579_v41, %v1587_v43  ;;  %v9836_v44 = vcombine.low %v1579_v41, %v1587_v43  ;;  %v1666_v39 = vld [vmem:[#allocation10 + $0x1dc0] sm:$0xff] }
 0x234   :  { %6973 = vmatmul.mubr.bf16.vlgmr.msra.gmra.mrb[8].mxu0 %v10679_v59  ;;  %v9899_v30 = vcombine.high %v1642_v19, %v1650_v25  ;;  %v1674_v41 = vld [vmem:[#allocation10 + $0x1e00] sm:$0xff] }
 0x235   :  { %7137 = vmatmul.mubr.bf16.vlgmr.msra.gmra.mrb[8].mxu1 %v10679_v59  ;;  %6982 = vmatpush1.bf16.msra.mxu0 %v9738_v56  ;;  %v1594_v56 = vld [vmem:[#allocation10 + $0x1b80] sm:$0xff] }
 0x236   :  { %7013 = vmatprep.mubr.bf16.mxu0 %v10681_v2  ;;  %7146 = vmatpush1.bf16.msra.mxu1 %v9740_v60  ;;  %v1603_v60 = vld [vmem:[#allocation10 + $0x1bc8] sm:$0xff]  ;;  %v9851_v29 = vcombine.high %v1594_v56, %v1602_v8  ;;  %v1682_v43 = vld [vmem:[#allocation10 + $0x1e40] sm:$0xff] }
 0x237   :  { %7177 = vmatprep.mubr.bf16.mxu1 %v10681_v2  ;;  %6983 = vmatprep.subr.bf16.mxu0 %v9755_v61  ;;  %v9834_v61 = vcombine.low %v1578_v7, %v1586_v33  ;;  %v9915_v7 = vcombine.high %v1658_v35, %v1666_v39 }
 0x238   :  { %7147 = vmatprep.subr.bf16.mxu1 %v9757_v42  ;;  %v9853_v42 = vcombine.high %v1595_v58, %v1603_v60 }
 0x239   :  { %6984 = vmatpush1.bf16.msra.mxu0 %v9754_v0  ;;  %v1611_v0 = vld [vmem:[#allocation10 + $0x1c08] sm:$0xff] }
 0x23a   :  { %7148 = vmatpush1.bf16.msra.mxu1 %v9756_v57  ;;  %6985 = vmatprep.subr.bf16.mxu0 %v9771_v1  ;;  %v1619_v57 = vld [vmem:[#allocation10 + $0x1c48] sm:$0xff]  ;;  %v9850_v1 = vcombine.low %v1594_v56, %v1602_v8  ;;  %v9931_v56 = vcombine.high %v1674_v41, %v1682_v43 }
 0x23b   :  { %7149 = vmatprep.subr.bf16.mxu1 %v9773_v45  ;;  %v9852_v45 = vcombine.low %v1595_v58, %v1603_v60  ;;  %v9869_v5 = vcombine.high %v1611_v0, %v1619_v57  ;;  %v1690_v58 = vld [vmem:[#allocation10 + $0x1e80] sm:$0xff] }
 0x23c   :  { %v1698_v60 = vld [vmem:[#allocation10 + $0x1ec0] sm:$0xff] }
 0x23d   :  { %6986 = vmatpush1.bf16.msra.mxu0 %v9770_v9  ;;  %v1627_v9 = vld [vmem:[#allocation10 + $0x1c88] sm:$0xff] }
 0x23e   :  { %7150 = vmatpush1.bf16.msra.mxu1 %v9772_v10  ;;  %6987 = vmatprep.subr.bf16.mxu0 %v9787_v11  ;;  %v1635_v10 = vld [vmem:[#allocation10 + $0x1cc8] sm:$0xff]  ;;  %v9866_v11 = vcombine.low %v1610_v63, %v1618_v53  ;;  %v9947_v63 = vcombine.high %v1690_v58, %v1698_v60 }
 0x23f   :  { %7151 = vmatprep.subr.bf16.mxu1 %v9789_v12  ;;  %v9868_v12 = vcombine.low %v1611_v0, %v1619_v57  ;;  %v9885_v15 = vcombine.high %v1627_v9, %v1635_v10  ;;  %v1706_v0 = vld [vmem:[#allocation10 + $0x1f00] sm:$0xff] }
 0x240   :  { %v1714_v57 = vld [vmem:[#allocation10 + $0x1f40] sm:$0xff] }
 0x241   :  { %6988 = vmatpush1.bf16.msra.mxu0 %v9786_v17  ;;  %v1643_v17 = vld [vmem:[#allocation10 + $0x1d08] sm:$0xff] }
 0x242   :  { %7152 = vmatpush1.bf16.msra.mxu1 %v9788_v28  ;;  %6989 = vmatprep.subr.bf16.mxu0 %v9803_v18  ;;  %v1651_v28 = vld [vmem:[#allocation10 + $0x1d48] sm:$0xff]  ;;  %v9882_v18 = vcombine.low %v1626_v62, %v1634_v6  ;;  %v9963_v62 = vcombine.high %v1706_v0, %v1714_v57 }
 0x243   :  { %7153 = vmatprep.subr.bf16.mxu1 %v9805_v22  ;;  %v9884_v22 = vcombine.low %v1627_v9, %v1635_v10  ;;  %v9901_v34 = vcombine.high %v1643_v17, %v1651_v28  ;;  %v1722_v9 = vld [vmem:[#allocation10 + $0x1f80] sm:$0xff] }
 0x244   :  { %v1730_v10 = vld [vmem:[#allocation10 + $0x1fc0] sm:$0xff] }
 0x245   :  { %6990 = vmatpush1.bf16.msra.mxu0 %v9802_v36  ;;  %v1659_v36 = vld [vmem:[#allocation10 + $0x1d88] sm:$0xff] }
 0x246   :  { %7154 = vmatpush1.bf16.msra.mxu1 %v9804_v38  ;;  %6991 = vmatprep.subr.bf16.mxu0 %v9819_v40  ;;  %v1667_v38 = vld [vmem:[#allocation10 + $0x1dc8] sm:$0xff]  ;;  %v9898_v40 = vcombine.low %v1642_v19, %v1650_v25  ;;  %v9979_v19 = vcombine.high %v1722_v9, %v1730_v10 }
 0x247   :  { %7155 = vmatprep.subr.bf16.mxu1 %v9821_v32  ;;  %v9900_v32 = vcombine.low %v1643_v17, %v1651_v28  ;;  %v9917_v33 = vcombine.high %v1659_v36, %v1667_v38  ;;  %v716_v17 = vld [vmem:[#allocation10 + $0x10] sm:$0xff] }
 0x248   :  { %v724_v28 = vld [vmem:[#allocation10 + $0x50] sm:$0xff] }
 0x249   :  { %6992 = vmatpush1.bf16.msra.mxu0 %v9818_v46  ;;  %v1675_v46 = vld [vmem:[#allocation10 + $0x1e08] sm:$0xff] }
 0x24a   :  { %7156 = vmatpush1.bf16.msra.mxu1 %v9820_v48  ;;  %6993 = vmatprep.subr.bf16.mxu0 %v9835_v51  ;;  %v1683_v48 = vld [vmem:[#allocation10 + $0x1e48] sm:$0xff]  ;;  %v9914_v51 = vcombine.low %v1658_v35, %v1666_v39  ;;  %v704_v35 = vmax.f32 %v10665_v31, 0.0  ;;  %v8975_v39 = vcombine.high %v716_v17, %v724_v28 }
 0x24b   :  { %7157 = vmatprep.subr.bf16.mxu1 %v9837_v54  ;;  %v9916_v54 = vcombine.low %v1659_v36, %v1667_v38  ;;  %v9933_v8 = vcombine.high %v1675_v46, %v1683_v48  ;;  %v732_v38 = vld [vmem:[#allocation10 + $0x90] sm:$0xff] }
 0x24d   :  { %6994 = vmatpush1.bf16.msra.mxu0 %v9834_v61  ;;  %v1691_v61 = vld [vmem:[#allocation10 + $0x1e88] sm:$0xff] }
 0x24e   :  { %7158 = vmatpush1.bf16.msra.mxu1 %v9836_v44  ;;  %6995 = vmatprep.subr.bf16.mxu0 %v9851_v29  ;;  %v1699_v44 = vld [vmem:[#allocation10 + $0x1ec8] sm:$0xff]  ;;  %v9930_v29 = vcombine.low %v1674_v41, %v1682_v43  ;;  %v10688_v41 = vpack.c.bf16 %v704_v35, %v704_v35  ;;  %v821_v35 = vld [vmem:[#allocation10 + $0x358] sm:$0xff] }
 0x24f   :  { %7159 = vmatprep.subr.bf16.mxu1 %v9853_v42  ;;  %v9932_v42 = vcombine.low %v1675_v46, %v1683_v48  ;;  %v9949_v53 = vcombine.high %v1691_v61, %v1699_v44  ;;  %v748_v48 = vld [vmem:[#allocation10 + $0x110] sm:$0xff] }
 0x251   :  { %6996 = vmatpush1.bf16.msra.mxu0 %v9850_v1  ;;  %v1707_v1 = vld [vmem:[#allocation10 + $0x1f08] sm:$0xff] }
 0x252   :  { %7160 = vmatpush1.bf16.msra.mxu1 %v9852_v45  ;;  %6997 = vmatprep.subr.bf16.mxu0 %v9867_v3  ;;  %v1715_v45 = vld [vmem:[#allocation10 + $0x1f48] sm:$0xff]  ;;  %v9946_v3 = vcombine.low %v1690_v58, %v1698_v60 }
 0x253   :  { %7161 = vmatprep.subr.bf16.mxu1 %v9869_v5  ;;  %v9948_v5 = vcombine.low %v1691_v61, %v1699_v44  ;;  %v9965_v6 = vcombine.high %v1707_v1, %v1715_v45  ;;  %v764_v44 = vld [vmem:[#allocation10 + $0x190] sm:$0xff] }
 0x255   :  { %6998 = vmatpush1.bf16.msra.mxu0 %v9866_v11  ;;  %v1723_v11 = vld [vmem:[#allocation10 + $0x1f88] sm:$0xff] }
 0x256   :  { %7162 = vmatpush1.bf16.msra.mxu1 %v9868_v12  ;;  %6999 = vmatprep.subr.bf16.mxu0 %v9883_v14  ;;  %v1731_v12 = vld [vmem:[#allocation10 + $0x1fc8] sm:$0xff]  ;;  %v9962_v14 = vcombine.low %v1706_v0, %v1714_v57 }
 0x257   :  { %7163 = vmatprep.subr.bf16.mxu1 %v9885_v15  ;;  %v9964_v15 = vcombine.low %v1707_v1, %v1715_v45  ;;  %v9981_v25 = vcombine.high %v1723_v11, %v1731_v12  ;;  %v780_v45 = vld [vmem:[#allocation10 + $0x210] sm:$0xff] }
 0x259   :  { %7000 = vmatpush1.bf16.msra.mxu0 %v9882_v18  ;;  %v717_v18 = vld [vmem:[#allocation10 + $0x18] sm:$0xff] }
 0x25a   :  { %7164 = vmatpush1.bf16.msra.mxu1 %v9884_v22  ;;  %7001 = vmatprep.subr.bf16.mxu0 %v9899_v30  ;;  %v725_v22 = vld [vmem:[#allocation10 + $0x58] sm:$0xff]  ;;  %v9978_v30 = vcombine.low %v1722_v9, %v1730_v10 }
 0x25b   :  { %7165 = vmatprep.subr.bf16.mxu1 %v9901_v34  ;;  %v9980_v34 = vcombine.low %v1723_v11, %v1731_v12  ;;  %v8977_v36 = vcombine.high %v717_v18, %v725_v22  ;;  %v8976_v43 = vcombine.low %v717_v18, %v725_v22  ;;  %v796_v12 = vld [vmem:[#allocation10 + $0x290] sm:$0xff] }
 0x25c   :  { %v812_v22 = vld [vmem:[#allocation10 + $0x310] sm:$0xff] }
 0x25d   :  { %7002 = vmatpush1.bf16.msra.mxu0 %v9898_v40  ;;  %v740_v40 = vld [vmem:[#allocation10 + $0xd0] sm:$0xff] }
 0x25e   :  { %7166 = vmatpush1.bf16.msra.mxu1 %v9900_v32  ;;  %7003 = vmatprep.subr.bf16.mxu0 %v9915_v7  ;;  %v8974_v32 = vcombine.low %v716_v17, %v724_v28  ;;  %v733_v7 = vld [vmem:[#allocation10 + $0x98] sm:$0xff]  ;;  %v8991_v46 = vcombine.high %v732_v38, %v740_v40 }
 0x25f   :  { %7167 = vmatprep.subr.bf16.mxu1 %v9917_v33  ;;  %v741_v33 = vld [vmem:[#allocation10 + $0xd8] sm:$0xff] }
 0x260   :  { %v8993_v31 = vcombine.high %v733_v7, %v741_v33  ;;  %v8992_v58 = vcombine.low %v733_v7, %v741_v33  ;;  %v836_v7 = vld [vmem:[#allocation10 + $0x3d0] sm:$0xff]  ;;  %v829_v33 = vld [vmem:[#allocation10 + $0x398] sm:$0xff] }
 0x261   :  { %7004 = vmatpush1.bf16.msra.mxu0 %v9914_v51  ;;  %v756_v51 = vld [vmem:[#allocation10 + $0x150] sm:$0xff] }
 0x262   :  { %7168 = vmatpush1.bf16.msra.mxu1 %v9916_v54  ;;  %7005 = vmatprep.subr.bf16.mxu0 %v9931_v56  ;;  %v749_v54 = vld [vmem:[#allocation10 + $0x118] sm:$0xff]  ;;  %v9007_v60 = vcombine.high %v748_v48, %v756_v51 }
 0x263   :  { %7169 = vmatprep.subr.bf16.mxu1 %v9933_v8  ;;  %v757_v56 = vld [vmem:[#allocation10 + $0x158] sm:$0xff]  ;;  %v8990_v8 = vcombine.low %v732_v38, %v740_v40 }
 0x264   :  { %v9009_v61 = vcombine.high %v749_v54, %v757_v56  ;;  %v9008_v0 = vcombine.low %v749_v54, %v757_v56  ;;  %v844_v54 = vld [vmem:[#allocation10 + $0x410] sm:$0xff] }
 0x265   :  { %7006 = vmatpush1.bf16.msra.mxu0 %v9930_v29  ;;  %v772_v29 = vld [vmem:[#allocation10 + $0x1d0] sm:$0xff] }
 0x266   :  { %7170 = vmatpush1.bf16.msra.mxu1 %v9932_v42  ;;  %7007 = vmatprep.subr.bf16.mxu0 %v9947_v63  ;;  %v765_v42 = vld [vmem:[#allocation10 + $0x198] sm:$0xff]  ;;  %v9023_v57 = vcombine.high %v764_v44, %v772_v29  ;;  %v852_v56 = vld [vmem:[#allocation10 + $0x450] sm:$0xff] }
 0x267   :  { %7171 = vmatprep.subr.bf16.mxu1 %v9949_v53  ;;  %v773_v63 = vld [vmem:[#allocation10 + $0x1d8] sm:$0xff]  ;;  %v9006_v53 = vcombine.low %v748_v48, %v756_v51 }
 0x268   :  { %v9025_v1 = vcombine.high %v765_v42, %v773_v63  ;;  %v9024_v9 = vcombine.low %v765_v42, %v773_v63  ;;  %v860_v42 = vld [vmem:[#allocation10 + $0x490] sm:$0xff] }
 0x269   :  { %7008 = vmatpush1.bf16.msra.mxu0 %v9946_v3  ;;  %v788_v3 = vld [vmem:[#allocation10 + $0x250] sm:$0xff] }
 0x26a   :  { %7172 = vmatpush1.bf16.msra.mxu1 %v9948_v5  ;;  %7009 = vmatprep.subr.bf16.mxu0 %v9963_v62  ;;  %v781_v5 = vld [vmem:[#allocation10 + $0x218] sm:$0xff]  ;;  %v9039_v10 = vcombine.high %v780_v45, %v788_v3  ;;  %v868_v63 = vld [vmem:[#allocation10 + $0x4d0] sm:$0xff] }
 0x26b   :  { %7173 = vmatprep.subr.bf16.mxu1 %v9965_v6  ;;  %v789_v62 = vld [vmem:[#allocation10 + $0x258] sm:$0xff]  ;;  %v9022_v6 = vcombine.low %v764_v44, %v772_v29  ;;  %v9103_v44 = vcombine.high %v844_v54, %v852_v56 }
 0x26c   :  { %v9041_v11 = vcombine.high %v781_v5, %v789_v62  ;;  %v9040_v17 = vcombine.low %v781_v5, %v789_v62  ;;  %v876_v5 = vld [vmem:[#allocation10 + $0x510] sm:$0xff] }
 0x26d   :  { %7010 = vmatpush1.bf16.msra.mxu0 %v9962_v14  ;;  %v804_v14 = vld [vmem:[#allocation10 + $0x2d0] sm:$0xff] }
 0x26e   :  { %7174 = vmatpush1.bf16.msra.mxu1 %v9964_v15  ;;  %7011 = vmatprep.subr.bf16.mxu0 %v9979_v19  ;;  %v797_v15 = vld [vmem:[#allocation10 + $0x298] sm:$0xff]  ;;  %v9055_v28 = vcombine.high %v796_v12, %v804_v14  ;;  %v884_v62 = vld [vmem:[#allocation10 + $0x550] sm:$0xff] }
 0x26f   :  { %7175 = vmatprep.subr.bf16.mxu1 %v9981_v25  ;;  %v805_v19 = vld [vmem:[#allocation10 + $0x2d8] sm:$0xff]  ;;  %v9038_v25 = vcombine.low %v780_v45, %v788_v3  ;;  %v9119_v45 = vcombine.high %v860_v42, %v868_v63 }
 0x270   :  { %v9057_v18 = vcombine.high %v797_v15, %v805_v19 }
 0x271   :  { %7012 = vmatpush1.bf16.msra.mxu0 %v9978_v30  ;;  %v820_v30 = vld [vmem:[#allocation10 + $0x350] sm:$0xff] }
 0x272   :  { %7176 = vmatpush1.bf16.msra.mxu1 %v9980_v34  ;;  %7186 = vmatprep.subr.bf16.mxu0 %v8975_v39  ;;  %v813_v34 = vld [vmem:[#allocation10 + $0x318] sm:$0xff]  ;;  %v9054_v39 = vcombine.low %v796_v12, %v804_v14  ;;  %v9071_v38 = vcombine.high %v812_v22, %v820_v30  ;;  %v9135_v12 = vcombine.high %v876_v5, %v884_v62 }
 0x273   :  { %7350 = vmatprep.subr.bf16.mxu1 %v8977_v36  ;;  %v9056_v36 = vcombine.low %v797_v15, %v805_v19  ;;  %v9073_v40 = vcombine.high %v813_v34, %v821_v35  ;;  %v9072_v48 = vcombine.low %v813_v34, %v821_v35  ;;  %v892_v15 = vld [vmem:[#allocation10 + $0x590] sm:$0xff] }
 0x274   :  { %7014 = vmatmul.mubr.bf16.vlgmr.msra.gmra.mrb[8].mxu0 %v10688_v41  ;;  %v900_v19 = vld [vmem:[#allocation10 + $0x5d0] sm:$0xff] }
 0x275   :  { %7178 = vmatmul.mubr.bf16.vlgmr.msra.gmra.mrb[8].mxu1 %v10688_v41  ;;  %7187 = vmatpush1.bf16.msra.mxu0 %v8974_v32  ;;  %v828_v32 = vld [vmem:[#allocation10 + $0x390] sm:$0xff] }
 0x276   :  { %7218 = vmatprep.mubr.bf16.mxu0 %v10639_v49  ;;  %7351 = vmatpush1.bf16.msra.mxu1 %v8976_v43  ;;  %v837_v43 = vld [vmem:[#allocation10 + $0x3d8] sm:$0xff]  ;;  %v9087_v51 = vcombine.high %v828_v32, %v836_v7  ;;  %v908_v34 = vld [vmem:[#allocation10 + $0x610] sm:$0xff] }
 0x277   :  { %7382 = vmatprep.mubr.bf16.mxu1 %v10639_v49  ;;  %7188 = vmatprep.subr.bf16.mxu0 %v8991_v46  ;;  %v9070_v46 = vcombine.low %v812_v22, %v820_v30  ;;  %v9151_v22 = vcombine.high %v892_v15, %v900_v19  ;;  %v916_v35 = vld [vmem:[#allocation10 + $0x650] sm:$0xff] }
 0x278   :  { %7352 = vmatprep.subr.bf16.mxu1 %v8993_v31  ;;  %v9089_v31 = vcombine.high %v829_v33, %v837_v43 }
 0x279   :  { %7189 = vmatpush1.bf16.msra.mxu0 %v8990_v8  ;;  %v845_v8 = vld [vmem:[#allocation10 + $0x418] sm:$0xff] }
 0x27a   :  { %7353 = vmatpush1.bf16.msra.mxu1 %v8992_v58  ;;  %7190 = vmatprep.subr.bf16.mxu0 %v9007_v60  ;;  %v853_v58 = vld [vmem:[#allocation10 + $0x458] sm:$0xff]  ;;  %v9086_v60 = vcombine.low %v828_v32, %v836_v7  ;;  %v9167_v32 = vcombine.high %v908_v34, %v916_v35 }
 0x27b   :  { %7354 = vmatprep.subr.bf16.mxu1 %v9009_v61  ;;  %v9088_v61 = vcombine.low %v829_v33, %v837_v43  ;;  %v9105_v29 = vcombine.high %v845_v8, %v853_v58  ;;  %v924_v33 = vld [vmem:[#allocation10 + $0x690] sm:$0xff] }
 0x27c   :  { %v932_v43 = vld [vmem:[#allocation10 + $0x6d0] sm:$0xff] }
 0x27d   :  { %7191 = vmatpush1.bf16.msra.mxu0 %v9006_v53  ;;  %v861_v53 = vld [vmem:[#allocation10 + $0x498] sm:$0xff] }
 0x27e   :  { %7355 = vmatpush1.bf16.msra.mxu1 %v9008_v0  ;;  %7192 = vmatprep.subr.bf16.mxu0 %v9023_v57  ;;  %v869_v0 = vld [vmem:[#allocation10 + $0x4d8] sm:$0xff]  ;;  %v9102_v57 = vcombine.low %v844_v54, %v852_v56  ;;  %v9183_v54 = vcombine.high %v924_v33, %v932_v43 }
 0x27f   :  { %7356 = vmatprep.subr.bf16.mxu1 %v9025_v1  ;;  %v9104_v1 = vcombine.low %v845_v8, %v853_v58  ;;  %v9121_v3 = vcombine.high %v861_v53, %v869_v0  ;;  %v940_v8 = vld [vmem:[#allocation10 + $0x710] sm:$0xff] }
 0x280   :  { %v948_v58 = vld [vmem:[#allocation10 + $0x750] sm:$0xff] }
 0x281   :  { %7193 = vmatpush1.bf16.msra.mxu0 %v9022_v6  ;;  %v877_v6 = vld [vmem:[#allocation10 + $0x518] sm:$0xff] }
 0x282   :  { %7357 = vmatpush1.bf16.msra.mxu1 %v9024_v9  ;;  %7194 = vmatprep.subr.bf16.mxu0 %v9039_v10  ;;  %v885_v9 = vld [vmem:[#allocation10 + $0x558] sm:$0xff]  ;;  %v9118_v10 = vcombine.low %v860_v42, %v868_v63  ;;  %v9199_v42 = vcombine.high %v940_v8, %v948_v58 }
 0x283   :  { %7358 = vmatprep.subr.bf16.mxu1 %v9041_v11  ;;  %v9120_v11 = vcombine.low %v861_v53, %v869_v0  ;;  %v9137_v14 = vcombine.high %v877_v6, %v885_v9  ;;  %v956_v53 = vld [vmem:[#allocation10 + $0x790] sm:$0xff] }
 0x284   :  { %v964_v0 = vld [vmem:[#allocation10 + $0x7d0] sm:$0xff] }
 0x285   :  { %7195 = vmatpush1.bf16.msra.mxu0 %v9038_v25  ;;  %v893_v25 = vld [vmem:[#allocation10 + $0x598] sm:$0xff] }
 0x286   :  { %7359 = vmatpush1.bf16.msra.mxu1 %v9040_v17  ;;  %7196 = vmatprep.subr.bf16.mxu0 %v9055_v28  ;;  %v901_v17 = vld [vmem:[#allocation10 + $0x5d8] sm:$0xff]  ;;  %v9134_v28 = vcombine.low %v876_v5, %v884_v62  ;;  %v9215_v5 = vcombine.high %v956_v53, %v964_v0 }
 0x287   :  { %7360 = vmatprep.subr.bf16.mxu1 %v9057_v18  ;;  %v9136_v18 = vcombine.low %v877_v6, %v885_v9  ;;  %v9153_v30 = vcombine.high %v893_v25, %v901_v17  ;;  %v972_v6 = vld [vmem:[#allocation10 + $0x810] sm:$0xff] }
 0x288   :  { %v980_v9 = vld [vmem:[#allocation10 + $0x850] sm:$0xff] }
 0x289   :  { %7197 = vmatpush1.bf16.msra.mxu0 %v9054_v39  ;;  %v909_v39 = vld [vmem:[#allocation10 + $0x618] sm:$0xff] }
 0x28a   :  { %7361 = vmatpush1.bf16.msra.mxu1 %v9056_v36  ;;  %7198 = vmatprep.subr.bf16.mxu0 %v9071_v38  ;;  %v917_v36 = vld [vmem:[#allocation10 + $0x658] sm:$0xff]  ;;  %v9150_v38 = vcombine.low %v892_v15, %v900_v19  ;;  %v9231_v15 = vcombine.high %v972_v6, %v980_v9 }
 0x28b   :  { %7362 = vmatprep.subr.bf16.mxu1 %v9073_v40  ;;  %v9152_v40 = vcombine.low %v893_v25, %v901_v17  ;;  %v9169_v7 = vcombine.high %v909_v39, %v917_v36  ;;  %v988_v25 = vld [vmem:[#allocation10 + $0x890] sm:$0xff] }
 0x28c   :  { %v996_v17 = vld [vmem:[#allocation10 + $0x8d0] sm:$0xff] }
 0x28d   :  { %7199 = vmatpush1.bf16.msra.mxu0 %v9070_v46  ;;  %v925_v46 = vld [vmem:[#allocation10 + $0x698] sm:$0xff] }
 0x28e   :  { %7363 = vmatpush1.bf16.msra.mxu1 %v9072_v48  ;;  %7200 = vmatprep.subr.bf16.mxu0 %v9087_v51  ;;  %v933_v48 = vld [vmem:[#allocation10 + $0x6d8] sm:$0xff]  ;;  %v9166_v51 = vcombine.low %v908_v34, %v916_v35  ;;  %v9247_v34 = vcombine.high %v988_v25, %v996_v17  ;;  %v1004_v35 = vld [vmem:[#allocation10 + $0x910] sm:$0xff] }
 0x28f   :  { %7364 = vmatprep.subr.bf16.mxu1 %v9089_v31  ;;  %v9168_v31 = vcombine.low %v909_v39, %v917_v36  ;;  %v9185_v56 = vcombine.high %v925_v46, %v933_v48  ;;  %v1012_v39 = vld [vmem:[#allocation10 + $0x950] sm:$0xff] }
 0x291   :  { %7201 = vmatpush1.bf16.msra.mxu0 %v9086_v60  ;;  %v941_v60 = vld [vmem:[#allocation10 + $0x718] sm:$0xff] }
 0x292   :  { %7365 = vmatpush1.bf16.msra.mxu1 %v9088_v61  ;;  %7202 = vmatprep.subr.bf16.mxu0 %v9103_v44  ;;  %v949_v61 = vld [vmem:[#allocation10 + $0x758] sm:$0xff]  ;;  %v9182_v44 = vcombine.low %v924_v33, %v932_v43  ;;  %v9263_v33 = vcombine.high %v1004_v35, %v1012_v39 }
 0x293   :  { %7366 = vmatprep.subr.bf16.mxu1 %v9105_v29  ;;  %v9184_v29 = vcombine.low %v925_v46, %v933_v48  ;;  %v9201_v63 = vcombine.high %v941_v60, %v949_v61  ;;  %v1020_v46 = vld [vmem:[#allocation10 + $0x990] sm:$0xff] }
 0x294   :  { %v1028_v48 = vld [vmem:[#allocation10 + $0x9d0] sm:$0xff] }
 0x295   :  { %7203 = vmatpush1.bf16.msra.mxu0 %v9102_v57  ;;  %v957_v57 = vld [vmem:[#allocation10 + $0x798] sm:$0xff] }
 0x296   :  { %7367 = vmatpush1.bf16.msra.mxu1 %v9104_v1  ;;  %7204 = vmatprep.subr.bf16.mxu0 %v9119_v45  ;;  %v965_v1 = vld [vmem:[#allocation10 + $0x7d8] sm:$0xff]  ;;  %v9198_v45 = vcombine.low %v940_v8, %v948_v58  ;;  %v9279_v8 = vcombine.high %v1020_v46, %v1028_v48 }
 0x297   :  { %7368 = vmatprep.subr.bf16.mxu1 %v9121_v3  ;;  %v9200_v3 = vcombine.low %v941_v60, %v949_v61  ;;  %v9217_v62 = vcombine.high %v957_v57, %v965_v1  ;;  %v1036_v60 = vld [vmem:[#allocation10 + $0xa10] sm:$0xff] }
 0x298   :  { %v1044_v61 = vld [vmem:[#allocation10 + $0xa50] sm:$0xff] }
 0x299   :  { %7205 = vmatpush1.bf16.msra.mxu0 %v9118_v10  ;;  %v973_v10 = vld [vmem:[#allocation10 + $0x818] sm:$0xff] }
 0x29a   :  { %7369 = vmatpush1.bf16.msra.mxu1 %v9120_v11  ;;  %7206 = vmatprep.subr.bf16.mxu0 %v9135_v12  ;;  %v981_v11 = vld [vmem:[#allocation10 + $0x858] sm:$0xff]  ;;  %v9214_v12 = vcombine.low %v956_v53, %v964_v0  ;;  %v9295_v53 = vcombine.high %v1036_v60, %v1044_v61 }
 0x29b   :  { %7370 = vmatprep.subr.bf16.mxu1 %v9137_v14  ;;  %v9216_v14 = vcombine.low %v957_v57, %v965_v1  ;;  %v9233_v19 = vcombine.high %v973_v10, %v981_v11  ;;  %v1052_v57 = vld [vmem:[#allocation10 + $0xa90] sm:$0xff] }
 0x29c   :  { %v1060_v1 = vld [vmem:[#allocation10 + $0xad0] sm:$0xff] }
 0x29d   :  { %7207 = vmatpush1.bf16.msra.mxu0 %v9134_v28  ;;  %v9230_v28 = vcombine.low %v972_v6, %v980_v9  ;;  %v9311_v6 = vcombine.high %v1052_v57, %v1060_v1 }
 0x29e   :  { %7371 = vmatpush1.bf16.msra.mxu1 %v9136_v18  ;;  %7208 = vmatprep.subr.bf16.mxu0 %v9151_v22  ;;  %v989_v18 = vld [vmem:[#allocation10 + $0x898] sm:$0xff] }
 0x29f   :  { %7372 = vmatprep.subr.bf16.mxu1 %v9153_v30  ;;  %v997_v22 = vld [vmem:[#allocation10 + $0x8d8] sm:$0xff]  ;;  %v9232_v30 = vcombine.low %v973_v10, %v981_v11  ;;  %v1068_v10 = vld [vmem:[#allocation10 + $0xb10] sm:$0xff] }
 0x2a0   :  { %v9249_v36 = vcombine.high %v989_v18, %v997_v22  ;;  %v1076_v11 = vld [vmem:[#allocation10 + $0xb50] sm:$0xff] }
 0x2a1   :  { %7209 = vmatpush1.bf16.msra.mxu0 %v9150_v38  ;;  %v1005_v38 = vld [vmem:[#allocation10 + $0x918] sm:$0xff] }
 0x2a2   :  { %7373 = vmatpush1.bf16.msra.mxu1 %v9152_v40  ;;  %7210 = vmatprep.subr.bf16.mxu0 %v9167_v32  ;;  %v1013_v40 = vld [vmem:[#allocation10 + $0x958] sm:$0xff]  ;;  %v9246_v32 = vcombine.low %v988_v25, %v996_v17  ;;  %v9327_v25 = vcombine.high %v1068_v10, %v1076_v11 }
 0x2a3   :  { %7374 = vmatprep.subr.bf16.mxu1 %v9169_v7  ;;  %v9248_v7 = vcombine.low %v989_v18, %v997_v22  ;;  %v9265_v43 = vcombine.high %v1005_v38, %v1013_v40  ;;  %v1092_v18 = vld [vmem:[#allocation10 + $0xbd0] sm:$0xff]  ;;  %v1085_v22 = vld [vmem:[#allocation10 + $0xb98] sm:$0xff] }
 0x2a5   :  { %7211 = vmatpush1.bf16.msra.mxu0 %v9166_v51  ;;  %v1021_v51 = vld [vmem:[#allocation10 + $0x998] sm:$0xff] }
 0x2a6   :  { %7375 = vmatpush1.bf16.msra.mxu1 %v9168_v31  ;;  %7212 = vmatprep.subr.bf16.mxu0 %v9183_v54  ;;  %v1029_v31 = vld [vmem:[#allocation10 + $0x9d8] sm:$0xff]  ;;  %v9262_v54 = vcombine.low %v1004_v35, %v1012_v39 }
 0x2a7   :  { %7376 = vmatprep.subr.bf16.mxu1 %v9185_v56  ;;  %v9264_v56 = vcombine.low %v1005_v38, %v1013_v40  ;;  %v9281_v58 = vcombine.high %v1021_v51, %v1029_v31  ;;  %v1100_v38 = vld [vmem:[#allocation10 + $0xc10] sm:$0xff] }
 0x2a8   :  { %v1108_v40 = vld [vmem:[#allocation10 + $0xc50] sm:$0xff] }
 0x2a9   :  { %7213 = vmatpush1.bf16.msra.mxu0 %v9182_v44  ;;  %v1037_v44 = vld [vmem:[#allocation10 + $0xa18] sm:$0xff] }
 0x2aa   :  { %7377 = vmatpush1.bf16.msra.mxu1 %v9184_v29  ;;  %7214 = vmatprep.subr.bf16.mxu0 %v9199_v42  ;;  %v1045_v29 = vld [vmem:[#allocation10 + $0xa58] sm:$0xff]  ;;  %v9278_v42 = vcombine.low %v1020_v46, %v1028_v48  ;;  %v9359_v46 = vcombine.high %v1100_v38, %v1108_v40 }
 0x2ab   :  { %7378 = vmatprep.subr.bf16.mxu1 %v9201_v63  ;;  %v9280_v63 = vcombine.low %v1021_v51, %v1029_v31  ;;  %v9297_v0 = vcombine.high %v1037_v44, %v1045_v29  ;;  %v1116_v51 = vld [vmem:[#allocation10 + $0xc90] sm:$0xff] }
 0x2ac   :  { %v1124_v31 = vld [vmem:[#allocation10 + $0xcd0] sm:$0xff] }
 0x2ad   :  { %7215 = vmatpush1.bf16.msra.mxu0 %v9198_v45  ;;  %v1053_v45 = vld [vmem:[#allocation10 + $0xa98] sm:$0xff] }
 0x2ae   :  { %7379 = vmatpush1.bf16.msra.mxu1 %v9200_v3  ;;  %7216 = vmatprep.subr.bf16.mxu0 %v9215_v5  ;;  %v1061_v3 = vld [vmem:[#allocation10 + $0xad8] sm:$0xff]  ;;  %v9294_v5 = vcombine.low %v1036_v60, %v1044_v61  ;;  %v9375_v60 = vcombine.high %v1116_v51, %v1124_v31 }
 0x2af   :  { %7380 = vmatprep.subr.bf16.mxu1 %v9217_v62  ;;  %v9296_v62 = vcombine.low %v1037_v44, %v1045_v29  ;;  %v9313_v9 = vcombine.high %v1053_v45, %v1061_v3  ;;  %v1132_v44 = vld [vmem:[#allocation10 + $0xd10] sm:$0xff] }
 0x2b0   :  { %v1140_v29 = vld [vmem:[#allocation10 + $0xd50] sm:$0xff] }
 0x2b1   :  { %7217 = vmatpush1.bf16.msra.mxu0 %v9214_v12  ;;  %v1069_v12 = vld [vmem:[#allocation10 + $0xb18] sm:$0xff] }
 0x2b2   :  { %7381 = vmatpush1.bf16.msra.mxu1 %v9216_v14  ;;  %7227 = vmatprep.subr.bf16.mxu0 %v9231_v15  ;;  %v1077_v14 = vld [vmem:[#allocation10 + $0xb58] sm:$0xff]  ;;  %v9310_v15 = vcombine.low %v1052_v57, %v1060_v1  ;;  %v9391_v57 = vcombine.high %v1132_v44, %v1140_v29 }
 0x2b3   :  { %7391 = vmatprep.subr.bf16.mxu1 %v9233_v19  ;;  %v9312_v19 = vcombine.low %v1053_v45, %v1061_v3  ;;  %v9329_v17 = vcombine.high %v1069_v12, %v1077_v14  ;;  %v9328_v35 = vcombine.low %v1069_v12, %v1077_v14  ;;  %v1148_v45 = vld [vmem:[#allocation10 + $0xd90] sm:$0xff] }
 0x2b4   :  { %7219 = vmatmul.mubr.bf16.vlgmr.msra.gmra.mrb[12].mxu0 %v10641_v4  ;;  %v1156_v3 = vld [vmem:[#allocation10 + $0xdd0] sm:$0xff] }
 0x2b5   :  { %7383 = vmatmul.mubr.bf16.vlgmr.msra.gmra.mrb[12].mxu1 %v10641_v4  ;;  %7228 = vmatpush1.bf16.msra.mxu0 %v9230_v28  ;;  %v1084_v28 = vld [vmem:[#allocation10 + $0xb90] sm:$0xff] }
 0x2b6   :  { %7259 = vmatprep.mubr.bf16.mxu0 %v10653_v26  ;;  %7392 = vmatpush1.bf16.msra.mxu1 %v9232_v30  ;;  %v1093_v30 = vld [vmem:[#allocation10 + $0xbd8] sm:$0xff]  ;;  %v9343_v39 = vcombine.high %v1084_v28, %v1092_v18  ;;  %v1164_v12 = vld [vmem:[#allocation10 + $0xe10] sm:$0xff] }
 0x2b7   :  { %7423 = vmatprep.mubr.bf16.mxu1 %v10653_v26  ;;  %7229 = vmatprep.subr.bf16.mxu0 %v9247_v34  ;;  %v9326_v34 = vcombine.low %v1068_v10, %v1076_v11  ;;  %v9407_v10 = vcombine.high %v1148_v45, %v1156_v3  ;;  %v1172_v14 = vld [vmem:[#allocation10 + $0xe50] sm:$0xff] }
 0x2b8   :  { %7393 = vmatprep.subr.bf16.mxu1 %v9249_v36  ;;  %v9345_v36 = vcombine.high %v1085_v22, %v1093_v30 }
 0x2b9   :  { %7230 = vmatpush1.bf16.msra.mxu0 %v9246_v32  ;;  %v1101_v32 = vld [vmem:[#allocation10 + $0xc18] sm:$0xff] }
 0x2ba   :  { %7394 = vmatpush1.bf16.msra.mxu1 %v9248_v7  ;;  %7231 = vmatprep.subr.bf16.mxu0 %v9263_v33  ;;  %v1109_v7 = vld [vmem:[#allocation10 + $0xc58] sm:$0xff]  ;;  %v9342_v33 = vcombine.low %v1084_v28, %v1092_v18  ;;  %v9423_v28 = vcombine.high %v1164_v12, %v1172_v14 }
 0x2bb   :  { %7395 = vmatprep.subr.bf16.mxu1 %v9265_v43  ;;  %v9344_v43 = vcombine.low %v1085_v22, %v1093_v30  ;;  %v9361_v48 = vcombine.high %v1101_v32, %v1109_v7  ;;  %v1180_v22 = vld [vmem:[#allocation10 + $0xe90] sm:$0xff] }
 0x2bc   :  { %v1188_v30 = vld [vmem:[#allocation10 + $0xed0] sm:$0xff] }
 0x2bd   :  { %7232 = vmatpush1.bf16.msra.mxu0 %v9262_v54  ;;  %v1117_v54 = vld [vmem:[#allocation10 + $0xc98] sm:$0xff] }
 0x2be   :  { %7396 = vmatpush1.bf16.msra.mxu1 %v9264_v56  ;;  %7233 = vmatprep.subr.bf16.mxu0 %v9279_v8  ;;  %v1125_v56 = vld [vmem:[#allocation10 + $0xcd8] sm:$0xff]  ;;  %v9358_v8 = vcombine.low %v1100_v38, %v1108_v40  ;;  %v9439_v38 = vcombine.high %v1180_v22, %v1188_v30 }
 0x2bf   :  { %7397 = vmatprep.subr.bf16.mxu1 %v9281_v58  ;;  %v9360_v58 = vcombine.low %v1101_v32, %v1109_v7  ;;  %v9377_v61 = vcombine.high %v1117_v54, %v1125_v56  ;;  %v1196_v32 = vld [vmem:[#allocation10 + $0xf10] sm:$0xff] }
 0x2c0   :  { %v1204_v7 = vld [vmem:[#allocation10 + $0xf50] sm:$0xff] }
 0x2c1   :  { %7234 = vmatpush1.bf16.msra.mxu0 %v9278_v42  ;;  %v1133_v42 = vld [vmem:[#allocation10 + $0xd18] sm:$0xff] }
 0x2c2   :  { %7398 = vmatpush1.bf16.msra.mxu1 %v9280_v63  ;;  %7235 = vmatprep.subr.bf16.mxu0 %v9295_v53  ;;  %v1141_v63 = vld [vmem:[#allocation10 + $0xd58] sm:$0xff]  ;;  %v9374_v53 = vcombine.low %v1116_v51, %v1124_v31  ;;  %v9455_v51 = vcombine.high %v1196_v32, %v1204_v7 }
 0x2c3   :  { %7399 = vmatprep.subr.bf16.mxu1 %v9297_v0  ;;  %v9376_v0 = vcombine.low %v1117_v54, %v1125_v56  ;;  %v9393_v1 = vcombine.high %v1133_v42, %v1141_v63  ;;  %v1212_v54 = vld [vmem:[#allocation10 + $0xf90] sm:$0xff] }
 0x2c4   :  { %v1220_v56 = vld [vmem:[#allocation10 + $0xfd0] sm:$0xff] }
 0x2c5   :  { %7236 = vmatpush1.bf16.msra.mxu0 %v9294_v5  ;;  %v1149_v5 = vld [vmem:[#allocation10 + $0xd98] sm:$0xff] }
 0x2c6   :  { %7400 = vmatpush1.bf16.msra.mxu1 %v9296_v62  ;;  %7237 = vmatprep.subr.bf16.mxu0 %v9311_v6  ;;  %v1157_v62 = vld [vmem:[#allocation10 + $0xdd8] sm:$0xff]  ;;  %v9390_v6 = vcombine.low %v1132_v44, %v1140_v29  ;;  %v9471_v44 = vcombine.high %v1212_v54, %v1220_v56 }
 0x2c7   :  { %7401 = vmatprep.subr.bf16.mxu1 %v9313_v9  ;;  %v9392_v9 = vcombine.low %v1133_v42, %v1141_v63  ;;  %v9409_v11 = vcombine.high %v1149_v5, %v1157_v62  ;;  %v1228_v42 = vld [vmem:[#allocation10 + $0x1010] sm:$0xff] }
 0x2c8   :  { %v1236_v63 = vld [vmem:[#allocation10 + $0x1050] sm:$0xff] }
 0x2c9   :  { %7238 = vmatpush1.bf16.msra.mxu0 %v9310_v15  ;;  %v1165_v15 = vld [vmem:[#allocation10 + $0xe18] sm:$0xff] }
 0x2ca   :  { %7402 = vmatpush1.bf16.msra.mxu1 %v9312_v19  ;;  %7239 = vmatprep.subr.bf16.mxu0 %v9327_v25  ;;  %v1173_v19 = vld [vmem:[#allocation10 + $0xe58] sm:$0xff]  ;;  %v9406_v25 = vcombine.low %v1148_v45, %v1156_v3  ;;  %v9487_v45 = vcombine.high %v1228_v42, %v1236_v63 }
 0x2cb   :  { %7403 = vmatprep.subr.bf16.mxu1 %v9329_v17  ;;  %v9408_v17 = vcombine.low %v1149_v5, %v1157_v62  ;;  %v9425_v18 = vcombine.high %v1165_v15, %v1173_v19  ;;  %v1244_v5 = vld [vmem:[#allocation10 + $0x1090] sm:$0xff] }
 0x2cc   :  { %v1252_v62 = vld [vmem:[#allocation10 + $0x10d0] sm:$0xff] }
 0x2cd   :  { %7240 = vmatpush1.bf16.msra.mxu0 %v9326_v34  ;;  %v1181_v34 = vld [vmem:[#allocation10 + $0xe98] sm:$0xff] }
 0x2ce   :  { %7404 = vmatpush1.bf16.msra.mxu1 %v9328_v35  ;;  %7241 = vmatprep.subr.bf16.mxu0 %v9343_v39  ;;  %v1189_v35 = vld [vmem:[#allocation10 + $0xed8] sm:$0xff]  ;;  %v9422_v39 = vcombine.low %v1164_v12, %v1172_v14  ;;  %v9503_v12 = vcombine.high %v1244_v5, %v1252_v62  ;;  %v1260_v14 = vld [vmem:[#allocation10 + $0x1110] sm:$0xff] }
 0x2cf   :  { %7405 = vmatprep.subr.bf16.mxu1 %v9345_v36  ;;  %v9424_v36 = vcombine.low %v1165_v15, %v1173_v19  ;;  %v9441_v40 = vcombine.high %v1181_v34, %v1189_v35  ;;  %v1268_v15 = vld [vmem:[#allocation10 + $0x1150] sm:$0xff] }
 0x2d1   :  { %7242 = vmatpush1.bf16.msra.mxu0 %v9342_v33  ;;  %v1197_v33 = vld [vmem:[#allocation10 + $0xf18] sm:$0xff] }
 0x2d2   :  { %7406 = vmatpush1.bf16.msra.mxu1 %v9344_v43  ;;  %7243 = vmatprep.subr.bf16.mxu0 %v9359_v46  ;;  %v1205_v43 = vld [vmem:[#allocation10 + $0xf58] sm:$0xff]  ;;  %v9438_v46 = vcombine.low %v1180_v22, %v1188_v30  ;;  %v9519_v22 = vcombine.high %v1260_v14, %v1268_v15 }
 0x2d3   :  { %7407 = vmatprep.subr.bf16.mxu1 %v9361_v48  ;;  %v9440_v48 = vcombine.low %v1181_v34, %v1189_v35  ;;  %v9457_v31 = vcombine.high %v1197_v33, %v1205_v43  ;;  %v1276_v34 = vld [vmem:[#allocation10 + $0x1190] sm:$0xff] }
 0x2d4   :  { %v1284_v35 = vld [vmem:[#allocation10 + $0x11d0] sm:$0xff] }
 0x2d5   :  { %7244 = vmatpush1.bf16.msra.mxu0 %v9358_v8  ;;  %v1213_v8 = vld [vmem:[#allocation10 + $0xf98] sm:$0xff] }
 0x2d6   :  { %7408 = vmatpush1.bf16.msra.mxu1 %v9360_v58  ;;  %7245 = vmatprep.subr.bf16.mxu0 %v9375_v60  ;;  %v1221_v58 = vld [vmem:[#allocation10 + $0xfd8] sm:$0xff]  ;;  %v9454_v60 = vcombine.low %v1196_v32, %v1204_v7  ;;  %v9535_v32 = vcombine.high %v1276_v34, %v1284_v35 }
 0x2d7   :  { %7409 = vmatprep.subr.bf16.mxu1 %v9377_v61  ;;  %v9456_v61 = vcombine.low %v1197_v33, %v1205_v43  ;;  %v9473_v29 = vcombine.high %v1213_v8, %v1221_v58  ;;  %v1292_v33 = vld [vmem:[#allocation10 + $0x1210] sm:$0xff] }
 0x2d8   :  { %v1300_v43 = vld [vmem:[#allocation10 + $0x1250] sm:$0xff] }
 0x2d9   :  { %7246 = vmatpush1.bf16.msra.mxu0 %v9374_v53  ;;  %v1229_v53 = vld [vmem:[#allocation10 + $0x1018] sm:$0xff] }
 0x2da   :  { %7410 = vmatpush1.bf16.msra.mxu1 %v9376_v0  ;;  %7247 = vmatprep.subr.bf16.mxu0 %v9391_v57  ;;  %v1237_v0 = vld [vmem:[#allocation10 + $0x1058] sm:$0xff]  ;;  %v9470_v57 = vcombine.low %v1212_v54, %v1220_v56  ;;  %v9551_v54 = vcombine.high %v1292_v33, %v1300_v43 }
 0x2db   :  { %7411 = vmatprep.subr.bf16.mxu1 %v9393_v1  ;;  %v9472_v1 = vcombine.low %v1213_v8, %v1221_v58  ;;  %v9489_v3 = vcombine.high %v1229_v53, %v1237_v0  ;;  %v1308_v8 = vld [vmem:[#allocation10 + $0x1290] sm:$0xff] }
 0x2dc   :  { %v1316_v58 = vld [vmem:[#allocation10 + $0x12d0] sm:$0xff] }
 0x2dd   :  { %7248 = vmatpush1.bf16.msra.mxu0 %v9390_v6  ;;  %v9486_v6 = vcombine.low %v1228_v42, %v1236_v63  ;;  %v9567_v42 = vcombine.high %v1308_v8, %v1316_v58 }
 0x2de   :  { %7412 = vmatpush1.bf16.msra.mxu1 %v9392_v9  ;;  %7249 = vmatprep.subr.bf16.mxu0 %v9407_v10  ;;  %v1245_v9 = vld [vmem:[#allocation10 + $0x1098] sm:$0xff] }
 0x2df   :  { %7413 = vmatprep.subr.bf16.mxu1 %v9409_v11  ;;  %v1253_v10 = vld [vmem:[#allocation10 + $0x10d8] sm:$0xff]  ;;  %v9488_v11 = vcombine.low %v1229_v53, %v1237_v0  ;;  %v1324_v53 = vld [vmem:[#allocation10 + $0x1310] sm:$0xff] }
 0x2e0   :  { %v9505_v19 = vcombine.high %v1245_v9, %v1253_v10  ;;  %v1332_v0 = vld [vmem:[#allocation10 + $0x1350] sm:$0xff] }
 0x2e1   :  { %7250 = vmatpush1.bf16.msra.mxu0 %v9406_v25  ;;  %v1261_v25 = vld [vmem:[#allocation10 + $0x1118] sm:$0xff] }
 0x2e2   :  { %7414 = vmatpush1.bf16.msra.mxu1 %v9408_v17  ;;  %7251 = vmatprep.subr.bf16.mxu0 %v9423_v28  ;;  %v1269_v17 = vld [vmem:[#allocation10 + $0x1158] sm:$0xff]  ;;  %v9502_v28 = vcombine.low %v1244_v5, %v1252_v62  ;;  %v9583_v5 = vcombine.high %v1324_v53, %v1332_v0 }
 0x2e3   :  { %7415 = vmatprep.subr.bf16.mxu1 %v9425_v18  ;;  %v9504_v18 = vcombine.low %v1245_v9, %v1253_v10  ;;  %v9521_v30 = vcombine.high %v1261_v25, %v1269_v17  ;;  %v1348_v9 = vld [vmem:[#allocation10 + $0x13d0] sm:$0xff]  ;;  %v1341_v10 = vld [vmem:[#allocation10 + $0x1398] sm:$0xff] }
 0x2e5   :  { %7252 = vmatpush1.bf16.msra.mxu0 %v9422_v39  ;;  %v1277_v39 = vld [vmem:[#allocation10 + $0x1198] sm:$0xff] }
 0x2e6   :  { %7416 = vmatpush1.bf16.msra.mxu1 %v9424_v36  ;;  %7253 = vmatprep.subr.bf16.mxu0 %v9439_v38  ;;  %v1285_v36 = vld [vmem:[#allocation10 + $0x11d8] sm:$0xff]  ;;  %v9518_v38 = vcombine.low %v1260_v14, %v1268_v15 }
 0x2e7   :  { %7417 = vmatprep.subr.bf16.mxu1 %v9441_v40  ;;  %v9520_v40 = vcombine.low %v1261_v25, %v1269_v17  ;;  %v9537_v7 = vcombine.high %v1277_v39, %v1285_v36  ;;  %v1356_v25 = vld [vmem:[#allocation10 + $0x1410] sm:$0xff] }
 0x2e8   :  { %v1364_v17 = vld [vmem:[#allocation10 + $0x1450] sm:$0xff] }
 0x2e9   :  { %7254 = vmatpush1.bf16.msra.mxu0 %v9438_v46  ;;  %v1293_v46 = vld [vmem:[#allocation10 + $0x1218] sm:$0xff] }
 0x2ea   :  { %7418 = vmatpush1.bf16.msra.mxu1 %v9440_v48  ;;  %7255 = vmatprep.subr.bf16.mxu0 %v9455_v51  ;;  %v1301_v48 = vld [vmem:[#allocation10 + $0x1258] sm:$0xff]  ;;  %v9534_v51 = vcombine.low %v1276_v34, %v1284_v35  ;;  %v9615_v34 = vcombine.high %v1356_v25, %v1364_v17 }
 0x2eb   :  { %7419 = vmatprep.subr.bf16.mxu1 %v9457_v31  ;;  %v9536_v31 = vcombine.low %v1277_v39, %v1285_v36  ;;  %v9553_v56 = vcombine.high %v1293_v46, %v1301_v48  ;;  %v1372_v39 = vld [vmem:[#allocation10 + $0x1490] sm:$0xff] }
 0x2ec   :  { %v1380_v36 = vld [vmem:[#allocation10 + $0x14d0] sm:$0xff] }
 0x2ed   :  { %7256 = vmatpush1.bf16.msra.mxu0 %v9454_v60  ;;  %v1309_v60 = vld [vmem:[#allocation10 + $0x1298] sm:$0xff] }
 0x2ee   :  { %7420 = vmatpush1.bf16.msra.mxu1 %v9456_v61  ;;  %7257 = vmatprep.subr.bf16.mxu0 %v9471_v44  ;;  %v1317_v61 = vld [vmem:[#allocation10 + $0x12d8] sm:$0xff]  ;;  %v9550_v44 = vcombine.low %v1292_v33, %v1300_v43  ;;  %v9631_v33 = vcombine.high %v1372_v39, %v1380_v36 }
 0x2ef   :  { %7421 = vmatprep.subr.bf16.mxu1 %v9473_v29  ;;  %v9552_v29 = vcombine.low %v1293_v46, %v1301_v48  ;;  %v9569_v63 = vcombine.high %v1309_v60, %v1317_v61  ;;  %v1388_v46 = vld [vmem:[#allocation10 + $0x1510] sm:$0xff] }
 0x2f0   :  { %v1396_v48 = vld [vmem:[#allocation10 + $0x1550] sm:$0xff] }
 0x2f1   :  { %7258 = vmatpush1.bf16.msra.mxu0 %v9470_v57  ;;  %v1325_v57 = vld [vmem:[#allocation10 + $0x1318] sm:$0xff] }
 0x2f2   :  { %7422 = vmatpush1.bf16.msra.mxu1 %v9472_v1  ;;  %7268 = vmatprep.subr.bf16.mxu0 %v9487_v45  ;;  %v1333_v1 = vld [vmem:[#allocation10 + $0x1358] sm:$0xff]  ;;  %v9566_v45 = vcombine.low %v1308_v8, %v1316_v58  ;;  %v9647_v8 = vcombine.high %v1388_v46, %v1396_v48 }
 0x2f3   :  { %7432 = vmatprep.subr.bf16.mxu1 %v9489_v3  ;;  %v9568_v3 = vcombine.low %v1309_v60, %v1317_v61  ;;  %v9585_v62 = vcombine.high %v1325_v57, %v1333_v1  ;;  %v9584_v14 = vcombine.low %v1325_v57, %v1333_v1  ;;  %v1404_v60 = vld [vmem:[#allocation10 + $0x1590] sm:$0xff] }
 0x2f4   :  { %7260 = vmatmul.mubr.bf16.vlgmr.msra.gmra.mrb[12].mxu0 %v10669_v47  ;;  %v1412_v61 = vld [vmem:[#allocation10 + $0x15d0] sm:$0xff] }
 0x2f5   :  { %7424 = vmatmul.mubr.bf16.vlgmr.msra.gmra.mrb[12].mxu1 %v10669_v47  ;;  %7269 = vmatpush1.bf16.msra.mxu0 %v9486_v6  ;;  %v1340_v6 = vld [vmem:[#allocation10 + $0x1390] sm:$0xff] }
 0x2f6   :  { %7300 = vmatprep.mubr.bf16.mxu0 %v10671_v52  ;;  %7433 = vmatpush1.bf16.msra.mxu1 %v9488_v11  ;;  %v1349_v11 = vld [vmem:[#allocation10 + $0x13d8] sm:$0xff]  ;;  %v9599_v15 = vcombine.high %v1340_v6, %v1348_v9  ;;  %v1420_v57 = vld [vmem:[#allocation10 + $0x1610] sm:$0xff] }
 0x2f7   :  { %7464 = vmatprep.mubr.bf16.mxu1 %v10671_v52  ;;  %7270 = vmatprep.subr.bf16.mxu0 %v9503_v12  ;;  %v9582_v12 = vcombine.low %v1324_v53, %v1332_v0  ;;  %v9663_v53 = vcombine.high %v1404_v60, %v1412_v61  ;;  %v1428_v1 = vld [vmem:[#allocation10 + $0x1650] sm:$0xff] }
 0x2f8   :  { %7434 = vmatprep.subr.bf16.mxu1 %v9505_v19  ;;  %v9601_v19 = vcombine.high %v1341_v10, %v1349_v11 }
 0x2f9   :  { %7271 = vmatpush1.bf16.msra.mxu0 %v9502_v28  ;;  %v1357_v28 = vld [vmem:[#allocation10 + $0x1418] sm:$0xff] }
 0x2fa   :  { %7435 = vmatpush1.bf16.msra.mxu1 %v9504_v18  ;;  %7272 = vmatprep.subr.bf16.mxu0 %v9519_v22  ;;  %v1365_v18 = vld [vmem:[#allocation10 + $0x1458] sm:$0xff]  ;;  %v9598_v22 = vcombine.low %v1340_v6, %v1348_v9  ;;  %v9679_v6 = vcombine.high %v1420_v57, %v1428_v1 }
 0x2fb   :  { %7436 = vmatprep.subr.bf16.mxu1 %v9521_v30  ;;  %v9600_v30 = vcombine.low %v1341_v10, %v1349_v11  ;;  %v9617_v35 = vcombine.high %v1357_v28, %v1365_v18  ;;  %v1436_v10 = vld [vmem:[#allocation10 + $0x1690] sm:$0xff] }
 0x2fc   :  { %v1444_v11 = vld [vmem:[#allocation10 + $0x16d0] sm:$0xff] }
 0x2fd   :  { %7273 = vmatpush1.bf16.msra.mxu0 %v9518_v38  ;;  %v1373_v38 = vld [vmem:[#allocation10 + $0x1498] sm:$0xff] }
 0x2fe   :  { %7437 = vmatpush1.bf16.msra.mxu1 %v9520_v40  ;;  %7274 = vmatprep.subr.bf16.mxu0 %v9535_v32  ;;  %v1381_v40 = vld [vmem:[#allocation10 + $0x14d8] sm:$0xff]  ;;  %v9614_v32 = vcombine.low %v1356_v25, %v1364_v17  ;;  %v9695_v25 = vcombine.high %v1436_v10, %v1444_v11 }
 0x2ff   :  { %7438 = vmatprep.subr.bf16.mxu1 %v9537_v7  ;;  %v9616_v7 = vcombine.low %v1357_v28, %v1365_v18  ;;  %v9633_v43 = vcombine.high %v1373_v38, %v1381_v40  ;;  %v1452_v28 = vld [vmem:[#allocation10 + $0x1710] sm:$0xff] }
 0x300   :  { %v1460_v18 = vld [vmem:[#allocation10 + $0x1750] sm:$0xff] }
 0x301   :  { %7275 = vmatpush1.bf16.msra.mxu0 %v9534_v51  ;;  %v1389_v51 = vld [vmem:[#allocation10 + $0x1518] sm:$0xff] }
 0x302   :  { %7439 = vmatpush1.bf16.msra.mxu1 %v9536_v31  ;;  %7276 = vmatprep.subr.bf16.mxu0 %v9551_v54  ;;  %v1397_v31 = vld [vmem:[#allocation10 + $0x1558] sm:$0xff]  ;;  %v9630_v54 = vcombine.low %v1372_v39, %v1380_v36  ;;  %v9711_v39 = vcombine.high %v1452_v28, %v1460_v18 }
 0x303   :  { %7440 = vmatprep.subr.bf16.mxu1 %v9553_v56  ;;  %v9632_v56 = vcombine.low %v1373_v38, %v1381_v40  ;;  %v9649_v58 = vcombine.high %v1389_v51, %v1397_v31  ;;  %v1468_v38 = vld [vmem:[#allocation10 + $0x1790] sm:$0xff] }
 0x304   :  { %v1476_v40 = vld [vmem:[#allocation10 + $0x17d0] sm:$0xff] }
 0x305   :  { %7277 = vmatpush1.bf16.msra.mxu0 %v9550_v44  ;;  %v1405_v44 = vld [vmem:[#allocation10 + $0x1598] sm:$0xff] }
 0x306   :  { %7441 = vmatpush1.bf16.msra.mxu1 %v9552_v29  ;;  %7278 = vmatprep.subr.bf16.mxu0 %v9567_v42  ;;  %v1413_v29 = vld [vmem:[#allocation10 + $0x15d8] sm:$0xff]  ;;  %v9646_v42 = vcombine.low %v1388_v46, %v1396_v48  ;;  %v9727_v46 = vcombine.high %v1468_v38, %v1476_v40 }
 0x307   :  { %7442 = vmatprep.subr.bf16.mxu1 %v9569_v63  ;;  %v9648_v63 = vcombine.low %v1389_v51, %v1397_v31  ;;  %v9665_v0 = vcombine.high %v1405_v44, %v1413_v29  ;;  %v1484_v51 = vld [vmem:[#allocation10 + $0x1810] sm:$0xff] }
 0x308   :  { %v1492_v31 = vld [vmem:[#allocation10 + $0x1850] sm:$0xff] }
 0x309   :  { %7279 = vmatpush1.bf16.msra.mxu0 %v9566_v45  ;;  %v1421_v45 = vld [vmem:[#allocation10 + $0x1618] sm:$0xff] }
 0x30a   :  { %7443 = vmatpush1.bf16.msra.mxu1 %v9568_v3  ;;  %7280 = vmatprep.subr.bf16.mxu0 %v9583_v5  ;;  %v1429_v3 = vld [vmem:[#allocation10 + $0x1658] sm:$0xff]  ;;  %v9662_v5 = vcombine.low %v1404_v60, %v1412_v61  ;;  %v9743_v60 = vcombine.high %v1484_v51, %v1492_v31 }
 0x30b   :  { %7444 = vmatprep.subr.bf16.mxu1 %v9585_v62  ;;  %v9664_v62 = vcombine.low %v1405_v44, %v1413_v29  ;;  %v9681_v9 = vcombine.high %v1421_v45, %v1429_v3  ;;  %v1500_v44 = vld [vmem:[#allocation10 + $0x1890] sm:$0xff] }
 0x30c   :  { %v1508_v29 = vld [vmem:[#allocation10 + $0x18d0] sm:$0xff] }
 0x30d   :  { %7281 = vmatpush1.bf16.msra.mxu0 %v9582_v12  ;;  %v1437_v12 = vld [vmem:[#allocation10 + $0x1698] sm:$0xff] }
 0x30e   :  { %7445 = vmatpush1.bf16.msra.mxu1 %v9584_v14  ;;  %7282 = vmatprep.subr.bf16.mxu0 %v9599_v15  ;;  %v1445_v14 = vld [vmem:[#allocation10 + $0x16d8] sm:$0xff]  ;;  %v9678_v15 = vcombine.low %v1420_v57, %v1428_v1  ;;  %v9759_v57 = vcombine.high %v1500_v44, %v1508_v29  ;;  %v1516_v1 = vld [vmem:[#allocation10 + $0x1910] sm:$0xff] }
 0x30f   :  { %7446 = vmatprep.subr.bf16.mxu1 %v9601_v19  ;;  %v9680_v19 = vcombine.low %v1421_v45, %v1429_v3  ;;  %v9697_v17 = vcombine.high %v1437_v12, %v1445_v14  ;;  %v1524_v45 = vld [vmem:[#allocation10 + $0x1950] sm:$0xff] }
 0x311   :  { %7283 = vmatpush1.bf16.msra.mxu0 %v9598_v22  ;;  %v1453_v22 = vld [vmem:[#allocation10 + $0x1718] sm:$0xff] }
 0x312   :  { %7447 = vmatpush1.bf16.msra.mxu1 %v9600_v30  ;;  %7284 = vmatprep.subr.bf16.mxu0 %v9615_v34  ;;  %v1461_v30 = vld [vmem:[#allocation10 + $0x1758] sm:$0xff]  ;;  %v9694_v34 = vcombine.low %v1436_v10, %v1444_v11  ;;  %v9775_v10 = vcombine.high %v1516_v1, %v1524_v45 }
 0x313   :  { %7448 = vmatprep.subr.bf16.mxu1 %v9617_v35  ;;  %v9696_v35 = vcombine.low %v1437_v12, %v1445_v14  ;;  %v9713_v36 = vcombine.high %v1453_v22, %v1461_v30  ;;  %v1532_v12 = vld [vmem:[#allocation10 + $0x1990] sm:$0xff] }
 0x314   :  { %v1540_v14 = vld [vmem:[#allocation10 + $0x19d0] sm:$0xff] }
 0x315   :  { %7285 = vmatpush1.bf16.msra.mxu0 %v9614_v32  ;;  %v1469_v32 = vld [vmem:[#allocation10 + $0x1798] sm:$0xff] }
 0x316   :  { %7449 = vmatpush1.bf16.msra.mxu1 %v9616_v7  ;;  %7286 = vmatprep.subr.bf16.mxu0 %v9631_v33  ;;  %v1477_v7 = vld [vmem:[#allocation10 + $0x17d8] sm:$0xff]  ;;  %v9710_v33 = vcombine.low %v1452_v28, %v1460_v18  ;;  %v9791_v28 = vcombine.high %v1532_v12, %v1540_v14 }
 0x317   :  { %7450 = vmatprep.subr.bf16.mxu1 %v9633_v43  ;;  %v9712_v43 = vcombine.low %v1453_v22, %v1461_v30  ;;  %v9729_v48 = vcombine.high %v1469_v32, %v1477_v7  ;;  %v1548_v22 = vld [vmem:[#allocation10 + $0x1a10] sm:$0xff] }
 0x318   :  { %v1556_v30 = vld [vmem:[#allocation10 + $0x1a50] sm:$0xff] }
 0x319   :  { %7287 = vmatpush1.bf16.msra.mxu0 %v9630_v54  ;;  %v1485_v54 = vld [vmem:[#allocation10 + $0x1818] sm:$0xff] }
 0x31a   :  { %7451 = vmatpush1.bf16.msra.mxu1 %v9632_v56  ;;  %7288 = vmatprep.subr.bf16.mxu0 %v9647_v8  ;;  %v1493_v56 = vld [vmem:[#allocation10 + $0x1858] sm:$0xff]  ;;  %v9726_v8 = vcombine.low %v1468_v38, %v1476_v40  ;;  %v9807_v38 = vcombine.high %v1548_v22, %v1556_v30 }
 0x31b   :  { %7452 = vmatprep.subr.bf16.mxu1 %v9649_v58  ;;  %v9728_v58 = vcombine.low %v1469_v32, %v1477_v7  ;;  %v9745_v61 = vcombine.high %v1485_v54, %v1493_v56  ;;  %v1564_v32 = vld [vmem:[#allocation10 + $0x1a90] sm:$0xff] }
 0x31c   :  { %v1572_v7 = vld [vmem:[#allocation10 + $0x1ad0] sm:$0xff] }
 0x31d   :  { %7289 = vmatpush1.bf16.msra.mxu0 %v9646_v42  ;;  %v9742_v42 = vcombine.low %v1484_v51, %v1492_v31  ;;  %v9823_v51 = vcombine.high %v1564_v32, %v1572_v7 }
 0x31e   :  { %7453 = vmatpush1.bf16.msra.mxu1 %v9648_v63  ;;  %7290 = vmatprep.subr.bf16.mxu0 %v9663_v53  ;;  %v1501_v63 = vld [vmem:[#allocation10 + $0x1898] sm:$0xff] }
 0x31f   :  { %7454 = vmatprep.subr.bf16.mxu1 %v9665_v0  ;;  %v1509_v53 = vld [vmem:[#allocation10 + $0x18d8] sm:$0xff]  ;;  %v9744_v0 = vcombine.low %v1485_v54, %v1493_v56  ;;  %v1580_v54 = vld [vmem:[#allocation10 + $0x1b10] sm:$0xff] }
 0x320   :  { %v9761_v3 = vcombine.high %v1501_v63, %v1509_v53  ;;  %v1588_v56 = vld [vmem:[#allocation10 + $0x1b50] sm:$0xff] }
 0x321   :  { %7291 = vmatpush1.bf16.msra.mxu0 %v9662_v5  ;;  %v1517_v5 = vld [vmem:[#allocation10 + $0x1918] sm:$0xff] }
 0x322   :  { %7455 = vmatpush1.bf16.msra.mxu1 %v9664_v62  ;;  %7292 = vmatprep.subr.bf16.mxu0 %v9679_v6  ;;  %v1525_v62 = vld [vmem:[#allocation10 + $0x1958] sm:$0xff]  ;;  %v9758_v6 = vcombine.low %v1500_v44, %v1508_v29  ;;  %v9839_v44 = vcombine.high %v1580_v54, %v1588_v56 }
 0x323   :  { %7456 = vmatprep.subr.bf16.mxu1 %v9681_v9  ;;  %v9760_v9 = vcombine.low %v1501_v63, %v1509_v53  ;;  %v9777_v11 = vcombine.high %v1517_v5, %v1525_v62  ;;  %v1596_v63 = vld [vmem:[#allocation10 + $0x1b90] sm:$0xff] }
 0x324   :  { %v1604_v53 = vld [vmem:[#allocation10 + $0x1bd0] sm:$0xff] }
 0x325   :  { %7293 = vmatpush1.bf16.msra.mxu0 %v9678_v15  ;;  %v1533_v15 = vld [vmem:[#allocation10 + $0x1998] sm:$0xff] }
 0x326   :  { %7457 = vmatpush1.bf16.msra.mxu1 %v9680_v19  ;;  %7294 = vmatprep.subr.bf16.mxu0 %v9695_v25  ;;  %v1541_v19 = vld [vmem:[#allocation10 + $0x19d8] sm:$0xff]  ;;  %v9774_v25 = vcombine.low %v1516_v1, %v1524_v45  ;;  %v9838_v45 = vcombine.low %v1580_v54, %v1588_v56 }
 0x327   :  { %7458 = vmatprep.subr.bf16.mxu1 %v9697_v17  ;;  %v9776_v17 = vcombine.low %v1517_v5, %v1525_v62  ;;  %v9793_v18 = vcombine.high %v1533_v15, %v1541_v19  ;;  %v1605_v5 = vld [vmem:[#allocation10 + $0x1bd8] sm:$0xff] }
 0x329   :  { %7295 = vmatpush1.bf16.msra.mxu0 %v9694_v34  ;;  %v1549_v34 = vld [vmem:[#allocation10 + $0x1a18] sm:$0xff] }
 0x32a   :  { %7459 = vmatpush1.bf16.msra.mxu1 %v9696_v35  ;;  %7296 = vmatprep.subr.bf16.mxu0 %v9711_v39  ;;  %v1557_v35 = vld [vmem:[#allocation10 + $0x1a58] sm:$0xff]  ;;  %v9790_v39 = vcombine.low %v1532_v12, %v1540_v14 }
 0x32b   :  { %7460 = vmatprep.subr.bf16.mxu1 %v9713_v36  ;;  %v9792_v36 = vcombine.low %v1533_v15, %v1541_v19  ;;  %v9809_v40 = vcombine.high %v1549_v34, %v1557_v35 }
 0x32d   :  { %7297 = vmatpush1.bf16.msra.mxu0 %v9710_v33  ;;  %v1565_v33 = vld [vmem:[#allocation10 + $0x1a98] sm:$0xff] }
 0x32e   :  { %7461 = vmatpush1.bf16.msra.mxu1 %v9712_v43  ;;  %7298 = vmatprep.subr.bf16.mxu0 %v9727_v46  ;;  %v1573_v43 = vld [vmem:[#allocation10 + $0x1ad8] sm:$0xff]  ;;  %v9806_v46 = vcombine.low %v1548_v22, %v1556_v30 }
 0x32f   :  { %7462 = vmatprep.subr.bf16.mxu1 %v9729_v48  ;;  %v9808_v48 = vcombine.low %v1549_v34, %v1557_v35  ;;  %v9825_v31 = vcombine.high %v1565_v33, %v1573_v43  ;;  %v1612_v35 = vld [vmem:[#allocation10 + $0x1c10] sm:$0xff] }
 0x331   :  { %7299 = vmatpush1.bf16.msra.mxu0 %v9726_v8  ;;  %v1581_v8 = vld [vmem:[#allocation10 + $0x1b18] sm:$0xff] }
 0x332   :  { %7463 = vmatpush1.bf16.msra.mxu1 %v9728_v58  ;;  %7309 = vmatprep.subr.bf16.mxu0 %v9743_v60  ;;  %v1589_v58 = vld [vmem:[#allocation10 + $0x1b58] sm:$0xff]  ;;  %v9822_v60 = vcombine.low %v1564_v32, %v1572_v7 }
 0x333   :  { %7473 = vmatprep.subr.bf16.mxu1 %v9745_v61  ;;  %v9824_v61 = vcombine.low %v1565_v33, %v1573_v43  ;;  %v9840_v12 = vcombine.low %v1581_v8, %v1589_v58  ;;  %v1621_v32 = vld [vmem:[#allocation10 + $0x1c58] sm:$0xff]  ;;  %v9854_v43 = vcombine.low %v1596_v63, %v1604_v53 }
 0x334   :  { %7301 = vmatmul.mubr.bf16.vlgmr.msra.gmra.mrb[12].mxu0 %v10679_v59 }
 0x335   :  { %7465 = vmatmul.mubr.bf16.vlgmr.msra.gmra.mrb[12].mxu1 %v10679_v59  ;;  %7310 = vmatpush1.bf16.msra.mxu0 %v9742_v42  ;;  %v9841_v42 = vcombine.high %v1581_v8, %v1589_v58  ;;  %v1628_v58 = vld [vmem:[#allocation10 + $0x1c90] sm:$0xff] }
 0x336   :  { %7341 = vmatprep.mubr.bf16.mxu0 %v10681_v2  ;;  %7474 = vmatpush1.bf16.msra.mxu1 %v9744_v0 }
 0x337   :  { %7505 = vmatprep.mubr.bf16.mxu1 %v10681_v2  ;;  %7311 = vmatprep.subr.bf16.mxu0 %v9759_v57 }
 0x338   :  { %7475 = vmatprep.subr.bf16.mxu1 %v9761_v3  ;;  %v1597_v3 = vld [vmem:[#allocation10 + $0x1b98] sm:$0xff] }
 0x339   :  { %7312 = vmatpush1.bf16.msra.mxu0 %v9758_v6  ;;  %v9857_v34 = vcombine.high %v1597_v3, %v1605_v5 }
 0x33a   :  { %7476 = vmatpush1.bf16.msra.mxu1 %v9760_v9  ;;  %7313 = vmatprep.subr.bf16.mxu0 %v9775_v10 }
 0x33b   :  { %7477 = vmatprep.subr.bf16.mxu1 %v9777_v11 }
 0x33d   :  { %7314 = vmatpush1.bf16.msra.mxu0 %v9774_v25 }
 0x33e   :  { %7478 = vmatpush1.bf16.msra.mxu1 %v9776_v17  ;;  %7315 = vmatprep.subr.bf16.mxu0 %v9791_v28  ;;  %v9855_v28 = vcombine.high %v1596_v63, %v1604_v53 }
 0x33f   :  { %7479 = vmatprep.subr.bf16.mxu1 %v9793_v18 }
 0x341   :  { %7316 = vmatpush1.bf16.msra.mxu0 %v9790_v39  ;;  %v1620_v39 = vld [vmem:[#allocation10 + $0x1c50] sm:$0xff] }
 0x342   :  { %7480 = vmatpush1.bf16.msra.mxu1 %v9792_v36  ;;  %7317 = vmatprep.subr.bf16.mxu0 %v9807_v38  ;;  %v9870_v63 = vcombine.low %v1612_v35, %v1620_v39 }
 0x343   :  { %7481 = vmatprep.subr.bf16.mxu1 %v9809_v40  ;;  %v1613_v40 = vld [vmem:[#allocation10 + $0x1c18] sm:$0xff] }
 0x344   :  { %v9873_v8 = vcombine.high %v1613_v40, %v1621_v32 }
 0x345   :  { %7318 = vmatpush1.bf16.msra.mxu0 %v9806_v46 }
 0x346   :  { %7482 = vmatpush1.bf16.msra.mxu1 %v9808_v48  ;;  %7319 = vmatprep.subr.bf16.mxu0 %v9823_v51  ;;  %v9856_v51 = vcombine.low %v1597_v3, %v1605_v5  ;;  %v9872_v3 = vcombine.low %v1613_v40, %v1621_v32 }
 0x347   :  { %v10706_v29 = vpop.f32.mrb[8].mxu0  ;;  %7483 = vmatprep.subr.bf16.mxu1 %v9825_v31  ;;  %v9871_v31 = vcombine.high %v1612_v35, %v1620_v39 }
 0x348   :  { %v8170_v0 = vsel %vm378_vm1, %v10706_v29, 0.0  ;;  %v10710_v57 = vpop.f32.mrb[8].mxu1  ;;  %v10712_v1 = vpop.f32.mrb[9].mxu0 }
 0x349   :  { %v8171_v62 = vrot.slane %v8170_v0, 4  ;;  %v8184_v6 = vsel %vm378_vm1, %v10710_v57, 0.0  ;;  %v8177_v9 = vsel %vm378_vm1, %v10712_v1, 0.0  ;;  %v10718_v10 = vpop.f32.mrb[9].mxu1  ;;  %v7019_v11 = vpop.f32.mrb[10].mxu0  ;;  %7320 = vmatpush1.bf16.msra.mxu0 %v9822_v60  ;;  %v1636_v60 = vld [vmem:[#allocation10 + $0x1cd0] sm:$0xff] }
 0x34a   :  { %v8185_v14 = vrot.slane %v8184_v6, 4  ;;  %v8178_v15 = vrot.slane %v8177_v9, 4  ;;  %v8191_v19 = vsel %vm378_vm1, %v10718_v10, 0.0  ;;  %v7183_v25 = vpop.f32.mrb[10].mxu1  ;;  %7484 = vmatpush1.bf16.msra.mxu1 %v9824_v61  ;;  %v7020_v17 = vpop.f32.mrb[11].mxu0  ;;  %7321 = vmatprep.subr.bf16.mxu0 %v9839_v44  ;;  %v9887_v5 = vcombine.high %v1628_v58, %v1636_v60 }
 0x34b   :  { %v8172_v18 = vadd.f32 %v8171_v62, %v8170_v0  ;;  %v8192_v22 = vrot.slane %v8191_v19, 4  ;;  %v7184_v30 = vpop.f32.mrb[11].mxu1  ;;  %7485 = vmatprep.subr.bf16.mxu1 %v9841_v42  ;;  %v1629_v42 = vld [vmem:[#allocation10 + $0x1c98] sm:$0xff] }
 0x34c   :  { %v8186_v36 = vadd.f32 %v8185_v14, %v8184_v6  ;;  %v8179_v38 = vadd.f32 %v8178_v15, %v8177_v9  ;;  %v1637_v0 = vld [vmem:[#allocation10 + $0x1cd8] sm:$0xff]  ;;  %v1644_v14 = vld [vmem:[#allocation10 + $0x1d10] sm:$0xff]  ;;  %v9886_v30 = vcombine.low %v1628_v58, %v1636_v60 }
 0x34d   :  { %v8173_v7 = vrot.slane %v8172_v18, 2  ;;  %v8193_v33 = vadd.f32 %v8192_v22, %v8191_v19  ;;  %7322 = vmatpush1.bf16.msra.mxu0 %v9838_v45  ;;  %v1652_v15 = vld [vmem:[#allocation10 + $0x1d50] sm:$0xff]  ;;  %v1645_v17 = vld [vmem:[#allocation10 + $0x1d18] sm:$0xff]  ;;  %v9888_v39 = vcombine.low %v1629_v42, %v1637_v0 }
 0x34e   :  { %v8187_v46 = vrot.slane %v8186_v36, 2  ;;  %v8180_v48 = vrot.slane %v8179_v38, 2  ;;  %7486 = vmatpush1.bf16.msra.mxu1 %v9840_v12  ;;  %7323 = vmatprep.subr.bf16.mxu0 %v9855_v28  ;;  %v9889_v12 = vcombine.high %v1629_v42, %v1637_v0  ;;  %v1653_v28 = vld [vmem:[#allocation10 + $0x1d58] sm:$0xff] }
 0x34f   :  { %v8174_v54 = vadd.f32 %v8173_v7, %v8172_v18  ;;  %v8194_v56 = vrot.slane %v8193_v33, 2  ;;  %7487 = vmatprep.subr.bf16.mxu1 %v9857_v34  ;;  %v9905_v32 = vcombine.high %v1645_v17, %v1653_v28  ;;  %v1660_v7 = vld [vmem:[#allocation10 + $0x1d90] sm:$0xff] }
 0x350   :  { %v8188_v61 = vadd.f32 %v8187_v46, %v8186_v36  ;;  %v8181_v44 = vadd.f32 %v8180_v48, %v8179_v38  ;;  %v9903_v36 = vcombine.high %v1644_v14, %v1652_v15  ;;  %v1661_v48 = vld [vmem:[#allocation10 + $0x1d98] sm:$0xff] }
 0x351   :  { %v8175_v62 = vrot.slane %v8174_v54, 1  ;;  %v8195_v6 = vadd.f32 %v8194_v56, %v8193_v33  ;;  %7324 = vmatpush1.bf16.msra.mxu0 %v9854_v43  ;;  %v1668_v33 = vld [vmem:[#allocation10 + $0x1dd0] sm:$0xff]  ;;  %v9904_v56 = vcombine.low %v1645_v17, %v1653_v28 }
 0x352   :  { %v8189_v53 = vrot.slane %v8188_v61, 1  ;;  %v8182_v45 = vrot.slane %v8181_v44, 1  ;;  %7488 = vmatpush1.bf16.msra.mxu1 %v9856_v51  ;;  %7325 = vmatprep.subr.bf16.mxu0 %v9871_v31  ;;  %v1669_v51 = vld [vmem:[#allocation10 + $0x1dd8] sm:$0xff]  ;;  %v1692_v17 = vld [vmem:[#allocation10 + $0x1e90] sm:$0xff] }
 0x353   :  { %v8176_v9 = vadd.f32 %v8175_v62, %v8174_v54  ;;  %v8196_v11 = vrot.slane %v8195_v6, 1  ;;  %7489 = vmatprep.subr.bf16.mxu1 %v9873_v8  ;;  %v1700_v28 = vld [vmem:[#allocation10 + $0x1ed0] sm:$0xff] }
 0x354   :  { %v8190_v19 = vadd.f32 %v8189_v53, %v8188_v61  ;;  %v8183_v25 = vadd.f32 %v8182_v45, %v8181_v44  ;;  %v1676_v61 = vld [vmem:[#allocation10 + $0x1e10] sm:$0xff] }
 0x355   :  { %v8282_v18 = vmul.f32 0.25, %v8176_v9  ;;  %v8197_v22 = vadd.f32 %v8196_v11, %v8195_v6  ;;  %7326 = vmatpush1.bf16.msra.mxu0 %v9870_v63  ;;  %v1684_v44 = vld [vmem:[#allocation10 + $0x1e50] sm:$0xff]  ;;  %v1677_v6 = vld [vmem:[#allocation10 + $0x1e18] sm:$0xff] }
 0x356   :  { %v8284_v34 = vmul.f32 0.25, %v8190_v19  ;;  %v8283_v35 = vmul.f32 0.25, %v8183_v25  ;;  %7490 = vmatpush1.bf16.msra.mxu1 %v9872_v3  ;;  %7327 = vmatprep.subr.bf16.mxu0 %v9887_v5  ;;  %v1685_v63 = vld [vmem:[#allocation10 + $0x1e58] sm:$0xff]  ;;  %v9918_v5 = vcombine.low %v1660_v7, %v1668_v33 }
 0x357   :  { %v10723_v38 = vsub.f32 %v10706_v29, %v8282_v18  ;;  %v8285_v40 = vmul.f32 0.25, %v8197_v22  ;;  %7491 = vmatprep.subr.bf16.mxu1 %v9889_v12  ;;  %v9902_v29 = vcombine.low %v1644_v14, %v1652_v15  ;;  %v9920_v12 = vcombine.low %v1661_v48, %v1669_v51 }
 0x358   :  { %v10726_v43 = vsub.f32 %v10710_v57, %v8284_v34  ;;  %v10729_v46 = vsub.f32 %v10712_v1, %v8283_v35  ;;  %v9919_v1 = vcombine.high %v1660_v7, %v1668_v33  ;;  %v9935_v14 = vcombine.high %v1676_v61, %v1684_v44  ;;  %v1701_v34 = vld [vmem:[#allocation10 + $0x1ed8] sm:$0xff] }
 0x359   :  { %v8314_v31 = vmul.f32 %v10723_v38, %v10723_v38  ;;  %v10734_v54 = vsub.f32 %v10718_v10, %v8285_v40  ;;  %7328 = vmatpush1.bf16.msra.mxu0 %v9886_v30  ;;  %v9921_v10 = vcombine.high %v1661_v48, %v1669_v51  ;;  %v9937_v25 = vcombine.high %v1677_v6, %v1685_v63  ;;  %v1693_v30 = vld [vmem:[#allocation10 + $0x1e98] sm:$0xff] }
 0x35a   :  { %v8316_v8 = vmul.f32 %v10726_v43, %v10726_v43  ;;  %v8315_v57 = vmul.f32 %v10729_v46, %v10729_v46  ;;  %7492 = vmatpush1.bf16.msra.mxu1 %v9888_v39  ;;  %7329 = vmatprep.subr.bf16.mxu0 %v9903_v36  ;;  %v9934_v36 = vcombine.low %v1676_v61, %v1684_v44 }
 0x35b   :  { %v8330_v58 = vsel %vm378_vm1, %v8314_v31, 0.0  ;;  %v8317_v60 = vmul.f32 %v10734_v54, %v10734_v54  ;;  %7493 = vmatprep.subr.bf16.mxu1 %v9905_v32  ;;  %v9936_v7 = vcombine.low %v1677_v6, %v1685_v63  ;;  %v9951_v33 = vcombine.high %v1692_v17, %v1700_v28 }
 0x35c   :  { %v8331_v42 = vrot.slane %v8330_v58, 4  ;;  %v8344_v0 = vsel %vm378_vm1, %v8316_v8, 0.0  ;;  %v8337_v62 = vsel %vm378_vm1, %v8315_v57, 0.0  ;;  %v9953_v31 = vcombine.high %v1693_v30, %v1701_v34 }
 0x35d   :  { %v8345_v53 = vrot.slane %v8344_v0, 4  ;;  %v8338_v45 = vrot.slane %v8337_v62, 4  ;;  %v8351_v3 = vsel %vm378_vm1, %v8317_v60, 0.0  ;;  %7330 = vmatpush1.bf16.msra.mxu0 %v9902_v29  ;;  %v1708_v29 = vld [vmem:[#allocation10 + $0x1f10] sm:$0xff]  ;;  %v9950_v61 = vcombine.low %v1692_v17, %v1700_v28 }
 0x35e   :  { %v8332_v9 = vadd.f32 %v8331_v42, %v8330_v58  ;;  %v8352_v11 = vrot.slane %v8351_v3, 4  ;;  %7494 = vmatpush1.bf16.msra.mxu1 %v9904_v56  ;;  %7331 = vmatprep.subr.bf16.mxu0 %v9919_v1  ;;  %v1716_v56 = vld [vmem:[#allocation10 + $0x1f50] sm:$0xff]  ;;  %v1709_v1 = vld [vmem:[#allocation10 + $0x1f18] sm:$0xff] }
 0x35f   :  { %v8346_v15 = vadd.f32 %v8345_v53, %v8344_v0  ;;  %v8339_v19 = vadd.f32 %v8338_v45, %v8337_v62  ;;  %7495 = vmatprep.subr.bf16.mxu1 %v9921_v10  ;;  %v1717_v58 = vld [vmem:[#allocation10 + $0x1f58] sm:$0xff]  ;;  %v9952_v0 = vcombine.low %v1693_v30, %v1701_v34  ;;  %v9967_v62 = vcombine.high %v1708_v29, %v1716_v56  ;;  %v1724_v45 = vld [vmem:[#allocation10 + $0x1f90] sm:$0xff] }
 0x360   :  { %v8333_v18 = vrot.slane %v8332_v9, 2  ;;  %v8353_v22 = vadd.f32 %v8352_v11, %v8351_v3  ;;  %v9969_v53 = vcombine.high %v1709_v1, %v1717_v58  ;;  %v1732_v3 = vld [vmem:[#allocation10 + $0x1fd0] sm:$0xff]  ;;  %v1725_v11 = vld [vmem:[#allocation10 + $0x1f98] sm:$0xff]  ;;  %v9968_v28 = vcombine.low %v1709_v1, %v1717_v58 }
 0x361   :  { %v8347_v35 = vrot.slane %v8346_v15, 2  ;;  %v8340_v39 = vrot.slane %v8339_v19, 2  ;;  %7332 = vmatpush1.bf16.msra.mxu0 %v9918_v5 }
 0x362   :  { %v8334_v40 = vadd.f32 %v8333_v18, %v8332_v9  ;;  %v8354_v32 = vrot.slane %v8353_v22, 2  ;;  %7496 = vmatpush1.bf16.msra.mxu1 %v9920_v12  ;;  %7333 = vmatprep.subr.bf16.mxu0 %v9935_v14  ;;  %v1733_v12 = vld [vmem:[#allocation10 + $0x1fd8] sm:$0xff]  ;;  %v9983_v18 = vcombine.high %v1724_v45, %v1732_v3 }
 0x363   :  { %v8348_v48 = vadd.f32 %v8347_v35, %v8346_v15  ;;  %v8341_v51 = vadd.f32 %v8340_v39, %v8339_v19  ;;  %7497 = vmatprep.subr.bf16.mxu1 %v9937_v25  ;;  %v9966_v19 = vcombine.low %v1708_v29, %v1716_v56  ;;  %v9985_v34 = vcombine.high %v1725_v11, %v1733_v12  ;;  %v718_v35 = vld [vmem:[#allocation10 + $0x20] sm:$0xff] }
 0x364   :  { %v8335_v8 = vrot.slane %v8334_v40, 1  ;;  %v8355_v57 = vadd.f32 %v8354_v32, %v8353_v22  ;;  %v726_v39 = vld [vmem:[#allocation10 + $0x60] sm:$0xff]  ;;  %v727_v32 = vld [vmem:[#allocation10 + $0x68] sm:$0xff] }
 0x365   :  { %v8349_v60 = vrot.slane %v8348_v48, 1  ;;  %v8342_v10 = vrot.slane %v8341_v51, 1  ;;  %7334 = vmatpush1.bf16.msra.mxu0 %v9934_v36  ;;  %v742_v29 = vld [vmem:[#allocation10 + $0xe0] sm:$0xff]  ;;  %v8978_v56 = vcombine.low %v718_v35, %v726_v39 }
 0x366   :  { %v8336_v44 = vadd.f32 %v8335_v8, %v8334_v40  ;;  %v8356_v42 = vrot.slane %v8355_v57, 1  ;;  %7498 = vmatpush1.bf16.msra.mxu1 %v9936_v7  ;;  %7335 = vmatprep.subr.bf16.mxu0 %v9951_v33  ;;  %v719_v40 = vld [vmem:[#allocation10 + $0x28] sm:$0xff]  ;;  %v9982_v7 = vcombine.low %v1724_v45, %v1732_v3  ;;  %v9984_v33 = vcombine.low %v1725_v11, %v1733_v12  ;;  %v766_v3 = vld [vmem:[#allocation10 + $0x1a0] sm:$0xff] }
 0x367   :  { %v8350_v6 = vadd.f32 %v8349_v60, %v8348_v48  ;;  %v8343_v63 = vadd.f32 %v8342_v10, %v8341_v51  ;;  %7499 = vmatprep.subr.bf16.mxu1 %v9953_v31  ;;  %v8979_v48 = vcombine.high %v718_v35, %v726_v39  ;;  %v8981_v51 = vcombine.high %v719_v40, %v727_v32  ;;  %v734_v31 = vld [vmem:[#allocation10 + $0xa0] sm:$0xff]  ;;  %v735_v8 = vld [vmem:[#allocation10 + $0xa8] sm:$0xff] }
 0x368   :  { %v8442_v5 = vmul.f32 0.25, %v8336_v44  ;;  %v8357_v9 = vadd.f32 %v8356_v42, %v8355_v57  ;;  %v743_v57 = vld [vmem:[#allocation10 + $0xe8] sm:$0xff]  ;;  %v8980_v1 = vcombine.low %v719_v40, %v727_v32  ;;  %v8995_v58 = vcombine.high %v734_v31, %v742_v29  ;;  %v750_v60 = vld [vmem:[#allocation10 + $0x120] sm:$0xff] }
 0x369   :  { %v8444_v14 = vmul.f32 0.25, %v8350_v6  ;;  %v8443_v15 = vmul.f32 0.25, %v8343_v63  ;;  %7336 = vmatpush1.bf16.msra.mxu0 %v9950_v61  ;;  %v758_v10 = vld [vmem:[#allocation10 + $0x160] sm:$0xff]  ;;  %v8997_v61 = vcombine.high %v735_v8, %v743_v57  ;;  %v751_v44 = vld [vmem:[#allocation10 + $0x128] sm:$0xff]  ;;  %v8996_v6 = vcombine.low %v735_v8, %v743_v57 }
 0x36a   :  { %v8460_v25 = vadd.f32 1e-05, %v8442_v5  ;;  %v8445_v17 = vmul.f32 0.25, %v8357_v9  ;;  %7500 = vmatpush1.bf16.msra.mxu1 %v9952_v0  ;;  %7337 = vmatprep.subr.bf16.mxu0 %v9967_v62  ;;  %v759_v42 = vld [vmem:[#allocation10 + $0x168] sm:$0xff]  ;;  %v8994_v0 = vcombine.low %v734_v31, %v742_v29  ;;  %v9011_v63 = vcombine.high %v750_v60, %v758_v10  ;;  %v774_v5 = vld [vmem:[#allocation10 + $0x1e0] sm:$0xff] }
 0x36b   :  { %v8462_v22 = vadd.f32 1e-05, %v8444_v14  ;;  %v8461_v30 = vadd.f32 1e-05, %v8443_v15  ;;  %7501 = vmatprep.subr.bf16.mxu1 %v9969_v53  ;;  %v9013_v45 = vcombine.high %v751_v44, %v759_v42  ;;  %v767_v11 = vld [vmem:[#allocation10 + $0x1a8] sm:$0xff]  ;;  %v9026_v40 = vcombine.low %v766_v3, %v774_v5  ;;  %v806_v31 = vld [vmem:[#allocation10 + $0x2e0] sm:$0xff] }
 0x36c   :  { %10129 = vrsqrt.f32 %v8460_v25  ;;  %v8463_v36 = vadd.f32 1e-05, %v8445_v17  ;;  %v775_v12 = vld [vmem:[#allocation10 + $0x1e8] sm:$0xff]  ;;  %v9012_v17 = vcombine.low %v751_v44, %v759_v42 }
 0x36d   :  { %10131 = vrsqrt.f32 %v8462_v22  ;;  %7338 = vmatpush1.bf16.msra.mxu0 %v9966_v19  ;;  %v9010_v19 = vcombine.low %v750_v60, %v758_v10  ;;  %v9029_v22 = vcombine.high %v767_v11, %v775_v12  ;;  %v783_v39 = vld [vmem:[#allocation10 + $0x228] sm:$0xff]  ;;  %v814_v60 = vld [vmem:[#allocation10 + $0x320] sm:$0xff] }
 0x36e   :  { %10133 = vrsqrt.f32 %v8461_v30  ;;  %7502 = vmatpush1.bf16.msra.mxu1 %v9968_v28  ;;  %7339 = vmatprep.subr.bf16.mxu0 %v9983_v18  ;;  %v9027_v28 = vcombine.high %v766_v3, %v774_v5  ;;  %v782_v30 = vld [vmem:[#allocation10 + $0x220] sm:$0xff]  ;;  %v799_v29 = vld [vmem:[#allocation10 + $0x2a8] sm:$0xff] }
 0x36f   :  { %10135 = vrsqrt.f32 %v8463_v36  ;;  %7503 = vmatprep.subr.bf16.mxu1 %v9985_v34  ;;  %v790_v34 = vld [vmem:[#allocation10 + $0x260] sm:$0xff]  ;;  %v791_v36 = vld [vmem:[#allocation10 + $0x268] sm:$0xff] }
 0x370   :  { %v9042_v8 = vcombine.low %v782_v30, %v790_v34  ;;  %v9044_v57 = vcombine.low %v783_v39, %v791_v36  ;;  %v822_v10 = vld [vmem:[#allocation10 + $0x360] sm:$0xff]  ;;  %v823_v44 = vld [vmem:[#allocation10 + $0x368] sm:$0xff] }
 0x371   :  { %7340 = vmatpush1.bf16.msra.mxu0 %v9982_v7  ;;  %v9028_v7 = vcombine.low %v767_v11, %v775_v12  ;;  %v839_v3 = vld [vmem:[#allocation10 + $0x3e8] sm:$0xff]  ;;  %v9074_v5 = vcombine.low %v814_v60, %v822_v10 }
 0x372   :  { %7504 = vmatpush1.bf16.msra.mxu1 %v9984_v33  ;;  %7514 = vmatprep.subr.bf16.mxu0 %v8979_v48  ;;  %v9043_v33 = vcombine.high %v782_v30, %v790_v34  ;;  %v9045_v48 = vcombine.high %v783_v39, %v791_v36  ;;  %v862_v34 = vld [vmem:[#allocation10 + $0x4a0] sm:$0xff]  ;;  %v863_v36 = vld [vmem:[#allocation10 + $0x4a8] sm:$0xff] }
 0x373   :  { %7678 = vmatprep.subr.bf16.mxu1 %v8981_v51  ;;  %v798_v51 = vld [vmem:[#allocation10 + $0x2a0] sm:$0xff] }
 0x374   :  { %7342 = vmatmul.mubr.bf16.vlgmr.msra.gmra.mrb[12].mxu0 %v10688_v41  ;;  %v9058_v42 = vcombine.low %v798_v51, %v806_v31  ;;  %v870_v39 = vld [vmem:[#allocation10 + $0x4e0] sm:$0xff] }
 0x375   :  { %7506 = vmatmul.mubr.bf16.vlgmr.msra.gmra.mrb[12].mxu1 %v10688_v41  ;;  %7515 = vmatpush1.bf16.msra.mxu0 %v8978_v56  ;;  %v807_v56 = vld [vmem:[#allocation10 + $0x2e8] sm:$0xff] }
 0x376   :  { %v10130_v62 = vpop.eup %10129  ;;  %7546 = vmatprep.mubr.bf16.mxu0 %v10639_v49  ;;  %7679 = vmatpush1.bf16.msra.mxu1 %v8980_v1  ;;  %v9059_v1 = vcombine.high %v798_v51, %v806_v31  ;;  %v878_v31 = vld [vmem:[#allocation10 + $0x520] sm:$0xff] }
 0x377   :  { %v10132_v53 = vpop.eup %10131  ;;  %7710 = vmatprep.mubr.bf16.mxu1 %v10639_v49  ;;  %7516 = vmatprep.subr.bf16.mxu0 %v8995_v58  ;;  %v9061_v58 = vcombine.high %v799_v29, %v807_v56 }
 0x378   :  { %v10134_v9 = vpop.eup %10133  ;;  %7680 = vmatprep.subr.bf16.mxu1 %v8997_v61  ;;  %v815_v61 = vld [vmem:[#allocation10 + $0x328] sm:$0xff] }
 0x379   :  { %v10136_v14 = vpop.eup %10135  ;;  %v8508_v15 = vcombine.low %v10130_v62, %v10134_v9  ;;  %7517 = vmatpush1.bf16.msra.mxu0 %v8994_v0  ;;  %v9060_v0 = vcombine.low %v799_v29, %v807_v56  ;;  %v9075_v62 = vcombine.high %v814_v60, %v822_v10  ;;  %v9076_v9 = vcombine.low %v815_v61, %v823_v44  ;;  %v886_v29 = vld [vmem:[#allocation10 + $0x560] sm:$0xff]  ;;  %v879_v56 = vld [vmem:[#allocation10 + $0x528] sm:$0xff] }
 0x37a   :  { %v8509_v25 = vcombine.low %v10132_v53, %v10136_v14  ;;  %7681 = vmatpush1.bf16.msra.mxu1 %v8996_v6  ;;  %7518 = vmatprep.subr.bf16.mxu0 %v9011_v63  ;;  %v9077_v6 = vcombine.high %v815_v61, %v823_v44  ;;  %v830_v63 = vld [vmem:[#allocation10 + $0x3a0] sm:$0xff]  ;;  %v895_v44 = vld [vmem:[#allocation10 + $0x5a8] sm:$0xff] }
 0x37b   :  { %v10751_v18 = vrot.slane %v8508_v15, %v10573_v55  ;;  %7682 = vmatprep.subr.bf16.mxu1 %v9013_v45  ;;  %v838_v53 = vld [vmem:[#allocation10 + $0x3e0] sm:$0xff]  ;;  %v831_v45 = vld [vmem:[#allocation10 + $0x3a8] sm:$0xff] }
 0x37c   :  { %v10754_v35 = vrot.slane %v8509_v25, %v10573_v55  ;;  %v9091_v11 = vcombine.high %v830_v63, %v838_v53  ;;  %v9093_v12 = vcombine.high %v831_v45, %v839_v3  ;;  %v846_v14 = vld [vmem:[#allocation10 + $0x420] sm:$0xff]  ;;  %v855_v25 = vld [vmem:[#allocation10 + $0x468] sm:$0xff] }
 0x37d   :  { %7519 = vmatpush1.bf16.msra.mxu0 %v9010_v19  ;;  %v854_v15 = vld [vmem:[#allocation10 + $0x460] sm:$0xff]  ;;  %v847_v19 = vld [vmem:[#allocation10 + $0x428] sm:$0xff] }
 0x37e   :  { %v8540_v32 = vcombine.low %v10751_v18, %v10754_v35  ;;  %7683 = vmatpush1.bf16.msra.mxu1 %v9012_v17  ;;  %7520 = vmatprep.subr.bf16.mxu0 %v9027_v28  ;;  %v9090_v17 = vcombine.low %v830_v63, %v838_v53  ;;  %v9092_v28 = vcombine.low %v831_v45, %v839_v3  ;;  %v894_v10 = vld [vmem:[#allocation10 + $0x5a0] sm:$0xff]  ;;  %v911_v3 = vld [vmem:[#allocation10 + $0x628] sm:$0xff]  ;;  %v816_v18 = vld [vmem:[#allocation10 + $0x330] sm:$0xff] }
 0x37f   :  { %7684 = vmatprep.subr.bf16.mxu1 %v9029_v22  ;;  %v9107_v22 = vcombine.high %v846_v14, %v854_v15  ;;  %v9109_v30 = vcombine.high %v847_v19, %v855_v25  ;;  %v902_v61 = vld [vmem:[#allocation10 + $0x5e0] sm:$0xff]  ;;  %v824_v35 = vld [vmem:[#allocation10 + $0x370] sm:$0xff] }
 0x380   :  { %v910_v53 = vld [vmem:[#allocation10 + $0x620] sm:$0xff] }
 0x381   :  { %7521 = vmatpush1.bf16.msra.mxu0 %v9026_v40  ;;  %v871_v40 = vld [vmem:[#allocation10 + $0x4e8] sm:$0xff]  ;;  %v918_v45 = vld [vmem:[#allocation10 + $0x660] sm:$0xff] }
 0x382   :  { %7685 = vmatpush1.bf16.msra.mxu1 %v9028_v7  ;;  %7522 = vmatprep.subr.bf16.mxu0 %v9043_v33  ;;  %v9106_v7 = vcombine.low %v846_v14, %v854_v15  ;;  %v9108_v33 = vcombine.low %v847_v19, %v855_v25  ;;  %v9125_v51 = vcombine.high %v863_v36, %v871_v40  ;;  %v926_v15 = vld [vmem:[#allocation10 + $0x6a0] sm:$0xff]  ;;  %v927_v25 = vld [vmem:[#allocation10 + $0x6a8] sm:$0xff] }
 0x383   :  { %7686 = vmatprep.subr.bf16.mxu1 %v9045_v48  ;;  %v9123_v48 = vcombine.high %v862_v34, %v870_v39  ;;  %v934_v19 = vld [vmem:[#allocation10 + $0x6e0] sm:$0xff] }
 0x385   :  { %7523 = vmatpush1.bf16.msra.mxu0 %v9042_v8  ;;  %v887_v8 = vld [vmem:[#allocation10 + $0x568] sm:$0xff] }
 0x386   :  { %7687 = vmatpush1.bf16.msra.mxu1 %v9044_v57  ;;  %7524 = vmatprep.subr.bf16.mxu0 %v9059_v1  ;;  %v9122_v57 = vcombine.low %v862_v34, %v870_v39  ;;  %v9124_v1 = vcombine.low %v863_v36, %v871_v40  ;;  %v9141_v60 = vcombine.high %v879_v56, %v887_v8  ;;  %v942_v39 = vld [vmem:[#allocation10 + $0x720] sm:$0xff]  ;;  %v943_v40 = vld [vmem:[#allocation10 + $0x728] sm:$0xff] }
 0x387   :  { %7688 = vmatprep.subr.bf16.mxu1 %v9061_v58  ;;  %v9139_v58 = vcombine.high %v878_v31, %v886_v29  ;;  %v950_v36 = vld [vmem:[#allocation10 + $0x760] sm:$0xff] }
 0x389   :  { %7525 = vmatpush1.bf16.msra.mxu0 %v9058_v42  ;;  %v903_v42 = vld [vmem:[#allocation10 + $0x5e8] sm:$0xff] }
 0x38a   :  { %7689 = vmatpush1.bf16.msra.mxu1 %v9060_v0  ;;  %7526 = vmatprep.subr.bf16.mxu0 %v9075_v62  ;;  %v9138_v0 = vcombine.low %v878_v31, %v886_v29  ;;  %v9140_v62 = vcombine.low %v879_v56, %v887_v8  ;;  %v9157_v63 = vcombine.high %v895_v44, %v903_v42  ;;  %v958_v29 = vld [vmem:[#allocation10 + $0x7a0] sm:$0xff]  ;;  %v959_v8 = vld [vmem:[#allocation10 + $0x7a8] sm:$0xff] }
 0x38b   :  { %7690 = vmatprep.subr.bf16.mxu1 %v9077_v6  ;;  %v9155_v6 = vcombine.high %v894_v10, %v902_v61  ;;  %v966_v56 = vld [vmem:[#allocation10 + $0x7e0] sm:$0xff] }
 0x38d   :  { %7527 = vmatpush1.bf16.msra.mxu0 %v9074_v5  ;;  %v919_v5 = vld [vmem:[#allocation10 + $0x668] sm:$0xff] }
 0x38e   :  { %7691 = vmatpush1.bf16.msra.mxu1 %v9076_v9  ;;  %7528 = vmatprep.subr.bf16.mxu0 %v9091_v11  ;;  %v9154_v9 = vcombine.low %v894_v10, %v902_v61  ;;  %v9156_v11 = vcombine.low %v895_v44, %v903_v42  ;;  %v9173_v14 = vcombine.high %v911_v3, %v919_v5  ;;  %v974_v61 = vld [vmem:[#allocation10 + $0x820] sm:$0xff]  ;;  %v975_v42 = vld [vmem:[#allocation10 + $0x828] sm:$0xff] }
 0x38f   :  { %7692 = vmatprep.subr.bf16.mxu1 %v9093_v12  ;;  %v9171_v12 = vcombine.high %v910_v53, %v918_v45  ;;  %v982_v44 = vld [vmem:[#allocation10 + $0x860] sm:$0xff] }
 0x391   :  { %7529 = vmatpush1.bf16.msra.mxu0 %v9090_v17  ;;  %v935_v17 = vld [vmem:[#allocation10 + $0x6e8] sm:$0xff] }
 0x392   :  { %7693 = vmatpush1.bf16.msra.mxu1 %v9092_v28  ;;  %7530 = vmatprep.subr.bf16.mxu0 %v9107_v22  ;;  %v9170_v28 = vcombine.low %v910_v53, %v918_v45  ;;  %v9172_v22 = vcombine.low %v911_v3, %v919_v5  ;;  %v9189_v34 = vcombine.high %v927_v25, %v935_v17  ;;  %v990_v45 = vld [vmem:[#allocation10 + $0x8a0] sm:$0xff] }
 0x393   :  { %7694 = vmatprep.subr.bf16.mxu1 %v9109_v30  ;;  %v9187_v30 = vcombine.high %v926_v15, %v934_v19  ;;  %v998_v3 = vld [vmem:[#allocation10 + $0x8e0] sm:$0xff]  ;;  %v9234_v5 = vcombine.low %v974_v61, %v982_v44 }
 0x395   :  { %7531 = vmatpush1.bf16.msra.mxu0 %v9106_v7  ;;  %v951_v7 = vld [vmem:[#allocation10 + $0x768] sm:$0xff] }
 0x396   :  { %7695 = vmatpush1.bf16.msra.mxu1 %v9108_v33  ;;  %7532 = vmatprep.subr.bf16.mxu0 %v9123_v48  ;;  %v9186_v33 = vcombine.low %v926_v15, %v934_v19  ;;  %v9188_v48 = vcombine.low %v927_v25, %v935_v17  ;;  %v9205_v31 = vcombine.high %v943_v40, %v951_v7  ;;  %v1006_v15 = vld [vmem:[#allocation10 + $0x920] sm:$0xff]  ;;  %v1007_v17 = vld [vmem:[#allocation10 + $0x928] sm:$0xff] }
 0x397   :  { %7696 = vmatprep.subr.bf16.mxu1 %v9125_v51  ;;  %v9203_v51 = vcombine.high %v942_v39, %v950_v36  ;;  %v1014_v19 = vld [vmem:[#allocation10 + $0x960] sm:$0xff] }
 0x399   :  { %7533 = vmatpush1.bf16.msra.mxu0 %v9122_v57  ;;  %v967_v57 = vld [vmem:[#allocation10 + $0x7e8] sm:$0xff] }
 0x39a   :  { %7697 = vmatpush1.bf16.msra.mxu1 %v9124_v1  ;;  %7534 = vmatprep.subr.bf16.mxu0 %v9139_v58  ;;  %v9202_v1 = vcombine.low %v942_v39, %v950_v36  ;;  %v9204_v58 = vcombine.low %v943_v40, %v951_v7  ;;  %v9221_v10 = vcombine.high %v959_v8, %v967_v57  ;;  %v1022_v36 = vld [vmem:[#allocation10 + $0x9a0] sm:$0xff]  ;;  %v1023_v7 = vld [vmem:[#allocation10 + $0x9a8] sm:$0xff] }
 0x39b   :  { %7698 = vmatprep.subr.bf16.mxu1 %v9141_v60  ;;  %v9219_v60 = vcombine.high %v958_v29, %v966_v56  ;;  %v1030_v40 = vld [vmem:[#allocation10 + $0x9e0] sm:$0xff] }
 0x39d   :  { %7535 = vmatpush1.bf16.msra.mxu0 %v9138_v0  ;;  %v983_v0 = vld [vmem:[#allocation10 + $0x868] sm:$0xff] }
 0x39e   :  { %7699 = vmatpush1.bf16.msra.mxu1 %v9140_v62  ;;  %7536 = vmatprep.subr.bf16.mxu0 %v9155_v6  ;;  %v9218_v62 = vcombine.low %v958_v29, %v966_v56  ;;  %v9220_v6 = vcombine.low %v959_v8, %v967_v57  ;;  %v9237_v53 = vcombine.high %v975_v42, %v983_v0  ;;  %v1038_v56 = vld [vmem:[#allocation10 + $0xa20] sm:$0xff]  ;;  %v1039_v57 = vld [vmem:[#allocation10 + $0xa28] sm:$0xff] }
 0x39f   :  { %7700 = vmatprep.subr.bf16.mxu1 %v9157_v63  ;;  %v9235_v63 = vcombine.high %v974_v61, %v982_v44  ;;  %v1046_v8 = vld [vmem:[#allocation10 + $0xa60] sm:$0xff] }
 0x3a0   :  { %v1054_v44 = vld [vmem:[#allocation10 + $0xaa0] sm:$0xff] }
 0x3a1   :  { %7537 = vmatpush1.bf16.msra.mxu0 %v9154_v9  ;;  %v991_v9 = vld [vmem:[#allocation10 + $0x8a8] sm:$0xff] }
 0x3a2   :  { %7701 = vmatpush1.bf16.msra.mxu1 %v9156_v11  ;;  %7538 = vmatprep.subr.bf16.mxu0 %v9171_v12  ;;  %v999_v11 = vld [vmem:[#allocation10 + $0x8e8] sm:$0xff]  ;;  %v9236_v12 = vcombine.low %v975_v42, %v983_v0  ;;  %v1062_v42 = vld [vmem:[#allocation10 + $0xae0] sm:$0xff] }
 0x3a3   :  { %7702 = vmatprep.subr.bf16.mxu1 %v9173_v14  ;;  %v9251_v14 = vcombine.high %v990_v45, %v998_v3  ;;  %v9253_v25 = vcombine.high %v991_v9, %v999_v11  ;;  %v1055_v0 = vld [vmem:[#allocation10 + $0xaa8] sm:$0xff] }
 0x3a5   :  { %7539 = vmatpush1.bf16.msra.mxu0 %v9170_v28  ;;  %v1015_v28 = vld [vmem:[#allocation10 + $0x968] sm:$0xff] }
 0x3a6   :  { %7703 = vmatpush1.bf16.msra.mxu1 %v9172_v22  ;;  %7540 = vmatprep.subr.bf16.mxu0 %v9187_v30  ;;  %v9250_v22 = vcombine.low %v990_v45, %v998_v3  ;;  %v9252_v30 = vcombine.low %v991_v9, %v999_v11  ;;  %v9269_v39 = vcombine.high %v1007_v17, %v1015_v28  ;;  %v1070_v3 = vld [vmem:[#allocation10 + $0xb20] sm:$0xff]  ;;  %v1071_v9 = vld [vmem:[#allocation10 + $0xb28] sm:$0xff] }
 0x3a7   :  { %7704 = vmatprep.subr.bf16.mxu1 %v9189_v34  ;;  %v9267_v34 = vcombine.high %v1006_v15, %v1014_v19  ;;  %v1079_v11 = vld [vmem:[#allocation10 + $0xb68] sm:$0xff] }
 0x3a9   :  { %7541 = vmatpush1.bf16.msra.mxu0 %v9186_v33  ;;  %v1031_v33 = vld [vmem:[#allocation10 + $0x9e8] sm:$0xff] }
 0x3aa   :  { %7705 = vmatpush1.bf16.msra.mxu1 %v9188_v48  ;;  %7542 = vmatprep.subr.bf16.mxu0 %v9203_v51  ;;  %v9266_v48 = vcombine.low %v1006_v15, %v1014_v19  ;;  %v9268_v51 = vcombine.low %v1007_v17, %v1015_v28  ;;  %v9285_v29 = vcombine.high %v1023_v7, %v1031_v33  ;;  %v1094_v17 = vld [vmem:[#allocation10 + $0xbe0] sm:$0xff]  ;;  %v1087_v28 = vld [vmem:[#allocation10 + $0xba8] sm:$0xff] }
 0x3ab   :  { %7706 = vmatprep.subr.bf16.mxu1 %v9205_v31  ;;  %v9283_v31 = vcombine.high %v1022_v36, %v1030_v40  ;;  %v9333_v19 = vcombine.high %v1071_v9, %v1079_v11 }
 0x3ad   :  { %7543 = vmatpush1.bf16.msra.mxu0 %v9202_v1  ;;  %v1047_v1 = vld [vmem:[#allocation10 + $0xa68] sm:$0xff] }
 0x3ae   :  { %7707 = vmatpush1.bf16.msra.mxu1 %v9204_v58  ;;  %7544 = vmatprep.subr.bf16.mxu0 %v9219_v60  ;;  %v9282_v58 = vcombine.low %v1022_v36, %v1030_v40  ;;  %v9284_v60 = vcombine.low %v1023_v7, %v1031_v33  ;;  %v9301_v61 = vcombine.high %v1039_v57, %v1047_v1  ;;  %v1102_v40 = vld [vmem:[#allocation10 + $0xc20] sm:$0xff]  ;;  %v1103_v33 = vld [vmem:[#allocation10 + $0xc28] sm:$0xff] }
 0x3af   :  { %7708 = vmatprep.subr.bf16.mxu1 %v9221_v10  ;;  %v9299_v10 = vcombine.high %v1038_v56, %v1046_v8  ;;  %v1110_v7 = vld [vmem:[#allocation10 + $0xc60] sm:$0xff] }
 0x3b1   :  { %7545 = vmatpush1.bf16.msra.mxu0 %v9218_v62  ;;  %v1063_v62 = vld [vmem:[#allocation10 + $0xae8] sm:$0xff] }
 0x3b2   :  { %7709 = vmatpush1.bf16.msra.mxu1 %v9220_v6  ;;  %7555 = vmatprep.subr.bf16.mxu0 %v9235_v63  ;;  %v9298_v6 = vcombine.low %v1038_v56, %v1046_v8  ;;  %v9300_v63 = vcombine.low %v1039_v57, %v1047_v1  ;;  %v9317_v45 = vcombine.high %v1055_v0, %v1063_v62  ;;  %v1118_v8 = vld [vmem:[#allocation10 + $0xca0] sm:$0xff]  ;;  %v1119_v1 = vld [vmem:[#allocation10 + $0xca8] sm:$0xff] }
 0x3b3   :  { %7719 = vmatprep.subr.bf16.mxu1 %v9237_v53  ;;  %v9315_v53 = vcombine.high %v1054_v44, %v1062_v42  ;;  %v1126_v57 = vld [vmem:[#allocation10 + $0xce0] sm:$0xff] }
 0x3b4   :  { %7547 = vmatmul.mubr.bf16.vlgmr.msra.gmra.mrb[16].mxu0 %v10641_v4 }
 0x3b5   :  { %7711 = vmatmul.mubr.bf16.vlgmr.msra.gmra.mrb[16].mxu1 %v10641_v4  ;;  %7556 = vmatpush1.bf16.msra.mxu0 %v9234_v5  ;;  %v1078_v5 = vld [vmem:[#allocation10 + $0xb60] sm:$0xff] }
 0x3b6   :  { %7587 = vmatprep.mubr.bf16.mxu0 %v10653_v26  ;;  %7720 = vmatpush1.bf16.msra.mxu1 %v9236_v12  ;;  %v9314_v12 = vcombine.low %v1054_v44, %v1062_v42  ;;  %v9331_v15 = vcombine.high %v1070_v3, %v1078_v5  ;;  %v1134_v42 = vld [vmem:[#allocation10 + $0xd20] sm:$0xff] }
 0x3b7   :  { %7751 = vmatprep.mubr.bf16.mxu1 %v10653_v26  ;;  %7557 = vmatprep.subr.bf16.mxu0 %v9251_v14  ;;  %v9316_v14 = vcombine.low %v1055_v0, %v1063_v62  ;;  %v1142_v0 = vld [vmem:[#allocation10 + $0xd60] sm:$0xff]  ;;  %v1135_v62 = vld [vmem:[#allocation10 + $0xd28] sm:$0xff] }
 0x3b8   :  { %7721 = vmatprep.subr.bf16.mxu1 %v9253_v25  ;;  %v1086_v25 = vld [vmem:[#allocation10 + $0xba0] sm:$0xff] }
 0x3b9   :  { %7558 = vmatpush1.bf16.msra.mxu0 %v9250_v22  ;;  %v1095_v22 = vld [vmem:[#allocation10 + $0xbe8] sm:$0xff] }
 0x3ba   :  { %7722 = vmatpush1.bf16.msra.mxu1 %v9252_v30  ;;  %7559 = vmatprep.subr.bf16.mxu0 %v9267_v34  ;;  %v9330_v30 = vcombine.low %v1070_v3, %v1078_v5  ;;  %v9332_v34 = vcombine.low %v1071_v9, %v1079_v11  ;;  %v9349_v36 = vcombine.high %v1087_v28, %v1095_v22  ;;  %v1150_v5 = vld [vmem:[#allocation10 + $0xda0] sm:$0xff]  ;;  %v1151_v11 = vld [vmem:[#allocation10 + $0xda8] sm:$0xff] }
 0x3bb   :  { %7723 = vmatprep.subr.bf16.mxu1 %v9269_v39  ;;  %v9347_v39 = vcombine.high %v1086_v25, %v1094_v17  ;;  %v1158_v9 = vld [vmem:[#allocation10 + $0xde0] sm:$0xff] }
 0x3bd   :  { %7560 = vmatpush1.bf16.msra.mxu0 %v9266_v48  ;;  %v1111_v48 = vld [vmem:[#allocation10 + $0xc68] sm:$0xff] }
 0x3be   :  { %7724 = vmatpush1.bf16.msra.mxu1 %v9268_v51  ;;  %7561 = vmatprep.subr.bf16.mxu0 %v9283_v31  ;;  %v9346_v51 = vcombine.low %v1086_v25, %v1094_v17  ;;  %v9348_v31 = vcombine.low %v1087_v28, %v1095_v22  ;;  %v9365_v56 = vcombine.high %v1103_v33, %v1111_v48  ;;  %v1166_v17 = vld [vmem:[#allocation10 + $0xe20] sm:$0xff]  ;;  %v1167_v22 = vld [vmem:[#allocation10 + $0xe28] sm:$0xff] }
 0x3bf   :  { %7725 = vmatprep.subr.bf16.mxu1 %v9285_v29  ;;  %v9363_v29 = vcombine.high %v1102_v40, %v1110_v7  ;;  %v1174_v28 = vld [vmem:[#allocation10 + $0xe60] sm:$0xff] }
 0x3c1   :  { %7562 = vmatpush1.bf16.msra.mxu0 %v9282_v58  ;;  %v1127_v58 = vld [vmem:[#allocation10 + $0xce8] sm:$0xff] }
 0x3c2   :  { %7726 = vmatpush1.bf16.msra.mxu1 %v9284_v60  ;;  %7563 = vmatprep.subr.bf16.mxu0 %v9299_v10  ;;  %v9362_v60 = vcombine.low %v1102_v40, %v1110_v7  ;;  %v9364_v10 = vcombine.low %v1103_v33, %v1111_v48  ;;  %v9381_v44 = vcombine.high %v1119_v1, %v1127_v58  ;;  %v1182_v7 = vld [vmem:[#allocation10 + $0xea0] sm:$0xff]  ;;  %v1183_v48 = vld [vmem:[#allocation10 + $0xea8] sm:$0xff] }
 0x3c3   :  { %7727 = vmatprep.subr.bf16.mxu1 %v9301_v61  ;;  %v9379_v61 = vcombine.high %v1118_v8, %v1126_v57  ;;  %v1190_v33 = vld [vmem:[#allocation10 + $0xee0] sm:$0xff] }
 0x3c5   :  { %7564 = vmatpush1.bf16.msra.mxu0 %v9298_v6  ;;  %v1143_v6 = vld [vmem:[#allocation10 + $0xd68] sm:$0xff] }
 0x3c6   :  { %7728 = vmatpush1.bf16.msra.mxu1 %v9300_v63  ;;  %7565 = vmatprep.subr.bf16.mxu0 %v9315_v53  ;;  %v9378_v63 = vcombine.low %v1118_v8, %v1126_v57  ;;  %v9380_v53 = vcombine.low %v1119_v1, %v1127_v58  ;;  %v9397_v3 = vcombine.high %v1135_v62, %v1143_v6  ;;  %v1198_v57 = vld [vmem:[#allocation10 + $0xf20] sm:$0xff]  ;;  %v1199_v58 = vld [vmem:[#allocation10 + $0xf28] sm:$0xff] }
 0x3c7   :  { %7729 = vmatprep.subr.bf16.mxu1 %v9317_v45  ;;  %v9395_v45 = vcombine.high %v1134_v42, %v1142_v0  ;;  %v1206_v1 = vld [vmem:[#allocation10 + $0xf60] sm:$0xff] }
 0x3c9   :  { %7566 = vmatpush1.bf16.msra.mxu0 %v9314_v12  ;;  %v1159_v12 = vld [vmem:[#allocation10 + $0xde8] sm:$0xff] }
 0x3ca   :  { %7730 = vmatpush1.bf16.msra.mxu1 %v9316_v14  ;;  %7567 = vmatprep.subr.bf16.mxu0 %v9331_v15  ;;  %v9394_v14 = vcombine.low %v1134_v42, %v1142_v0  ;;  %v9396_v15 = vcombine.low %v1135_v62, %v1143_v6  ;;  %v9413_v25 = vcombine.high %v1151_v11, %v1159_v12  ;;  %v1214_v0 = vld [vmem:[#allocation10 + $0xfa0] sm:$0xff]  ;;  %v1215_v6 = vld [vmem:[#allocation10 + $0xfa8] sm:$0xff] }
 0x3cb   :  { %7731 = vmatprep.subr.bf16.mxu1 %v9333_v19  ;;  %v9411_v19 = vcombine.high %v1150_v5, %v1158_v9  ;;  %v1222_v62 = vld [vmem:[#allocation10 + $0xfe0] sm:$0xff] }
 0x3cd   :  { %7568 = vmatpush1.bf16.msra.mxu0 %v9330_v30  ;;  %v1175_v30 = vld [vmem:[#allocation10 + $0xe68] sm:$0xff] }
 0x3ce   :  { %7732 = vmatpush1.bf16.msra.mxu1 %v9332_v34  ;;  %7569 = vmatprep.subr.bf16.mxu0 %v9347_v39  ;;  %v9410_v34 = vcombine.low %v1150_v5, %v1158_v9  ;;  %v9412_v39 = vcombine.low %v1151_v11, %v1159_v12  ;;  %v9429_v40 = vcombine.high %v1167_v22, %v1175_v30  ;;  %v1230_v9 = vld [vmem:[#allocation10 + $0x1020] sm:$0xff]  ;;  %v1231_v12 = vld [vmem:[#allocation10 + $0x1028] sm:$0xff] }
 0x3cf   :  { %7733 = vmatprep.subr.bf16.mxu1 %v9349_v36  ;;  %v9427_v36 = vcombine.high %v1166_v17, %v1174_v28  ;;  %v1238_v11 = vld [vmem:[#allocation10 + $0x1060] sm:$0xff] }
 0x3d1   :  { %7570 = vmatpush1.bf16.msra.mxu0 %v9346_v51  ;;  %v1191_v51 = vld [vmem:[#allocation10 + $0xee8] sm:$0xff] }
 0x3d2   :  { %7734 = vmatpush1.bf16.msra.mxu1 %v9348_v31  ;;  %7571 = vmatprep.subr.bf16.mxu0 %v9363_v29  ;;  %v9426_v31 = vcombine.low %v1166_v17, %v1174_v28  ;;  %v9428_v29 = vcombine.low %v1167_v22, %v1175_v30  ;;  %v9445_v8 = vcombine.high %v1183_v48, %v1191_v51  ;;  %v1246_v28 = vld [vmem:[#allocation10 + $0x10a0] sm:$0xff] }
 0x3d3   :  { %7735 = vmatprep.subr.bf16.mxu1 %v9365_v56  ;;  %v9443_v56 = vcombine.high %v1182_v7, %v1190_v33  ;;  %v1254_v22 = vld [vmem:[#allocation10 + $0x10e0] sm:$0xff]  ;;  %v9490_v30 = vcombine.low %v1230_v9, %v1238_v11 }
 0x3d5   :  { %7572 = vmatpush1.bf16.msra.mxu0 %v9362_v60  ;;  %v1207_v60 = vld [vmem:[#allocation10 + $0xf68] sm:$0xff] }
 0x3d6   :  { %7736 = vmatpush1.bf16.msra.mxu1 %v9364_v10  ;;  %7573 = vmatprep.subr.bf16.mxu0 %v9379_v61  ;;  %v9442_v10 = vcombine.low %v1182_v7, %v1190_v33  ;;  %v9444_v61 = vcombine.low %v1183_v48, %v1191_v51  ;;  %v9461_v42 = vcombine.high %v1199_v58, %v1207_v60  ;;  %v1262_v7 = vld [vmem:[#allocation10 + $0x1120] sm:$0xff]  ;;  %v1263_v51 = vld [vmem:[#allocation10 + $0x1128] sm:$0xff] }
 0x3d7   :  { %7737 = vmatprep.subr.bf16.mxu1 %v9381_v44  ;;  %v9459_v44 = vcombine.high %v1198_v57, %v1206_v1  ;;  %v1270_v33 = vld [vmem:[#allocation10 + $0x1160] sm:$0xff] }
 0x3d9   :  { %7574 = vmatpush1.bf16.msra.mxu0 %v9378_v63  ;;  %v1223_v63 = vld [vmem:[#allocation10 + $0xfe8] sm:$0xff] }
 0x3da   :  { %7738 = vmatpush1.bf16.msra.mxu1 %v9380_v53  ;;  %7575 = vmatprep.subr.bf16.mxu0 %v9395_v45  ;;  %v9458_v53 = vcombine.low %v1198_v57, %v1206_v1  ;;  %v9460_v45 = vcombine.low %v1199_v58, %v1207_v60  ;;  %v9477_v5 = vcombine.high %v1215_v6, %v1223_v63  ;;  %v1278_v1 = vld [vmem:[#allocation10 + $0x11a0] sm:$0xff]  ;;  %v1279_v60 = vld [vmem:[#allocation10 + $0x11a8] sm:$0xff] }
 0x3db   :  { %7739 = vmatprep.subr.bf16.mxu1 %v9397_v3  ;;  %v9475_v3 = vcombine.high %v1214_v0, %v1222_v62  ;;  %v1286_v58 = vld [vmem:[#allocation10 + $0x11e0] sm:$0xff] }
 0x3dd   :  { %7576 = vmatpush1.bf16.msra.mxu0 %v9394_v14  ;;  %v1239_v14 = vld [vmem:[#allocation10 + $0x1068] sm:$0xff] }
 0x3de   :  { %7740 = vmatpush1.bf16.msra.mxu1 %v9396_v15  ;;  %7577 = vmatprep.subr.bf16.mxu0 %v9411_v19  ;;  %v9474_v15 = vcombine.low %v1214_v0, %v1222_v62  ;;  %v9476_v19 = vcombine.low %v1215_v6, %v1223_v63  ;;  %v9493_v17 = vcombine.high %v1231_v12, %v1239_v14  ;;  %v1294_v62 = vld [vmem:[#allocation10 + $0x1220] sm:$0xff]  ;;  %v1295_v63 = vld [vmem:[#allocation10 + $0x1228] sm:$0xff] }
 0x3df   :  { %7741 = vmatprep.subr.bf16.mxu1 %v9413_v25  ;;  %v9491_v25 = vcombine.high %v1230_v9, %v1238_v11  ;;  %v1302_v6 = vld [vmem:[#allocation10 + $0x1260] sm:$0xff] }
 0x3e0   :  { %v1310_v11 = vld [vmem:[#allocation10 + $0x12a0] sm:$0xff] }
 0x3e1   :  { %7578 = vmatpush1.bf16.msra.mxu0 %v9410_v34  ;;  %v1247_v34 = vld [vmem:[#allocation10 + $0x10a8] sm:$0xff] }
 0x3e2   :  { %7742 = vmatpush1.bf16.msra.mxu1 %v9412_v39  ;;  %7579 = vmatprep.subr.bf16.mxu0 %v9427_v36  ;;  %v1255_v39 = vld [vmem:[#allocation10 + $0x10e8] sm:$0xff]  ;;  %v9492_v36 = vcombine.low %v1231_v12, %v1239_v14  ;;  %v1318_v12 = vld [vmem:[#allocation10 + $0x12e0] sm:$0xff] }
 0x3e3   :  { %7743 = vmatprep.subr.bf16.mxu1 %v9429_v40  ;;  %v9507_v40 = vcombine.high %v1246_v28, %v1254_v22  ;;  %v9509_v48 = vcombine.high %v1247_v34, %v1255_v39  ;;  %v1311_v14 = vld [vmem:[#allocation10 + $0x12a8] sm:$0xff] }
 0x3e5   :  { %7580 = vmatpush1.bf16.msra.mxu0 %v9426_v31  ;;  %v1271_v31 = vld [vmem:[#allocation10 + $0x1168] sm:$0xff] }
 0x3e6   :  { %7744 = vmatpush1.bf16.msra.mxu1 %v9428_v29  ;;  %7581 = vmatprep.subr.bf16.mxu0 %v9443_v56  ;;  %v9506_v29 = vcombine.low %v1246_v28, %v1254_v22  ;;  %v9508_v56 = vcombine.low %v1247_v34, %v1255_v39  ;;  %v9525_v57 = vcombine.high %v1263_v51, %v1271_v31  ;;  %v1326_v22 = vld [vmem:[#allocation10 + $0x1320] sm:$0xff]  ;;  %v1327_v34 = vld [vmem:[#allocation10 + $0x1328] sm:$0xff] }
 0x3e7   :  { %7745 = vmatprep.subr.bf16.mxu1 %v9445_v8  ;;  %v9523_v8 = vcombine.high %v1262_v7, %v1270_v33  ;;  %v1335_v39 = vld [vmem:[#allocation10 + $0x1368] sm:$0xff] }
 0x3e9   :  { %7582 = vmatpush1.bf16.msra.mxu0 %v9442_v10  ;;  %v1287_v10 = vld [vmem:[#allocation10 + $0x11e8] sm:$0xff] }
 0x3ea   :  { %7746 = vmatpush1.bf16.msra.mxu1 %v9444_v61  ;;  %7583 = vmatprep.subr.bf16.mxu0 %v9459_v44  ;;  %v9522_v61 = vcombine.low %v1262_v7, %v1270_v33  ;;  %v9524_v44 = vcombine.low %v1263_v51, %v1271_v31  ;;  %v9541_v0 = vcombine.high %v1279_v60, %v1287_v10  ;;  %v1350_v51 = vld [vmem:[#allocation10 + $0x13e0] sm:$0xff]  ;;  %v1343_v31 = vld [vmem:[#allocation10 + $0x13a8] sm:$0xff] }
 0x3eb   :  { %7747 = vmatprep.subr.bf16.mxu1 %v9461_v42  ;;  %v9539_v42 = vcombine.high %v1278_v1, %v1286_v58  ;;  %v9589_v33 = vcombine.high %v1327_v34, %v1335_v39 }
 0x3ed   :  { %7584 = vmatpush1.bf16.msra.mxu0 %v9458_v53  ;;  %v1303_v53 = vld [vmem:[#allocation10 + $0x1268] sm:$0xff] }
 0x3ee   :  { %7748 = vmatpush1.bf16.msra.mxu1 %v9460_v45  ;;  %7585 = vmatprep.subr.bf16.mxu0 %v9475_v3  ;;  %v9538_v45 = vcombine.low %v1278_v1, %v1286_v58  ;;  %v9540_v3 = vcombine.low %v1279_v60, %v1287_v10  ;;  %v9557_v9 = vcombine.high %v1295_v63, %v1303_v53  ;;  %v1358_v58 = vld [vmem:[#allocation10 + $0x1420] sm:$0xff]  ;;  %v1359_v10 = vld [vmem:[#allocation10 + $0x1428] sm:$0xff] }
 0x3ef   :  { %7749 = vmatprep.subr.bf16.mxu1 %v9477_v5  ;;  %v9555_v5 = vcombine.high %v1294_v62, %v1302_v6  ;;  %v1366_v60 = vld [vmem:[#allocation10 + $0x1460] sm:$0xff] }
 0x3f1   :  { %7586 = vmatpush1.bf16.msra.mxu0 %v9474_v15  ;;  %v1319_v15 = vld [vmem:[#allocation10 + $0x12e8] sm:$0xff] }
 0x3f2   :  { %7750 = vmatpush1.bf16.msra.mxu1 %v9476_v19  ;;  %7596 = vmatprep.subr.bf16.mxu0 %v9491_v25  ;;  %v9554_v19 = vcombine.low %v1294_v62, %v1302_v6  ;;  %v9556_v25 = vcombine.low %v1295_v63, %v1303_v53  ;;  %v9573_v28 = vcombine.high %v1311_v14, %v1319_v15  ;;  %v1374_v6 = vld [vmem:[#allocation10 + $0x14a0] sm:$0xff]  ;;  %v1375_v53 = vld [vmem:[#allocation10 + $0x14a8] sm:$0xff] }
 0x3f3   :  { %7760 = vmatprep.subr.bf16.mxu1 %v9493_v17  ;;  %v9571_v17 = vcombine.high %v1310_v11, %v1318_v12  ;;  %v1382_v63 = vld [vmem:[#allocation10 + $0x14e0] sm:$0xff] }
 0x3f4   :  { %7588 = vmatmul.mubr.bf16.vlgmr.msra.gmra.mrb[16].mxu0 %v10669_v47 }
 0x3f5   :  { %7752 = vmatmul.mubr.bf16.vlgmr.msra.gmra.mrb[16].mxu1 %v10669_v47  ;;  %7597 = vmatpush1.bf16.msra.mxu0 %v9490_v30  ;;  %v1334_v30 = vld [vmem:[#allocation10 + $0x1360] sm:$0xff] }
 0x3f6   :  { %7628 = vmatprep.mubr.bf16.mxu0 %v10671_v52  ;;  %7761 = vmatpush1.bf16.msra.mxu1 %v9492_v36  ;;  %v9570_v36 = vcombine.low %v1310_v11, %v1318_v12  ;;  %v9587_v7 = vcombine.high %v1326_v22, %v1334_v30  ;;  %v1390_v12 = vld [vmem:[#allocation10 + $0x1520] sm:$0xff] }
 0x3f7   :  { %7792 = vmatprep.mubr.bf16.mxu1 %v10671_v52  ;;  %7598 = vmatprep.subr.bf16.mxu0 %v9507_v40  ;;  %v9572_v40 = vcombine.low %v1311_v14, %v1319_v15  ;;  %v1398_v14 = vld [vmem:[#allocation10 + $0x1560] sm:$0xff]  ;;  %v1391_v15 = vld [vmem:[#allocation10 + $0x1528] sm:$0xff] }
 0x3f8   :  { %7762 = vmatprep.subr.bf16.mxu1 %v9509_v48  ;;  %v1342_v48 = vld [vmem:[#allocation10 + $0x13a0] sm:$0xff] }
 0x3f9   :  { %7599 = vmatpush1.bf16.msra.mxu0 %v9506_v29  ;;  %v1351_v29 = vld [vmem:[#allocation10 + $0x13e8] sm:$0xff] }
 0x3fa   :  { %7763 = vmatpush1.bf16.msra.mxu1 %v9508_v56  ;;  %7600 = vmatprep.subr.bf16.mxu0 %v9523_v8  ;;  %v9586_v56 = vcombine.low %v1326_v22, %v1334_v30  ;;  %v9588_v8 = vcombine.low %v1327_v34, %v1335_v39  ;;  %v9605_v1 = vcombine.high %v1343_v31, %v1351_v29  ;;  %v1406_v30 = vld [vmem:[#allocation10 + $0x15a0] sm:$0xff]  ;;  %v1407_v39 = vld [vmem:[#allocation10 + $0x15a8] sm:$0xff] }
 0x3fb   :  { %7764 = vmatprep.subr.bf16.mxu1 %v9525_v57  ;;  %v9603_v57 = vcombine.high %v1342_v48, %v1350_v51  ;;  %v1414_v34 = vld [vmem:[#allocation10 + $0x15e0] sm:$0xff] }
 0x3fd   :  { %7601 = vmatpush1.bf16.msra.mxu0 %v9522_v61  ;;  %v1367_v61 = vld [vmem:[#allocation10 + $0x1468] sm:$0xff] }
 0x3fe   :  { %7765 = vmatpush1.bf16.msra.mxu1 %v9524_v44  ;;  %7602 = vmatprep.subr.bf16.mxu0 %v9539_v42  ;;  %v9602_v44 = vcombine.low %v1342_v48, %v1350_v51  ;;  %v9604_v42 = vcombine.low %v1343_v31, %v1351_v29  ;;  %v9621_v62 = vcombine.high %v1359_v10, %v1367_v61  ;;  %v1422_v51 = vld [vmem:[#allocation10 + $0x1620] sm:$0xff]  ;;  %v1423_v29 = vld [vmem:[#allocation10 + $0x1628] sm:$0xff] }
 0x3ff   :  { %7766 = vmatprep.subr.bf16.mxu1 %v9541_v0  ;;  %v9619_v0 = vcombine.high %v1358_v58, %v1366_v60  ;;  %v1430_v31 = vld [vmem:[#allocation10 + $0x1660] sm:$0xff] }
 0x401   :  { %7603 = vmatpush1.bf16.msra.mxu0 %v9538_v45  ;;  %v1383_v45 = vld [vmem:[#allocation10 + $0x14e8] sm:$0xff] }
 0x402   :  { %7767 = vmatpush1.bf16.msra.mxu1 %v9540_v3  ;;  %7604 = vmatprep.subr.bf16.mxu0 %v9555_v5  ;;  %v9618_v3 = vcombine.low %v1358_v58, %v1366_v60  ;;  %v9620_v5 = vcombine.low %v1359_v10, %v1367_v61  ;;  %v9637_v11 = vcombine.high %v1375_v53, %v1383_v45  ;;  %v1438_v60 = vld [vmem:[#allocation10 + $0x16a0] sm:$0xff]  ;;  %v1439_v61 = vld [vmem:[#allocation10 + $0x16a8] sm:$0xff] }
 0x403   :  { %7768 = vmatprep.subr.bf16.mxu1 %v9557_v9  ;;  %v9635_v9 = vcombine.high %v1374_v6, %v1382_v63  ;;  %v1446_v10 = vld [vmem:[#allocation10 + $0x16e0] sm:$0xff] }
 0x405   :  { %7605 = vmatpush1.bf16.msra.mxu0 %v9554_v19  ;;  %v1399_v19 = vld [vmem:[#allocation10 + $0x1568] sm:$0xff] }
 0x406   :  { %7769 = vmatpush1.bf16.msra.mxu1 %v9556_v25  ;;  %7606 = vmatprep.subr.bf16.mxu0 %v9571_v17  ;;  %v9634_v25 = vcombine.low %v1374_v6, %v1382_v63  ;;  %v9636_v17 = vcombine.low %v1375_v53, %v1383_v45  ;;  %v9653_v22 = vcombine.high %v1391_v15, %v1399_v19  ;;  %v1454_v63 = vld [vmem:[#allocation10 + $0x1720] sm:$0xff]  ;;  %v1455_v45 = vld [vmem:[#allocation10 + $0x1728] sm:$0xff] }
 0x407   :  { %7770 = vmatprep.subr.bf16.mxu1 %v9573_v28  ;;  %v9651_v28 = vcombine.high %v1390_v12, %v1398_v14  ;;  %v1462_v53 = vld [vmem:[#allocation10 + $0x1760] sm:$0xff] }
 0x409   :  { %7607 = vmatpush1.bf16.msra.mxu0 %v9570_v36  ;;  %v1415_v36 = vld [vmem:[#allocation10 + $0x15e8] sm:$0xff] }
 0x40a   :  { %7771 = vmatpush1.bf16.msra.mxu1 %v9572_v40  ;;  %7608 = vmatprep.subr.bf16.mxu0 %v9587_v7  ;;  %v9650_v40 = vcombine.low %v1390_v12, %v1398_v14  ;;  %v9652_v7 = vcombine.low %v1391_v15, %v1399_v19  ;;  %v9669_v48 = vcombine.high %v1407_v39, %v1415_v36  ;;  %v1470_v14 = vld [vmem:[#allocation10 + $0x17a0] sm:$0xff]  ;;  %v1471_v19 = vld [vmem:[#allocation10 + $0x17a8] sm:$0xff] }
 0x40b   :  { %7772 = vmatprep.subr.bf16.mxu1 %v9589_v33  ;;  %v9667_v33 = vcombine.high %v1406_v30, %v1414_v34  ;;  %v1478_v15 = vld [vmem:[#allocation10 + $0x17e0] sm:$0xff] }
 0x40d   :  { %7609 = vmatpush1.bf16.msra.mxu0 %v9586_v56  ;;  %v1431_v56 = vld [vmem:[#allocation10 + $0x1668] sm:$0xff] }
 0x40e   :  { %7773 = vmatpush1.bf16.msra.mxu1 %v9588_v8  ;;  %7610 = vmatprep.subr.bf16.mxu0 %v9603_v57  ;;  %v9666_v8 = vcombine.low %v1406_v30, %v1414_v34  ;;  %v9668_v57 = vcombine.low %v1407_v39, %v1415_v36  ;;  %v9685_v58 = vcombine.high %v1423_v29, %v1431_v56  ;;  %v1486_v34 = vld [vmem:[#allocation10 + $0x1820] sm:$0xff]  ;;  %v1487_v36 = vld [vmem:[#allocation10 + $0x1828] sm:$0xff] }
 0x40f   :  { %7774 = vmatprep.subr.bf16.mxu1 %v9605_v1  ;;  %v9683_v1 = vcombine.high %v1422_v51, %v1430_v31  ;;  %v1494_v39 = vld [vmem:[#allocation10 + $0x1860] sm:$0xff] }
 0x411   :  { %7611 = vmatpush1.bf16.msra.mxu0 %v9602_v44  ;;  %v1447_v44 = vld [vmem:[#allocation10 + $0x16e8] sm:$0xff] }
 0x412   :  { %7775 = vmatpush1.bf16.msra.mxu1 %v9604_v42  ;;  %7612 = vmatprep.subr.bf16.mxu0 %v9619_v0  ;;  %v9682_v42 = vcombine.low %v1422_v51, %v1430_v31  ;;  %v9684_v0 = vcombine.low %v1423_v29, %v1431_v56  ;;  %v9701_v6 = vcombine.high %v1439_v61, %v1447_v44  ;;  %v1502_v31 = vld [vmem:[#allocation10 + $0x18a0] sm:$0xff] }
 0x413   :  { %7776 = vmatprep.subr.bf16.mxu1 %v9621_v62  ;;  %v9699_v62 = vcombine.high %v1438_v60, %v1446_v10  ;;  %v1510_v29 = vld [vmem:[#allocation10 + $0x18e0] sm:$0xff]  ;;  %v9746_v56 = vcombine.low %v1486_v34, %v1494_v39 }
 0x415   :  { %7613 = vmatpush1.bf16.msra.mxu0 %v9618_v3  ;;  %v1463_v3 = vld [vmem:[#allocation10 + $0x1768] sm:$0xff] }
 0x416   :  { %7777 = vmatpush1.bf16.msra.mxu1 %v9620_v5  ;;  %7614 = vmatprep.subr.bf16.mxu0 %v9635_v9  ;;  %v9698_v5 = vcombine.low %v1438_v60, %v1446_v10  ;;  %v9700_v9 = vcombine.low %v1439_v61, %v1447_v44  ;;  %v9717_v12 = vcombine.high %v1455_v45, %v1463_v3  ;;  %v1518_v60 = vld [vmem:[#allocation10 + $0x1920] sm:$0xff]  ;;  %v1519_v44 = vld [vmem:[#allocation10 + $0x1928] sm:$0xff] }
 0x417   :  { %7778 = vmatprep.subr.bf16.mxu1 %v9637_v11  ;;  %v9715_v11 = vcombine.high %v1454_v63, %v1462_v53  ;;  %v1526_v10 = vld [vmem:[#allocation10 + $0x1960] sm:$0xff] }
 0x419   :  { %7615 = vmatpush1.bf16.msra.mxu0 %v9634_v25  ;;  %v1479_v25 = vld [vmem:[#allocation10 + $0x17e8] sm:$0xff] }
 0x41a   :  { %7779 = vmatpush1.bf16.msra.mxu1 %v9636_v17  ;;  %7616 = vmatprep.subr.bf16.mxu0 %v9651_v28  ;;  %v9714_v17 = vcombine.low %v1454_v63, %v1462_v53  ;;  %v9716_v28 = vcombine.low %v1455_v45, %v1463_v3  ;;  %v9733_v30 = vcombine.high %v1471_v19, %v1479_v25  ;;  %v1534_v53 = vld [vmem:[#allocation10 + $0x19a0] sm:$0xff]  ;;  %v1535_v3 = vld [vmem:[#allocation10 + $0x19a8] sm:$0xff] }
 0x41b   :  { %7780 = vmatprep.subr.bf16.mxu1 %v9653_v22  ;;  %v9731_v22 = vcombine.high %v1470_v14, %v1478_v15  ;;  %v1542_v45 = vld [vmem:[#allocation10 + $0x19e0] sm:$0xff] }
 0x41d   :  { %7617 = vmatpush1.bf16.msra.mxu0 %v9650_v40  ;;  %v1495_v40 = vld [vmem:[#allocation10 + $0x1868] sm:$0xff] }
 0x41e   :  { %7781 = vmatpush1.bf16.msra.mxu1 %v9652_v7  ;;  %7618 = vmatprep.subr.bf16.mxu0 %v9667_v33  ;;  %v9730_v7 = vcombine.low %v1470_v14, %v1478_v15  ;;  %v9732_v33 = vcombine.low %v1471_v19, %v1479_v25  ;;  %v9749_v51 = vcombine.high %v1487_v36, %v1495_v40  ;;  %v1550_v15 = vld [vmem:[#allocation10 + $0x1a20] sm:$0xff]  ;;  %v1551_v25 = vld [vmem:[#allocation10 + $0x1a28] sm:$0xff] }
 0x41f   :  { %7782 = vmatprep.subr.bf16.mxu1 %v9669_v48  ;;  %v9747_v48 = vcombine.high %v1486_v34, %v1494_v39  ;;  %v1558_v19 = vld [vmem:[#allocation10 + $0x1a60] sm:$0xff] }
 0x420   :  { %v1566_v39 = vld [vmem:[#allocation10 + $0x1aa0] sm:$0xff] }
 0x421   :  { %7619 = vmatpush1.bf16.msra.mxu0 %v9666_v8  ;;  %v1503_v8 = vld [vmem:[#allocation10 + $0x18a8] sm:$0xff] }
 0x422   :  { %7783 = vmatpush1.bf16.msra.mxu1 %v9668_v57  ;;  %7620 = vmatprep.subr.bf16.mxu0 %v9683_v1  ;;  %v1511_v57 = vld [vmem:[#allocation10 + $0x18e8] sm:$0xff]  ;;  %v9748_v1 = vcombine.low %v1487_v36, %v1495_v40  ;;  %v1574_v36 = vld [vmem:[#allocation10 + $0x1ae0] sm:$0xff] }
 0x423   :  { %7784 = vmatprep.subr.bf16.mxu1 %v9685_v58  ;;  %v9763_v58 = vcombine.high %v1502_v31, %v1510_v29  ;;  %v9765_v61 = vcombine.high %v1503_v8, %v1511_v57  ;;  %v1567_v40 = vld [vmem:[#allocation10 + $0x1aa8] sm:$0xff] }
 0x425   :  { %7621 = vmatpush1.bf16.msra.mxu0 %v9682_v42  ;;  %v1527_v42 = vld [vmem:[#allocation10 + $0x1968] sm:$0xff] }
 0x426   :  { %7785 = vmatpush1.bf16.msra.mxu1 %v9684_v0  ;;  %7622 = vmatprep.subr.bf16.mxu0 %v9699_v62  ;;  %v9762_v0 = vcombine.low %v1502_v31, %v1510_v29  ;;  %v9764_v62 = vcombine.low %v1503_v8, %v1511_v57  ;;  %v9781_v63 = vcombine.high %v1519_v44, %v1527_v42  ;;  %v1582_v29 = vld [vmem:[#allocation10 + $0x1b20] sm:$0xff]  ;;  %v1583_v8 = vld [vmem:[#allocation10 + $0x1b28] sm:$0xff] }
 0x427   :  { %7786 = vmatprep.subr.bf16.mxu1 %v9701_v6  ;;  %v9779_v6 = vcombine.high %v1518_v60, %v1526_v10  ;;  %v1591_v57 = vld [vmem:[#allocation10 + $0x1b68] sm:$0xff] }
 0x429   :  { %7623 = vmatpush1.bf16.msra.mxu0 %v9698_v5  ;;  %v1543_v5 = vld [vmem:[#allocation10 + $0x19e8] sm:$0xff] }
 0x42a   :  { %7787 = vmatpush1.bf16.msra.mxu1 %v9700_v9  ;;  %7624 = vmatprep.subr.bf16.mxu0 %v9715_v11  ;;  %v9778_v9 = vcombine.low %v1518_v60, %v1526_v10  ;;  %v9780_v11 = vcombine.low %v1519_v44, %v1527_v42  ;;  %v9797_v14 = vcombine.high %v1535_v3, %v1543_v5  ;;  %v1598_v44 = vld [vmem:[#allocation10 + $0x1ba0] sm:$0xff] }
 0x42b   :  { %7788 = vmatprep.subr.bf16.mxu1 %v9717_v12  ;;  %v9795_v12 = vcombine.high %v1534_v53, %v1542_v45  ;;  %v1606_v42 = vld [vmem:[#allocation10 + $0x1be0] sm:$0xff] }
 0x42d   :  { %7625 = vmatpush1.bf16.msra.mxu0 %v9714_v17  ;;  %v1559_v17 = vld [vmem:[#allocation10 + $0x1a68] sm:$0xff] }
 0x42e   :  { %7789 = vmatpush1.bf16.msra.mxu1 %v9716_v28  ;;  %7626 = vmatprep.subr.bf16.mxu0 %v9731_v22  ;;  %v9794_v28 = vcombine.low %v1534_v53, %v1542_v45  ;;  %v9796_v22 = vcombine.low %v1535_v3, %v1543_v5  ;;  %v9813_v34 = vcombine.high %v1551_v25, %v1559_v17  ;;  %v1599_v53 = vld [vmem:[#allocation10 + $0x1ba8] sm:$0xff] }
 0x42f   :  { %7790 = vmatprep.subr.bf16.mxu1 %v9733_v30  ;;  %v9811_v30 = vcombine.high %v1550_v15, %v1558_v19  ;;  %v1607_v45 = vld [vmem:[#allocation10 + $0x1be8] sm:$0xff] }
 0x431   :  { %7627 = vmatpush1.bf16.msra.mxu0 %v9730_v7  ;;  %v1575_v7 = vld [vmem:[#allocation10 + $0x1ae8] sm:$0xff] }
 0x432   :  { %7791 = vmatpush1.bf16.msra.mxu1 %v9732_v33  ;;  %7637 = vmatprep.subr.bf16.mxu0 %v9747_v48  ;;  %v9810_v33 = vcombine.low %v1550_v15, %v1558_v19  ;;  %v9812_v48 = vcombine.low %v1551_v25, %v1559_v17  ;;  %v9829_v31 = vcombine.high %v1567_v40, %v1575_v7 }
 0x433   :  { %7801 = vmatprep.subr.bf16.mxu1 %v9749_v51  ;;  %v9827_v51 = vcombine.high %v1566_v39, %v1574_v36 }
 0x434   :  { %7629 = vmatmul.mubr.bf16.vlgmr.msra.gmra.mrb[16].mxu0 %v10679_v59 }
 0x435   :  { %7793 = vmatmul.mubr.bf16.vlgmr.msra.gmra.mrb[16].mxu1 %v10679_v59  ;;  %7638 = vmatpush1.bf16.msra.mxu0 %v9746_v56  ;;  %v1590_v56 = vld [vmem:[#allocation10 + $0x1b60] sm:$0xff] }
 0x436   :  { %7669 = vmatprep.mubr.bf16.mxu0 %v10681_v2  ;;  %7802 = vmatpush1.bf16.msra.mxu1 %v9748_v1  ;;  %v9826_v1 = vcombine.low %v1566_v39, %v1574_v36  ;;  %v9843_v60 = vcombine.high %v1582_v29, %v1590_v56  ;;  %v9861_v36 = vcombine.high %v1599_v53, %v1607_v45 }
 0x437   :  { %7833 = vmatprep.mubr.bf16.mxu1 %v10681_v2  ;;  %7639 = vmatprep.subr.bf16.mxu0 %v9763_v58  ;;  %v9828_v58 = vcombine.low %v1567_v40, %v1575_v7  ;;  %v1614_v40 = vld [vmem:[#allocation10 + $0x1c20] sm:$0xff] }
 0x438   :  { %7803 = vmatprep.subr.bf16.mxu1 %v9765_v61  ;;  %v9845_v61 = vcombine.high %v1583_v8, %v1591_v57  ;;  %v1622_v7 = vld [vmem:[#allocation10 + $0x1c60] sm:$0xff] }
 0x439   :  { %7640 = vmatpush1.bf16.msra.mxu0 %v9762_v0 }
 0x43a   :  { %7804 = vmatpush1.bf16.msra.mxu1 %v9764_v62  ;;  %7641 = vmatprep.subr.bf16.mxu0 %v9779_v6 }
 0x43b   :  { %7805 = vmatprep.subr.bf16.mxu1 %v9781_v63  ;;  %v9842_v63 = vcombine.low %v1582_v29, %v1590_v56 }
 0x43d   :  { %7642 = vmatpush1.bf16.msra.mxu0 %v9778_v9 }
 0x43e   :  { %7806 = vmatpush1.bf16.msra.mxu1 %v9780_v11  ;;  %7643 = vmatprep.subr.bf16.mxu0 %v9795_v12 }
 0x43f   :  { %7807 = vmatprep.subr.bf16.mxu1 %v9797_v14  ;;  %v9844_v14 = vcombine.low %v1583_v8, %v1591_v57  ;;  %v9858_v8 = vcombine.low %v1598_v44, %v1606_v42 }
 0x441   :  { %7644 = vmatpush1.bf16.msra.mxu0 %v9794_v28 }
 0x442   :  { %7808 = vmatpush1.bf16.msra.mxu1 %v9796_v22  ;;  %7645 = vmatprep.subr.bf16.mxu0 %v9811_v30  ;;  %v9859_v22 = vcombine.high %v1598_v44, %v1606_v42  ;;  %v9874_v44 = vcombine.low %v1614_v40, %v1622_v7 }
 0x443   :  { %7809 = vmatprep.subr.bf16.mxu1 %v9813_v34 }
 0x445   :  { %7646 = vmatpush1.bf16.msra.mxu0 %v9810_v33 }
 0x446   :  { %7810 = vmatpush1.bf16.msra.mxu1 %v9812_v48  ;;  %7647 = vmatprep.subr.bf16.mxu0 %v9827_v51  ;;  %v1615_v51 = vld [vmem:[#allocation10 + $0x1c28] sm:$0xff] }
 0x447   :  { %v10770_v10 = vpop.f32.mrb[12].mxu0  ;;  %7811 = vmatprep.subr.bf16.mxu1 %v9829_v31  ;;  %v1623_v31 = vld [vmem:[#allocation10 + $0x1c68] sm:$0xff] }
 0x448   :  { %v8198_v0 = vsel %vm378_vm1, %v10770_v10, 0.0  ;;  %v10774_v62 = vpop.f32.mrb[12].mxu1  ;;  %v10776_v6 = vpop.f32.mrb[13].mxu0 }
 0x449   :  { %v8199_v3 = vrot.slane %v8198_v0, 4  ;;  %v8212_v5 = vsel %vm378_vm1, %v10774_v62, 0.0  ;;  %v8205_v9 = vsel %vm378_vm1, %v10776_v6, 0.0  ;;  %v10782_v11 = vpop.f32.mrb[13].mxu1  ;;  %v7347_v12 = vpop.f32.mrb[14].mxu0  ;;  %7648 = vmatpush1.bf16.msra.mxu0 %v9826_v1 }
 0x44a   :  { %v8213_v15 = vrot.slane %v8212_v5, 4  ;;  %v8206_v19 = vrot.slane %v8205_v9, 4  ;;  %v8219_v25 = vsel %vm378_vm1, %v10782_v11, 0.0  ;;  %v7511_v17 = vpop.f32.mrb[14].mxu1  ;;  %7812 = vmatpush1.bf16.msra.mxu1 %v9828_v58  ;;  %v7348_v28 = vpop.f32.mrb[15].mxu0  ;;  %7649 = vmatprep.subr.bf16.mxu0 %v9843_v60  ;;  %v9860_v58 = vcombine.low %v1599_v53, %v1607_v45  ;;  %v1630_v12 = vld [vmem:[#allocation10 + $0x1ca0] sm:$0xff] }
 0x44b   :  { %v8200_v30 = vadd.f32 %v8199_v3, %v8198_v0  ;;  %v8220_v34 = vrot.slane %v8219_v25, 4  ;;  %v7512_v39 = vpop.f32.mrb[15].mxu1  ;;  %7813 = vmatprep.subr.bf16.mxu1 %v9845_v61  ;;  %v9875_v60 = vcombine.high %v1614_v40, %v1622_v7  ;;  %v9877_v61 = vcombine.high %v1615_v51, %v1623_v31  ;;  %v1638_v17 = vld [vmem:[#allocation10 + $0x1ce0] sm:$0xff] }
 0x44c   :  { %v8214_v33 = vadd.f32 %v8213_v15, %v8212_v5  ;;  %v8207_v48 = vadd.f32 %v8206_v19, %v8205_v9  ;;  %v1631_v15 = vld [vmem:[#allocation10 + $0x1ca8] sm:$0xff]  ;;  %v9876_v53 = vcombine.low %v1615_v51, %v1623_v31  ;;  %v9891_v45 = vcombine.high %v1630_v12, %v1638_v17  ;;  %v1654_v39 = vld [vmem:[#allocation10 + $0x1d60] sm:$0xff] }
 0x44d   :  { %v8201_v29 = vrot.slane %v8200_v30, 2  ;;  %v8221_v56 = vadd.f32 %v8220_v34, %v8219_v25  ;;  %7650 = vmatpush1.bf16.msra.mxu0 %v9842_v63  ;;  %v1639_v19 = vld [vmem:[#allocation10 + $0x1ce8] sm:$0xff]  ;;  %v1646_v34 = vld [vmem:[#allocation10 + $0x1d20] sm:$0xff]  ;;  %v9890_v40 = vcombine.low %v1630_v12, %v1638_v17 }
 0x44e   :  { %v8215_v57 = vrot.slane %v8214_v33, 2  ;;  %v8208_v1 = vrot.slane %v8207_v48, 2  ;;  %7814 = vmatpush1.bf16.msra.mxu1 %v9844_v14  ;;  %7651 = vmatprep.subr.bf16.mxu0 %v9859_v22  ;;  %v9892_v51 = vcombine.low %v1631_v15, %v1639_v19  ;;  %v9907_v31 = vcombine.high %v1646_v34, %v1654_v39  ;;  %v1663_v12 = vld [vmem:[#allocation10 + $0x1da8] sm:$0xff] }
 0x44f   :  { %v8202_v0 = vadd.f32 %v8201_v29, %v8200_v30  ;;  %v8222_v3 = vrot.slane %v8221_v56, 2  ;;  %7815 = vmatprep.subr.bf16.mxu1 %v9861_v36  ;;  %v9893_v30 = vcombine.high %v1631_v15, %v1639_v19  ;;  %v1655_v29 = vld [vmem:[#allocation10 + $0x1d68] sm:$0xff] }
 0x450   :  { %v8216_v5 = vadd.f32 %v8215_v57, %v8214_v33  ;;  %v8209_v9 = vadd.f32 %v8208_v1, %v8207_v48  ;;  %v1647_v48 = vld [vmem:[#allocation10 + $0x1d28] sm:$0xff] }
 0x451   :  { %v8203_v28 = vrot.slane %v8202_v0, 1  ;;  %v8223_v25 = vadd.f32 %v8222_v3, %v8221_v56  ;;  %7652 = vmatpush1.bf16.msra.mxu0 %v9858_v8  ;;  %v1670_v3 = vld [vmem:[#allocation10 + $0x1de0] sm:$0xff]  ;;  %v1671_v17 = vld [vmem:[#allocation10 + $0x1de8] sm:$0xff]  ;;  %v9908_v19 = vcombine.low %v1647_v48, %v1655_v29 }
 0x452   :  { %v8217_v42 = vrot.slane %v8216_v5, 1  ;;  %v8210_v63 = vrot.slane %v8209_v9, 1  ;;  %7816 = vmatpush1.bf16.msra.mxu1 %v9860_v58  ;;  %7653 = vmatprep.subr.bf16.mxu0 %v9875_v60  ;;  %v9909_v60 = vcombine.high %v1647_v48, %v1655_v29 }
 0x453   :  { %v8204_v14 = vadd.f32 %v8203_v28, %v8202_v0  ;;  %v8224_v22 = vrot.slane %v8223_v25, 1  ;;  %7817 = vmatprep.subr.bf16.mxu1 %v9877_v61  ;;  %v1662_v0 = vld [vmem:[#allocation10 + $0x1da0] sm:$0xff] }
 0x454   :  { %v8218_v36 = vadd.f32 %v8217_v42, %v8216_v5  ;;  %v8211_v33 = vadd.f32 %v8210_v63, %v8209_v9  ;;  %v1678_v42 = vld [vmem:[#allocation10 + $0x1e20] sm:$0xff] }
 0x455   :  { %v8286_v57 = vmul.f32 0.25, %v8204_v14  ;;  %v8225_v56 = vadd.f32 %v8224_v22, %v8223_v25  ;;  %7654 = vmatpush1.bf16.msra.mxu0 %v9874_v44  ;;  %v1686_v63 = vld [vmem:[#allocation10 + $0x1e60] sm:$0xff]  ;;  %v1679_v22 = vld [vmem:[#allocation10 + $0x1e28] sm:$0xff] }
 0x456   :  { %v8288_v7 = vmul.f32 0.25, %v8218_v36  ;;  %v8287_v8 = vmul.f32 0.25, %v8211_v33  ;;  %7818 = vmatpush1.bf16.msra.mxu1 %v9876_v53  ;;  %7655 = vmatprep.subr.bf16.mxu0 %v9891_v45  ;;  %v9922_v33 = vcombine.low %v1662_v0, %v1670_v3 }
 0x457   :  { %v10787_v1 = vsub.f32 %v10770_v10, %v8286_v57  ;;  %v8289_v58 = vmul.f32 0.25, %v8225_v56  ;;  %7819 = vmatprep.subr.bf16.mxu1 %v9893_v30  ;;  %v9906_v10 = vcombine.low %v1646_v34, %v1654_v39  ;;  %v1687_v30 = vld [vmem:[#allocation10 + $0x1e68] sm:$0xff]  ;;  %v9924_v57 = vcombine.low %v1663_v12, %v1671_v17 }
 0x458   :  { %v10790_v61 = vsub.f32 %v10774_v62, %v8288_v7  ;;  %v10793_v5 = vsub.f32 %v10776_v6, %v8287_v8  ;;  %v9923_v6 = vcombine.high %v1662_v0, %v1670_v3  ;;  %v9939_v56 = vcombine.high %v1678_v42, %v1686_v63 }
 0x459   :  { %v8318_v9 = vmul.f32 %v10787_v1, %v10787_v1  ;;  %v10798_v15 = vsub.f32 %v10782_v11, %v8289_v58  ;;  %7656 = vmatpush1.bf16.msra.mxu0 %v9890_v40  ;;  %v9925_v11 = vcombine.high %v1663_v12, %v1671_v17  ;;  %v9941_v8 = vcombine.high %v1679_v22, %v1687_v30 }
 0x45a   :  { %v8320_v28 = vmul.f32 %v10790_v61, %v10790_v61  ;;  %v8319_v62 = vmul.f32 %v10793_v5, %v10793_v5  ;;  %7820 = vmatpush1.bf16.msra.mxu1 %v9892_v51  ;;  %7657 = vmatprep.subr.bf16.mxu0 %v9907_v31  ;;  %v1694_v51 = vld [vmem:[#allocation10 + $0x1ea0] sm:$0xff]  ;;  %v9938_v0 = vcombine.low %v1678_v42, %v1686_v63 }
 0x45b   :  { %v8358_v25 = vsel %vm378_vm1, %v8318_v9, 0.0  ;;  %v8321_v44 = vmul.f32 %v10798_v15, %v10798_v15  ;;  %7821 = vmatprep.subr.bf16.mxu1 %v9909_v60  ;;  %v1702_v31 = vld [vmem:[#allocation10 + $0x1ee0] sm:$0xff]  ;;  %v1695_v9 = vld [vmem:[#allocation10 + $0x1ea8] sm:$0xff]  ;;  %v9940_v12 = vcombine.low %v1679_v22, %v1687_v30 }
 0x45c   :  { %v8359_v53 = vrot.slane %v8358_v25, 4  ;;  %v8372_v45 = vsel %vm378_vm1, %v8320_v28, 0.0  ;;  %v8365_v14 = vsel %vm378_vm1, %v8319_v62, 0.0  ;;  %v1703_v28 = vld [vmem:[#allocation10 + $0x1ee8] sm:$0xff]  ;;  %v9955_v17 = vcombine.high %v1694_v51, %v1702_v31 }
 0x45d   :  { %v8373_v34 = vrot.slane %v8372_v45, 4  ;;  %v8366_v39 = vrot.slane %v8365_v14, 4  ;;  %v8379_v36 = vsel %vm378_vm1, %v8321_v44, 0.0  ;;  %7658 = vmatpush1.bf16.msra.mxu0 %v9906_v10  ;;  %v9954_v42 = vcombine.low %v1694_v51, %v1702_v31 }
 0x45e   :  { %v8360_v48 = vadd.f32 %v8359_v53, %v8358_v25  ;;  %v8380_v29 = vrot.slane %v8379_v36, 4  ;;  %7822 = vmatpush1.bf16.msra.mxu1 %v9908_v19  ;;  %7659 = vmatprep.subr.bf16.mxu0 %v9923_v6  ;;  %v9957_v25 = vcombine.high %v1695_v9, %v1703_v28  ;;  %v1718_v53 = vld [vmem:[#allocation10 + $0x1f60] sm:$0xff]  ;;  %v9956_v22 = vcombine.low %v1695_v9, %v1703_v28 }
 0x45f   :  { %v8374_v40 = vadd.f32 %v8373_v34, %v8372_v45  ;;  %v8367_v7 = vadd.f32 %v8366_v39, %v8365_v14  ;;  %7823 = vmatprep.subr.bf16.mxu1 %v9925_v11  ;;  %v1710_v11 = vld [vmem:[#allocation10 + $0x1f20] sm:$0xff]  ;;  %v1711_v34 = vld [vmem:[#allocation10 + $0x1f28] sm:$0xff] }
 0x460   :  { %v8361_v58 = vrot.slane %v8360_v48, 2  ;;  %v8381_v60 = vadd.f32 %v8380_v29, %v8379_v36  ;;  %v1719_v39 = vld [vmem:[#allocation10 + $0x1f68] sm:$0xff]  ;;  %v9971_v30 = vcombine.high %v1710_v11, %v1718_v53  ;;  %v9970_v51 = vcombine.low %v1710_v11, %v1718_v53 }
 0x461   :  { %v8375_v62 = vrot.slane %v8374_v40, 2  ;;  %v8368_v44 = vrot.slane %v8367_v7, 2  ;;  %7660 = vmatpush1.bf16.msra.mxu0 %v9922_v33  ;;  %v9972_v9 = vcombine.low %v1711_v34, %v1719_v39 }
 0x462   :  { %v8362_v3 = vadd.f32 %v8361_v58, %v8360_v48  ;;  %v8382_v10 = vrot.slane %v8381_v60, 2  ;;  %7824 = vmatpush1.bf16.msra.mxu1 %v9924_v57  ;;  %7661 = vmatprep.subr.bf16.mxu0 %v9939_v56  ;;  %v9973_v56 = vcombine.high %v1711_v34, %v1719_v39  ;;  %v736_v39 = vld [vmem:[#allocation10 + $0xb0] sm:$0xff] }
 0x463   :  { %v8376_v19 = vadd.f32 %v8375_v62, %v8374_v40  ;;  %v8369_v6 = vadd.f32 %v8368_v44, %v8367_v7  ;;  %7825 = vmatprep.subr.bf16.mxu1 %v9941_v8  ;;  %v1726_v40 = vld [vmem:[#allocation10 + $0x1fa0] sm:$0xff]  ;;  %v1735_v62 = vld [vmem:[#allocation10 + $0x1fe8] sm:$0xff] }
 0x464   :  { %v8363_v45 = vrot.slane %v8362_v3, 1  ;;  %v8383_v14 = vadd.f32 %v8382_v10, %v8381_v60  ;;  %v1734_v7 = vld [vmem:[#allocation10 + $0x1fe0] sm:$0xff]  ;;  %v1727_v60 = vld [vmem:[#allocation10 + $0x1fa8] sm:$0xff] }
 0x465   :  { %v8377_v36 = vrot.slane %v8376_v19, 1  ;;  %v8370_v29 = vrot.slane %v8369_v6, 1  ;;  %7662 = vmatpush1.bf16.msra.mxu0 %v9938_v0  ;;  %v9987_v28 = vcombine.high %v1726_v40, %v1734_v7  ;;  %v9988_v11 = vcombine.low %v1727_v60, %v1735_v62 }
 0x466   :  { %v8364_v63 = vadd.f32 %v8363_v45, %v8362_v3  ;;  %v8384_v33 = vrot.slane %v8383_v14, 1  ;;  %7826 = vmatpush1.bf16.msra.mxu1 %v9940_v12  ;;  %7663 = vmatprep.subr.bf16.mxu0 %v9955_v17  ;;  %v9989_v17 = vcombine.high %v1727_v60, %v1735_v62  ;;  %v721_v45 = vld [vmem:[#allocation10 + $0x38] sm:$0xff] }
 0x467   :  { %v8378_v48 = vadd.f32 %v8377_v36, %v8376_v19  ;;  %v8371_v57 = vadd.f32 %v8370_v29, %v8369_v6  ;;  %7827 = vmatprep.subr.bf16.mxu1 %v9957_v25  ;;  %v720_v19 = vld [vmem:[#allocation10 + $0x30] sm:$0xff]  ;;  %v9986_v36 = vcombine.low %v1726_v40, %v1734_v7  ;;  %v753_v40 = vld [vmem:[#allocation10 + $0x138] sm:$0xff] }
 0x468   :  { %v8446_v8 = vmul.f32 0.25, %v8364_v63  ;;  %v8385_v58 = vadd.f32 %v8384_v33, %v8383_v14  ;;  %v728_v6 = vld [vmem:[#allocation10 + $0x70] sm:$0xff]  ;;  %v729_v14 = vld [vmem:[#allocation10 + $0x78] sm:$0xff] }
 0x469   :  { %v8448_v44 = vmul.f32 0.25, %v8378_v48  ;;  %v8447_v10 = vmul.f32 0.25, %v8371_v57  ;;  %7664 = vmatpush1.bf16.msra.mxu0 %v9954_v42  ;;  %v8983_v53 = vcombine.high %v720_v19, %v728_v6  ;;  %v8985_v34 = vcombine.high %v721_v45, %v729_v14  ;;  %v744_v29 = vld [vmem:[#allocation10 + $0xf0] sm:$0xff]  ;;  %v737_v63 = vld [vmem:[#allocation10 + $0xb8] sm:$0xff] }
 0x46a   :  { %v8464_v31 = vadd.f32 1e-05, %v8446_v8  ;;  %v8449_v0 = vmul.f32 0.25, %v8385_v58  ;;  %7828 = vmatpush1.bf16.msra.mxu1 %v9956_v22  ;;  %7665 = vmatprep.subr.bf16.mxu0 %v9971_v30  ;;  %v8982_v42 = vcombine.low %v720_v19, %v728_v6  ;;  %v745_v33 = vld [vmem:[#allocation10 + $0xf8] sm:$0xff]  ;;  %v8984_v22 = vcombine.low %v721_v45, %v729_v14  ;;  %v752_v48 = vld [vmem:[#allocation10 + $0x130] sm:$0xff] }
 0x46b   :  { %v8466_v3 = vadd.f32 1e-05, %v8448_v44  ;;  %v8465_v12 = vadd.f32 1e-05, %v8447_v10  ;;  %7829 = vmatprep.subr.bf16.mxu1 %v9973_v56  ;;  %v8999_v30 = vcombine.high %v736_v39, %v744_v29  ;;  %v760_v57 = vld [vmem:[#allocation10 + $0x170] sm:$0xff]  ;;  %v9001_v56 = vcombine.high %v737_v63, %v745_v33  ;;  %v761_v7 = vld [vmem:[#allocation10 + $0x178] sm:$0xff] }
 0x46c   :  { %10137 = vrsqrt.f32 %v8464_v31  ;;  %v8467_v25 = vadd.f32 1e-05, %v8449_v0  ;;  %v8998_v8 = vcombine.low %v736_v39, %v744_v29  ;;  %v9000_v60 = vcombine.low %v737_v63, %v745_v33  ;;  %v776_v31 = vld [vmem:[#allocation10 + $0x1f0] sm:$0xff] }
 0x46d   :  { %10139 = vrsqrt.f32 %v8466_v3  ;;  %7666 = vmatpush1.bf16.msra.mxu0 %v9970_v51  ;;  %v9015_v62 = vcombine.high %v752_v48, %v760_v57  ;;  %v9017_v10 = vcombine.high %v753_v40, %v761_v7  ;;  %v768_v51 = vld [vmem:[#allocation10 + $0x1b0] sm:$0xff]  ;;  %v9016_v6 = vcombine.low %v753_v40, %v761_v7  ;;  %v801_v40 = vld [vmem:[#allocation10 + $0x2b8] sm:$0xff] }
 0x46e   :  { %10141 = vrsqrt.f32 %v8465_v12  ;;  %7830 = vmatpush1.bf16.msra.mxu1 %v9972_v9  ;;  %7667 = vmatprep.subr.bf16.mxu0 %v9987_v28  ;;  %v769_v9 = vld [vmem:[#allocation10 + $0x1b8] sm:$0xff]  ;;  %v784_v14 = vld [vmem:[#allocation10 + $0x230] sm:$0xff]  ;;  %v9030_v39 = vcombine.low %v768_v51, %v776_v31 }
 0x46f   :  { %10143 = vrsqrt.f32 %v8467_v25  ;;  %7831 = vmatprep.subr.bf16.mxu1 %v9989_v17  ;;  %v777_v28 = vld [vmem:[#allocation10 + $0x1f8] sm:$0xff]  ;;  %v9014_v17 = vcombine.low %v752_v48, %v760_v57  ;;  %v9031_v25 = vcombine.high %v768_v51, %v776_v31  ;;  %v808_v48 = vld [vmem:[#allocation10 + $0x2f0] sm:$0xff]  ;;  %v8548_v57 = vrot.slane %v8540_v32, %v10573_v55 }
 0x470   :  { %v9032_v63 = vcombine.low %v769_v9, %v777_v28  ;;  %v809_v7 = vld [vmem:[#allocation10 + $0x2f8] sm:$0xff] }
 0x471   :  { %7668 = vmatpush1.bf16.msra.mxu0 %v9986_v36  ;;  %v792_v36 = vld [vmem:[#allocation10 + $0x270] sm:$0xff]  ;;  %v9065_v32 = vcombine.high %v801_v40, %v809_v7 }
 0x472   :  { %7832 = vmatpush1.bf16.msra.mxu1 %v9988_v11  ;;  %7842 = vmatprep.subr.bf16.mxu0 %v8983_v53  ;;  %v785_v53 = vld [vmem:[#allocation10 + $0x238] sm:$0xff]  ;;  %v9047_v33 = vcombine.high %v784_v14, %v792_v36 }
 0x473   :  { %8006 = vmatprep.subr.bf16.mxu1 %v8985_v34  ;;  %v793_v34 = vld [vmem:[#allocation10 + $0x278] sm:$0xff] }
 0x474   :  { %7670 = vmatmul.mubr.bf16.vlgmr.msra.gmra.mrb[16].mxu0 %v10688_v41 }
 0x475   :  { %7834 = vmatmul.mubr.bf16.vlgmr.msra.gmra.mrb[16].mxu1 %v10688_v41  ;;  %7843 = vmatpush1.bf16.msra.mxu0 %v8982_v42  ;;  %v10816_v42 = vld [vmem:[#allocation13] sm:$0xff] }
 0x476   :  { %v10138_v58 = vpop.eup %10137  ;;  %7874 = vmatprep.mubr.bf16.mxu0 %v10639_v49  ;;  %8007 = vmatpush1.bf16.msra.mxu1 %v8984_v22  ;;  %v9049_v22 = vcombine.high %v785_v53, %v793_v34  ;;  %v8715_v31 = vrot.slane %v10816_v42, %v10590_v13 }
 0x477   :  { %v10140_v44 = vpop.eup %10139  ;;  %8038 = vmatprep.mubr.bf16.mxu1 %v10639_v49  ;;  %7844 = vmatprep.subr.bf16.mxu0 %v8999_v30  ;;  %v9033_v49 = vcombine.high %v769_v9, %v777_v28  ;;  %v800_v30 = vld [vmem:[#allocation10 + $0x2b0] sm:$0xff] }
 0x478   :  { %v10142_v0 = vpop.eup %10141  ;;  %8008 = vmatprep.subr.bf16.mxu1 %v9001_v56  ;;  %v9063_v51 = vcombine.high %v800_v30, %v808_v48  ;;  %v9062_v28 = vcombine.low %v800_v30, %v808_v48 }
 0x479   :  { %v10144_v3 = vpop.eup %10143  ;;  %v8510_v12 = vcombine.low %v10138_v58, %v10142_v0  ;;  %7845 = vmatpush1.bf16.msra.mxu0 %v8998_v8  ;;  %v8458_v8 = vld [vmem:[#allocation11] sm:$0xff]  ;;  %v8739_v58 = vrot.slane %v10816_v42, %v10623_v50  ;;  %v8719_v0 = vrot.slane %v10816_v42, %v10587_v20 }
 0x47a   :  { %v8511_v19 = vcombine.low %v10140_v44, %v10144_v3  ;;  %8009 = vmatpush1.bf16.msra.mxu1 %v9000_v60  ;;  %7846 = vmatprep.subr.bf16.mxu0 %v9015_v62  ;;  %v8743_v60 = vrot.slane %v10816_v42, %v10582_v16  ;;  %v9046_v62 = vcombine.low %v784_v14, %v792_v36 }
 0x47b   :  { %v8532_v45 = vrot.slane %v8510_v12, %v10573_v55  ;;  %8010 = vmatprep.subr.bf16.mxu1 %v9017_v10  ;;  %v9048_v10 = vcombine.low %v785_v53, %v793_v34  ;;  %v9064_v3 = vcombine.low %v801_v40, %v809_v7  ;;  %v817_v12 = vld [vmem:[#allocation10 + $0x338] sm:$0xff]  ;;  %v8731_v14 = vrot.slane %v10816_v42, %v10604_v27 }
 0x47c   :  { %v8539_v11 = vrot.slane %v8511_v19, %v10573_v55  ;;  %v8723_v19 = vrot.slane %v10816_v42, %v10596_v23  ;;  %v8735_v36 = vrot.slane %v10816_v42, %v10599_v24  ;;  %v10360_v34 = vmov 1983009808   ;;  %v833_v40 = vld [vmem:[#allocation10 + $0x3b8] sm:$0xff] }
 0x47d   :  { %7847 = vmatpush1.bf16.msra.mxu0 %v9014_v17  ;;  %v825_v17 = vld [vmem:[#allocation10 + $0x378] sm:$0xff] }
 0x47e   :  { %v8541_v29 = vcombine.low %v8532_v45, %v8539_v11  ;;  %8011 = vmatpush1.bf16.msra.mxu1 %v9016_v6  ;;  %7848 = vmatprep.subr.bf16.mxu0 %v9031_v25  ;;  %v9079_v6 = vcombine.high %v816_v18, %v824_v35  ;;  %v10833_v25 = vld [vmem:[#allocation10 + $0x3b0] sm:$0xff]  ;;  %v841_v7 = vld [vmem:[#allocation10 + $0x3f8] sm:$0xff] }
 0x47f   :  { %8012 = vmatprep.subr.bf16.mxu1 %v9033_v49  ;;  %v10835_v45 = vld [vmem:[#allocation10 + $0x3f0] sm:$0xff]  ;;  %v8727_v49 = vrot.slane %v10816_v42, %v10593_v21 }
 0x480   :  { %v8555_v56 = vrot.slane %v8541_v29, %v10573_v55 }
 0x481   :  { %7849 = vmatpush1.bf16.msra.mxu0 %v9030_v39  ;;  %v8859_v39 = vunpack.c.l.s4 %v10360_v34  ;;  %v9096_v34 = vcombine.low %v833_v40, %v841_v7 }
 0x482   :  { %v8556_v44 = vcombine.low %v8548_v57, %v8555_v56  ;;  %8013 = vmatpush1.bf16.msra.mxu1 %v9032_v63  ;;  %7850 = vmatprep.subr.bf16.mxu0 %v9047_v33  ;;  %v9078_v63 = vcombine.low %v816_v18, %v824_v35  ;;  %v9081_v33 = vcombine.high %v817_v12, %v825_v17 }
 0x483   :  { %8014 = vmatprep.subr.bf16.mxu1 %v9049_v22  ;;  %v9080_v57 = vcombine.low %v817_v12, %v825_v17  ;;  %v9095_v56 = vcombine.high %v10833_v25, %v10835_v45  ;;  %v8860_v35 = vunpack.c.0.s8 %v8859_v39  ;;  %v9097_v12 = vcombine.high %v833_v40, %v841_v7  ;;  %v888_v40 = vld [vmem:[#allocation10 + $0x570] sm:$0xff] }
 0x484   :  { %v8608_v9 = vmul.f32 %v8556_v44, %v8458_v8  ;;  %v10852_v8 = vld [vmem:[#allocation10 + $0x430] sm:$0xff] }
 0x485   :  { %7851 = vmatpush1.bf16.msra.mxu0 %v9046_v62  ;;  %v10854_v62 = vld [vmem:[#allocation10 + $0x470] sm:$0xff] }
 0x486   :  { %v8639_v11 = vrot.slane %v8608_v9, %v10623_v50  ;;  %v8643_v53 = vrot.slane %v8608_v9, %v10582_v16  ;;  %8015 = vmatpush1.bf16.msra.mxu1 %v9048_v10  ;;  %7852 = vmatprep.subr.bf16.mxu0 %v9063_v51  ;;  %v8615_v29 = vrot.slane %v8608_v9, %v10590_v13 }
 0x487   :  { %8016 = vmatprep.subr.bf16.mxu1 %v9065_v32  ;;  %v8619_v22 = vrot.slane %v8608_v9, %v10587_v20  ;;  %v8623_v30 = vrot.slane %v8608_v9, %v10596_v23  ;;  %v8627_v44 = vrot.slane %v8608_v9, %v10593_v21  ;;  %v8631_v10 = vrot.slane %v8608_v9, %v10604_v27 }
 0x488   :  { %v8698_v48 = vmul.f32 %v8639_v11, %v10790_v61  ;;  %v8699_v42 = vmul.f32 %v8643_v53, %v10798_v15  ;;  %v8635_v51 = vrot.slane %v8608_v9, %v10599_v24  ;;  %v8692_v61 = vmul.f32 %v8615_v29, %v10723_v38  ;;  %v864_v29 = vld [vmem:[#allocation10 + $0x4b0] sm:$0xff] }
 0x489   :  { %7853 = vmatpush1.bf16.msra.mxu0 %v9062_v28  ;;  %v8693_v32 = vmul.f32 %v8619_v22, %v10729_v46  ;;  %v9094_v28 = vcombine.low %v10833_v25, %v10835_v45  ;;  %v8694_v17 = vmul.f32 %v8623_v30, %v10726_v43  ;;  %v8695_v11 = vmul.f32 %v8627_v44, %v10734_v54 }
 0x48a   :  { %v8798_v15 = vadd.f32 %v8739_v58, %v8698_v48  ;;  %v8799_v18 = vadd.f32 %v8743_v60, %v8699_v42  ;;  %8017 = vmatpush1.bf16.msra.mxu1 %v9064_v3  ;;  %7854 = vmatprep.subr.bf16.mxu0 %v9079_v6  ;;  %v9111_v38 = vcombine.high %v10852_v8, %v10854_v62  ;;  %v849_v58 = vld [vmem:[#allocation10 + $0x438] sm:$0xff] }
 0x48b   :  { %8018 = vmatprep.subr.bf16.mxu1 %v9081_v33  ;;  %v857_v60 = vld [vmem:[#allocation10 + $0x478] sm:$0xff]  ;;  %v8696_v46 = vmul.f32 %v8631_v10, %v10787_v1  ;;  %v8697_v3 = vmul.f32 %v8635_v51, %v10793_v5  ;;  %v8792_v6 = vadd.f32 %v8715_v31, %v8692_v61  ;;  %v8793_v25 = vadd.f32 %v8719_v0, %v8693_v32  ;;  %v872_v33 = vld [vmem:[#allocation10 + $0x4f0] sm:$0xff] }
 0x48c   :  { %v8814_v53 = vmax.f32 %v8798_v15, 0.0  ;;  %v8815_v9 = vmax.f32 %v8799_v18, 0.0  ;;  %v8794_v43 = vadd.f32 %v8723_v19, %v8694_v17  ;;  %v8795_v54 = vadd.f32 %v8727_v49, %v8695_v11  ;;  %v865_v5 = vld [vmem:[#allocation10 + $0x4b8] sm:$0xff]  ;;  %v896_v17 = vld [vmem:[#allocation10 + $0x5b0] sm:$0xff] }
 0x48d   :  { %7855 = vmatpush1.bf16.msra.mxu0 %v9078_v63  ;;  %v9113_v39 = vcombine.high %v849_v58, %v857_v60  ;;  %v8796_v22 = vadd.f32 %v8731_v14, %v8696_v46  ;;  %v8797_v30 = vadd.f32 %v8735_v36, %v8697_v3  ;;  %v10870_v48 = vsub.s32 %v8860_v35, %v10570_v37  ;;  %v873_v31 = vld [vmem:[#allocation10 + $0x4f8] sm:$0xff]  ;;  %v880_v37 = vld [vmem:[#allocation10 + $0x530] sm:$0xff] }
 0x48e   :  { %v9997_v45 = vpack.c.bf16 %v8815_v9, %v8814_v53  ;;  %8019 = vmatpush1.bf16.msra.mxu1 %v9080_v57  ;;  %7856 = vmatprep.subr.bf16.mxu0 %v9095_v56  ;;  %v9110_v1 = vcombine.low %v10852_v8, %v10854_v62  ;;  %v8808_v0 = vmax.f32 %v8792_v6, 0.0  ;;  %v8809_v63 = vmax.f32 %v8793_v25, 0.0  ;;  %v881_v62 = vld [vmem:[#allocation10 + $0x538] sm:$0xff]  ;;  %v904_v11 = vld [vmem:[#allocation10 + $0x5f0] sm:$0xff] }
 0x48f   :  { %8020 = vmatprep.subr.bf16.mxu1 %v9097_v12  ;;  %v8810_v42 = vmax.f32 %v8794_v43, 0.0  ;;  %v8811_v19 = vmax.f32 %v8795_v54, 0.0  ;;  %v8812_v49 = vmax.f32 %v8796_v22, 0.0  ;;  %v9112_v57 = vcombine.low %v849_v58, %v857_v60  ;;  %v889_v10 = vld [vmem:[#allocation10 + $0x578] sm:$0xff]  ;;  %v912_v6 = vld [vmem:[#allocation10 + $0x630] sm:$0xff] }
 0x490   :  { %v9127_v56 = vcombine.high %v864_v29, %v872_v33  ;;  %v8813_v14 = vmax.f32 %v8797_v30, 0.0  ;;  %v9129_v36 = vcombine.high %v865_v5, %v873_v31  ;;  %v9994_v7 = vpack.c.bf16 %v8809_v63, %v8808_v0  ;;  %v897_v9 = vld [vmem:[#allocation10 + $0x5b8] sm:$0xff]  ;;  %v920_v25 = vld [vmem:[#allocation10 + $0x670] sm:$0xff] }
 0x491   :  { %7857 = vmatpush1.bf16.msra.mxu0 %v9094_v28  ;;  %v9995_v44 = vpack.c.bf16 %v8811_v19, %v8810_v42  ;;  %v8888_v8 = vrot.slane %v9997_v45, %v10870_v48  ;;  %v9126_v61 = vcombine.low %v864_v29, %v872_v33  ;;  %v9128_v35 = vcombine.low %v865_v5, %v873_v31  ;;  %v913_v45 = vld [vmem:[#allocation10 + $0x638] sm:$0xff]  ;;  %v928_v22 = vld [vmem:[#allocation10 + $0x6b0] sm:$0xff] }
 0x492   :  { %8021 = vmatpush1.bf16.msra.mxu1 %v9096_v34  ;;  %7858 = vmatprep.subr.bf16.mxu0 %v9111_v38  ;;  %v9996_v51 = vpack.c.bf16 %v8813_v14, %v8812_v49  ;;  %v8864_v15 = vrot.slane %v9994_v7, %v10870_v48  ;;  %v9143_v32 = vcombine.high %v880_v37, %v888_v40  ;;  %v905_v34 = vld [vmem:[#allocation10 + $0x5f8] sm:$0xff]  ;;  %v936_v30 = vld [vmem:[#allocation10 + $0x6f0] sm:$0xff] }
 0x493   :  { %8022 = vmatprep.subr.bf16.mxu1 %v9113_v39  ;;  %v8871_v18 = vrot.slane %v9995_v44, %v10870_v48  ;;  %v9145_v12 = vcombine.high %v881_v62, %v889_v10  ;;  %v9142_v58 = vcombine.low %v880_v37, %v888_v40  ;;  %v9144_v60 = vcombine.low %v881_v62, %v889_v10  ;;  %v921_v43 = vld [vmem:[#allocation10 + $0x678] sm:$0xff]  ;;  %v944_v19 = vld [vmem:[#allocation10 + $0x730] sm:$0xff] }
 0x494   :  { %v8881_v28 = vrot.slane %v9996_v51, %v10870_v48  ;;  %v9159_v46 = vcombine.high %v896_v17, %v904_v11  ;;  %v9161_v3 = vcombine.high %v897_v9, %v905_v34  ;;  %v9158_v54 = vcombine.low %v896_v17, %v904_v11  ;;  %v937_v5 = vld [vmem:[#allocation10 + $0x6f8] sm:$0xff]  ;;  %v952_v49 = vld [vmem:[#allocation10 + $0x770] sm:$0xff] }
 0x495   :  { %7859 = vmatpush1.bf16.msra.mxu0 %v9110_v1  ;;  %v8872_v53 = vcombine.low %v8864_v15, %v8871_v18  ;;  %v9160_v39 = vcombine.low %v897_v9, %v905_v34  ;;  %v9175_v29 = vcombine.high %v912_v6, %v920_v25  ;;  %v9177_v33 = vcombine.high %v913_v45, %v921_v43  ;;  %v929_v1 = vld [vmem:[#allocation10 + $0x6b8] sm:$0xff]  ;;  %v960_v7 = vld [vmem:[#allocation10 + $0x7b0] sm:$0xff] }
 0x496   :  { %8023 = vmatpush1.bf16.msra.mxu1 %v9112_v57  ;;  %7860 = vmatprep.subr.bf16.mxu0 %v9127_v56  ;;  %v8889_v38 = vcombine.low %v8881_v28, %v8888_v8  ;;  %v9174_v31 = vcombine.low %v912_v6, %v920_v25  ;;  %v9176_v0 = vcombine.low %v913_v45, %v921_v43  ;;  %v945_v57 = vld [vmem:[#allocation10 + $0x738] sm:$0xff]  ;;  %v968_v44 = vld [vmem:[#allocation10 + $0x7f0] sm:$0xff] }
 0x497   :  { %8024 = vmatprep.subr.bf16.mxu1 %v9129_v36  ;;  %8928 = vst [vmem:[#allocation14] sm:$0xff] %v8872_v53  ;;  %v9191_v63 = vcombine.high %v928_v22, %v936_v30  ;;  %v9193_v42 = vcombine.high %v929_v1, %v937_v5  ;;  %v953_v56 = vld [vmem:[#allocation10 + $0x778] sm:$0xff]  ;;  %v9190_v14 = vcombine.low %v928_v22, %v936_v30  ;;  %v976_v18 = vld [vmem:[#allocation10 + $0x830] sm:$0xff] }
 0x498   :  { %8929 = vst [vmem:[#allocation14 + $0x8] sm:$0xff] %v8889_v38  ;;  %v9192_v36 = vcombine.low %v929_v1, %v937_v5  ;;  %v9207_v37 = vcombine.high %v944_v19, %v952_v49  ;;  %v9209_v40 = vcombine.high %v945_v57, %v953_v56  ;;  %v961_v8 = vld [vmem:[#allocation10 + $0x7b8] sm:$0xff]  ;;  %v9206_v10 = vcombine.low %v944_v19, %v952_v49  ;;  %v992_v9 = vld [vmem:[#allocation10 + $0x8b0] sm:$0xff] }
 0x499   :  { %7861 = vmatpush1.bf16.msra.mxu0 %v9126_v61  ;;  %v969_v62 = vld [vmem:[#allocation10 + $0x7f8] sm:$0xff]  ;;  %v9208_v51 = vcombine.low %v945_v57, %v953_v56  ;;  %v9223_v61 = vcombine.high %v960_v7, %v968_v44  ;;  %v1000_v34 = vld [vmem:[#allocation10 + $0x8f0] sm:$0xff] }
 0x49a   :  { %8025 = vmatpush1.bf16.msra.mxu1 %v9128_v35  ;;  %7862 = vmatprep.subr.bf16.mxu0 %v9143_v32  ;;  %v9225_v15 = vcombine.high %v961_v8, %v969_v62  ;;  %v984_v35 = vld [vmem:[#allocation10 + $0x870] sm:$0xff]  ;;  %v977_v32 = vld [vmem:[#allocation10 + $0x838] sm:$0xff]  ;;  %v9224_v17 = vcombine.low %v961_v8, %v969_v62 }
 0x49b   :  { %8026 = vmatprep.subr.bf16.mxu1 %v9145_v12  ;;  %v985_v28 = vld [vmem:[#allocation10 + $0x878] sm:$0xff]  ;;  %v9222_v12 = vcombine.low %v960_v7, %v968_v44  ;;  %v9239_v11 = vcombine.high %v976_v18, %v984_v35  ;;  %v9238_v38 = vcombine.low %v976_v18, %v984_v35  ;;  %v1008_v6 = vld [vmem:[#allocation10 + $0x930] sm:$0xff] }
 0x49c   :  { %v9241_v53 = vcombine.high %v977_v32, %v985_v28  ;;  %v1016_v25 = vld [vmem:[#allocation10 + $0x970] sm:$0xff]  ;;  %v1009_v43 = vld [vmem:[#allocation10 + $0x938] sm:$0xff] }
 0x49d   :  { %7863 = vmatpush1.bf16.msra.mxu0 %v9142_v58  ;;  %v993_v58 = vld [vmem:[#allocation10 + $0x8b8] sm:$0xff]  ;;  %v1024_v30 = vld [vmem:[#allocation10 + $0x9b0] sm:$0xff] }
 0x49e   :  { %8027 = vmatpush1.bf16.msra.mxu1 %v9144_v60  ;;  %7864 = vmatprep.subr.bf16.mxu0 %v9159_v46  ;;  %v1001_v60 = vld [vmem:[#allocation10 + $0x8f8] sm:$0xff]  ;;  %v9240_v46 = vcombine.low %v977_v32, %v985_v28  ;;  %v1032_v1 = vld [vmem:[#allocation10 + $0x9f0] sm:$0xff] }
 0x49f   :  { %8028 = vmatprep.subr.bf16.mxu1 %v9161_v3  ;;  %v9255_v3 = vcombine.high %v992_v9, %v1000_v34  ;;  %v9257_v45 = vcombine.high %v993_v58, %v1001_v60  ;;  %v1025_v5 = vld [vmem:[#allocation10 + $0x9b8] sm:$0xff]  ;;  %v1040_v19 = vld [vmem:[#allocation10 + $0xa30] sm:$0xff] }
 0x4a0   :  { %v1048_v49 = vld [vmem:[#allocation10 + $0xa70] sm:$0xff]  ;;  %v1041_v57 = vld [vmem:[#allocation10 + $0xa38] sm:$0xff] }
 0x4a1   :  { %7865 = vmatpush1.bf16.msra.mxu0 %v9158_v54  ;;  %v1017_v54 = vld [vmem:[#allocation10 + $0x978] sm:$0xff]  ;;  %v1064_v7 = vld [vmem:[#allocation10 + $0xaf0] sm:$0xff]  ;;  %v9302_v62 = vcombine.low %v1040_v19, %v1048_v49 }
 0x4a2   :  { %8029 = vmatpush1.bf16.msra.mxu1 %v9160_v39  ;;  %7866 = vmatprep.subr.bf16.mxu0 %v9175_v29  ;;  %v9254_v39 = vcombine.low %v992_v9, %v1000_v34  ;;  %v9256_v29 = vcombine.low %v993_v58, %v1001_v60  ;;  %v9273_v22 = vcombine.high %v1009_v43, %v1017_v54  ;;  %v1049_v56 = vld [vmem:[#allocation10 + $0xa78] sm:$0xff]  ;;  %v1080_v18 = vld [vmem:[#allocation10 + $0xb70] sm:$0xff] }
 0x4a3   :  { %8030 = vmatprep.subr.bf16.mxu1 %v9177_v33  ;;  %v9271_v33 = vcombine.high %v1008_v6, %v1016_v25  ;;  %v1057_v44 = vld [vmem:[#allocation10 + $0xab8] sm:$0xff]  ;;  %v1096_v9 = vld [vmem:[#allocation10 + $0xbf0] sm:$0xff] }
 0x4a4   :  { %v1065_v8 = vld [vmem:[#allocation10 + $0xaf8] sm:$0xff] }
 0x4a5   :  { %7867 = vmatpush1.bf16.msra.mxu0 %v9174_v31  ;;  %v1033_v31 = vld [vmem:[#allocation10 + $0x9f8] sm:$0xff] }
 0x4a6   :  { %8031 = vmatpush1.bf16.msra.mxu1 %v9176_v0  ;;  %7868 = vmatprep.subr.bf16.mxu0 %v9191_v63  ;;  %v9270_v0 = vcombine.low %v1008_v6, %v1016_v25  ;;  %v9287_v63 = vcombine.high %v1024_v30, %v1032_v1  ;;  %v1073_v35 = vld [vmem:[#allocation10 + $0xb38] sm:$0xff]  ;;  %v1104_v6 = vld [vmem:[#allocation10 + $0xc30] sm:$0xff] }
 0x4a7   :  { %8032 = vmatprep.subr.bf16.mxu1 %v9193_v42  ;;  %v9289_v42 = vcombine.high %v1025_v5, %v1033_v31  ;;  %v1081_v32 = vld [vmem:[#allocation10 + $0xb78] sm:$0xff]  ;;  %v1112_v25 = vld [vmem:[#allocation10 + $0xc70] sm:$0xff] }
 0x4a8   :  { %v1089_v34 = vld [vmem:[#allocation10 + $0xbb8] sm:$0xff]  ;;  %v9336_v60 = vcombine.low %v1073_v35, %v1081_v32 }
 0x4a9   :  { %7869 = vmatpush1.bf16.msra.mxu0 %v9190_v14  ;;  %v9288_v14 = vcombine.low %v1025_v5, %v1033_v31  ;;  %v1129_v5 = vld [vmem:[#allocation10 + $0xcf8] sm:$0xff]  ;;  %v9366_v31 = vcombine.low %v1104_v6, %v1112_v25 }
 0x4aa   :  { %8033 = vmatpush1.bf16.msra.mxu1 %v9192_v36  ;;  %7870 = vmatprep.subr.bf16.mxu0 %v9207_v37  ;;  %v9303_v36 = vcombine.high %v1040_v19, %v1048_v49  ;;  %v9305_v37 = vcombine.high %v1041_v57, %v1049_v56  ;;  %v1144_v19 = vld [vmem:[#allocation10 + $0xd70] sm:$0xff]  ;;  %v1137_v49 = vld [vmem:[#allocation10 + $0xd38] sm:$0xff] }
 0x4ab   :  { %8034 = vmatprep.subr.bf16.mxu1 %v9209_v40  ;;  %v1056_v40 = vld [vmem:[#allocation10 + $0xab0] sm:$0xff] }
 0x4ac   :  { %v9318_v28 = vcombine.low %v1056_v40, %v1064_v7 }
 0x4ad   :  { %7871 = vmatpush1.bf16.msra.mxu0 %v9206_v10  ;;  %v9304_v10 = vcombine.low %v1041_v57, %v1049_v56  ;;  %v1145_v57 = vld [vmem:[#allocation10 + $0xd78] sm:$0xff] }
 0x4ae   :  { %8035 = vmatpush1.bf16.msra.mxu1 %v9208_v51  ;;  %7872 = vmatprep.subr.bf16.mxu0 %v9223_v61  ;;  %v9319_v51 = vcombine.high %v1056_v40, %v1064_v7  ;;  %v9321_v61 = vcombine.high %v1057_v44, %v1065_v8  ;;  %v1160_v40 = vld [vmem:[#allocation10 + $0xdf0] sm:$0xff]  ;;  %v1153_v7 = vld [vmem:[#allocation10 + $0xdb8] sm:$0xff] }
 0x4af   :  { %8036 = vmatprep.subr.bf16.mxu1 %v9225_v15  ;;  %v1072_v15 = vld [vmem:[#allocation10 + $0xb30] sm:$0xff] }
 0x4b0   :  { %v9334_v58 = vcombine.low %v1072_v15, %v1080_v18 }
 0x4b1   :  { %7873 = vmatpush1.bf16.msra.mxu0 %v9222_v12  ;;  %v9320_v12 = vcombine.low %v1057_v44, %v1065_v8  ;;  %v1161_v44 = vld [vmem:[#allocation10 + $0xdf8] sm:$0xff] }
 0x4b2   :  { %8037 = vmatpush1.bf16.msra.mxu1 %v9224_v17  ;;  %7883 = vmatprep.subr.bf16.mxu0 %v9239_v11  ;;  %v9335_v17 = vcombine.high %v1072_v15, %v1080_v18  ;;  %v9337_v11 = vcombine.high %v1073_v35, %v1081_v32  ;;  %v1176_v15 = vld [vmem:[#allocation10 + $0xe70] sm:$0xff]  ;;  %v1169_v18 = vld [vmem:[#allocation10 + $0xe38] sm:$0xff] }
 0x4b3   :  { %8047 = vmatprep.subr.bf16.mxu1 %v9241_v53  ;;  %v1088_v53 = vld [vmem:[#allocation10 + $0xbb0] sm:$0xff]  ;;  %v1177_v35 = vld [vmem:[#allocation10 + $0xe78] sm:$0xff] }
 0x4b4   :  { %7875 = vmatmul.mubr.bf16.vlgmr.msra.gmra.mrb[20].mxu0 %v10641_v4 }
 0x4b5   :  { %8039 = vmatmul.mubr.bf16.vlgmr.msra.gmra.mrb[20].mxu1 %v10641_v4  ;;  %7884 = vmatpush1.bf16.msra.mxu0 %v9238_v38  ;;  %v9272_v4 = vcombine.low %v1009_v43, %v1017_v54  ;;  %v1097_v38 = vld [vmem:[#allocation10 + $0xbf8] sm:$0xff]  ;;  %v9350_v54 = vcombine.low %v1088_v53, %v1096_v9 }
 0x4b6   :  { %7915 = vmatprep.mubr.bf16.mxu0 %v10653_v26  ;;  %8048 = vmatpush1.bf16.msra.mxu1 %v9240_v46  ;;  %v9351_v46 = vcombine.high %v1088_v53, %v1096_v9  ;;  %v1113_v43 = vld [vmem:[#allocation10 + $0xc78] sm:$0xff]  ;;  %v1192_v53 = vld [vmem:[#allocation10 + $0xef0] sm:$0xff] }
 0x4b7   :  { %8079 = vmatprep.mubr.bf16.mxu1 %v10653_v26  ;;  %7885 = vmatprep.subr.bf16.mxu0 %v9255_v3  ;;  %v9286_v26 = vcombine.low %v1024_v30, %v1032_v1  ;;  %v9353_v3 = vcombine.high %v1089_v34, %v1097_v38  ;;  %v1128_v30 = vld [vmem:[#allocation10 + $0xcf0] sm:$0xff]  ;;  %v1121_v1 = vld [vmem:[#allocation10 + $0xcb8] sm:$0xff] }
 0x4b8   :  { %8049 = vmatprep.subr.bf16.mxu1 %v9257_v45  ;;  %v1105_v45 = vld [vmem:[#allocation10 + $0xc38] sm:$0xff] }
 0x4b9   :  { %7886 = vmatpush1.bf16.msra.mxu0 %v9254_v39  ;;  %v9352_v39 = vcombine.low %v1089_v34, %v1097_v38  ;;  %v1185_v9 = vld [vmem:[#allocation10 + $0xeb8] sm:$0xff] }
 0x4ba   :  { %8050 = vmatpush1.bf16.msra.mxu1 %v9256_v29  ;;  %7887 = vmatprep.subr.bf16.mxu0 %v9271_v33  ;;  %v9367_v29 = vcombine.high %v1104_v6, %v1112_v25  ;;  %v9369_v33 = vcombine.high %v1105_v45, %v1113_v43  ;;  %v1193_v34 = vld [vmem:[#allocation10 + $0xef8] sm:$0xff]  ;;  %v1208_v6 = vld [vmem:[#allocation10 + $0xf70] sm:$0xff] }
 0x4bb   :  { %8051 = vmatprep.subr.bf16.mxu1 %v9273_v22  ;;  %v1120_v22 = vld [vmem:[#allocation10 + $0xcb0] sm:$0xff]  ;;  %v1201_v25 = vld [vmem:[#allocation10 + $0xf38] sm:$0xff] }
 0x4bc   :  { %v9382_v56 = vcombine.low %v1120_v22, %v1128_v30 }
 0x4bd   :  { %7888 = vmatpush1.bf16.msra.mxu0 %v9270_v0  ;;  %v9368_v0 = vcombine.low %v1105_v45, %v1113_v43  ;;  %v1209_v45 = vld [vmem:[#allocation10 + $0xf78] sm:$0xff] }
 0x4be   :  { %8052 = vmatpush1.bf16.msra.mxu1 %v9272_v4  ;;  %7889 = vmatprep.subr.bf16.mxu0 %v9287_v63  ;;  %v9383_v4 = vcombine.high %v1120_v22, %v1128_v30  ;;  %v9385_v63 = vcombine.high %v1121_v1, %v1129_v5  ;;  %v1224_v22 = vld [vmem:[#allocation10 + $0xff0] sm:$0xff]  ;;  %v1217_v30 = vld [vmem:[#allocation10 + $0xfb8] sm:$0xff] }
 0x4bf   :  { %8053 = vmatprep.subr.bf16.mxu1 %v9289_v42  ;;  %v1136_v42 = vld [vmem:[#allocation10 + $0xd30] sm:$0xff] }
 0x4c0   :  { %v9398_v8 = vcombine.low %v1136_v42, %v1144_v19 }
 0x4c1   :  { %7890 = vmatpush1.bf16.msra.mxu0 %v9286_v26  ;;  %v9384_v26 = vcombine.low %v1121_v1, %v1129_v5  ;;  %v1225_v1 = vld [vmem:[#allocation10 + $0xff8] sm:$0xff] }
 0x4c2   :  { %8054 = vmatpush1.bf16.msra.mxu1 %v9288_v14  ;;  %7891 = vmatprep.subr.bf16.mxu0 %v9303_v36  ;;  %v9399_v14 = vcombine.high %v1136_v42, %v1144_v19  ;;  %v9401_v36 = vcombine.high %v1137_v49, %v1145_v57  ;;  %v1240_v42 = vld [vmem:[#allocation10 + $0x1070] sm:$0xff]  ;;  %v1233_v19 = vld [vmem:[#allocation10 + $0x1038] sm:$0xff] }
 0x4c3   :  { %8055 = vmatprep.subr.bf16.mxu1 %v9305_v37  ;;  %v1152_v37 = vld [vmem:[#allocation10 + $0xdb0] sm:$0xff] }
 0x4c4   :  { %v9414_v32 = vcombine.low %v1152_v37, %v1160_v40 }
 0x4c5   :  { %7892 = vmatpush1.bf16.msra.mxu0 %v9302_v62  ;;  %v9400_v62 = vcombine.low %v1137_v49, %v1145_v57  ;;  %v1241_v49 = vld [vmem:[#allocation10 + $0x1078] sm:$0xff] }
 0x4c6   :  { %8056 = vmatpush1.bf16.msra.mxu1 %v9304_v10  ;;  %7893 = vmatprep.subr.bf16.mxu0 %v9319_v51  ;;  %v9415_v10 = vcombine.high %v1152_v37, %v1160_v40  ;;  %v9417_v51 = vcombine.high %v1153_v7, %v1161_v44  ;;  %v1256_v37 = vld [vmem:[#allocation10 + $0x10f0] sm:$0xff] }
 0x4c7   :  { %8057 = vmatprep.subr.bf16.mxu1 %v9321_v61  ;;  %v1168_v61 = vld [vmem:[#allocation10 + $0xe30] sm:$0xff] }
 0x4c8   :  { %v9430_v38 = vcombine.low %v1168_v61, %v1176_v15 }
 0x4c9   :  { %7894 = vmatpush1.bf16.msra.mxu0 %v9318_v28  ;;  %v9416_v28 = vcombine.low %v1153_v7, %v1161_v44  ;;  %v1249_v7 = vld [vmem:[#allocation10 + $0x10b8] sm:$0xff] }
 0x4ca   :  { %8058 = vmatpush1.bf16.msra.mxu1 %v9320_v12  ;;  %7895 = vmatprep.subr.bf16.mxu0 %v9335_v17  ;;  %v9431_v12 = vcombine.high %v1168_v61, %v1176_v15  ;;  %v9433_v17 = vcombine.high %v1169_v18, %v1177_v35  ;;  %v1257_v44 = vld [vmem:[#allocation10 + $0x10f8] sm:$0xff] }
 0x4cb   :  { %8059 = vmatprep.subr.bf16.mxu1 %v9337_v11  ;;  %v1184_v11 = vld [vmem:[#allocation10 + $0xeb0] sm:$0xff]  ;;  %v9513_v61 = vcombine.high %v1249_v7, %v1257_v44  ;;  %v1265_v15 = vld [vmem:[#allocation10 + $0x1138] sm:$0xff] }
 0x4cc   :  { %v9446_v43 = vcombine.low %v1184_v11, %v1192_v53 }
 0x4cd   :  { %7896 = vmatpush1.bf16.msra.mxu0 %v9334_v58  ;;  %v9432_v58 = vcombine.low %v1169_v18, %v1177_v35  ;;  %v1273_v18 = vld [vmem:[#allocation10 + $0x1178] sm:$0xff] }
 0x4ce   :  { %8060 = vmatpush1.bf16.msra.mxu1 %v9336_v60  ;;  %7897 = vmatprep.subr.bf16.mxu0 %v9351_v46  ;;  %v9447_v60 = vcombine.high %v1184_v11, %v1192_v53  ;;  %v9449_v46 = vcombine.high %v1185_v9, %v1193_v34  ;;  %v1288_v11 = vld [vmem:[#allocation10 + $0x11f0] sm:$0xff]  ;;  %v1281_v53 = vld [vmem:[#allocation10 + $0x11b8] sm:$0xff] }
 0x4cf   :  { %8061 = vmatprep.subr.bf16.mxu1 %v9353_v3  ;;  %v1200_v3 = vld [vmem:[#allocation10 + $0xf30] sm:$0xff] }
 0x4d0   :  { %v9462_v5 = vcombine.low %v1200_v3, %v1208_v6 }
 0x4d1   :  { %7898 = vmatpush1.bf16.msra.mxu0 %v9350_v54  ;;  %v9448_v54 = vcombine.low %v1185_v9, %v1193_v34  ;;  %v1289_v9 = vld [vmem:[#allocation10 + $0x11f8] sm:$0xff] }
 0x4d2   :  { %8062 = vmatpush1.bf16.msra.mxu1 %v9352_v39  ;;  %7899 = vmatprep.subr.bf16.mxu0 %v9367_v29  ;;  %v9463_v39 = vcombine.high %v1200_v3, %v1208_v6  ;;  %v9465_v29 = vcombine.high %v1201_v25, %v1209_v45  ;;  %v1297_v3 = vld [vmem:[#allocation10 + $0x1238] sm:$0xff] }
 0x4d3   :  { %8063 = vmatprep.subr.bf16.mxu1 %v9369_v33  ;;  %v1216_v33 = vld [vmem:[#allocation10 + $0xfb0] sm:$0xff]  ;;  %v1305_v6 = vld [vmem:[#allocation10 + $0x1278] sm:$0xff] }
 0x4d4   :  { %v9478_v57 = vcombine.low %v1216_v33, %v1224_v22 }
 0x4d5   :  { %7900 = vmatpush1.bf16.msra.mxu0 %v9366_v31  ;;  %v9464_v31 = vcombine.low %v1201_v25, %v1209_v45  ;;  %v9544_v25 = vcombine.low %v1281_v53, %v1289_v9 }
 0x4d6   :  { %8064 = vmatpush1.bf16.msra.mxu1 %v9368_v0  ;;  %7901 = vmatprep.subr.bf16.mxu0 %v9383_v4  ;;  %v9479_v0 = vcombine.high %v1216_v33, %v1224_v22  ;;  %v9481_v4 = vcombine.high %v1217_v30, %v1225_v1  ;;  %v1321_v33 = vld [vmem:[#allocation10 + $0x12f8] sm:$0xff] }
 0x4d7   :  { %8065 = vmatprep.subr.bf16.mxu1 %v9385_v63  ;;  %v1232_v63 = vld [vmem:[#allocation10 + $0x1030] sm:$0xff] }
 0x4d8   :  { %v9494_v40 = vcombine.low %v1232_v63, %v1240_v42 }
 0x4d9   :  { %7902 = vmatpush1.bf16.msra.mxu0 %v9382_v56  ;;  %v9480_v56 = vcombine.low %v1217_v30, %v1225_v1  ;;  %v9560_v30 = vcombine.low %v1297_v3, %v1305_v6 }
 0x4da   :  { %8066 = vmatpush1.bf16.msra.mxu1 %v9384_v26  ;;  %7903 = vmatprep.subr.bf16.mxu0 %v9399_v14  ;;  %v9495_v26 = vcombine.high %v1232_v63, %v1240_v42  ;;  %v9497_v14 = vcombine.high %v1233_v19, %v1241_v49  ;;  %v1337_v63 = vld [vmem:[#allocation10 + $0x1378] sm:$0xff] }
 0x4db   :  { %8067 = vmatprep.subr.bf16.mxu1 %v9401_v36  ;;  %v1248_v36 = vld [vmem:[#allocation10 + $0x10b0] sm:$0xff] }
 0x4dc   :  { %v9510_v35 = vcombine.low %v1248_v36, %v1256_v37 }
 0x4dd   :  { %7904 = vmatpush1.bf16.msra.mxu0 %v9398_v8  ;;  %v9496_v8 = vcombine.low %v1233_v19, %v1241_v49 }
 0x4de   :  { %8068 = vmatpush1.bf16.msra.mxu1 %v9400_v62  ;;  %7905 = vmatprep.subr.bf16.mxu0 %v9415_v10  ;;  %v9511_v62 = vcombine.high %v1248_v36, %v1256_v37  ;;  %v1264_v10 = vld [vmem:[#allocation10 + $0x1130] sm:$0xff]  ;;  %v1353_v36 = vld [vmem:[#allocation10 + $0x13f8] sm:$0xff] }
 0x4df   :  { %8069 = vmatprep.subr.bf16.mxu1 %v9417_v51  ;;  %v1272_v51 = vld [vmem:[#allocation10 + $0x1170] sm:$0xff] }
 0x4e0   :  { %v9526_v34 = vcombine.low %v1264_v10, %v1272_v51 }
 0x4e1   :  { %7906 = vmatpush1.bf16.msra.mxu0 %v9414_v32  ;;  %v9512_v32 = vcombine.low %v1249_v7, %v1257_v44 }
 0x4e2   :  { %8070 = vmatpush1.bf16.msra.mxu1 %v9416_v28  ;;  %7907 = vmatprep.subr.bf16.mxu0 %v9431_v12  ;;  %v9527_v28 = vcombine.high %v1264_v10, %v1272_v51  ;;  %v9529_v12 = vcombine.high %v1265_v15, %v1273_v18  ;;  %v1361_v10 = vld [vmem:[#allocation10 + $0x1438] sm:$0xff] }
 0x4e3   :  { %8071 = vmatprep.subr.bf16.mxu1 %v9433_v17  ;;  %v1280_v17 = vld [vmem:[#allocation10 + $0x11b0] sm:$0xff]  ;;  %v1369_v51 = vld [vmem:[#allocation10 + $0x1478] sm:$0xff] }
 0x4e5   :  { %7908 = vmatpush1.bf16.msra.mxu0 %v9430_v38  ;;  %v9543_v38 = vcombine.high %v1280_v17, %v1288_v11 }
 0x4e6   :  { %8072 = vmatpush1.bf16.msra.mxu1 %v9432_v58  ;;  %7909 = vmatprep.subr.bf16.mxu0 %v9447_v60  ;;  %v9545_v58 = vcombine.high %v1281_v53, %v1289_v9  ;;  %v1296_v60 = vld [vmem:[#allocation10 + $0x1230] sm:$0xff]  ;;  %v9624_v53 = vcombine.low %v1361_v10, %v1369_v51 }
 0x4e7   :  { %8073 = vmatprep.subr.bf16.mxu1 %v9449_v46  ;;  %v1304_v46 = vld [vmem:[#allocation10 + $0x1270] sm:$0xff] }
 0x4e8   :  { %v9559_v45 = vcombine.high %v1296_v60, %v1304_v46  ;;  %v9558_v22 = vcombine.low %v1296_v60, %v1304_v46  ;;  %v1401_v60 = vld [vmem:[#allocation10 + $0x1578] sm:$0xff] }
 0x4e9   :  { %7910 = vmatpush1.bf16.msra.mxu0 %v9446_v43  ;;  %v9561_v43 = vcombine.high %v1297_v3, %v1305_v6 }
 0x4ea   :  { %8074 = vmatpush1.bf16.msra.mxu1 %v9448_v54  ;;  %7911 = vmatprep.subr.bf16.mxu0 %v9463_v39  ;;  %v1312_v54 = vld [vmem:[#allocation10 + $0x12b0] sm:$0xff] }
 0x4eb   :  { %8075 = vmatprep.subr.bf16.mxu1 %v9465_v29  ;;  %v1320_v39 = vld [vmem:[#allocation10 + $0x12f0] sm:$0xff]  ;;  %v1313_v29 = vld [vmem:[#allocation10 + $0x12b8] sm:$0xff] }
 0x4ec   :  { %v9575_v1 = vcombine.high %v1312_v54, %v1320_v39  ;;  %v9574_v42 = vcombine.low %v1312_v54, %v1320_v39  ;;  %v9576_v19 = vcombine.low %v1313_v29, %v1321_v33  ;;  %v1417_v54 = vld [vmem:[#allocation10 + $0x15f8] sm:$0xff] }
 0x4ed   :  { %7912 = vmatpush1.bf16.msra.mxu0 %v9462_v5  ;;  %v9577_v5 = vcombine.high %v1313_v29, %v1321_v33 }
 0x4ee   :  { %8076 = vmatpush1.bf16.msra.mxu1 %v9464_v31  ;;  %7913 = vmatprep.subr.bf16.mxu0 %v9479_v0  ;;  %v1328_v31 = vld [vmem:[#allocation10 + $0x1330] sm:$0xff] }
 0x4ef   :  { %8077 = vmatprep.subr.bf16.mxu1 %v9481_v4  ;;  %v1336_v0 = vld [vmem:[#allocation10 + $0x1370] sm:$0xff]  ;;  %v1329_v4 = vld [vmem:[#allocation10 + $0x1338] sm:$0xff] }
 0x4f0   :  { %v9591_v49 = vcombine.high %v1328_v31, %v1336_v0  ;;  %v9590_v37 = vcombine.low %v1328_v31, %v1336_v0  ;;  %v1433_v31 = vld [vmem:[#allocation10 + $0x1678] sm:$0xff] }
 0x4f1   :  { %7914 = vmatpush1.bf16.msra.mxu0 %v9478_v57  ;;  %v9593_v57 = vcombine.high %v1329_v4, %v1337_v63 }
 0x4f2   :  { %8078 = vmatpush1.bf16.msra.mxu1 %v9480_v56  ;;  %7924 = vmatprep.subr.bf16.mxu0 %v9495_v26  ;;  %v1344_v56 = vld [vmem:[#allocation10 + $0x13b0] sm:$0xff] }
 0x4f3   :  { %8088 = vmatprep.subr.bf16.mxu1 %v9497_v14  ;;  %v1352_v26 = vld [vmem:[#allocation10 + $0x13f0] sm:$0xff]  ;;  %v1345_v14 = vld [vmem:[#allocation10 + $0x13b8] sm:$0xff] }
 0x4f4   :  { %7916 = vmatmul.mubr.bf16.vlgmr.msra.gmra.mrb[20].mxu0 %v10669_v47  ;;  %v9607_v7 = vcombine.high %v1344_v56, %v1352_v26  ;;  %v9609_v44 = vcombine.high %v1345_v14, %v1353_v36 }
 0x4f5   :  { %8080 = vmatmul.mubr.bf16.vlgmr.msra.gmra.mrb[20].mxu1 %v10669_v47  ;;  %7925 = vmatpush1.bf16.msra.mxu0 %v9494_v40  ;;  %v9528_v47 = vcombine.low %v1265_v15, %v1273_v18  ;;  %v9592_v40 = vcombine.low %v1329_v4, %v1337_v63  ;;  %v9608_v15 = vcombine.low %v1345_v14, %v1353_v36 }
 0x4f6   :  { %7956 = vmatprep.mubr.bf16.mxu0 %v10671_v52  ;;  %8089 = vmatpush1.bf16.msra.mxu1 %v9496_v8  ;;  %v1360_v8 = vld [vmem:[#allocation10 + $0x1430] sm:$0xff] }
 0x4f7   :  { %8120 = vmatprep.mubr.bf16.mxu1 %v10671_v52  ;;  %7926 = vmatprep.subr.bf16.mxu0 %v9511_v62  ;;  %v9542_v52 = vcombine.low %v1280_v17, %v1288_v11  ;;  %v1368_v62 = vld [vmem:[#allocation10 + $0x1470] sm:$0xff]  ;;  %v1385_v17 = vld [vmem:[#allocation10 + $0x14f8] sm:$0xff] }
 0x4f8   :  { %8090 = vmatprep.subr.bf16.mxu1 %v9513_v61  ;;  %v9606_v61 = vcombine.low %v1344_v56, %v1352_v26  ;;  %v9623_v18 = vcombine.high %v1360_v8, %v1368_v62  ;;  %v9622_v11 = vcombine.low %v1360_v8, %v1368_v62  ;;  %v1449_v56 = vld [vmem:[#allocation10 + $0x16f8] sm:$0xff] }
 0x4f9   :  { %7927 = vmatpush1.bf16.msra.mxu0 %v9510_v35  ;;  %v9625_v35 = vcombine.high %v1361_v10, %v1369_v51  ;;  %v1465_v8 = vld [vmem:[#allocation10 + $0x1778] sm:$0xff] }
 0x4fa   :  { %8091 = vmatpush1.bf16.msra.mxu1 %v9512_v32  ;;  %7928 = vmatprep.subr.bf16.mxu0 %v9527_v28  ;;  %v1376_v32 = vld [vmem:[#allocation10 + $0x14b0] sm:$0xff] }
 0x4fb   :  { %8092 = vmatprep.subr.bf16.mxu1 %v9529_v12  ;;  %v1384_v28 = vld [vmem:[#allocation10 + $0x14f0] sm:$0xff]  ;;  %v1377_v12 = vld [vmem:[#allocation10 + $0x14b8] sm:$0xff] }
 0x4fc   :  { %v9639_v9 = vcombine.high %v1376_v32, %v1384_v28  ;;  %v9638_v46 = vcombine.low %v1376_v32, %v1384_v28  ;;  %v9640_v3 = vcombine.low %v1377_v12, %v1385_v17  ;;  %v1481_v32 = vld [vmem:[#allocation10 + $0x17f8] sm:$0xff] }
 0x4fd   :  { %7929 = vmatpush1.bf16.msra.mxu0 %v9526_v34  ;;  %v9641_v34 = vcombine.high %v1377_v12, %v1385_v17 }
 0x4fe   :  { %8093 = vmatpush1.bf16.msra.mxu1 %v9528_v47  ;;  %7930 = vmatprep.subr.bf16.mxu0 %v9543_v38  ;;  %v1392_v47 = vld [vmem:[#allocation10 + $0x1530] sm:$0xff] }
 0x4ff   :  { %8094 = vmatprep.subr.bf16.mxu1 %v9545_v58  ;;  %v1400_v38 = vld [vmem:[#allocation10 + $0x1570] sm:$0xff]  ;;  %v1393_v58 = vld [vmem:[#allocation10 + $0x1538] sm:$0xff] }
 0x500   :  { %v9655_v6 = vcombine.high %v1392_v47, %v1400_v38  ;;  %v9654_v39 = vcombine.low %v1392_v47, %v1400_v38  ;;  %v9656_v29 = vcombine.low %v1393_v58, %v1401_v60  ;;  %v1497_v47 = vld [vmem:[#allocation10 + $0x1878] sm:$0xff] }
 0x501   :  { %7931 = vmatpush1.bf16.msra.mxu0 %v9542_v52  ;;  %v9657_v52 = vcombine.high %v1393_v58, %v1401_v60 }
 0x502   :  { %8095 = vmatpush1.bf16.msra.mxu1 %v9544_v25  ;;  %7932 = vmatprep.subr.bf16.mxu0 %v9559_v45  ;;  %v1408_v25 = vld [vmem:[#allocation10 + $0x15b0] sm:$0xff] }
 0x503   :  { %8096 = vmatprep.subr.bf16.mxu1 %v9561_v43  ;;  %v1416_v45 = vld [vmem:[#allocation10 + $0x15f0] sm:$0xff]  ;;  %v1409_v43 = vld [vmem:[#allocation10 + $0x15b8] sm:$0xff] }
 0x504   :  { %v9671_v33 = vcombine.high %v1408_v25, %v1416_v45  ;;  %v9670_v0 = vcombine.low %v1408_v25, %v1416_v45  ;;  %v9672_v4 = vcombine.low %v1409_v43, %v1417_v54  ;;  %v1505_v25 = vld [vmem:[#allocation10 + $0x18b8] sm:$0xff] }
 0x505   :  { %7933 = vmatpush1.bf16.msra.mxu0 %v9558_v22  ;;  %v9673_v22 = vcombine.high %v1409_v43, %v1417_v54  ;;  %v1513_v45 = vld [vmem:[#allocation10 + $0x18f8] sm:$0xff] }
 0x506   :  { %8097 = vmatpush1.bf16.msra.mxu1 %v9560_v30  ;;  %7934 = vmatprep.subr.bf16.mxu0 %v9575_v1  ;;  %v1424_v30 = vld [vmem:[#allocation10 + $0x1630] sm:$0xff] }
 0x507   :  { %8098 = vmatprep.subr.bf16.mxu1 %v9577_v5  ;;  %v1432_v1 = vld [vmem:[#allocation10 + $0x1670] sm:$0xff]  ;;  %v1425_v5 = vld [vmem:[#allocation10 + $0x1638] sm:$0xff] }
 0x508   :  { %v9687_v63 = vcombine.high %v1424_v30, %v1432_v1  ;;  %v9686_v26 = vcombine.low %v1424_v30, %v1432_v1  ;;  %v9688_v14 = vcombine.low %v1425_v5, %v1433_v31  ;;  %v1529_v30 = vld [vmem:[#allocation10 + $0x1978] sm:$0xff] }
 0x509   :  { %7935 = vmatpush1.bf16.msra.mxu0 %v9574_v42  ;;  %v9689_v42 = vcombine.high %v1425_v5, %v1433_v31  ;;  %v9768_v5 = vcombine.low %v1505_v25, %v1513_v45 }
 0x50a   :  { %8099 = vmatpush1.bf16.msra.mxu1 %v9576_v19  ;;  %7936 = vmatprep.subr.bf16.mxu0 %v9591_v49  ;;  %v1440_v19 = vld [vmem:[#allocation10 + $0x16b0] sm:$0xff] }
 0x50b   :  { %8100 = vmatprep.subr.bf16.mxu1 %v9593_v57  ;;  %v1448_v49 = vld [vmem:[#allocation10 + $0x16f0] sm:$0xff]  ;;  %v1441_v57 = vld [vmem:[#allocation10 + $0x16b8] sm:$0xff] }
 0x50c   :  { %v9703_v36 = vcombine.high %v1440_v19, %v1448_v49  ;;  %v9702_v62 = vcombine.low %v1440_v19, %v1448_v49  ;;  %v9704_v10 = vcombine.low %v1441_v57, %v1449_v56  ;;  %v1545_v19 = vld [vmem:[#allocation10 + $0x19f8] sm:$0xff] }
 0x50d   :  { %7937 = vmatpush1.bf16.msra.mxu0 %v9590_v37  ;;  %v9705_v37 = vcombine.high %v1441_v57, %v1449_v56 }
 0x50e   :  { %8101 = vmatpush1.bf16.msra.mxu1 %v9592_v40  ;;  %7938 = vmatprep.subr.bf16.mxu0 %v9607_v7  ;;  %v1456_v40 = vld [vmem:[#allocation10 + $0x1730] sm:$0xff] }
 0x50f   :  { %8102 = vmatprep.subr.bf16.mxu1 %v9609_v44  ;;  %v1464_v7 = vld [vmem:[#allocation10 + $0x1770] sm:$0xff]  ;;  %v1457_v44 = vld [vmem:[#allocation10 + $0x1738] sm:$0xff] }
 0x510   :  { %v9719_v51 = vcombine.high %v1456_v40, %v1464_v7  ;;  %v9718_v28 = vcombine.low %v1456_v40, %v1464_v7  ;;  %v9720_v12 = vcombine.low %v1457_v44, %v1465_v8 }
 0x511   :  { %7939 = vmatpush1.bf16.msra.mxu0 %v9606_v61  ;;  %v9721_v61 = vcombine.high %v1457_v44, %v1465_v8  ;;  %v1568_v8 = vld [vmem:[#allocation10 + $0x1ab0] sm:$0xff] }
 0x512   :  { %8103 = vmatpush1.bf16.msra.mxu1 %v9608_v15  ;;  %7940 = vmatprep.subr.bf16.mxu0 %v9623_v18  ;;  %v1472_v15 = vld [vmem:[#allocation10 + $0x17b0] sm:$0xff] }
 0x513   :  { %8104 = vmatprep.subr.bf16.mxu1 %v9625_v35  ;;  %v1480_v18 = vld [vmem:[#allocation10 + $0x17f0] sm:$0xff]  ;;  %v1473_v35 = vld [vmem:[#allocation10 + $0x17b8] sm:$0xff] }
 0x514   :  { %v9735_v17 = vcombine.high %v1472_v15, %v1480_v18  ;;  %v9734_v38 = vcombine.low %v1472_v15, %v1480_v18  ;;  %v9736_v58 = vcombine.low %v1473_v35, %v1481_v32 }
 0x515   :  { %7941 = vmatpush1.bf16.msra.mxu0 %v9622_v11  ;;  %v9737_v11 = vcombine.high %v1473_v35, %v1481_v32  ;;  %v1584_v32 = vld [vmem:[#allocation10 + $0x1b30] sm:$0xff] }
 0x516   :  { %8105 = vmatpush1.bf16.msra.mxu1 %v9624_v53  ;;  %7942 = vmatprep.subr.bf16.mxu0 %v9639_v9  ;;  %v1488_v53 = vld [vmem:[#allocation10 + $0x1830] sm:$0xff] }
 0x517   :  { %8106 = vmatprep.subr.bf16.mxu1 %v9641_v34  ;;  %v1496_v9 = vld [vmem:[#allocation10 + $0x1870] sm:$0xff]  ;;  %v1489_v34 = vld [vmem:[#allocation10 + $0x1838] sm:$0xff] }
 0x518   :  { %v9751_v60 = vcombine.high %v1488_v53, %v1496_v9  ;;  %v9752_v43 = vcombine.low %v1489_v34, %v1497_v47 }
 0x519   :  { %7943 = vmatpush1.bf16.msra.mxu0 %v9638_v46  ;;  %v9753_v46 = vcombine.high %v1489_v34, %v1497_v47 }
 0x51a   :  { %8107 = vmatpush1.bf16.msra.mxu1 %v9640_v3  ;;  %7944 = vmatprep.subr.bf16.mxu0 %v9655_v6  ;;  %v1504_v3 = vld [vmem:[#allocation10 + $0x18b0] sm:$0xff] }
 0x51b   :  { %8108 = vmatprep.subr.bf16.mxu1 %v9657_v52  ;;  %v1512_v6 = vld [vmem:[#allocation10 + $0x18f0] sm:$0xff]  ;;  %v9750_v52 = vcombine.low %v1488_v53, %v1496_v9 }
 0x51c   :  { %v9767_v54 = vcombine.high %v1504_v3, %v1512_v6  ;;  %v9766_v1 = vcombine.low %v1504_v3, %v1512_v6 }
 0x51d   :  { %7945 = vmatpush1.bf16.msra.mxu0 %v9654_v39  ;;  %v1520_v39 = vld [vmem:[#allocation10 + $0x1930] sm:$0xff] }
 0x51e   :  { %8109 = vmatpush1.bf16.msra.mxu1 %v9656_v29  ;;  %7946 = vmatprep.subr.bf16.mxu0 %v9671_v33  ;;  %v1528_v29 = vld [vmem:[#allocation10 + $0x1970] sm:$0xff]  ;;  %v9769_v33 = vcombine.high %v1505_v25, %v1513_v45  ;;  %v1609_v25 = vld [vmem:[#allocation10 + $0x1bf8] sm:$0xff] }
 0x51f   :  { %8110 = vmatprep.subr.bf16.mxu1 %v9673_v22  ;;  %v1521_v22 = vld [vmem:[#allocation10 + $0x1938] sm:$0xff]  ;;  %v9783_v31 = vcombine.high %v1520_v39, %v1528_v29  ;;  %v9782_v49 = vcombine.low %v1520_v39, %v1528_v29 }
 0x521   :  { %7947 = vmatpush1.bf16.msra.mxu0 %v9670_v0  ;;  %v9785_v0 = vcombine.high %v1521_v22, %v1529_v30 }
 0x522   :  { %8111 = vmatpush1.bf16.msra.mxu1 %v9672_v4  ;;  %7948 = vmatprep.subr.bf16.mxu0 %v9687_v63  ;;  %v1536_v4 = vld [vmem:[#allocation10 + $0x19b0] sm:$0xff] }
 0x523   :  { %8112 = vmatprep.subr.bf16.mxu1 %v9689_v42  ;;  %v1544_v63 = vld [vmem:[#allocation10 + $0x19f0] sm:$0xff]  ;;  %v1537_v42 = vld [vmem:[#allocation10 + $0x19b8] sm:$0xff] }
 0x524   :  { %v9799_v57 = vcombine.high %v1536_v4, %v1544_v63  ;;  %v9801_v56 = vcombine.high %v1537_v42, %v1545_v19  ;;  %v9800_v40 = vcombine.low %v1537_v42, %v1545_v19 }
 0x525   :  { %7949 = vmatpush1.bf16.msra.mxu0 %v9686_v26  ;;  %v1552_v26 = vld [vmem:[#allocation10 + $0x1a30] sm:$0xff] }
 0x526   :  { %8113 = vmatpush1.bf16.msra.mxu1 %v9688_v14  ;;  %7950 = vmatprep.subr.bf16.mxu0 %v9703_v36  ;;  %v1560_v14 = vld [vmem:[#allocation10 + $0x1a70] sm:$0xff]  ;;  %v1553_v36 = vld [vmem:[#allocation10 + $0x1a38] sm:$0xff] }
 0x527   :  { %8114 = vmatprep.subr.bf16.mxu1 %v9705_v37  ;;  %v1561_v37 = vld [vmem:[#allocation10 + $0x1a78] sm:$0xff]  ;;  %v9815_v7 = vcombine.high %v1552_v26, %v1560_v14 }
 0x528   :  { %v9817_v44 = vcombine.high %v1553_v36, %v1561_v37  ;;  %v9816_v15 = vcombine.low %v1553_v36, %v1561_v37 }
 0x529   :  { %7951 = vmatpush1.bf16.msra.mxu0 %v9702_v62  ;;  %v1576_v62 = vld [vmem:[#allocation10 + $0x1af0] sm:$0xff] }
 0x52a   :  { %8115 = vmatpush1.bf16.msra.mxu1 %v9704_v10  ;;  %7952 = vmatprep.subr.bf16.mxu0 %v9719_v51  ;;  %v1569_v10 = vld [vmem:[#allocation10 + $0x1ab8] sm:$0xff]  ;;  %v9831_v18 = vcombine.high %v1568_v8, %v1576_v62 }
 0x52b   :  { %8116 = vmatprep.subr.bf16.mxu1 %v9721_v61  ;;  %v1577_v51 = vld [vmem:[#allocation10 + $0x1af8] sm:$0xff]  ;;  %v9814_v61 = vcombine.low %v1552_v26, %v1560_v14 }
 0x52c   :  { %v9833_v35 = vcombine.high %v1569_v10, %v1577_v51  ;;  %v9832_v53 = vcombine.low %v1569_v10, %v1577_v51  ;;  %v1617_v26 = vld [vmem:[#allocation10 + $0x1c38] sm:$0xff] }
 0x52d   :  { %7953 = vmatpush1.bf16.msra.mxu0 %v9718_v28  ;;  %v1592_v28 = vld [vmem:[#allocation10 + $0x1b70] sm:$0xff]  ;;  %v1625_v14 = vld [vmem:[#allocation10 + $0x1c78] sm:$0xff] }
 0x52e   :  { %8117 = vmatpush1.bf16.msra.mxu1 %v9720_v12  ;;  %7954 = vmatprep.subr.bf16.mxu0 %v9735_v17  ;;  %v1585_v12 = vld [vmem:[#allocation10 + $0x1b38] sm:$0xff]  ;;  %v9847_v9 = vcombine.high %v1584_v32, %v1592_v28  ;;  %v9846_v6 = vcombine.low %v1584_v32, %v1592_v28  ;;  %v9881_v51 = vcombine.high %v1617_v26, %v1625_v14 }
 0x52f   :  { %8118 = vmatprep.subr.bf16.mxu1 %v9737_v11  ;;  %v1593_v17 = vld [vmem:[#allocation10 + $0x1b78] sm:$0xff]  ;;  %v9830_v11 = vcombine.low %v1568_v8, %v1576_v62 }
 0x530   :  { %v9849_v47 = vcombine.high %v1585_v12, %v1593_v17  ;;  %v1633_v32 = vld [vmem:[#allocation10 + $0x1cb8] sm:$0xff] }
 0x531   :  { %7955 = vmatpush1.bf16.msra.mxu0 %v9734_v38  ;;  %v1600_v38 = vld [vmem:[#allocation10 + $0x1bb0] sm:$0xff]  ;;  %v1641_v28 = vld [vmem:[#allocation10 + $0x1cf8] sm:$0xff] }
 0x532   :  { %8119 = vmatpush1.bf16.msra.mxu1 %v9736_v58  ;;  %7965 = vmatprep.subr.bf16.mxu0 %v9751_v60  ;;  %v1608_v58 = vld [vmem:[#allocation10 + $0x1bf0] sm:$0xff] }
 0x533   :  { %8129 = vmatprep.subr.bf16.mxu1 %v9753_v46 }
 0x534   :  { %7957 = vmatmul.mubr.bf16.vlgmr.msra.gmra.mrb[20].mxu0 %v10679_v59 }
 0x535   :  { %8121 = vmatmul.mubr.bf16.vlgmr.msra.gmra.mrb[20].mxu1 %v10679_v59  ;;  %7966 = vmatpush1.bf16.msra.mxu0 %v9750_v52  ;;  %v9784_v59 = vcombine.low %v1521_v22, %v1529_v30  ;;  %v1601_v52 = vld [vmem:[#allocation10 + $0x1bb8] sm:$0xff] }
 0x536   :  { %7997 = vmatprep.mubr.bf16.mxu0 %v10681_v2  ;;  %8130 = vmatpush1.bf16.msra.mxu1 %v9752_v43  ;;  %v9865_v19 = vcombine.high %v1601_v52, %v1609_v25 }
 0x537   :  { %8161 = vmatprep.mubr.bf16.mxu1 %v10681_v2  ;;  %7967 = vmatprep.subr.bf16.mxu0 %v9767_v54  ;;  %v9798_v2 = vcombine.low %v1536_v4, %v1544_v63 }
 0x538   :  { %8131 = vmatprep.subr.bf16.mxu1 %v9769_v33  ;;  %v9848_v33 = vcombine.low %v1585_v12, %v1593_v17 }
 0x539   :  { %7968 = vmatpush1.bf16.msra.mxu0 %v9766_v1 }
 0x53a   :  { %8132 = vmatpush1.bf16.msra.mxu1 %v9768_v5  ;;  %7969 = vmatprep.subr.bf16.mxu0 %v9783_v31 }
 0x53b   :  { %8133 = vmatprep.subr.bf16.mxu1 %v9785_v0  ;;  %v9863_v0 = vcombine.high %v1600_v38, %v1608_v58 }
 0x53d   :  { %7970 = vmatpush1.bf16.msra.mxu0 %v9782_v49  ;;  %v1616_v49 = vld [vmem:[#allocation10 + $0x1c30] sm:$0xff] }
 0x53e   :  { %8134 = vmatpush1.bf16.msra.mxu1 %v9784_v59  ;;  %7971 = vmatprep.subr.bf16.mxu0 %v9799_v57  ;;  %v1624_v59 = vld [vmem:[#allocation10 + $0x1c70] sm:$0xff] }
 0x53f   :  { %8135 = vmatprep.subr.bf16.mxu1 %v9801_v56  ;;  %v9879_v8 = vcombine.high %v1616_v49, %v1624_v59 }
 0x541   :  { %7972 = vmatpush1.bf16.msra.mxu0 %v9798_v2  ;;  %v9862_v2 = vcombine.low %v1600_v38, %v1608_v58 }
 0x542   :  { %8136 = vmatpush1.bf16.msra.mxu1 %v9800_v40  ;;  %7973 = vmatprep.subr.bf16.mxu0 %v9815_v7 }
 0x543   :  { %8137 = vmatprep.subr.bf16.mxu1 %v9817_v44  ;;  %v9864_v44 = vcombine.low %v1601_v52, %v1609_v25  ;;  %v1648_v52 = vld [vmem:[#allocation10 + $0x1d30] sm:$0xff] }
 0x544   :  { %v1656_v25 = vld [vmem:[#allocation10 + $0x1d70] sm:$0xff] }
 0x545   :  { %7974 = vmatpush1.bf16.msra.mxu0 %v9814_v61  ;;  %v1632_v61 = vld [vmem:[#allocation10 + $0x1cb0] sm:$0xff] }
 0x546   :  { %8138 = vmatpush1.bf16.msra.mxu1 %v9816_v15  ;;  %7975 = vmatprep.subr.bf16.mxu0 %v9831_v18  ;;  %v1640_v15 = vld [vmem:[#allocation10 + $0x1cf0] sm:$0xff] }
 0x547   :  { %v10890_v34 = vpop.f32.mrb[16].mxu0  ;;  %8139 = vmatprep.subr.bf16.mxu1 %v9833_v35  ;;  %v9895_v38 = vcombine.high %v1632_v61, %v1640_v15 }
 0x548   :  { %v8226_v60 = vsel %vm378_vm1, %v10890_v34, 0.0  ;;  %v10894_v46 = vpop.f32.mrb[16].mxu1  ;;  %v10896_v3 = vpop.f32.mrb[17].mxu0 }
 0x549   :  { %v8227_v45 = vrot.slane %v8226_v60, 4  ;;  %v8240_v43 = vsel %vm378_vm1, %v10894_v46, 0.0  ;;  %v8233_v54 = vsel %vm378_vm1, %v10896_v3, 0.0  ;;  %v10902_v39 = vpop.f32.mrb[17].mxu1  ;;  %v7675_v29 = vpop.f32.mrb[18].mxu0  ;;  %7976 = vmatpush1.bf16.msra.mxu0 %v9830_v11  ;;  %v9878_v11 = vcombine.low %v1616_v49, %v1624_v59  ;;  %v1672_v49 = vld [vmem:[#allocation10 + $0x1df0] sm:$0xff] }
 0x54a   :  { %v8241_v22 = vrot.slane %v8240_v43, 4  ;;  %v8234_v30 = vrot.slane %v8233_v54, 4  ;;  %v8247_v1 = vsel %vm378_vm1, %v10902_v39, 0.0  ;;  %v7839_v5 = vpop.f32.mrb[18].mxu1  ;;  %8140 = vmatpush1.bf16.msra.mxu1 %v9832_v53  ;;  %v7676_v31 = vpop.f32.mrb[19].mxu0  ;;  %7977 = vmatprep.subr.bf16.mxu0 %v9847_v9  ;;  %v1657_v29 = vld [vmem:[#allocation10 + $0x1d78] sm:$0xff] }
 0x54b   :  { %v8228_v4 = vadd.f32 %v8227_v45, %v8226_v60  ;;  %v8248_v63 = vrot.slane %v8247_v1, 4  ;;  %v7840_v42 = vpop.f32.mrb[19].mxu1  ;;  %8141 = vmatprep.subr.bf16.mxu1 %v9849_v47  ;;  %v9880_v47 = vcombine.low %v1617_v26, %v1625_v14  ;;  %v9896_v31 = vcombine.low %v1633_v32, %v1641_v28  ;;  %v1673_v26 = vld [vmem:[#allocation10 + $0x1df8] sm:$0xff] }
 0x54c   :  { %v8242_v57 = vadd.f32 %v8241_v22, %v8240_v43  ;;  %v8235_v56 = vadd.f32 %v8234_v30, %v8233_v54  ;;  %v1649_v54 = vld [vmem:[#allocation10 + $0x1d38] sm:$0xff]  ;;  %v9894_v30 = vcombine.low %v1632_v61, %v1640_v15 }
 0x54d   :  { %v8229_v36 = vrot.slane %v8228_v4, 2  ;;  %v8249_v37 = vadd.f32 %v8248_v63, %v8247_v1  ;;  %7978 = vmatpush1.bf16.msra.mxu0 %v9846_v6  ;;  %v9897_v6 = vcombine.high %v1633_v32, %v1641_v28  ;;  %v9913_v42 = vcombine.high %v1649_v54, %v1657_v29  ;;  %v1681_v61 = vld [vmem:[#allocation10 + $0x1e38] sm:$0xff] }
 0x54e   :  { %v8243_v40 = vrot.slane %v8242_v57, 2  ;;  %v8236_v7 = vrot.slane %v8235_v56, 2  ;;  %8142 = vmatpush1.bf16.msra.mxu1 %v9848_v33  ;;  %7979 = vmatprep.subr.bf16.mxu0 %v9863_v0  ;;  %v9911_v0 = vcombine.high %v1648_v52, %v1656_v25  ;;  %v1689_v15 = vld [vmem:[#allocation10 + $0x1e78] sm:$0xff] }
 0x54f   :  { %v8230_v62 = vadd.f32 %v8229_v36, %v8228_v4  ;;  %v8250_v10 = vrot.slane %v8249_v37, 2  ;;  %8143 = vmatprep.subr.bf16.mxu1 %v9865_v19  ;;  %v1664_v19 = vld [vmem:[#allocation10 + $0x1db0] sm:$0xff] }
 0x550   :  { %v8244_v18 = vadd.f32 %v8243_v40, %v8242_v57  ;;  %v8237_v35 = vadd.f32 %v8236_v7, %v8235_v56  ;;  %v1665_v56 = vld [vmem:[#allocation10 + $0x1db8] sm:$0xff]  ;;  %v9926_v28 = vcombine.low %v1664_v19, %v1672_v49 }
 0x551   :  { %v8231_v12 = vrot.slane %v8230_v62, 1  ;;  %v8251_v17 = vadd.f32 %v8250_v10, %v8249_v37  ;;  %7980 = vmatpush1.bf16.msra.mxu0 %v9862_v2  ;;  %v9912_v37 = vcombine.low %v1649_v54, %v1657_v29 }
 0x552   :  { %v8245_v53 = vrot.slane %v8244_v18, 1  ;;  %v8238_v9 = vrot.slane %v8237_v35, 1  ;;  %8144 = vmatpush1.bf16.msra.mxu1 %v9864_v44  ;;  %7981 = vmatprep.subr.bf16.mxu0 %v9879_v8  ;;  %v1680_v44 = vld [vmem:[#allocation10 + $0x1e30] sm:$0xff] }
 0x553   :  { %v8232_v58 = vadd.f32 %v8231_v12, %v8230_v62  ;;  %v8252_v60 = vrot.slane %v8251_v17, 1  ;;  %8145 = vmatprep.subr.bf16.mxu1 %v9881_v51  ;;  %v1688_v8 = vld [vmem:[#allocation10 + $0x1e70] sm:$0xff] }
 0x554   :  { %v8246_v45 = vadd.f32 %v8245_v53, %v8244_v18  ;;  %v8239_v43 = vadd.f32 %v8238_v9, %v8237_v35  ;;  %v9943_v53 = vcombine.high %v1680_v44, %v1688_v8  ;;  %v9942_v29 = vcombine.low %v1680_v44, %v1688_v8  ;;  %v1728_v8 = vld [vmem:[#allocation10 + $0x1fb0] sm:$0xff] }
 0x555   :  { %v8290_v33 = vmul.f32 0.25, %v8232_v58  ;;  %v8253_v22 = vadd.f32 %v8252_v60, %v8251_v17  ;;  %7982 = vmatpush1.bf16.msra.mxu0 %v9878_v11  ;;  %v9928_v11 = vcombine.low %v1665_v56, %v1673_v26  ;;  %v1696_v58 = vld [vmem:[#allocation10 + $0x1eb0] sm:$0xff] }
 0x556   :  { %v8292_v1 = vmul.f32 0.25, %v8246_v45  ;;  %v8291_v5 = vmul.f32 0.25, %v8239_v43  ;;  %8146 = vmatpush1.bf16.msra.mxu1 %v9880_v47  ;;  %7983 = vmatprep.subr.bf16.mxu0 %v9895_v38  ;;  %v9945_v38 = vcombine.high %v1681_v61, %v1689_v15  ;;  %v1704_v60 = vld [vmem:[#allocation10 + $0x1ef0] sm:$0xff]  ;;  %v1705_v45 = vld [vmem:[#allocation10 + $0x1ef8] sm:$0xff] }
 0x557   :  { %v10907_v4 = vsub.f32 %v10890_v34, %v8290_v33  ;;  %v8293_v63 = vmul.f32 0.25, %v8253_v22  ;;  %8147 = vmatprep.subr.bf16.mxu1 %v9897_v6  ;;  %v9910_v34 = vcombine.low %v1648_v52, %v1656_v25  ;;  %v1697_v25 = vld [vmem:[#allocation10 + $0x1eb8] sm:$0xff] }
 0x558   :  { %v10910_v59 = vsub.f32 %v10894_v46, %v8292_v1  ;;  %v10913_v57 = vsub.f32 %v10896_v3, %v8291_v5  ;;  %v9927_v3 = vcombine.high %v1664_v19, %v1672_v49  ;;  %v9959_v1 = vcombine.high %v1696_v58, %v1704_v60 }
 0x559   :  { %v8322_v14 = vmul.f32 %v10907_v4, %v10907_v4  ;;  %v10918_v36 = vsub.f32 %v10902_v39, %v8293_v63  ;;  %7984 = vmatpush1.bf16.msra.mxu0 %v9894_v30  ;;  %v9929_v39 = vcombine.high %v1665_v56, %v1673_v26  ;;  %v9944_v30 = vcombine.low %v1681_v61, %v1689_v15  ;;  %v1712_v63 = vld [vmem:[#allocation10 + $0x1f30] sm:$0xff]  ;;  %v1713_v56 = vld [vmem:[#allocation10 + $0x1f38] sm:$0xff] }
 0x55a   :  { %v8324_v2 = vmul.f32 %v10910_v59, %v10910_v59  ;;  %v8323_v46 = vmul.f32 %v10913_v57, %v10913_v57  ;;  %8148 = vmatpush1.bf16.msra.mxu1 %v9896_v31  ;;  %7985 = vmatprep.subr.bf16.mxu0 %v9911_v0  ;;  %v9961_v0 = vcombine.high %v1697_v25, %v1705_v45  ;;  %v1721_v26 = vld [vmem:[#allocation10 + $0x1f78] sm:$0xff] }
 0x55b   :  { %v8386_v40 = vsel %vm378_vm1, %v8322_v14, 0.0  ;;  %v8325_v7 = vmul.f32 %v10918_v36, %v10918_v36  ;;  %8149 = vmatprep.subr.bf16.mxu1 %v9913_v42  ;;  %v1720_v42 = vld [vmem:[#allocation10 + $0x1f70] sm:$0xff]  ;;  %v9977_v44 = vcombine.high %v1713_v56, %v1721_v26  ;;  %v1729_v61 = vld [vmem:[#allocation10 + $0x1fb8] sm:$0xff] }
 0x55c   :  { %v8387_v62 = vrot.slane %v8386_v40, 4  ;;  %v8400_v10 = vsel %vm378_vm1, %v8324_v2, 0.0  ;;  %v8393_v51 = vsel %vm378_vm1, %v8323_v46, 0.0  ;;  %v1737_v15 = vld [vmem:[#allocation10 + $0x1ff8] sm:$0xff] }
 0x55d   :  { %v8401_v18 = vrot.slane %v8400_v10, 4  ;;  %v8394_v35 = vrot.slane %v8393_v51, 4  ;;  %v8407_v32 = vsel %vm378_vm1, %v8325_v7, 0.0  ;;  %7986 = vmatpush1.bf16.msra.mxu0 %v9910_v34 }
 0x55e   :  { %v8388_v12 = vadd.f32 %v8387_v62, %v8386_v40  ;;  %v8408_v17 = vrot.slane %v8407_v32, 4  ;;  %8150 = vmatpush1.bf16.msra.mxu1 %v9912_v37  ;;  %7987 = vmatprep.subr.bf16.mxu0 %v9927_v3  ;;  %v9958_v37 = vcombine.low %v1696_v58, %v1704_v60  ;;  %v9960_v3 = vcombine.low %v1697_v25, %v1705_v45  ;;  %v1736_v62 = vld [vmem:[#allocation10 + $0x1ff0] sm:$0xff] }
 0x55f   :  { %v8402_v9 = vadd.f32 %v8401_v18, %v8400_v10  ;;  %v8395_v47 = vadd.f32 %v8394_v35, %v8393_v51  ;;  %8151 = vmatprep.subr.bf16.mxu1 %v9929_v39  ;;  %v9975_v40 = vcombine.high %v1712_v63, %v1720_v42  ;;  %v9990_v58 = vcombine.low %v1728_v8, %v1736_v62 }
 0x560   :  { %v8389_v6 = vrot.slane %v8388_v12, 2  ;;  %v8409_v52 = vadd.f32 %v8408_v17, %v8407_v32  ;;  %v9974_v32 = vcombine.low %v1712_v63, %v1720_v42  ;;  %v9976_v17 = vcombine.low %v1713_v56, %v1721_v26 }
 0x561   :  { %v8403_v43 = vrot.slane %v8402_v9, 2  ;;  %v8396_v54 = vrot.slane %v8395_v47, 2  ;;  %7988 = vmatpush1.bf16.msra.mxu0 %v9926_v28  ;;  %v9992_v60 = vcombine.low %v1729_v61, %v1737_v15 }
 0x562   :  { %v8390_v33 = vadd.f32 %v8389_v6, %v8388_v12  ;;  %v8410_v22 = vrot.slane %v8409_v52, 2  ;;  %8152 = vmatpush1.bf16.msra.mxu1 %v9928_v11  ;;  %7989 = vmatprep.subr.bf16.mxu0 %v9943_v53  ;;  %v9991_v11 = vcombine.high %v1728_v8, %v1736_v62 }
 0x563   :  { %v8404_v5 = vadd.f32 %v8403_v43, %v8402_v9  ;;  %v8397_v31 = vadd.f32 %v8396_v54, %v8395_v47  ;;  %8153 = vmatprep.subr.bf16.mxu1 %v9945_v38  ;;  %v9993_v47 = vcombine.high %v1729_v61, %v1737_v15 }
 0x564   :  { %v8391_v19 = vrot.slane %v8390_v33, 1  ;;  %v8411_v49 = vadd.f32 %v8410_v22, %v8409_v52 }
 0x565   :  { %v8405_v14 = vrot.slane %v8404_v5, 1  ;;  %v8398_v34 = vrot.slane %v8397_v31, 1  ;;  %7990 = vmatpush1.bf16.msra.mxu0 %v9942_v29 }
 0x566   :  { %v8392_v2 = vadd.f32 %v8391_v19, %v8390_v33  ;;  %v8412_v46 = vrot.slane %v8411_v49, 1  ;;  %8154 = vmatpush1.bf16.msra.mxu1 %v9944_v30  ;;  %7991 = vmatprep.subr.bf16.mxu0 %v9959_v1 }
 0x567   :  { %v8406_v7 = vadd.f32 %v8405_v14, %v8404_v5  ;;  %v8399_v39 = vadd.f32 %v8398_v34, %v8397_v31  ;;  %8155 = vmatprep.subr.bf16.mxu1 %v9961_v0 }
 0x568   :  { %v8450_v10 = vmul.f32 0.25, %v8392_v2  ;;  %v8413_v51 = vadd.f32 %v8412_v46, %v8411_v49 }
 0x569   :  { %v8452_v18 = vmul.f32 0.25, %v8406_v7  ;;  %v8451_v35 = vmul.f32 0.25, %v8399_v39  ;;  %7992 = vmatpush1.bf16.msra.mxu0 %v9958_v37 }
 0x56a   :  { %v8468_v28 = vadd.f32 1e-05, %v8450_v10  ;;  %v8453_v12 = vmul.f32 0.25, %v8413_v51  ;;  %8156 = vmatpush1.bf16.msra.mxu1 %v9960_v3  ;;  %7993 = vmatprep.subr.bf16.mxu0 %v9975_v40 }
 0x56b   :  { %v8470_v53 = vadd.f32 1e-05, %v8452_v18  ;;  %v8469_v9 = vadd.f32 1e-05, %v8451_v35  ;;  %8157 = vmatprep.subr.bf16.mxu1 %v9977_v44 }
 0x56c   :  { %10145 = vrsqrt.f32 %v8468_v28  ;;  %v8471_v38 = vadd.f32 1e-05, %v8453_v12 }
 0x56d   :  { %10147 = vrsqrt.f32 %v8470_v53  ;;  %7994 = vmatpush1.bf16.msra.mxu0 %v9974_v32 }
 0x56e   :  { %10149 = vrsqrt.f32 %v8469_v9  ;;  %8158 = vmatpush1.bf16.msra.mxu1 %v9976_v17  ;;  %7995 = vmatprep.subr.bf16.mxu0 %v9991_v11 }
 0x56f   :  { %10151 = vrsqrt.f32 %v8471_v38  ;;  %8159 = vmatprep.subr.bf16.mxu1 %v9993_v47 }
 0x571   :  { %7996 = vmatpush1.bf16.msra.mxu0 %v9990_v58 }
 0x572   :  { %8160 = vmatpush1.bf16.msra.mxu1 %v9992_v60 }
 0x574   :  { %7998 = vmatmul.mubr.bf16.vlgmr.msra.gmra.mrb[20].mxu0 %v10688_v41 }
 0x575   :  { %8162 = vmatmul.mubr.bf16.vlgmr.msra.gmra.mrb[20].mxu1 %v10688_v41 }
 0x576   :  { %v10146_v6 = vpop.eup %10145 }
 0x577   :  { %v10148_v52 = vpop.eup %10147 }
 0x578   :  { %v10150_v25 = vpop.eup %10149 }
 0x579   :  { %v10152_v45 = vpop.eup %10151  ;;  %v8557_v43 = vcombine.low %v10146_v6, %v10150_v25 }
 0x57a   :  { %v8558_v54 = vcombine.low %v10148_v52, %v10152_v45 }
 0x57b   :  { %v10933_v29 = vrot.slane %v8557_v43, %v10573_v55 }
 0x57c   :  { %v10936_v33 = vrot.slane %v8558_v54, %v10573_v55 }
 0x57e   :  { %v8589_v22 = vcombine.low %v10933_v29, %v10936_v33 }
 0x647   :  { %v7999_v30 = vpop.f32.mrb[20].mxu0 }
 0x648   :  { %v8254_v1 = vsel %vm378_vm1, %v7999_v30, 0.0  ;;  %v8163_v5 = vpop.f32.mrb[20].mxu1  ;;  %v8001_v41 = vpop.f32.mrb[21].mxu0 }
 0x649   :  { %v8255_v31 = vrot.slane %v8254_v1, 4  ;;  %v8268_v0 = vsel %vm378_vm1, %v8163_v5, 0.0  ;;  %v8261_v63 = vsel %vm378_vm1, %v8001_v41, 0.0  ;;  %v8165_v42 = vpop.f32.mrb[21].mxu1  ;;  %v8003_v19 = vpop.f32.mrb[22].mxu0 }
 0x64a   :  { %v8269_v49 = vrot.slane %v8268_v0, 4  ;;  %v8262_v56 = vrot.slane %v8261_v63, 4  ;;  %v8275_v26 = vsel %vm378_vm1, %v8165_v42, 0.0  ;;  %v8167_v14 = vpop.f32.mrb[22].mxu1  ;;  %v8004_v34 = vpop.f32.mrb[23].mxu0 }
 0x64b   :  { %v8256_v37 = vadd.f32 %v8255_v31, %v8254_v1  ;;  %v8276_v2 = vrot.slane %v8275_v26, 4  ;;  %v8168_v46 = vpop.f32.mrb[23].mxu1 }
 0x64c   :  { %v8270_v3 = vadd.f32 %v8269_v49, %v8268_v0  ;;  %v8263_v40 = vadd.f32 %v8262_v56, %v8261_v63 }
 0x64d   :  { %v8257_v7 = vrot.slane %v8256_v37, 2  ;;  %v8277_v39 = vadd.f32 %v8276_v2, %v8275_v26 }
 0x64e   :  { %v8271_v44 = vrot.slane %v8270_v3, 2  ;;  %v8264_v8 = vrot.slane %v8263_v40, 2 }
 0x64f   :  { %v8258_v62 = vadd.f32 %v8257_v7, %v8256_v37  ;;  %v8278_v10 = vrot.slane %v8277_v39, 2 }
 0x650   :  { %v8272_v51 = vadd.f32 %v8271_v44, %v8270_v3  ;;  %v8265_v61 = vadd.f32 %v8264_v8, %v8263_v40 }
 0x651   :  { %v8259_v15 = vrot.slane %v8258_v62, 1  ;;  %v8279_v18 = vadd.f32 %v8278_v10, %v8277_v39 }
 0x652   :  { %v8273_v35 = vrot.slane %v8272_v51, 1  ;;  %v8266_v32 = vrot.slane %v8265_v61, 1 }
 0x653   :  { %v8260_v28 = vadd.f32 %v8259_v15, %v8258_v62  ;;  %v8280_v12 = vrot.slane %v8279_v18, 1 }
 0x654   :  { %v8274_v17 = vadd.f32 %v8273_v35, %v8272_v51  ;;  %v8267_v11 = vadd.f32 %v8266_v32, %v8265_v61 }
 0x655   :  { %v8294_v53 = vmul.f32 0.25, %v8260_v28  ;;  %v8281_v9 = vadd.f32 %v8280_v12, %v8279_v18 }
 0x656   :  { %v8296_v47 = vmul.f32 0.25, %v8274_v17  ;;  %v8295_v38 = vmul.f32 0.25, %v8267_v11 }
 0x657   :  { %v10944_v58 = vsub.f32 %v7999_v30, %v8294_v53  ;;  %v8297_v60 = vmul.f32 0.25, %v8281_v9 }
 0x658   :  { %v10946_v6 = vsub.f32 %v8163_v5, %v8296_v47  ;;  %v10948_v52 = vsub.f32 %v8001_v41, %v8295_v38 }
 0x659   :  { %v8326_v25 = vmul.f32 %v10944_v58, %v10944_v58  ;;  %v10952_v45 = vsub.f32 %v8165_v42, %v8297_v60 }
 0x65a   :  { %v8328_v43 = vmul.f32 %v10946_v6, %v10946_v6  ;;  %v8327_v54 = vmul.f32 %v10948_v52, %v10948_v52 }
 0x65b   :  { %v8414_v1 = vsel %vm378_vm1, %v8326_v25, 0.0  ;;  %v8329_v30 = vmul.f32 %v10952_v45, %v10952_v45 }
 0x65c   :  { %v8415_v5 = vrot.slane %v8414_v1, 4  ;;  %v8428_v41 = vsel %vm378_vm1, %v8328_v43, 0.0  ;;  %v8421_v31 = vsel %vm378_vm1, %v8327_v54, 0.0 }
 0x65d   :  { %v8429_v0 = vrot.slane %v8428_v41, 4  ;;  %v8422_v63 = vrot.slane %v8421_v31, 4  ;;  %v8435_v42 = vsel %vm378_vm1, %v8329_v30, 0.0 }
 0x65e   :  { %v8416_v19 = vadd.f32 %v8415_v5, %v8414_v1  ;;  %v8436_v49 = vrot.slane %v8435_v42, 4 }
 0x65f   :  { %v8430_v56 = vadd.f32 %v8429_v0, %v8428_v41  ;;  %v8423_v26 = vadd.f32 %v8422_v63, %v8421_v31  ;;  %v8597_v41 = vrot.slane %v8589_v22, %v10573_v55  ;;  %v8709_v0 = vld [vmem:[#allocation13 + $0x8] sm:$0xff]  ;;  %v8459_v63 = vld [vmem:[#allocation11 + $0x8] sm:$0xff] }
 0x660   :  { %v8417_v14 = vrot.slane %v8416_v19, 2  ;;  %v8437_v34 = vadd.f32 %v8436_v49, %v8435_v42  ;;  %v8763_v29 = vrot.slane %v8709_v0, %v10604_v27 }
 0x661   :  { %v8431_v37 = vrot.slane %v8430_v56, 2  ;;  %v8424_v2 = vrot.slane %v8423_v26, 2 }
 0x662   :  { %v8418_v46 = vadd.f32 %v8417_v14, %v8416_v19  ;;  %v8438_v3 = vrot.slane %v8437_v34, 2  ;;  %v8771_v19 = vrot.slane %v8709_v0, %v10623_v50  ;;  %v8751_v14 = vrot.slane %v8709_v0, %v10587_v20 }
 0x663   :  { %v8432_v40 = vadd.f32 %v8431_v37, %v8430_v56  ;;  %v8425_v7 = vadd.f32 %v8424_v2, %v8423_v26  ;;  %v8775_v56 = vrot.slane %v8709_v0, %v10582_v16  ;;  %v8747_v26 = vrot.slane %v8709_v0, %v10590_v13 }
 0x664   :  { %v8419_v39 = vrot.slane %v8418_v46, 1  ;;  %v8439_v44 = vadd.f32 %v8438_v3, %v8437_v34  ;;  %v8755_v34 = vrot.slane %v8709_v0, %v10596_v23  ;;  %v8759_v37 = vrot.slane %v8709_v0, %v10593_v21 }
 0x665   :  { %v8433_v8 = vrot.slane %v8432_v40, 1  ;;  %v8426_v62 = vrot.slane %v8425_v7, 1 }
 0x666   :  { %v8420_v10 = vadd.f32 %v8419_v39, %v8418_v46  ;;  %v8440_v51 = vrot.slane %v8439_v44, 1 }
 0x667   :  { %v8434_v61 = vadd.f32 %v8433_v8, %v8432_v40  ;;  %v8427_v15 = vadd.f32 %v8426_v62, %v8425_v7 }
 0x668   :  { %v8454_v18 = vmul.f32 0.25, %v8420_v10  ;;  %v8441_v35 = vadd.f32 %v8440_v51, %v8439_v44 }
 0x669   :  { %v8456_v32 = vmul.f32 0.25, %v8434_v61  ;;  %v8455_v28 = vmul.f32 0.25, %v8427_v15 }
 0x66a   :  { %v8472_v12 = vadd.f32 1e-05, %v8454_v18  ;;  %v8457_v17 = vmul.f32 0.25, %v8441_v35 }
 0x66b   :  { %v8474_v11 = vadd.f32 1e-05, %v8456_v32  ;;  %v8473_v53 = vadd.f32 1e-05, %v8455_v28 }
 0x66c   :  { %10153 = vrsqrt.f32 %v8472_v12  ;;  %v8475_v9 = vadd.f32 1e-05, %v8457_v17 }
 0x66d   :  { %10155 = vrsqrt.f32 %v8474_v11 }
 0x66e   :  { %10157 = vrsqrt.f32 %v8473_v53 }
 0x66f   :  { %10159 = vrsqrt.f32 %v8475_v9 }
 0x676   :  { %v10154_v47 = vpop.eup %10153 }
 0x677   :  { %v10156_v38 = vpop.eup %10155 }
 0x678   :  { %v10158_v60 = vpop.eup %10157 }
 0x679   :  { %v10160_v25 = vpop.eup %10159  ;;  %v8559_v43 = vcombine.low %v10154_v47, %v10158_v60 }
 0x67a   :  { %v8560_v54 = vcombine.low %v10156_v38, %v10160_v25 }
 0x67b   :  { %v8581_v1 = vrot.slane %v8559_v43, %v10573_v55 }
 0x67c   :  { %v8588_v30 = vrot.slane %v8560_v54, %v10573_v55 }
 0x67e   :  { %v8590_v5 = vcombine.low %v8581_v1, %v8588_v30 }
 0x680   :  { %v8604_v31 = vrot.slane %v8590_v5, %v10573_v55  ;;  %v8767_v55 = vrot.slane %v8709_v0, %v10599_v24 }
 0x682   :  { %v8605_v42 = vcombine.low %v8597_v41, %v8604_v31 }
 0x684   :  { %v8609_v49 = vmul.f32 %v8605_v42, %v8459_v63 }
 0x686   :  { %v8671_v33 = vrot.slane %v8609_v49, %v10623_v50  ;;  %v8675_v22 = vrot.slane %v8609_v49, %v10582_v16  ;;  %v8647_v2 = vrot.slane %v8609_v49, %v10590_v13  ;;  %v8651_v46 = vrot.slane %v8609_v49, %v10587_v20 }
 0x687   :  { %v8655_v3 = vrot.slane %v8609_v49, %v10596_v23  ;;  %v8659_v40 = vrot.slane %v8609_v49, %v10593_v21  ;;  %v8663_v7 = vrot.slane %v8609_v49, %v10604_v27  ;;  %v8667_v39 = vrot.slane %v8609_v49, %v10599_v24 }
 0x688   :  { %v8706_v44 = vmul.f32 %v8671_v33, %v10946_v6  ;;  %v8707_v8 = vmul.f32 %v8675_v22, %v10952_v45  ;;  %v8700_v50 = vmul.f32 %v8647_v2, %v10907_v4  ;;  %v8701_v16 = vmul.f32 %v8651_v46, %v10913_v57 }
 0x689   :  { %v8702_v13 = vmul.f32 %v8655_v3, %v10910_v59  ;;  %v8703_v20 = vmul.f32 %v8659_v40, %v10918_v36  ;;  %v8704_v23 = vmul.f32 %v8663_v7, %v10944_v58  ;;  %v8705_v21 = vmul.f32 %v8667_v39, %v10948_v52 }
 0x68a   :  { %v8806_v62 = vadd.f32 %v8771_v19, %v8706_v44  ;;  %v8807_v27 = vadd.f32 %v8775_v56, %v8707_v8  ;;  %v8800_v10 = vadd.f32 %v8747_v26, %v8700_v50  ;;  %v8801_v24 = vadd.f32 %v8751_v14, %v8701_v16 }
 0x68b   :  { %v8802_v51 = vadd.f32 %v8755_v34, %v8702_v13  ;;  %v8803_v6 = vadd.f32 %v8759_v37, %v8703_v20  ;;  %v8804_v61 = vadd.f32 %v8763_v29, %v8704_v23  ;;  %v8805_v45 = vadd.f32 %v8767_v55, %v8705_v21 }
 0x68c   :  { %v8822_v15 = vmax.f32 %v8806_v62, 0.0  ;;  %v8823_v4 = vmax.f32 %v8807_v27, 0.0  ;;  %v8816_v18 = vmax.f32 %v8800_v10, 0.0  ;;  %v8817_v57 = vmax.f32 %v8801_v24, 0.0 }
 0x68d   :  { %v8818_v35 = vmax.f32 %v8802_v51, 0.0  ;;  %v8819_v59 = vmax.f32 %v8803_v6, 0.0  ;;  %v8820_v32 = vmax.f32 %v8804_v61, 0.0  ;;  %v8821_v36 = vmax.f32 %v8805_v45, 0.0 }
 0x68e   :  { %v10001_v28 = vpack.c.bf16 %v8823_v4, %v8822_v15  ;;  %v9998_v58 = vpack.c.bf16 %v8817_v57, %v8816_v18 }
 0x68f   :  { %v9999_v12 = vpack.c.bf16 %v8819_v59, %v8818_v35  ;;  %v10000_v52 = vpack.c.bf16 %v8821_v36, %v8820_v32 }
 0x690   :  { %v8922_v17 = vrot.slane %v10001_v28, %v10870_v48  ;;  %v8898_v11 = vrot.slane %v9998_v58, %v10870_v48 }
 0x691   :  { %v8905_v53 = vrot.slane %v9999_v12, %v10870_v48  ;;  %v8915_v9 = vrot.slane %v10000_v52, %v10870_v48 }
 0x693   :  { %v8906_v47 = vcombine.low %v8898_v11, %v8905_v53  ;;  %v8923_v38 = vcombine.low %v8915_v9, %v8922_v17 }
 0x695   :  { %8930 = vst [vmem:[#allocation14 + $0x10] sm:$0xff] %v8906_v47  ;;  %8931 = vst [vmem:[#allocation14 + $0x18] sm:$0xff] %v8923_v38 }
 0x696   :  { %10326 = shalt.err (!%p10323_p4)
}
 0x697   :  { %s10327_s3 = scalar_lea.hbm %s11018_s7, 512 }
 0x698   :  { %p10328_p5 = scmp.ne.s32.totalorder %s11018_s7, %s10327_s3  ;;  %p10331_p6 = scmp.lt.u32.totalorder %s10327_s3, %s11018_s7 }
 0x69a   :  { %p10333_p7 = pnand %p10331_p6, %p10328_p5 }
 0x69c   :  { %10336 = shalt.err (!%p10333_p7)
}
 0x69d   :  { %8941 = dma.vmem_to_hbm [thread:$0]  %s8939_s10, 512, %s11018_s7, [#allocation4]  }
 0x69e   :  { %10345 = dma.done.wait [#allocation4], 512  }
 0x69f   :  { %10346 = vsyncadd [#allocation4], 4294966784 }
 0x6a0   :  { %8945 = vsyncpa [#allocation3], 1 }
 0x6a1   :  { %8946 = vsyncpa [#allocation6], 1 }
 0x6a2   :  { %8947 = vsyncpa [#allocation9], 1 }
 0x6a3   :  { %8948 = vsyncpa [#allocation12], 1 }
 0x6a4   :  { %8949 = vsyncpa [#allocation4], 1 }

</bundles_post_ra>
